<compile_context>
chip_gen: v7x
topology: tpu7x:2x2x1
jax: 0.10.0
libtpu: 0.0.40
codegen_flags: <defaults>
</compile_context>

<pallas_src>
import jax
import jax.numpy as jnp
import numpy as np
from jax import lax
from jax.experimental import pallas as pl
from jax.experimental.pallas import tpu as pltpu


# ---------------------------------------------------------------------------
# Fused kernel: 1x1 down conv + 3 dilated dynamic-filter branches + concat +
#               fuse 3x3 conv (im2col matmul) + folded BN + ReLU.
# One grid step per batch element.
# ---------------------------------------------------------------------------
def make_trans_ddpm_kernel(H, W, xC):
    out_C = 4 * xC
    P = 5  # zero border large enough for the d=5 dilated branch

    def kernel(
        x_ref,       # [1, H*W, out_C]   bf16   raw input (channels-last, flattened)
        y0_ref,      # [1, 9, H, W, xC]  bf16
        y1_ref,      # [1, 9, H, W, xC]  bf16
        y2_ref,      # [1, 9, H, W, xC]  bf16
        w1_ref,      # [out_C, xC]       bf16   down_input weights
        b1_ref,      # [1, xC]           f32    down_input bias
        wf_ref,      # [9*out_C, out_C]  bf16   fuse conv weights (tap-major, ci-minor)
        scale_ref,   # [1, out_C]        f32    folded BN scale
        shift_ref,   # [1, out_C]        f32    folded BN shift
        o_ref,       # [1, H*W, out_C]   f32
        xpad_ref,    # scratch [H+2P, W+2P, xC]      f32
        catpad_ref,  # scratch [H+2, W+2, out_C]     f32
        imcol_ref,   # scratch [H, W, 9*out_C]       bf16
    ):
        f32 = jnp.float32
        b16 = jnp.bfloat16

        # ---- fused down_input 1x1 conv: [H*W, out_C] @ [out_C, xC] (bf16 -> f32) ----
        xd_flat = (
            jnp.dot(x_ref[0], w1_ref[...], preferred_element_type=jnp.float32)
            + b1_ref[...]
        )
        xd = xd_flat.reshape(H, W, xC)  # major-dim split only (layout preserving)

        # ---- refresh zero border of the padded-x scratch, write the interior ----
        xpad_ref[0:P, :, :] = jnp.zeros((P, W + 2 * P, xC), f32)
        xpad_ref[P + H:2 * P + H, :, :] = jnp.zeros((P, W + 2 * P, xC), f32)
        xpad_ref[P:P + H, 0:P, :] = jnp.zeros((H, P, xC), f32)
        xpad_ref[P:P + H, P + W:2 * P + W, :] = jnp.zeros((H, P, xC), f32)
        xpad_ref[P:P + H, P:P + W, :] = xd

        # ---- refresh 1-px zero border of the concat scratch; group 0 = xd ----
        catpad_ref[0:1, :, :] = jnp.zeros((1, W + 2, out_C), f32)
        catpad_ref[1 + H:2 + H, :, :] = jnp.zeros((1, W + 2, out_C), f32)
        catpad_ref[1:1 + H, 0:1, :] = jnp.zeros((H, 1, out_C), f32)
        catpad_ref[1:1 + H, 1 + W:2 + W, :] = jnp.zeros((H, 1, out_C), f32)
        catpad_ref[1:1 + H, 1:1 + W, 0:xC] = xd

        # ---- three dilated "dynamic filter" branches (VPU, f32) ----
        def branch(y_ref, d):
            acc = jnp.zeros((H, W, xC), jnp.float32)
            for ki in range(3):
                for kj in range(3):
                    k = ki * 3 + kj
                    r0 = P - d + ki * d
                    c0 = P - d + kj * d
                    shifted = xpad_ref[r0:r0 + H, c0:c0 + W, :]
                    acc = acc + shifted * y_ref[0, k].astype(jnp.float32)
            return acc

        # write each result into its concat slot as soon as it is ready
        catpad_ref[1:1 + H, 1:1 + W, 1 * xC:2 * xC] = branch(y0_ref, 1)
        catpad_ref[1:1 + H, 1:1 + W, 2 * xC:3 * xC] = branch(y1_ref, 3)
        catpad_ref[1:1 + H, 1:1 + W, 3 * xC:4 * xC] = branch(y2_ref, 5)

        # ---- fuse BasicConv2d: im2col gather + one MXU matmul + BN + ReLU ----
        for ki in range(3):
            for kj in range(3):
                k = ki * 3 + kj
                imcol_ref[:, :, k * out_C:(k + 1) * out_C] = (
                    catpad_ref[ki:ki + H, kj:kj + W, :].astype(b16)
                )
        slab = imcol_ref[...].reshape(H * W, 9 * out_C)  # major-dim merge only
        conv = jnp.dot(slab, wf_ref[...], preferred_element_type=jnp.float32)
        o_ref[0] = jnp.maximum(conv * scale_ref[...] + shift_ref[...], 0.0)

    return kernel


def ddpm_fused(x_flat, y0, y1, y2, w1m, b1, wf_im, scale, shift, *, H, W, xC):
    N = x_flat.shape[0]
    out_C = 4 * xC
    P = 5
    kernel = make_trans_ddpm_kernel(H, W, xC)
    return pl.pallas_call(
        kernel,
        out_shape=jax.ShapeDtypeStruct((N, H * W, out_C), jnp.float32),
        grid_spec=pltpu.PrefetchScalarGridSpec(
            num_scalar_prefetch=0,
            grid=(N,),
            in_specs=[
                pl.BlockSpec((1, H * W, out_C), lambda n: (n, 0, 0)),
                pl.BlockSpec((1, 9, H, W, xC), lambda n: (n, 0, 0, 0, 0)),
                pl.BlockSpec((1, 9, H, W, xC), lambda n: (n, 0, 0, 0, 0)),
                pl.BlockSpec((1, 9, H, W, xC), lambda n: (n, 0, 0, 0, 0)),
                pl.BlockSpec((out_C, xC), lambda n: (0, 0)),
                pl.BlockSpec((1, xC), lambda n: (0, 0)),
                pl.BlockSpec((9 * out_C, out_C), lambda n: (0, 0)),
                pl.BlockSpec((1, out_C), lambda n: (0, 0)),
                pl.BlockSpec((1, out_C), lambda n: (0, 0)),
            ],
            out_specs=pl.BlockSpec((1, H * W, out_C), lambda n: (n, 0, 0)),
            scratch_shapes=[
                pltpu.VMEM((H + 2 * P, W + 2 * P, xC), jnp.float32),
                pltpu.VMEM((H + 2, W + 2, out_C), jnp.float32),
                pltpu.VMEM((H, W, 9 * out_C), jnp.bfloat16),
            ],
        ),
        compiler_params=pltpu.CompilerParams(
            dimension_semantics=("parallel",),          # batch is independent (v7x 2 TCs)
            vmem_limit_bytes=64 * 1024 * 1024,
        ),
    )(x_flat, y0, y1, y2, w1m, b1, wf_im, scale, shift)


# ---------------------------------------------------------------------------
# Module-level forward (PyTorch NCHW interface; kernel uses channels-last)
# ---------------------------------------------------------------------------
def trans_ddpm_forward(x_nchw, y_list, params):
    N, out_C, H, W = x_nchw.shape
    xC = out_C // 4

    # x: NCHW -> [N, H*W, out_C]  (bf16 matmul operand)
    x_flat = (
        jnp.transpose(x_nchw, (0, 2, 3, 1))
        .reshape(N, H * W, out_C)
        .astype(jnp.bfloat16)
    )

    # y[i]: [N, xC*9, H, W] -> [N, xC, 9, H, W] -> [N, 9, H, W, xC]  (bf16)
    yts = [
        jnp.transpose(yi.reshape(N, xC, 9, H, W), (0, 2, 3, 4, 1)).astype(jnp.bfloat16)
        for yi in y_list
    ]

    # down_input weights: OIHW [xC, out_C, 1, 1] -> [out_C(in), xC(out)]
    w1m = jnp.transpose(params["w1"][:, :, 0, 0]).astype(jnp.bfloat16)
    b1 = params["b1"].reshape(1, xC).astype(jnp.float32)

    # fuse conv weights: OIHW [out_C, out_C, 3, 3] -> [tap*ci, co] = [9*out_C, out_C]
    wf_im = (
        jnp.transpose(params["wf"], (2, 3, 1, 0))
        .reshape(9 * out_C, out_C)
        .astype(jnp.bfloat16)
    )

    # eval-mode BatchNorm folded into scale/shift
    eps = 1e-5
    scale = (params["gamma"] / jnp.sqrt(params["var"] + eps)).reshape(1, out_C)
    shift = (params["beta"] - params["mean"] * scale[0]).reshape(1, out_C)

    out_flat = ddpm_fused(
        x_flat, yts[0], yts[1], yts[2], w1m, b1, wf_im,
        scale.astype(jnp.float32), shift.astype(jnp.float32),
        H=H, W=W, xC=xC,
    )
    # [N, H*W, out_C] -> NCHW
    return jnp.transpose(out_flat.reshape(N, H, W, out_C), (0, 3, 1, 2))


# ---------------------------------------------------------------------------
# Pure-JAX reference (NCHW, lax.conv, f32) for validation
# ---------------------------------------------------------------------------
def trans_ddpm_reference(x_nchw, y_list, params):
    N, out_C, H, W = x_nchw.shape
    xC = out_C // 4
    xd = lax.conv_general_dilated(
        x_nchw, params["w1"], (1, 1), "VALID",
        dimension_numbers=("NCHW", "OIHW", "NCHW"),
        precision=lax.Precision.HIGHEST,
    ) + params["b1"][None, :, None, None]

    results = []
    for yi, d in zip(y_list, (1, 3, 5)):
        y5 = yi.reshape(N, xC, 9, H, W)
        xpad = jnp.pad(xd, ((0, 0), (0, 0), (d, d), (d, d)))
        r = jnp.zeros((N, xC, H, W), jnp.float32)
        for ki in range(3):
            for kj in range(3):
                k = ki * 3 + kj
                r = r + xpad[:, :, ki * d:ki * d + H, kj * d:kj * d + W] * y5[:, :, k]
        results.append(r)

    cat = jnp.concatenate([xd] + results, axis=1)
    conv = lax.conv_general_dilated(
        cat, params["wf"], (1, 1), ((1, 1), (1, 1)),
        dimension_numbers=("NCHW", "OIHW", "NCHW"),
        precision=lax.Precision.HIGHEST,
    )
    eps = 1e-5
    scale = params["gamma"] / jnp.sqrt(params["var"] + eps)
    shift = params["beta"] - params["mean"] * scale
    bn = conv * scale[None, :, None, None] + shift[None, :, None, None]
    return jnp.maximum(bn, 0.0)


if __name__ == "__main__":
    key = jax.random.PRNGKey(0)
    N, out_C, H, W = 2, 16, 16, 16
    xC = out_C // 4

    keys = jax.random.split(key, 11)
    x = jax.random.normal(keys[0], (N, out_C, H, W), jnp.float32)
    y = [
        0.1 * jax.random.normal(keys[1 + i], (N, xC * 9, H, W), jnp.float32)
        for i in range(3)
    ]
    params = {
        "w1": 0.1 * jax.random.normal(keys[4], (xC, out_C, 1, 1), jnp.float32),
        "b1": 0.1 * jax.random.normal(keys[5], (xC,), jnp.float32),
        "wf": 0.05 * jax.random.normal(keys[6], (out_C, out_C, 3, 3), jnp.float32),
        "gamma": 1.0 + 0.1 * jax.random.normal(keys[7], (out_C,), jnp.float32),
        "beta": 0.1 * jax.random.normal(keys[8], (out_C,), jnp.float32),
        "mean": 0.1 * jax.random.normal(keys[9], (out_C,), jnp.float32),
        "var": 1.0 + 0.1 * jax.random.uniform(keys[10], (out_C,), jnp.float32),
    }

    out = trans_ddpm_forward(x, y, params)
    jax.block_until_ready(out)

    ref = trans_ddpm_reference(x, y, params)
    # tolerance reflects bf16 MXU operands / bf16-streamed y (f32 accumulation)
    np.testing.assert_allclose(np.asarray(out), np.asarray(ref), rtol=2e-2, atol=8e-3)

    print("KERNEL_OK")
</pallas_src>

<mosaic_0001>
module attributes {stable_mosaic.version = 11 : i64} {
  func.func @kernel(%arg0: i32, %arg1: memref<1x256x16xbf16, #tpu.memory_space<vmem>>, %arg2: memref<1x9x16x16x4xbf16, #tpu.memory_space<vmem>>, %arg3: memref<1x9x16x16x4xbf16, #tpu.memory_space<vmem>>, %arg4: memref<1x9x16x16x4xbf16, #tpu.memory_space<vmem>>, %arg5: memref<16x4xbf16, #tpu.memory_space<vmem>>, %arg6: memref<1x4xf32, #tpu.memory_space<vmem>>, %arg7: memref<144x16xbf16, #tpu.memory_space<vmem>>, %arg8: memref<1x16xf32, #tpu.memory_space<vmem>>, %arg9: memref<1x16xf32, #tpu.memory_space<vmem>>, %arg10: memref<1x256x16xf32, #tpu.memory_space<vmem>>, %arg11: memref<26x26x4xf32, #tpu.memory_space<vmem>>, %arg12: memref<18x18x16xf32, #tpu.memory_space<vmem>>, %arg13: memref<16x16x144xbf16, #tpu.memory_space<vmem>>) attributes {dimension_semantics = [#tpu.dimension_semantics<parallel>], iteration_bounds = array<i64: 2>, scalar_prefetch = 0 : i64, scratch_operands = 3 : i64, tpu.core_type = #tpu.core_type<tc>, window_params = [{transform_indices = @transform_0, window_bounds = array<i64: 1, 256, 16>}, {transform_indices = @transform_1, window_bounds = array<i64: 1, 9, 16, 16, 4>}, {transform_indices = @transform_2, window_bounds = array<i64: 1, 9, 16, 16, 4>}, {transform_indices = @transform_3, window_bounds = array<i64: 1, 9, 16, 16, 4>}, {pipeline_mode = #tpu.pipeline_mode<synchronous>, transform_indices = @transform_4, window_bounds = array<i64: 16, 4>}, {pipeline_mode = #tpu.pipeline_mode<synchronous>, transform_indices = @transform_5, window_bounds = array<i64: 1, 4>}, {pipeline_mode = #tpu.pipeline_mode<synchronous>, transform_indices = @transform_6, window_bounds = array<i64: 144, 16>}, {pipeline_mode = #tpu.pipeline_mode<synchronous>, transform_indices = @transform_7, window_bounds = array<i64: 1, 16>}, {pipeline_mode = #tpu.pipeline_mode<synchronous>, transform_indices = @transform_8, window_bounds = array<i64: 1, 16>}, {transform_indices = @transform_9, window_bounds = array<i64: 1, 256, 16>}]} {
    %c0 = arith.constant 0 : index
    %c0_0 = arith.constant 0 : index
    %c0_1 = arith.constant 0 : index
    %0 = vector.load %arg1[%c0, %c0_0, %c0_1] : memref<1x256x16xbf16, #tpu.memory_space<vmem>>, vector<1x256x16xbf16>
    %1 = vector.shape_cast %0 : vector<1x256x16xbf16> to vector<256x16xbf16>
    %c0_2 = arith.constant 0 : index
    %c0_3 = arith.constant 0 : index
    %2 = vector.load %arg5[%c0_2, %c0_3] : memref<16x4xbf16, #tpu.memory_space<vmem>>, vector<16x4xbf16>
    %cst = arith.constant dense<0.000000e+00> : vector<256x4xf32>
    %3 = tpu.matmul %1, %2, %cst {dimension_numbers = #tpu.dot_dimension_numbers<[1], [0], [0], [1], [0, 0, 1, 1], [], []>} : vector<256x16xbf16>, vector<16x4xbf16>, vector<256x4xf32> -> vector<256x4xf32>
    %c0_4 = arith.constant 0 : index
    %c0_5 = arith.constant 0 : index
    %4 = vector.load %arg6[%c0_4, %c0_5] : memref<1x4xf32, #tpu.memory_space<vmem>>, vector<1x4xf32>
    %5 = vector.broadcast %4 : vector<1x4xf32> to vector<256x4xf32>
    %6 = arith.addf %3, %5 : vector<256x4xf32>
    %7 = vector.shape_cast %6 : vector<256x4xf32> to vector<16x16x4xf32>
    %cst_6 = arith.constant 0.000000e+00 : f32
    %8 = vector.broadcast %cst_6 : f32 to vector<5x26x4xf32>
    %c0_7 = arith.constant 0 : index
    %c0_8 = arith.constant 0 : index
    %c0_9 = arith.constant 0 : index
    %9 = vector.load %arg11[%c0_7, %c0_8, %c0_9] : memref<26x26x4xf32, #tpu.memory_space<vmem>>, vector<5x26x4xf32>
    tpu.vector_store %arg11[%c0_7, %c0_8, %c0_9], %8 {strides = array<i32>} : memref<26x26x4xf32, #tpu.memory_space<vmem>>, vector<5x26x4xf32>,
    %cst_10 = arith.constant 0.000000e+00 : f32
    %10 = vector.broadcast %cst_10 : f32 to vector<5x26x4xf32>
    %c21 = arith.constant 21 : index
    %c0_11 = arith.constant 0 : index
    %c0_12 = arith.constant 0 : index
    %11 = vector.load %arg11[%c21, %c0_11, %c0_12] : memref<26x26x4xf32, #tpu.memory_space<vmem>>, vector<5x26x4xf32>
    tpu.vector_store %arg11[%c21, %c0_11, %c0_12], %10 {strides = array<i32>} : memref<26x26x4xf32, #tpu.memory_space<vmem>>, vector<5x26x4xf32>,
    %cst_13 = arith.constant 0.000000e+00 : f32
    %12 = vector.broadcast %cst_13 : f32 to vector<16x5x4xf32>
    %c5 = arith.constant 5 : index
    %c0_14 = arith.constant 0 : index
    %c0_15 = arith.constant 0 : index
    %13 = vector.load %arg11[%c5, %c0_14, %c0_15] : memref<26x26x4xf32, #tpu.memory_space<vmem>>, vector<16x5x4xf32>
    tpu.vector_store %arg11[%c5, %c0_14, %c0_15], %12 {strides = array<i32>} : memref<26x26x4xf32, #tpu.memory_space<vmem>>, vector<16x5x4xf32>,
    %cst_16 = arith.constant 0.000000e+00 : f32
    %14 = vector.broadcast %cst_16 : f32 to vector<16x5x4xf32>
    %c5_17 = arith.constant 5 : index
    %c21_18 = arith.constant 21 : index
    %c0_19 = arith.constant 0 : index
    %15 = vector.load %arg11[%c5_17, %c21_18, %c0_19] : memref<26x26x4xf32, #tpu.memory_space<vmem>>, vector<16x5x4xf32>
    tpu.vector_store %arg11[%c5_17, %c21_18, %c0_19], %14 {strides = array<i32>} : memref<26x26x4xf32, #tpu.memory_space<vmem>>, vector<16x5x4xf32>,
    %c5_20 = arith.constant 5 : index
    %c5_21 = arith.constant 5 : index
    %c0_22 = arith.constant 0 : index
    %16 = vector.load %arg11[%c5_20, %c5_21, %c0_22] : memref<26x26x4xf32, #tpu.memory_space<vmem>>, vector<16x16x4xf32>
    tpu.vector_store %arg11[%c5_20, %c5_21, %c0_22], %7 {strides = array<i32>} : memref<26x26x4xf32, #tpu.memory_space<vmem>>, vector<16x16x4xf32>,
    %cst_23 = arith.constant 0.000000e+00 : f32
    %17 = vector.broadcast %cst_23 : f32 to vector<1x18x16xf32>
    %c0_24 = arith.constant 0 : index
    %c0_25 = arith.constant 0 : index
    %c0_26 = arith.constant 0 : index
    %18 = vector.load %arg12[%c0_24, %c0_25, %c0_26] : memref<18x18x16xf32, #tpu.memory_space<vmem>>, vector<1x18x16xf32>
    tpu.vector_store %arg12[%c0_24, %c0_25, %c0_26], %17 {strides = array<i32>} : memref<18x18x16xf32, #tpu.memory_space<vmem>>, vector<1x18x16xf32>,
    %cst_27 = arith.constant 0.000000e+00 : f32
    %19 = vector.broadcast %cst_27 : f32 to vector<1x18x16xf32>
    %c17 = arith.constant 17 : index
    %c0_28 = arith.constant 0 : index
    %c0_29 = arith.constant 0 : index
    %20 = vector.load %arg12[%c17, %c0_28, %c0_29] : memref<18x18x16xf32, #tpu.memory_space<vmem>>, vector<1x18x16xf32>
    tpu.vector_store %arg12[%c17, %c0_28, %c0_29], %19 {strides = array<i32>} : memref<18x18x16xf32, #tpu.memory_space<vmem>>, vector<1x18x16xf32>,
    %cst_30 = arith.constant 0.000000e+00 : f32
    %21 = vector.broadcast %cst_30 : f32 to vector<16x1x16xf32>
    %c1 = arith.constant 1 : index
    %c0_31 = arith.constant 0 : index
    %c0_32 = arith.constant 0 : index
    %22 = vector.load %arg12[%c1, %c0_31, %c0_32] : memref<18x18x16xf32, #tpu.memory_space<vmem>>, vector<16x1x16xf32>
    tpu.vector_store %arg12[%c1, %c0_31, %c0_32], %21 {strides = array<i32>} : memref<18x18x16xf32, #tpu.memory_space<vmem>>, vector<16x1x16xf32>,
    %cst_33 = arith.constant 0.000000e+00 : f32
    %23 = vector.broadcast %cst_33 : f32 to vector<16x1x16xf32>
    %c1_34 = arith.constant 1 : index
    %c17_35 = arith.constant 17 : index
    %c0_36 = arith.constant 0 : index
    %24 = vector.load %arg12[%c1_34, %c17_35, %c0_36] : memref<18x18x16xf32, #tpu.memory_space<vmem>>, vector<16x1x16xf32>
    tpu.vector_store %arg12[%c1_34, %c17_35, %c0_36], %23 {strides = array<i32>} : memref<18x18x16xf32, #tpu.memory_space<vmem>>, vector<16x1x16xf32>,
    %c1_37 = arith.constant 1 : index
    %c1_38 = arith.constant 1 : index
    %c0_39 = arith.constant 0 : index
    %25 = vector.load %arg12[%c1_37, %c1_38, %c0_39] : memref<18x18x16xf32, #tpu.memory_space<vmem>>, vector<16x16x4xf32>
    tpu.vector_store %arg12[%c1_37, %c1_38, %c0_39], %7 {strides = array<i32>} : memref<18x18x16xf32, #tpu.memory_space<vmem>>, vector<16x16x4xf32>,
    %cst_40 = arith.constant 0.000000e+00 : f32
    %26 = vector.broadcast %cst_40 : f32 to vector<16x16x4xf32>
    %c4 = arith.constant 4 : index
    %c4_41 = arith.constant 4 : index
    %c0_42 = arith.constant 0 : index
    %27 = vector.load %arg11[%c4, %c4_41, %c0_42] : memref<26x26x4xf32, #tpu.memory_space<vmem>>, vector<16x16x4xf32>
    %c0_43 = arith.constant 0 : index
    %c0_44 = arith.constant 0 : index
    %c0_45 = arith.constant 0 : index
    %c0_46 = arith.constant 0 : index
    %c0_47 = arith.constant 0 : index
    %28 = vector.load %arg2[%c0_43, %c0_44, %c0_45, %c0_46, %c0_47] : memref<1x9x16x16x4xbf16, #tpu.memory_space<vmem>>, vector<1x1x16x16x4xbf16>
    %29 = vector.shape_cast %28 : vector<1x1x16x16x4xbf16> to vector<16x16x4xbf16>
    %30 = arith.extf %29 : vector<16x16x4xbf16> to vector<16x16x4xf32>
    %31 = arith.mulf %27, %30 : vector<16x16x4xf32>
    %32 = arith.addf %26, %31 : vector<16x16x4xf32>
    %c4_48 = arith.constant 4 : index
    %c5_49 = arith.constant 5 : index
    %c0_50 = arith.constant 0 : index
    %33 = vector.load %arg11[%c4_48, %c5_49, %c0_50] : memref<26x26x4xf32, #tpu.memory_space<vmem>>, vector<16x16x4xf32>
    %c0_51 = arith.constant 0 : index
    %c1_52 = arith.constant 1 : index
    %c0_53 = arith.constant 0 : index
    %c0_54 = arith.constant 0 : index
    %c0_55 = arith.constant 0 : index
    %34 = vector.load %arg2[%c0_51, %c1_52, %c0_53, %c0_54, %c0_55] : memref<1x9x16x16x4xbf16, #tpu.memory_space<vmem>>, vector<1x1x16x16x4xbf16>
    %35 = vector.shape_cast %34 : vector<1x1x16x16x4xbf16> to vector<16x16x4xbf16>
    %36 = arith.extf %35 : vector<16x16x4xbf16> to vector<16x16x4xf32>
    %37 = arith.mulf %33, %36 : vector<16x16x4xf32>
    %38 = arith.addf %32, %37 : vector<16x16x4xf32>
    %c4_56 = arith.constant 4 : index
    %c6 = arith.constant 6 : index
    %c0_57 = arith.constant 0 : index
    %39 = vector.load %arg11[%c4_56, %c6, %c0_57] : memref<26x26x4xf32, #tpu.memory_space<vmem>>, vector<16x16x4xf32>
    %c0_58 = arith.constant 0 : index
    %c2 = arith.constant 2 : index
    %c0_59 = arith.constant 0 : index
    %c0_60 = arith.constant 0 : index
    %c0_61 = arith.constant 0 : index
    %40 = vector.load %arg2[%c0_58, %c2, %c0_59, %c0_60, %c0_61] : memref<1x9x16x16x4xbf16, #tpu.memory_space<vmem>>, vector<1x1x16x16x4xbf16>
    %41 = vector.shape_cast %40 : vector<1x1x16x16x4xbf16> to vector<16x16x4xbf16>
    %42 = arith.extf %41 : vector<16x16x4xbf16> to vector<16x16x4xf32>
    %43 = arith.mulf %39, %42 : vector<16x16x4xf32>
    %44 = arith.addf %38, %43 : vector<16x16x4xf32>
    %c5_62 = arith.constant 5 : index
    %c4_63 = arith.constant 4 : index
    %c0_64 = arith.constant 0 : index
    %45 = vector.load %arg11[%c5_62, %c4_63, %c0_64] : memref<26x26x4xf32, #tpu.memory_space<vmem>>, vector<16x16x4xf32>
    %c0_65 = arith.constant 0 : index
    %c3 = arith.constant 3 : index
    %c0_66 = arith.constant 0 : index
    %c0_67 = arith.constant 0 : index
    %c0_68 = arith.constant 0 : index
    %46 = vector.load %arg2[%c0_65, %c3, %c0_66, %c0_67, %c0_68] : memref<1x9x16x16x4xbf16, #tpu.memory_space<vmem>>, vector<1x1x16x16x4xbf16>
    %47 = vector.shape_cast %46 : vector<1x1x16x16x4xbf16> to vector<16x16x4xbf16>
    %48 = arith.extf %47 : vector<16x16x4xbf16> to vector<16x16x4xf32>
    %49 = arith.mulf %45, %48 : vector<16x16x4xf32>
    %50 = arith.addf %44, %49 : vector<16x16x4xf32>
    %c5_69 = arith.constant 5 : index
    %c5_70 = arith.constant 5 : index
    %c0_71 = arith.constant 0 : index
    %51 = vector.load %arg11[%c5_69, %c5_70, %c0_71] : memref<26x26x4xf32, #tpu.memory_space<vmem>>, vector<16x16x4xf32>
    %c0_72 = arith.constant 0 : index
    %c4_73 = arith.constant 4 : index
    %c0_74 = arith.constant 0 : index
    %c0_75 = arith.constant 0 : index
    %c0_76 = arith.constant 0 : index
    %52 = vector.load %arg2[%c0_72, %c4_73, %c0_74, %c0_75, %c0_76] : memref<1x9x16x16x4xbf16, #tpu.memory_space<vmem>>, vector<1x1x16x16x4xbf16>
    %53 = vector.shape_cast %52 : vector<1x1x16x16x4xbf16> to vector<16x16x4xbf16>
    %54 = arith.extf %53 : vector<16x16x4xbf16> to vector<16x16x4xf32>
    %55 = arith.mulf %51, %54 : vector<16x16x4xf32>
    %56 = arith.addf %50, %55 : vector<16x16x4xf32>
    %c5_77 = arith.constant 5 : index
    %c6_78 = arith.constant 6 : index
    %c0_79 = arith.constant 0 : index
    %57 = vector.load %arg11[%c5_77, %c6_78, %c0_79] : memref<26x26x4xf32, #tpu.memory_space<vmem>>, vector<16x16x4xf32>
    %c0_80 = arith.constant 0 : index
    %c5_81 = arith.constant 5 : index
    %c0_82 = arith.constant 0 : index
    %c0_83 = arith.constant 0 : index
    %c0_84 = arith.constant 0 : index
    %58 = vector.load %arg2[%c0_80, %c5_81, %c0_82, %c0_83, %c0_84] : memref<1x9x16x16x4xbf16, #tpu.memory_space<vmem>>, vector<1x1x16x16x4xbf16>
    %59 = vector.shape_cast %58 : vector<1x1x16x16x4xbf16> to vector<16x16x4xbf16>
    %60 = arith.extf %59 : vector<16x16x4xbf16> to vector<16x16x4xf32>
    %61 = arith.mulf %57, %60 : vector<16x16x4xf32>
    %62 = arith.addf %56, %61 : vector<16x16x4xf32>
    %c6_85 = arith.constant 6 : index
    %c4_86 = arith.constant 4 : index
    %c0_87 = arith.constant 0 : index
    %63 = vector.load %arg11[%c6_85, %c4_86, %c0_87] : memref<26x26x4xf32, #tpu.memory_space<vmem>>, vector<16x16x4xf32>
    %c0_88 = arith.constant 0 : index
    %c6_89 = arith.constant 6 : index
    %c0_90 = arith.constant 0 : index
    %c0_91 = arith.constant 0 : index
    %c0_92 = arith.constant 0 : index
    %64 = vector.load %arg2[%c0_88, %c6_89, %c0_90, %c0_91, %c0_92] : memref<1x9x16x16x4xbf16, #tpu.memory_space<vmem>>, vector<1x1x16x16x4xbf16>
    %65 = vector.shape_cast %64 : vector<1x1x16x16x4xbf16> to vector<16x16x4xbf16>
    %66 = arith.extf %65 : vector<16x16x4xbf16> to vector<16x16x4xf32>
    %67 = arith.mulf %63, %66 : vector<16x16x4xf32>
    %68 = arith.addf %62, %67 : vector<16x16x4xf32>
    %c6_93 = arith.constant 6 : index
    %c5_94 = arith.constant 5 : index
    %c0_95 = arith.constant 0 : index
    %69 = vector.load %arg11[%c6_93, %c5_94, %c0_95] : memref<26x26x4xf32, #tpu.memory_space<vmem>>, vector<16x16x4xf32>
    %c0_96 = arith.constant 0 : index
    %c7 = arith.constant 7 : index
    %c0_97 = arith.constant 0 : index
    %c0_98 = arith.constant 0 : index
    %c0_99 = arith.constant 0 : index
    %70 = vector.load %arg2[%c0_96, %c7, %c0_97, %c0_98, %c0_99] : memref<1x9x16x16x4xbf16, #tpu.memory_space<vmem>>, vector<1x1x16x16x4xbf16>
    %71 = vector.shape_cast %70 : vector<1x1x16x16x4xbf16> to vector<16x16x4xbf16>
    %72 = arith.extf %71 : vector<16x16x4xbf16> to vector<16x16x4xf32>
    %73 = arith.mulf %69, %72 : vector<16x16x4xf32>
    %74 = arith.addf %68, %73 : vector<16x16x4xf32>
    %c6_100 = arith.constant 6 : index
    %c6_101 = arith.constant 6 : index
    %c0_102 = arith.constant 0 : index
    %75 = vector.load %arg11[%c6_100, %c6_101, %c0_102] : memref<26x26x4xf32, #tpu.memory_space<vmem>>, vector<16x16x4xf32>
    %c0_103 = arith.constant 0 : index
    %c8 = arith.constant 8 : index
    %c0_104 = arith.constant 0 : index
    %c0_105 = arith.constant 0 : index
    %c0_106 = arith.constant 0 : index
    %76 = vector.load %arg2[%c0_103, %c8, %c0_104, %c0_105, %c0_106] : memref<1x9x16x16x4xbf16, #tpu.memory_space<vmem>>, vector<1x1x16x16x4xbf16>
    %77 = vector.shape_cast %76 : vector<1x1x16x16x4xbf16> to vector<16x16x4xbf16>
    %78 = arith.extf %77 : vector<16x16x4xbf16> to vector<16x16x4xf32>
    %79 = arith.mulf %75, %78 : vector<16x16x4xf32>
    %80 = arith.addf %74, %79 : vector<16x16x4xf32>
    %c1_107 = arith.constant 1 : index
    %c1_108 = arith.constant 1 : index
    %c4_109 = arith.constant 4 : index
    %81 = vector.load %arg12[%c1_107, %c1_108, %c4_109] : memref<18x18x16xf32, #tpu.memory_space<vmem>>, vector<16x16x4xf32>
    tpu.vector_store %arg12[%c1_107, %c1_108, %c4_109], %80 {strides = array<i32>} : memref<18x18x16xf32, #tpu.memory_space<vmem>>, vector<16x16x4xf32>,
    %cst_110 = arith.constant 0.000000e+00 : f32
    %82 = vector.broadcast %cst_110 : f32 to vector<16x16x4xf32>
    %c2_111 = arith.constant 2 : index
    %c2_112 = arith.constant 2 : index
    %c0_113 = arith.constant 0 : index
    %83 = vector.load %arg11[%c2_111, %c2_112, %c0_113] : memref<26x26x4xf32, #tpu.memory_space<vmem>>, vector<16x16x4xf32>
    %c0_114 = arith.constant 0 : index
    %c0_115 = arith.constant 0 : index
    %c0_116 = arith.constant 0 : index
    %c0_117 = arith.constant 0 : index
    %c0_118 = arith.constant 0 : index
    %84 = vector.load %arg3[%c0_114, %c0_115, %c0_116, %c0_117, %c0_118] : memref<1x9x16x16x4xbf16, #tpu.memory_space<vmem>>, vector<1x1x16x16x4xbf16>
    %85 = vector.shape_cast %84 : vector<1x1x16x16x4xbf16> to vector<16x16x4xbf16>
    %86 = arith.extf %85 : vector<16x16x4xbf16> to vector<16x16x4xf32>
    %87 = arith.mulf %83, %86 : vector<16x16x4xf32>
    %88 = arith.addf %82, %87 : vector<16x16x4xf32>
    %c2_119 = arith.constant 2 : index
    %c5_120 = arith.constant 5 : index
    %c0_121 = arith.constant 0 : index
    %89 = vector.load %arg11[%c2_119, %c5_120, %c0_121] : memref<26x26x4xf32, #tpu.memory_space<vmem>>, vector<16x16x4xf32>
    %c0_122 = arith.constant 0 : index
    %c1_123 = arith.constant 1 : index
    %c0_124 = arith.constant 0 : index
    %c0_125 = arith.constant 0 : index
    %c0_126 = arith.constant 0 : index
    %90 = vector.load %arg3[%c0_122, %c1_123, %c0_124, %c0_125, %c0_126] : memref<1x9x16x16x4xbf16, #tpu.memory_space<vmem>>, vector<1x1x16x16x4xbf16>
    %91 = vector.shape_cast %90 : vector<1x1x16x16x4xbf16> to vector<16x16x4xbf16>
    %92 = arith.extf %91 : vector<16x16x4xbf16> to vector<16x16x4xf32>
    %93 = arith.mulf %89, %92 : vector<16x16x4xf32>
    %94 = arith.addf %88, %93 : vector<16x16x4xf32>
    %c2_127 = arith.constant 2 : index
    %c8_128 = arith.constant 8 : index
    %c0_129 = arith.constant 0 : index
    %95 = vector.load %arg11[%c2_127, %c8_128, %c0_129] : memref<26x26x4xf32, #tpu.memory_space<vmem>>, vector<16x16x4xf32>
    %c0_130 = arith.constant 0 : index
    %c2_131 = arith.constant 2 : index
    %c0_132 = arith.constant 0 : index
    %c0_133 = arith.constant 0 : index
    %c0_134 = arith.constant 0 : index
    %96 = vector.load %arg3[%c0_130, %c2_131, %c0_132, %c0_133, %c0_134] : memref<1x9x16x16x4xbf16, #tpu.memory_space<vmem>>, vector<1x1x16x16x4xbf16>
    %97 = vector.shape_cast %96 : vector<1x1x16x16x4xbf16> to vector<16x16x4xbf16>
    %98 = arith.extf %97 : vector<16x16x4xbf16> to vector<16x16x4xf32>
    %99 = arith.mulf %95, %98 : vector<16x16x4xf32>
    %100 = arith.addf %94, %99 : vector<16x16x4xf32>
    %c5_135 = arith.constant 5 : index
    %c2_136 = arith.constant 2 : index
    %c0_137 = arith.constant 0 : index
    %101 = vector.load %arg11[%c5_135, %c2_136, %c0_137] : memref<26x26x4xf32, #tpu.memory_space<vmem>>, vector<16x16x4xf32>
    %c0_138 = arith.constant 0 : index
    %c3_139 = arith.constant 3 : index
    %c0_140 = arith.constant 0 : index
    %c0_141 = arith.constant 0 : index
    %c0_142 = arith.constant 0 : index
    %102 = vector.load %arg3[%c0_138, %c3_139, %c0_140, %c0_141, %c0_142] : memref<1x9x16x16x4xbf16, #tpu.memory_space<vmem>>, vector<1x1x16x16x4xbf16>
    %103 = vector.shape_cast %102 : vector<1x1x16x16x4xbf16> to vector<16x16x4xbf16>
    %104 = arith.extf %103 : vector<16x16x4xbf16> to vector<16x16x4xf32>
    %105 = arith.mulf %101, %104 : vector<16x16x4xf32>
    %106 = arith.addf %100, %105 : vector<16x16x4xf32>
    %c5_143 = arith.constant 5 : index
    %c5_144 = arith.constant 5 : index
    %c0_145 = arith.constant 0 : index
    %107 = vector.load %arg11[%c5_143, %c5_144, %c0_145] : memref<26x26x4xf32, #tpu.memory_space<vmem>>, vector<16x16x4xf32>
    %c0_146 = arith.constant 0 : index
    %c4_147 = arith.constant 4 : index
    %c0_148 = arith.constant 0 : index
    %c0_149 = arith.constant 0 : index
    %c0_150 = arith.constant 0 : index
    %108 = vector.load %arg3[%c0_146, %c4_147, %c0_148, %c0_149, %c0_150] : memref<1x9x16x16x4xbf16, #tpu.memory_space<vmem>>, vector<1x1x16x16x4xbf16>
    %109 = vector.shape_cast %108 : vector<1x1x16x16x4xbf16> to vector<16x16x4xbf16>
    %110 = arith.extf %109 : vector<16x16x4xbf16> to vector<16x16x4xf32>
    %111 = arith.mulf %107, %110 : vector<16x16x4xf32>
    %112 = arith.addf %106, %111 : vector<16x16x4xf32>
    %c5_151 = arith.constant 5 : index
    %c8_152 = arith.constant 8 : index
    %c0_153 = arith.constant 0 : index
    %113 = vector.load %arg11[%c5_151, %c8_152, %c0_153] : memref<26x26x4xf32, #tpu.memory_space<vmem>>, vector<16x16x4xf32>
    %c0_154 = arith.constant 0 : index
    %c5_155 = arith.constant 5 : index
    %c0_156 = arith.constant 0 : index
    %c0_157 = arith.constant 0 : index
    %c0_158 = arith.constant 0 : index
    %114 = vector.load %arg3[%c0_154, %c5_155, %c0_156, %c0_157, %c0_158] : memref<1x9x16x16x4xbf16, #tpu.memory_space<vmem>>, vector<1x1x16x16x4xbf16>
    %115 = vector.shape_cast %114 : vector<1x1x16x16x4xbf16> to vector<16x16x4xbf16>
    %116 = arith.extf %115 : vector<16x16x4xbf16> to vector<16x16x4xf32>
    %117 = arith.mulf %113, %116 : vector<16x16x4xf32>
    %118 = arith.addf %112, %117 : vector<16x16x4xf32>
    %c8_159 = arith.constant 8 : index
    %c2_160 = arith.constant 2 : index
    %c0_161 = arith.constant 0 : index
    %119 = vector.load %arg11[%c8_159, %c2_160, %c0_161] : memref<26x26x4xf32, #tpu.memory_space<vmem>>, vector<16x16x4xf32>
    %c0_162 = arith.constant 0 : index
    %c6_163 = arith.constant 6 : index
    %c0_164 = arith.constant 0 : index
    %c0_165 = arith.constant 0 : index
    %c0_166 = arith.constant 0 : index
    %120 = vector.load %arg3[%c0_162, %c6_163, %c0_164, %c0_165, %c0_166] : memref<1x9x16x16x4xbf16, #tpu.memory_space<vmem>>, vector<1x1x16x16x4xbf16>
    %121 = vector.shape_cast %120 : vector<1x1x16x16x4xbf16> to vector<16x16x4xbf16>
    %122 = arith.extf %121 : vector<16x16x4xbf16> to vector<16x16x4xf32>
    %123 = arith.mulf %119, %122 : vector<16x16x4xf32>
    %124 = arith.addf %118, %123 : vector<16x16x4xf32>
    %c8_167 = arith.constant 8 : index
    %c5_168 = arith.constant 5 : index
    %c0_169 = arith.constant 0 : index
    %125 = vector.load %arg11[%c8_167, %c5_168, %c0_169] : memref<26x26x4xf32, #tpu.memory_space<vmem>>, vector<16x16x4xf32>
    %c0_170 = arith.constant 0 : index
    %c7_171 = arith.constant 7 : index
    %c0_172 = arith.constant 0 : index
    %c0_173 = arith.constant 0 : index
    %c0_174 = arith.constant 0 : index
    %126 = vector.load %arg3[%c0_170, %c7_171, %c0_172, %c0_173, %c0_174] : memref<1x9x16x16x4xbf16, #tpu.memory_space<vmem>>, vector<1x1x16x16x4xbf16>
    %127 = vector.shape_cast %126 : vector<1x1x16x16x4xbf16> to vector<16x16x4xbf16>
    %128 = arith.extf %127 : vector<16x16x4xbf16> to vector<16x16x4xf32>
    %129 = arith.mulf %125, %128 : vector<16x16x4xf32>
    %130 = arith.addf %124, %129 : vector<16x16x4xf32>
    %c8_175 = arith.constant 8 : index
    %c8_176 = arith.constant 8 : index
    %c0_177 = arith.constant 0 : index
    %131 = vector.load %arg11[%c8_175, %c8_176, %c0_177] : memref<26x26x4xf32, #tpu.memory_space<vmem>>, vector<16x16x4xf32>
    %c0_178 = arith.constant 0 : index
    %c8_179 = arith.constant 8 : index
    %c0_180 = arith.constant 0 : index
    %c0_181 = arith.constant 0 : index
    %c0_182 = arith.constant 0 : index
    %132 = vector.load %arg3[%c0_178, %c8_179, %c0_180, %c0_181, %c0_182] : memref<1x9x16x16x4xbf16, #tpu.memory_space<vmem>>, vector<1x1x16x16x4xbf16>
    %133 = vector.shape_cast %132 : vector<1x1x16x16x4xbf16> to vector<16x16x4xbf16>
    %134 = arith.extf %133 : vector<16x16x4xbf16> to vector<16x16x4xf32>
    %135 = arith.mulf %131, %134 : vector<16x16x4xf32>
    %136 = arith.addf %130, %135 : vector<16x16x4xf32>
    %c1_183 = arith.constant 1 : index
    %c1_184 = arith.constant 1 : index
    %c8_185 = arith.constant 8 : index
    %137 = vector.load %arg12[%c1_183, %c1_184, %c8_185] : memref<18x18x16xf32, #tpu.memory_space<vmem>>, vector<16x16x4xf32>
    tpu.vector_store %arg12[%c1_183, %c1_184, %c8_185], %136 {strides = array<i32>} : memref<18x18x16xf32, #tpu.memory_space<vmem>>, vector<16x16x4xf32>,
    %cst_186 = arith.constant 0.000000e+00 : f32
    %138 = vector.broadcast %cst_186 : f32 to vector<16x16x4xf32>
    %c0_187 = arith.constant 0 : index
    %c0_188 = arith.constant 0 : index
    %c0_189 = arith.constant 0 : index
    %139 = vector.load %arg11[%c0_187, %c0_188, %c0_189] : memref<26x26x4xf32, #tpu.memory_space<vmem>>, vector<16x16x4xf32>
    %c0_190 = arith.constant 0 : index
    %c0_191 = arith.constant 0 : index
    %c0_192 = arith.constant 0 : index
    %c0_193 = arith.constant 0 : index
    %c0_194 = arith.constant 0 : index
    %140 = vector.load %arg4[%c0_190, %c0_191, %c0_192, %c0_193, %c0_194] : memref<1x9x16x16x4xbf16, #tpu.memory_space<vmem>>, vector<1x1x16x16x4xbf16>
    %141 = vector.shape_cast %140 : vector<1x1x16x16x4xbf16> to vector<16x16x4xbf16>
    %142 = arith.extf %141 : vector<16x16x4xbf16> to vector<16x16x4xf32>
    %143 = arith.mulf %139, %142 : vector<16x16x4xf32>
    %144 = arith.addf %138, %143 : vector<16x16x4xf32>
    %c0_195 = arith.constant 0 : index
    %c5_196 = arith.constant 5 : index
    %c0_197 = arith.constant 0 : index
    %145 = vector.load %arg11[%c0_195, %c5_196, %c0_197] : memref<26x26x4xf32, #tpu.memory_space<vmem>>, vector<16x16x4xf32>
    %c0_198 = arith.constant 0 : index
    %c1_199 = arith.constant 1 : index
    %c0_200 = arith.constant 0 : index
    %c0_201 = arith.constant 0 : index
    %c0_202 = arith.constant 0 : index
    %146 = vector.load %arg4[%c0_198, %c1_199, %c0_200, %c0_201, %c0_202] : memref<1x9x16x16x4xbf16, #tpu.memory_space<vmem>>, vector<1x1x16x16x4xbf16>
    %147 = vector.shape_cast %146 : vector<1x1x16x16x4xbf16> to vector<16x16x4xbf16>
    %148 = arith.extf %147 : vector<16x16x4xbf16> to vector<16x16x4xf32>
    %149 = arith.mulf %145, %148 : vector<16x16x4xf32>
    %150 = arith.addf %144, %149 : vector<16x16x4xf32>
    %c0_203 = arith.constant 0 : index
    %c10 = arith.constant 10 : index
    %c0_204 = arith.constant 0 : index
    %151 = vector.load %arg11[%c0_203, %c10, %c0_204] : memref<26x26x4xf32, #tpu.memory_space<vmem>>, vector<16x16x4xf32>
    %c0_205 = arith.constant 0 : index
    %c2_206 = arith.constant 2 : index
    %c0_207 = arith.constant 0 : index
    %c0_208 = arith.constant 0 : index
    %c0_209 = arith.constant 0 : index
    %152 = vector.load %arg4[%c0_205, %c2_206, %c0_207, %c0_208, %c0_209] : memref<1x9x16x16x4xbf16, #tpu.memory_space<vmem>>, vector<1x1x16x16x4xbf16>
    %153 = vector.shape_cast %152 : vector<1x1x16x16x4xbf16> to vector<16x16x4xbf16>
    %154 = arith.extf %153 : vector<16x16x4xbf16> to vector<16x16x4xf32>
    %155 = arith.mulf %151, %154 : vector<16x16x4xf32>
    %156 = arith.addf %150, %155 : vector<16x16x4xf32>
    %c5_210 = arith.constant 5 : index
    %c0_211 = arith.constant 0 : index
    %c0_212 = arith.constant 0 : index
    %157 = vector.load %arg11[%c5_210, %c0_211, %c0_212] : memref<26x26x4xf32, #tpu.memory_space<vmem>>, vector<16x16x4xf32>
    %c0_213 = arith.constant 0 : index
    %c3_214 = arith.constant 3 : index
    %c0_215 = arith.constant 0 : index
    %c0_216 = arith.constant 0 : index
    %c0_217 = arith.constant 0 : index
    %158 = vector.load %arg4[%c0_213, %c3_214, %c0_215, %c0_216, %c0_217] : memref<1x9x16x16x4xbf16, #tpu.memory_space<vmem>>, vector<1x1x16x16x4xbf16>
    %159 = vector.shape_cast %158 : vector<1x1x16x16x4xbf16> to vector<16x16x4xbf16>
    %160 = arith.extf %159 : vector<16x16x4xbf16> to vector<16x16x4xf32>
    %161 = arith.mulf %157, %160 : vector<16x16x4xf32>
    %162 = arith.addf %156, %161 : vector<16x16x4xf32>
    %c5_218 = arith.constant 5 : index
    %c5_219 = arith.constant 5 : index
    %c0_220 = arith.constant 0 : index
    %163 = vector.load %arg11[%c5_218, %c5_219, %c0_220] : memref<26x26x4xf32, #tpu.memory_space<vmem>>, vector<16x16x4xf32>
    %c0_221 = arith.constant 0 : index
    %c4_222 = arith.constant 4 : index
    %c0_223 = arith.constant 0 : index
    %c0_224 = arith.constant 0 : index
    %c0_225 = arith.constant 0 : index
    %164 = vector.load %arg4[%c0_221, %c4_222, %c0_223, %c0_224, %c0_225] : memref<1x9x16x16x4xbf16, #tpu.memory_space<vmem>>, vector<1x1x16x16x4xbf16>
    %165 = vector.shape_cast %164 : vector<1x1x16x16x4xbf16> to vector<16x16x4xbf16>
    %166 = arith.extf %165 : vector<16x16x4xbf16> to vector<16x16x4xf32>
    %167 = arith.mulf %163, %166 : vector<16x16x4xf32>
    %168 = arith.addf %162, %167 : vector<16x16x4xf32>
    %c5_226 = arith.constant 5 : index
    %c10_227 = arith.constant 10 : index
    %c0_228 = arith.constant 0 : index
    %169 = vector.load %arg11[%c5_226, %c10_227, %c0_228] : memref<26x26x4xf32, #tpu.memory_space<vmem>>, vector<16x16x4xf32>
    %c0_229 = arith.constant 0 : index
    %c5_230 = arith.constant 5 : index
    %c0_231 = arith.constant 0 : index
    %c0_232 = arith.constant 0 : index
    %c0_233 = arith.constant 0 : index
    %170 = vector.load %arg4[%c0_229, %c5_230, %c0_231, %c0_232, %c0_233] : memref<1x9x16x16x4xbf16, #tpu.memory_space<vmem>>, vector<1x1x16x16x4xbf16>
    %171 = vector.shape_cast %170 : vector<1x1x16x16x4xbf16> to vector<16x16x4xbf16>
    %172 = arith.extf %171 : vector<16x16x4xbf16> to vector<16x16x4xf32>
    %173 = arith.mulf %169, %172 : vector<16x16x4xf32>
    %174 = arith.addf %168, %173 : vector<16x16x4xf32>
    %c10_234 = arith.constant 10 : index
    %c0_235 = arith.constant 0 : index
    %c0_236 = arith.constant 0 : index
    %175 = vector.load %arg11[%c10_234, %c0_235, %c0_236] : memref<26x26x4xf32, #tpu.memory_space<vmem>>, vector<16x16x4xf32>
    %c0_237 = arith.constant 0 : index
    %c6_238 = arith.constant 6 : index
    %c0_239 = arith.constant 0 : index
    %c0_240 = arith.constant 0 : index
    %c0_241 = arith.constant 0 : index
    %176 = vector.load %arg4[%c0_237, %c6_238, %c0_239, %c0_240, %c0_241] : memref<1x9x16x16x4xbf16, #tpu.memory_space<vmem>>, vector<1x1x16x16x4xbf16>
    %177 = vector.shape_cast %176 : vector<1x1x16x16x4xbf16> to vector<16x16x4xbf16>
    %178 = arith.extf %177 : vector<16x16x4xbf16> to vector<16x16x4xf32>
    %179 = arith.mulf %175, %178 : vector<16x16x4xf32>
    %180 = arith.addf %174, %179 : vector<16x16x4xf32>
    %c10_242 = arith.constant 10 : index
    %c5_243 = arith.constant 5 : index
    %c0_244 = arith.constant 0 : index
    %181 = vector.load %arg11[%c10_242, %c5_243, %c0_244] : memref<26x26x4xf32, #tpu.memory_space<vmem>>, vector<16x16x4xf32>
    %c0_245 = arith.constant 0 : index
    %c7_246 = arith.constant 7 : index
    %c0_247 = arith.constant 0 : index
    %c0_248 = arith.constant 0 : index
    %c0_249 = arith.constant 0 : index
    %182 = vector.load %arg4[%c0_245, %c7_246, %c0_247, %c0_248, %c0_249] : memref<1x9x16x16x4xbf16, #tpu.memory_space<vmem>>, vector<1x1x16x16x4xbf16>
    %183 = vector.shape_cast %182 : vector<1x1x16x16x4xbf16> to vector<16x16x4xbf16>
    %184 = arith.extf %183 : vector<16x16x4xbf16> to vector<16x16x4xf32>
    %185 = arith.mulf %181, %184 : vector<16x16x4xf32>
    %186 = arith.addf %180, %185 : vector<16x16x4xf32>
    %c10_250 = arith.constant 10 : index
    %c10_251 = arith.constant 10 : index
    %c0_252 = arith.constant 0 : index
    %187 = vector.load %arg11[%c10_250, %c10_251, %c0_252] : memref<26x26x4xf32, #tpu.memory_space<vmem>>, vector<16x16x4xf32>
    %c0_253 = arith.constant 0 : index
    %c8_254 = arith.constant 8 : index
    %c0_255 = arith.constant 0 : index
    %c0_256 = arith.constant 0 : index
    %c0_257 = arith.constant 0 : index
    %188 = vector.load %arg4[%c0_253, %c8_254, %c0_255, %c0_256, %c0_257] : memref<1x9x16x16x4xbf16, #tpu.memory_space<vmem>>, vector<1x1x16x16x4xbf16>
    %189 = vector.shape_cast %188 : vector<1x1x16x16x4xbf16> to vector<16x16x4xbf16>
    %190 = arith.extf %189 : vector<16x16x4xbf16> to vector<16x16x4xf32>
    %191 = arith.mulf %187, %190 : vector<16x16x4xf32>
    %192 = arith.addf %186, %191 : vector<16x16x4xf32>
    %c1_258 = arith.constant 1 : index
    %c1_259 = arith.constant 1 : index
    %c12 = arith.constant 12 : index
    %193 = vector.load %arg12[%c1_258, %c1_259, %c12] : memref<18x18x16xf32, #tpu.memory_space<vmem>>, vector<16x16x4xf32>
    tpu.vector_store %arg12[%c1_258, %c1_259, %c12], %192 {strides = array<i32>} : memref<18x18x16xf32, #tpu.memory_space<vmem>>, vector<16x16x4xf32>,
    %c0_260 = arith.constant 0 : index
    %c0_261 = arith.constant 0 : index
    %c0_262 = arith.constant 0 : index
    %194 = vector.load %arg12[%c0_260, %c0_261, %c0_262] : memref<18x18x16xf32, #tpu.memory_space<vmem>>, vector<16x16x16xf32>
    %195 = arith.truncf %194 : vector<16x16x16xf32> to vector<16x16x16xbf16>
    %c0_263 = arith.constant 0 : index
    %c0_264 = arith.constant 0 : index
    %c0_265 = arith.constant 0 : index
    %196 = vector.load %arg13[%c0_263, %c0_264, %c0_265] : memref<16x16x144xbf16, #tpu.memory_space<vmem>>, vector<16x16x16xbf16>
    tpu.vector_store %arg13[%c0_263, %c0_264, %c0_265], %195 {strides = array<i32>} : memref<16x16x144xbf16, #tpu.memory_space<vmem>>, vector<16x16x16xbf16>,
    %c0_266 = arith.constant 0 : index
    %c1_267 = arith.constant 1 : index
    %c0_268 = arith.constant 0 : index
    %197 = vector.load %arg12[%c0_266, %c1_267, %c0_268] : memref<18x18x16xf32, #tpu.memory_space<vmem>>, vector<16x16x16xf32>
    %198 = arith.truncf %197 : vector<16x16x16xf32> to vector<16x16x16xbf16>
    %c0_269 = arith.constant 0 : index
    %c0_270 = arith.constant 0 : index
    %c16 = arith.constant 16 : index
    %199 = vector.load %arg13[%c0_269, %c0_270, %c16] : memref<16x16x144xbf16, #tpu.memory_space<vmem>>, vector<16x16x16xbf16>
    tpu.vector_store %arg13[%c0_269, %c0_270, %c16], %198 {strides = array<i32>} : memref<16x16x144xbf16, #tpu.memory_space<vmem>>, vector<16x16x16xbf16>,
    %c0_271 = arith.constant 0 : index
    %c2_272 = arith.constant 2 : index
    %c0_273 = arith.constant 0 : index
    %200 = vector.load %arg12[%c0_271, %c2_272, %c0_273] : memref<18x18x16xf32, #tpu.memory_space<vmem>>, vector<16x16x16xf32>
    %201 = arith.truncf %200 : vector<16x16x16xf32> to vector<16x16x16xbf16>
    %c0_274 = arith.constant 0 : index
    %c0_275 = arith.constant 0 : index
    %c32 = arith.constant 32 : index
    %202 = vector.load %arg13[%c0_274, %c0_275, %c32] : memref<16x16x144xbf16, #tpu.memory_space<vmem>>, vector<16x16x16xbf16>
    tpu.vector_store %arg13[%c0_274, %c0_275, %c32], %201 {strides = array<i32>} : memref<16x16x144xbf16, #tpu.memory_space<vmem>>, vector<16x16x16xbf16>,
    %c1_276 = arith.constant 1 : index
    %c0_277 = arith.constant 0 : index
    %c0_278 = arith.constant 0 : index
    %203 = vector.load %arg12[%c1_276, %c0_277, %c0_278] : memref<18x18x16xf32, #tpu.memory_space<vmem>>, vector<16x16x16xf32>
    %204 = arith.truncf %203 : vector<16x16x16xf32> to vector<16x16x16xbf16>
    %c0_279 = arith.constant 0 : index
    %c0_280 = arith.constant 0 : index
    %c48 = arith.constant 48 : index
    %205 = vector.load %arg13[%c0_279, %c0_280, %c48] : memref<16x16x144xbf16, #tpu.memory_space<vmem>>, vector<16x16x16xbf16>
    tpu.vector_store %arg13[%c0_279, %c0_280, %c48], %204 {strides = array<i32>} : memref<16x16x144xbf16, #tpu.memory_space<vmem>>, vector<16x16x16xbf16>,
    %c1_281 = arith.constant 1 : index
    %c1_282 = arith.constant 1 : index
    %c0_283 = arith.constant 0 : index
    %206 = vector.load %arg12[%c1_281, %c1_282, %c0_283] : memref<18x18x16xf32, #tpu.memory_space<vmem>>, vector<16x16x16xf32>
    %207 = arith.truncf %206 : vector<16x16x16xf32> to vector<16x16x16xbf16>
    %c0_284 = arith.constant 0 : index
    %c0_285 = arith.constant 0 : index
    %c64 = arith.constant 64 : index
    %208 = vector.load %arg13[%c0_284, %c0_285, %c64] : memref<16x16x144xbf16, #tpu.memory_space<vmem>>, vector<16x16x16xbf16>
    tpu.vector_store %arg13[%c0_284, %c0_285, %c64], %207 {strides = array<i32>} : memref<16x16x144xbf16, #tpu.memory_space<vmem>>, vector<16x16x16xbf16>,
    %c1_286 = arith.constant 1 : index
    %c2_287 = arith.constant 2 : index
    %c0_288 = arith.constant 0 : index
    %209 = vector.load %arg12[%c1_286, %c2_287, %c0_288] : memref<18x18x16xf32, #tpu.memory_space<vmem>>, vector<16x16x16xf32>
    %210 = arith.truncf %209 : vector<16x16x16xf32> to vector<16x16x16xbf16>
    %c0_289 = arith.constant 0 : index
    %c0_290 = arith.constant 0 : index
    %c80 = arith.constant 80 : index
    %211 = vector.load %arg13[%c0_289, %c0_290, %c80] : memref<16x16x144xbf16, #tpu.memory_space<vmem>>, vector<16x16x16xbf16>
    tpu.vector_store %arg13[%c0_289, %c0_290, %c80], %210 {strides = array<i32>} : memref<16x16x144xbf16, #tpu.memory_space<vmem>>, vector<16x16x16xbf16>,
    %c2_291 = arith.constant 2 : index
    %c0_292 = arith.constant 0 : index
    %c0_293 = arith.constant 0 : index
    %212 = vector.load %arg12[%c2_291, %c0_292, %c0_293] : memref<18x18x16xf32, #tpu.memory_space<vmem>>, vector<16x16x16xf32>
    %213 = arith.truncf %212 : vector<16x16x16xf32> to vector<16x16x16xbf16>
    %c0_294 = arith.constant 0 : index
    %c0_295 = arith.constant 0 : index
    %c96 = arith.constant 96 : index
    %214 = vector.load %arg13[%c0_294, %c0_295, %c96] : memref<16x16x144xbf16, #tpu.memory_space<vmem>>, vector<16x16x16xbf16>
    tpu.vector_store %arg13[%c0_294, %c0_295, %c96], %213 {strides = array<i32>} : memref<16x16x144xbf16, #tpu.memory_space<vmem>>, vector<16x16x16xbf16>,
    %c2_296 = arith.constant 2 : index
    %c1_297 = arith.constant 1 : index
    %c0_298 = arith.constant 0 : index
    %215 = vector.load %arg12[%c2_296, %c1_297, %c0_298] : memref<18x18x16xf32, #tpu.memory_space<vmem>>, vector<16x16x16xf32>
    %216 = arith.truncf %215 : vector<16x16x16xf32> to vector<16x16x16xbf16>
    %c0_299 = arith.constant 0 : index
    %c0_300 = arith.constant 0 : index
    %c112 = arith.constant 112 : index
    %217 = vector.load %arg13[%c0_299, %c0_300, %c112] : memref<16x16x144xbf16, #tpu.memory_space<vmem>>, vector<16x16x16xbf16>
    tpu.vector_store %arg13[%c0_299, %c0_300, %c112], %216 {strides = array<i32>} : memref<16x16x144xbf16, #tpu.memory_space<vmem>>, vector<16x16x16xbf16>,
    %c2_301 = arith.constant 2 : index
    %c2_302 = arith.constant 2 : index
    %c0_303 = arith.constant 0 : index
    %218 = vector.load %arg12[%c2_301, %c2_302, %c0_303] : memref<18x18x16xf32, #tpu.memory_space<vmem>>, vector<16x16x16xf32>
    %219 = arith.truncf %218 : vector<16x16x16xf32> to vector<16x16x16xbf16>
    %c0_304 = arith.constant 0 : index
    %c0_305 = arith.constant 0 : index
    %c128 = arith.constant 128 : index
    %220 = vector.load %arg13[%c0_304, %c0_305, %c128] : memref<16x16x144xbf16, #tpu.memory_space<vmem>>, vector<16x16x16xbf16>
    tpu.vector_store %arg13[%c0_304, %c0_305, %c128], %219 {strides = array<i32>} : memref<16x16x144xbf16, #tpu.memory_space<vmem>>, vector<16x16x16xbf16>,
    %c0_306 = arith.constant 0 : index
    %c0_307 = arith.constant 0 : index
    %c0_308 = arith.constant 0 : index
    %221 = vector.load %arg13[%c0_306, %c0_307, %c0_308] : memref<16x16x144xbf16, #tpu.memory_space<vmem>>, vector<16x16x144xbf16>
    %222 = vector.shape_cast %221 : vector<16x16x144xbf16> to vector<256x144xbf16>
    %c0_309 = arith.constant 0 : index
    %c0_310 = arith.constant 0 : index
    %223 = vector.load %arg7[%c0_309, %c0_310] : memref<144x16xbf16, #tpu.memory_space<vmem>>, vector<144x16xbf16>
    %cst_311 = arith.constant dense<0.000000e+00> : vector<256x16xf32>
    %224 = tpu.matmul %222, %223, %cst_311 {dimension_numbers = #tpu.dot_dimension_numbers<[1], [0], [0], [1], [0, 0, 1, 1], [], []>} : vector<256x144xbf16>, vector<144x16xbf16>, vector<256x16xf32> -> vector<256x16xf32>
    %c0_312 = arith.constant 0 : index
    %c0_313 = arith.constant 0 : index
    %225 = vector.load %arg8[%c0_312, %c0_313] : memref<1x16xf32, #tpu.memory_space<vmem>>, vector<1x16xf32>
    %226 = vector.broadcast %225 : vector<1x16xf32> to vector<256x16xf32>
    %227 = arith.mulf %224, %226 : vector<256x16xf32>
    %c0_314 = arith.constant 0 : index
    %c0_315 = arith.constant 0 : index
    %228 = vector.load %arg9[%c0_314, %c0_315] : memref<1x16xf32, #tpu.memory_space<vmem>>, vector<1x16xf32>
    %229 = vector.broadcast %228 : vector<1x16xf32> to vector<256x16xf32>
    %230 = arith.addf %227, %229 : vector<256x16xf32>
    %cst_316 = arith.constant 0.000000e+00 : f32
    %231 = vector.broadcast %cst_316 : f32 to vector<256x16xf32>
    %232 = arith.maximumf %230, %231 : vector<256x16xf32>
    %c0_317 = arith.constant 0 : index
    %c0_318 = arith.constant 0 : index
    %c0_319 = arith.constant 0 : index
    %233 = vector.load %arg10[%c0_317, %c0_318, %c0_319] : memref<1x256x16xf32, #tpu.memory_space<vmem>>, vector<1x256x16xf32>
    %234 = vector.shape_cast %233 : vector<1x256x16xf32> to vector<256x16xf32>
    %235 = vector.shape_cast %232 : vector<256x16xf32> to vector<1x256x16xf32>
    tpu.vector_store %arg10[%c0_317, %c0_318, %c0_319], %235 {strides = array<i32>} : memref<1x256x16xf32, #tpu.memory_space<vmem>>, vector<1x256x16xf32>,
    return
  }
  func.func @transform_0(%arg0: i32) -> (i32, i32, i32) {
    %c0_i32 = arith.constant 0 : i32
    %c0_i32_0 = arith.constant 0 : i32
    %c0_i32_1 = arith.constant 0 : i32
    return %arg0, %c0_i32, %c0_i32_0 : i32, i32, i32
  }
  func.func @transform_1(%arg0: i32) -> (i32, i32, i32, i32, i32) {
    %c0_i32 = arith.constant 0 : i32
    %c0_i32_0 = arith.constant 0 : i32
    %c0_i32_1 = arith.constant 0 : i32
    %c0_i32_2 = arith.constant 0 : i32
    %c0_i32_3 = arith.constant 0 : i32
    return %arg0, %c0_i32, %c0_i32_0, %c0_i32_1, %c0_i32_2 : i32, i32, i32, i32, i32
  }
  func.func @transform_2(%arg0: i32) -> (i32, i32, i32, i32, i32) {
    %c0_i32 = arith.constant 0 : i32
    %c0_i32_0 = arith.constant 0 : i32
    %c0_i32_1 = arith.constant 0 : i32
    %c0_i32_2 = arith.constant 0 : i32
    %c0_i32_3 = arith.constant 0 : i32
    return %arg0, %c0_i32, %c0_i32_0, %c0_i32_1, %c0_i32_2 : i32, i32, i32, i32, i32
  }
  func.func @transform_3(%arg0: i32) -> (i32, i32, i32, i32, i32) {
    %c0_i32 = arith.constant 0 : i32
    %c0_i32_0 = arith.constant 0 : i32
    %c0_i32_1 = arith.constant 0 : i32
    %c0_i32_2 = arith.constant 0 : i32
    %c0_i32_3 = arith.constant 0 : i32
    return %arg0, %c0_i32, %c0_i32_0, %c0_i32_1, %c0_i32_2 : i32, i32, i32, i32, i32
  }
  func.func @transform_4(%arg0: i32) -> (i32, i32) {
    %c0_i32 = arith.constant 0 : i32
    %c0_i32_0 = arith.constant 0 : i32
    %c0_i32_1 = arith.constant 0 : i32
    return %c0_i32, %c0_i32_0 : i32, i32
  }
  func.func @transform_5(%arg0: i32) -> (i32, i32) {
    %c0_i32 = arith.constant 0 : i32
    %c0_i32_0 = arith.constant 0 : i32
    %c0_i32_1 = arith.constant 0 : i32
    return %c0_i32, %c0_i32_0 : i32, i32
  }
  func.func @transform_6(%arg0: i32) -> (i32, i32) {
    %c0_i32 = arith.constant 0 : i32
    %c0_i32_0 = arith.constant 0 : i32
    %c0_i32_1 = arith.constant 0 : i32
    return %c0_i32, %c0_i32_0 : i32, i32
  }
  func.func @transform_7(%arg0: i32) -> (i32, i32) {
    %c0_i32 = arith.constant 0 : i32
    %c0_i32_0 = arith.constant 0 : i32
    %c0_i32_1 = arith.constant 0 : i32
    return %c0_i32, %c0_i32_0 : i32, i32
  }
  func.func @transform_8(%arg0: i32) -> (i32, i32) {
    %c0_i32 = arith.constant 0 : i32
    %c0_i32_0 = arith.constant 0 : i32
    %c0_i32_1 = arith.constant 0 : i32
    return %c0_i32, %c0_i32_0 : i32, i32
  }
  func.func @transform_9(%arg0: i32) -> (i32, i32, i32) {
    %c0_i32 = arith.constant 0 : i32
    %c0_i32_0 = arith.constant 0 : i32
    %c0_i32_1 = arith.constant 0 : i32
    return %arg0, %c0_i32, %c0_i32_0 : i32, i32, i32
  }
}

</mosaic_0001>

<bundles_post_ra>
// kernel: tpu_custom_call.1
= control target key start
LH: loop header
LB: loop body
LE: loop exit
PB: predicated region body
PF: predicated region fallthrough
CT: control target
= control target key end

     0   :  { %s16627_s0 = inlined_call_operand.hbm [shape: bf16[2,256,16], index: 0, kind: input, shape index: {}]   ;;  %s16628_s1 = inlined_call_operand.hbm [shape: bf16[2,9,16,16,4], index: 1, kind: input, shape index: {}]   ;;  %s16629_s2 = inlined_call_operand.hbm [shape: bf16[2,9,16,16,4], index: 2, kind: input, shape index: {}]   ;;  %s16630_s3 = inlined_call_operand.hbm [shape: bf16[2,9,16,16,4], index: 3, kind: input, shape index: {}]   ;;  %s16631_s4 = inlined_call_operand.hbm [shape: bf16[16,4], index: 4, kind: input, shape index: {}]   ;;  %s16632_s5 = inlined_call_operand.hbm [shape: f32[1,4], index: 5, kind: input, shape index: {}]   ;;  %s16633_s6 = inlined_call_operand.hbm [shape: bf16[144,16], index: 6, kind: input, shape index: {}]   ;;  %s16634_s7 = inlined_call_operand.hbm [shape: f32[1,16], index: 7, kind: input, shape index: {}]   ;;  %s16635_s8 = inlined_call_operand.hbm [shape: f32[1,16], index: 8, kind: input, shape index: {}]   ;;  %s16636_s9 = inlined_call_operand.hbm [shape: f32[2,256,16], index: 9, kind: output, shape index: {}]  }
   0x1   :  { %16903 = sst [smem:[#allocation150_spill]] %s16628_s1 }
   0x2   :  { %16904 = sst [smem:[#allocation151_spill]] %s16631_s4 }
   0x3   :  { %16905 = sst [smem:[#allocation152_spill]] %s16632_s5 }
   0x4   :  { %16906 = sst [smem:[#allocation153_spill]] %s16634_s7 }
   0x5   :  { %16907 = sst [smem:[#allocation154_spill]] %s16636_s9 }
   0x6   :  { %14 = vsyncpa [#allocation6], 0 }
   0x7   :  { %16 = vsyncpa [#allocation6 + $0x1], 0 }
   0x8   :  { %17 = vsyncpa [#allocation9], 0 }
   0x9   :  { %19 = vsyncpa [#allocation9 + $0x1], 0 }
   0xa   :  { %20 = vsyncpa [#allocation12], 0 }
   0xb   :  { %22 = vsyncpa [#allocation12 + $0x1], 0 }
   0xc   :  { %23 = vsyncpa [#allocation15], 0 }
   0xd   :  { %24 = vsyncpa [#allocation18], 0 }
   0xe   :  { %25 = vsyncpa [#allocation7], 0 }
   0xf   :  { %27 = vsyncpa [#allocation7 + $0x1], 0  ;;  %s11257_s30 = smov 0   ;;  %s11259_s10 = smov 0  }
  0x10   :  { %s11261_s11 = smov 0   ;;  %s11263_s12 = smov 0  }
  0x11 LB: > { %16908 = sst [smem:[#allocation28_spill]] %s11168_s30  ;;  %s11278_s13 = sadd.s32 4294967295, %s11180_s12   ;;  %s11180_s12 = sphi %s11263_s12, %s17510_s12   ;;  %s11176_s11 = sphi %s11261_s11, %s17512_s11   ;;  %s11172_s10 = sphi %s11259_s10, %s17514_s10   ;;  %s11168_s30 = sphi %s11257_s30, %s17513_s30  }
  0x12   : > { %16909 = sst [smem:[#allocation29_spill]] %s11176_s11  ;;  %s7574_s14 = sadd.s32 4294967294, %s11180_s12  }
  0x13   : > { %16910 = sst [smem:[#allocation30_spill]] %s11278_s13  ;;  %p53_p0 = scmp.ne.s32.totalorder %s11172_s10, %s11168_s30 }
  0x14   : > { %p16637_p1 = scmp.eq.s32.totalorder %s11278_s13, 0  ;;  %p266_p3 = scmp.eq.s32.totalorder %s7574_s14, 1 }
  0x15   : > { %p7575_p5 = scmp.ge.s32.totalorder %s11180_s12, 1  ;;  %p273_p7 = scmp.lt.s32.totalorder %s11180_s12, 3 }
  0x16   : > { %p11287_p4 = por %p16637_p1, %p53_p0  ;;  %p11292_p6 = por %p266_p3, %p53_p0 }
  0x17   : > { %p11297_p8 = pnand %p7575_p5, %p273_p7  ;;  %s11182_s18 = smov [#allocation13]  }
  0x18   : > { %s16911_s15 = scalar_select %p11287_p4, 1, 0 }
  0x19   : > { %s16912_s16 = scalar_select %p11292_p6, 1, 0 }
  0x1a   : > { %s16914_s17 = scalar_select %p11297_p8, 1, 0 }
  0x1b   : > { %16913 = sst [smem:[#allocation31_spill]] %s16912_s16  ;;  %s285_s19 = sshll.u32 %s11182_s18, 4  ;;  %s11301_s19 = int_to_ptr.vmem [resolvable:$true] %s285_s19 }
  0x1c   : > { %p10695_p9 = pneg %p11297_p8  ;;  %s11183_s21 = smov [#allocation14]  }
  0x1d   : > { %s299_s22 = sshll.u32 %s11183_s21, 4  ;;  %s11184_s23 = smov [#allocation17]   ;;  %s11312_s22 = int_to_ptr.vmem [resolvable:$true] %s299_s22 }
  0x1e   : > { %p11308_p11 = pnand %p10695_p9, %p16637_p1  ;;  %s11314_s24 = sshll.u32 %s11184_s23, 4  ;;  %s324_s24 = int_to_ptr.vmem [resolvable:$true] %s11314_s24 }
  0x1f   : > { %s16916_s4 = sld [smem:[#allocation151_spill]] }
  0x20   : > { %s16915_s20 = scalar_select %p11308_p11, 1, 0 }
  0x21   : > { %p11324_p13 = pneg %p11308_p11 }
  0x23   : > { %s16917_s14 = scalar_select %p11324_p13, 1, 0 }
  0x25   : > { %s10834_s27 = scalar_lea.hbm %s16916_s4, 128 }
  0x26   : > { %p10835_p12 = scmp.ne.s32.totalorder %s16916_s4, %s10834_s27  ;;  %p10841_p5 = scmp.lt.u32.totalorder %s10834_s27, %s16916_s4 }
  0x28   : > { %p10837_p0 = pnand %p11324_p13, %p10835_p12 }
  0x2a   : > { %p10838_p3 = pneg %p10837_p0 }
  0x2c   : > { %p10843_p7 = pnand %p10841_p5, %p10838_p3 }
  0x2e   : > { %10846 = shalt.err (!%p10843_p7)
}
  0x2f   : > { %s10847_s23 = scalar_lea.vmem %s11301_s19, 128  ;;  %p10855_p2 = scmp.lt.s32.totalorder %s11301_s19, %s11301_s19 }
  0x30   : > { %p10848_p9 = scmp.ne.s32.totalorder %s11301_s19, %s10847_s23  ;;  %p10856_p6 = scmp.lt.s32.totalorder %s10847_s23, %s10847_s23 }
  0x32   : > { %p10850_p10 = pnand %p10848_p9, %p11324_p13  ;;  %p10857_p12 = por %p10856_p6, %p10855_p2 }
  0x34   : > { %p10851_p1 = pneg %p10850_p10 }
  0x36   : > { %p10858_p0 = pnand %p10857_p12, %p10851_p1 }
  0x38   : > { %10861 = shalt.err (!%p10858_p0)
}
  0x39   : > { %s16643_s25 = smov 64   ;;  %s16645_s26 = smov 4  }
  0x3a   : > { %10698 = dma.hbm_to_vmem [thread:$0]  (!%p11308_p11), %s16916_s4, 128, %s11301_s19, [#allocation12], %s16643_s25, %s16643_s25, %s16645_s26  }
  0x3b   : > { %s16918_s5 = sld [smem:[#allocation152_spill]] }
  0x41   : > { %s10862_s21 = scalar_lea.hbm %s16918_s5, 16 }
  0x42   : > { %p10863_p1 = scmp.ne.s32.totalorder %s16918_s5, %s10862_s21  ;;  %p10869_p10 = scmp.lt.u32.totalorder %s10862_s21, %s16918_s5 }
  0x44   : > { %p10865_p2 = pnand %p10863_p1, %p11324_p13 }
  0x46   : > { %p10866_p6 = pneg %p10865_p2 }
  0x48   : > { %p10871_p3 = pnand %p10869_p10, %p10866_p6 }
  0x4a   : > { %10874 = shalt.err (!%p10871_p3)
}
  0x4b   : > { %s10875_s19 = scalar_lea.vmem %s11312_s22, 16  ;;  %s10882_s16 = scalar_lea.vmem %s11312_s22, 32 }
  0x4c   : > { %p10876_p5 = scmp.ne.s32.totalorder %s11312_s22, %s10875_s19  ;;  %p10883_p12 = scmp.lt.s32.totalorder %s11312_s22, %s11312_s22 }
  0x4d   : > { %p10884_p0 = scmp.lt.s32.totalorder %s10882_s16, %s10875_s19 }
  0x4e   : > { %p10878_p7 = pnand %p10876_p5, %p11324_p13 }
  0x4f   : > { %p10885_p1 = por %p10884_p0, %p10883_p12 }
  0x50   : > { %p10879_p9 = pneg %p10878_p7 }
  0x52   : > { %p10886_p2 = pnand %p10885_p1, %p10879_p9 }
  0x54   : > { %10889 = shalt.err (!%p10886_p2)
}
  0x55   : > { %10701 = dma.hbm_to_vmem [thread:$0]  (!%p11308_p11), %s16918_s5, 16, %s11312_s22, [#allocation15]  }
  0x56   : > { %s16919_s7 = sld [smem:[#allocation153_spill]] }
  0x5c   : > { %s10890_s29 = scalar_lea.hbm %s16919_s7, 16 }
  0x5d   : > { %p10891_p6 = scmp.ne.s32.totalorder %s16919_s7, %s10890_s29  ;;  %p10897_p5 = scmp.lt.u32.totalorder %s10890_s29, %s16919_s7 }
  0x5f   : > { %p10893_p10 = pnand %p10891_p6, %p11324_p13 }
  0x61   : > { %p10894_p3 = pneg %p10893_p10 }
  0x63   : > { %p10899_p7 = pnand %p10897_p5, %p10894_p3 }
  0x65   : > { %10902 = shalt.err (!%p10899_p7)
}
  0x66   : > { %s10903_s16 = scalar_lea.vmem %s324_s24, 16  ;;  %s10910_s22 = scalar_lea.vmem %s324_s24, 32 }
  0x67   : > { %p10904_p9 = scmp.ne.s32.totalorder %s324_s24, %s10903_s16  ;;  %p10911_p1 = scmp.lt.s32.totalorder %s324_s24, %s324_s24 }
  0x68   : > { %p10912_p2 = scmp.lt.s32.totalorder %s10910_s22, %s10903_s16 }
  0x69   : > { %p10906_p12 = pnand %p10904_p9, %p11324_p13 }
  0x6a   : > { %p10913_p4 = por %p10912_p2, %p10911_p1 }
  0x6b   : > { %p10907_p0 = pneg %p10906_p12 }
  0x6d   : > { %p10914_p8 = pnand %p10913_p4, %p10907_p0 }
  0x6f   : > { %10917 = shalt.err (!%p10914_p8)
}
  0x70   : > { %10707 = dma.hbm_to_vmem [thread:$0]  (!%p11308_p11), %s16919_s7, 16, %s324_s24, [#allocation18]  }
  0x71   : > { %s11392_s27 = sadd.s32 1, %s11180_s12   ;;  %s40_s29 = sadd.s32 1, %s11176_s11 }
  0x72   : > { %16920 = sst [smem:[#allocation32_spill]] %s11392_s27  ;;  %s37_s28 = ssub.s32 %s11180_s12, %s11392_s27 }
  0x73   : > { %p38_p4 = scmp.eq.s32.totalorder %s37_s28, 0  ;;  %p47_p8 = scmp.ne.s32.totalorder %s11176_s11, %s11172_s10 }
  0x74   : > { %p48_p6 = scmp.eq.s32.totalorder %s11180_s12, 0  ;;  %p10733_p10 = scmp.lt.s32.totalorder %s11180_s12, 2 }
  0x75   : > { %s11402_s18 = scalar_select %p38_p4, %s11176_s11, %s40_s29  }
  0x76   : > { %p49_p3 = por %p48_p6, %p47_p8  ;;  %p16922_p5 = scmp.eq.s32.totalorder %s11278_s13, 1 }
  0x77   : > { %16921 = sst [smem:[#allocation33_spill]] %s11402_s18  ;;  %s11411_s23 = sand.u32 1, %s11176_s11  }
  0x78   : > { %p11406_p7 = por %p16922_p5, %p47_p8  ;;  %p11414_p9 = pnand %p10733_p10, %p49_p3 }
  0x79   : > { %s11419_s16 = smul.u32 1152, %s11411_s23  ;;  %s16926_s1 = sld [smem:[#allocation150_spill]] }
  0x7a   : > { %s16923_s21 = scalar_select %p11406_p7, 1, 0 }
  0x7b   : > { %s16925_s19 = scalar_select %p11414_p9, 1, 0 }
  0x7c   : > { %16924 = sst [smem:[#allocation34_spill]] %s16923_s21  ;;  %s11422_s22 = smul.u32 18432, %s11180_s12 }
  0x7d   : > { %s370_s29 = scalar_lea.vmem [#allocation8], %s11419_s16  ;;  %s11187_s26 = smov [#allocation16]  }
  0x7e   : > { %s377_s25 = sshll.u32 %s370_s29, 4  ;;  %s11433_s24 = sshll.u32 %s11187_s26, 4  ;;  %s11431_s25 = int_to_ptr.vmem [resolvable:$true] %s377_s25  ;;  %s310_s24 = int_to_ptr.vmem [resolvable:$true] %s11433_s24 }
  0x7f   : > { %s11428_s28 = scalar_lea.hbm %s16926_s1, %s11422_s22  ;;  %s16927_s4 = sand.u32 1, %s11180_s12  }
  0x80   : > { %s11437_s5 = scalar_lea.sflag [#allocation9], %s16927_s4  ;;  %s10918_s7 = scalar_lea.hbm %s11428_s28, 18432 }
  0x81   : > { %p10919_p12 = scmp.ne.s32.totalorder %s11428_s28, %s10918_s7  ;;  %p11443_p0 = pneg %p11414_p9 }
  0x82   : > { %s10923_s18 = scalar_lea.hbm %s16926_s1, 36864  ;;  %p10924_p4 = scmp.lt.u32.totalorder %s11428_s28, %s16926_s1 }
  0x83   : > { %s16928_s9 = scalar_select %p11443_p0, 1, 0 }
  0x84   : > { %p10921_p1 = pnand %p11443_p0, %p10919_p12  ;;  %p10925_p8 = scmp.lt.u32.totalorder %s10923_s18, %s10918_s7 }
  0x85   : > { %p10927_p10 = scmp.lt.u32.totalorder %s10918_s7, %s11428_s28 }
  0x86   : > { %p10922_p2 = pneg %p10921_p1  ;;  %p10926_p6 = por %p10925_p8, %p10924_p4 }
  0x88   : > { %p10928_p3 = por %p10927_p10, %p10926_p6 }
  0x8a   : > { %p10929_p5 = pnand %p10928_p3, %p10922_p2 }
  0x8c   : > { %10932 = shalt.err (!%p10929_p5)
}
  0x8d   : > { %s10933_s4 = scalar_lea.vmem %s11431_s25, 18432  ;;  %s11188_s30 = smov [#allocation8]  }
  0x8e   : > { %p10934_p12 = scmp.ne.s32.totalorder %s11431_s25, %s10933_s4  ;;  %s10938_s29 = sshll.u32 %s11188_s30, 4  ;;  %s10939_s29 = int_to_ptr.vmem [resolvable:$false] %s10938_s29 }
  0x8f   : > { %s10940_s11 = scalar_lea.vmem %s10939_s29, 36864  ;;  %p10941_p11 = scmp.lt.s32.totalorder %s11431_s25, %s10939_s29 }
  0x90   : > { %p10936_p1 = pnand %p10934_p12, %p11443_p0  ;;  %p10942_p13 = scmp.lt.s32.totalorder %s10940_s11, %s10933_s4 }
  0x92   : > { %p10937_p7 = pneg %p10936_p1  ;;  %p10943_p4 = por %p10942_p13, %p10941_p11 }
  0x94   : > { %p10944_p8 = pnand %p10943_p4, %p10937_p7 }
  0x96   : > { %10947 = shalt.err (!%p10944_p8)
}
  0x97   : > { %s16929_s7 = smov 4   ;;  %s16930_s18 = smov 64  }
  0x98   : > { %10717 = dma.hbm_to_vmem [thread:$0]  (!%p11414_p9), %s11428_s28, 18432, %s11431_s25, %s11437_s5, %s16930_s18, %s16930_s18, %s16929_s7  }
  0x99   : > { %s10948_s29 = scalar_lea.hbm %s16633_s6, 1152  ;;  %p16931_p13 = scmp.ne.s32.totalorder %s16917_s14, 0 }
  0x9a   : > { %p10949_p11 = scmp.ne.s32.totalorder %s16633_s6, %s10948_s29  ;;  %p10955_p6 = scmp.lt.u32.totalorder %s10948_s29, %s16633_s6 }
  0x9c   : > { %p10951_p7 = pnand %p10949_p11, %p16931_p13 }
  0x9e   : > { %p10952_p2 = pneg %p10951_p7 }
  0xa0   : > { %p10957_p10 = pnand %p10955_p6, %p10952_p2 }
  0xa2   : > { %10960 = shalt.err (!%p10957_p10)
}
  0xa3   : > { %s10961_s21 = scalar_lea.vmem %s310_s24, 1152  ;;  %p10969_p1 = scmp.lt.s32.totalorder %s310_s24, %s310_s24 }
  0xa4   : > { %p10962_p3 = scmp.ne.s32.totalorder %s310_s24, %s10961_s21  ;;  %p10970_p4 = scmp.lt.s32.totalorder %s10961_s21, %s10961_s21 }
  0xa6   : > { %p10964_p5 = pnand %p10962_p3, %p16931_p13  ;;  %p10971_p8 = por %p10970_p4, %p10969_p1 }
  0xa8   : > { %p10965_p12 = pneg %p10964_p5 }
  0xaa   : > { %p10972_p9 = pnand %p10971_p8, %p10965_p12 }
  0xac   : > { %10975 = shalt.err (!%p10972_p9)
}
  0xad   : > { %p16932_p11 = scmp.ne.s32.totalorder %s16915_s20, 0  ;;  %s11189_s27 = smov [#allocation19]  }
  0xae   : > { %s334_s28 = sshll.u32 %s11189_s27, 4  ;;  %s7582_s26 = sshll.u32 %s11411_s23, 7  ;;  %s335_s28 = int_to_ptr.vmem [resolvable:$true] %s334_s28 }
  0xaf   : > { %10704 = dma.hbm_to_vmem [thread:$0]  (!%p16932_p11), %s16633_s6, 1152, %s310_s24, [#allocation15], %s16930_s18, %s16930_s18, %s16929_s7  }
  0xb0   : > { %s10976_s29 = scalar_lea.hbm %s16635_s8, 16 }
  0xb1   : > { %p10977_p9 = scmp.ne.s32.totalorder %s16635_s8, %s10976_s29  ;;  %p10983_p6 = scmp.lt.u32.totalorder %s10976_s29, %s16635_s8 }
  0xb3   : > { %p10979_p7 = pnand %p10977_p9, %p16931_p13 }
  0xb5   : > { %p10980_p2 = pneg %p10979_p7 }
  0xb7   : > { %p10985_p10 = pnand %p10983_p6, %p10980_p2 }
  0xb9   : > { %10988 = shalt.err (!%p10985_p10)
}
  0xba   : > { %s10989_s24 = scalar_lea.vmem %s335_s28, 16  ;;  %s10996_s25 = scalar_lea.vmem %s335_s28, 32 }
  0xbb   : > { %p10990_p3 = scmp.ne.s32.totalorder %s335_s28, %s10989_s24  ;;  %p10997_p1 = scmp.lt.s32.totalorder %s335_s28, %s335_s28 }
  0xbc   : > { %p10998_p4 = scmp.lt.s32.totalorder %s10996_s25, %s10989_s24 }
  0xbd   : > { %p10992_p5 = pnand %p10990_p3, %p16931_p13 }
  0xbe   : > { %p10999_p8 = por %p10998_p4, %p10997_p1 }
  0xbf   : > { %p10993_p12 = pneg %p10992_p5 }
  0xc1   : > { %p11000_p0 = pnand %p10999_p8, %p10993_p12 }
  0xc3   : > { %11003 = shalt.err (!%p11000_p0)
}
  0xc4   : > { %10710 = dma.hbm_to_vmem [thread:$0]  (!%p16932_p11), %s16635_s8, 16, %s335_s28, [#allocation18]  }
  0xc5   : > { %s8430_s13 = sshll.u32 %s11180_s12, 11  ;;  %s349_s4 = scalar_lea.vmem [#allocation5], %s7582_s26 }
  0xc6   : > { %s11515_s29 = scalar_lea.hbm %s16627_s0, %s8430_s13  ;;  %s356_s11 = sshll.u32 %s349_s4, 4  ;;  %s11517_s11 = int_to_ptr.vmem [resolvable:$true] %s356_s11 }
  0xc7   : > { %s346_s20 = scalar_lea.sflag [#allocation6], %s11411_s23  ;;  %s11004_s1 = scalar_lea.hbm %s11515_s29, 2048 }
  0xc8   : > { %p11005_p0 = scmp.ne.s32.totalorder %s11515_s29, %s11004_s1  ;;  %p16933_p13 = scmp.ne.s32.totalorder %s16928_s9, 0 }
  0xc9   : > { %s11009_s25 = scalar_lea.hbm %s16627_s0, 4096  ;;  %p11010_p7 = scmp.lt.u32.totalorder %s11515_s29, %s16627_s0 }
  0xca   : > { %p11007_p9 = pnand %p11005_p0, %p16933_p13  ;;  %p11011_p2 = scmp.lt.u32.totalorder %s11009_s25, %s11004_s1 }
  0xcb   : > { %p11013_p10 = scmp.lt.u32.totalorder %s11004_s1, %s11515_s29 }
  0xcc   : > { %p11008_p11 = pneg %p11007_p9  ;;  %p11012_p6 = por %p11011_p2, %p11010_p7 }
  0xce   : > { %p11014_p3 = por %p11013_p10, %p11012_p6 }
  0xd0   : > { %p11015_p5 = pnand %p11014_p3, %p11008_p11 }
  0xd2   : > { %11018 = shalt.err (!%p11015_p5)
}
  0xd3   : > { %s11019_s26 = scalar_lea.vmem %s11517_s11, 2048  ;;  %s11190_s13 = smov [#allocation5]  }
  0xd4   : > { %p11020_p12 = scmp.ne.s32.totalorder %s11517_s11, %s11019_s26  ;;  %s11024_s21 = sshll.u32 %s11190_s13, 4  ;;  %s11025_s21 = int_to_ptr.vmem [resolvable:$false] %s11024_s21 }
  0xd5   : > { %s11026_s14 = scalar_lea.vmem %s11025_s21, 4096  ;;  %p11027_p8 = scmp.lt.s32.totalorder %s11517_s11, %s11025_s21 }
  0xd6   : > { %p11022_p1 = pnand %p11020_p12, %p16933_p13  ;;  %p11028_p0 = scmp.lt.s32.totalorder %s11026_s14, %s11019_s26 }
  0xd8   : > { %p11023_p4 = pneg %p11022_p1  ;;  %p11029_p9 = por %p11028_p0, %p11027_p8 }
  0xda   : > { %p11030_p7 = pnand %p11029_p9, %p11023_p4 }
  0xdc   : > { %11033 = shalt.err (!%p11030_p7)
}
  0xdd   : > { %p16934_p11 = scmp.ne.s32.totalorder %s16925_s19, 0  ;;  %s11550_s28 = scalar_lea.hbm %s16629_s2, %s11422_s22 }
  0xde   : > { %s391_s24 = scalar_lea.vmem [#allocation10], %s11419_s16  ;;  %s11034_s23 = scalar_lea.hbm %s11550_s28, 18432 }
  0xdf   : > { %10714 = dma.hbm_to_vmem [thread:$0]  (!%p16934_p11), %s11515_s29, 2048, %s11517_s11, %s346_s20, %s16930_s18, %s16930_s18, %s16929_s7  }
  0xe0   : > { %s398_s25 = sshll.u32 %s391_s24, 4  ;;  %p11035_p2 = scmp.ne.s32.totalorder %s11550_s28, %s11034_s23  ;;  %s11553_s25 = int_to_ptr.vmem [resolvable:$true] %s398_s25 }
  0xe1   : > { %s11039_s11 = scalar_lea.hbm %s16629_s2, 36864  ;;  %p11040_p3 = scmp.lt.u32.totalorder %s11550_s28, %s16629_s2 }
  0xe2   : > { %p11037_p6 = pnand %p11035_p2, %p16933_p13  ;;  %p11041_p5 = scmp.lt.u32.totalorder %s11039_s11, %s11034_s23 }
  0xe3   : > { %p11043_p1 = scmp.lt.u32.totalorder %s11034_s23, %s11550_s28 }
  0xe4   : > { %p11038_p10 = pneg %p11037_p6  ;;  %p11042_p12 = por %p11041_p5, %p11040_p3 }
  0xe6   : > { %p11044_p4 = por %p11043_p1, %p11042_p12 }
  0xe8   : > { %p11045_p8 = pnand %p11044_p4, %p11038_p10 }
  0xea   : > { %11048 = shalt.err (!%p11045_p8)
}
  0xeb   : > { %s11049_s26 = scalar_lea.vmem %s11553_s25, 18432  ;;  %s11191_s13 = smov [#allocation10]  }
  0xec   : > { %p11050_p0 = scmp.ne.s32.totalorder %s11553_s25, %s11049_s26  ;;  %s11054_s21 = sshll.u32 %s11191_s13, 4  ;;  %s11055_s21 = int_to_ptr.vmem [resolvable:$false] %s11054_s21 }
  0xed   : > { %s11056_s14 = scalar_lea.vmem %s11055_s21, 36864  ;;  %p11057_p2 = scmp.lt.s32.totalorder %s11553_s25, %s11055_s21 }
  0xee   : > { %p11052_p9 = pnand %p11050_p0, %p16933_p13  ;;  %p11058_p6 = scmp.lt.s32.totalorder %s11056_s14, %s11049_s26 }
  0xf0   : > { %p11053_p7 = pneg %p11052_p9  ;;  %p11059_p3 = por %p11058_p6, %p11057_p2 }
  0xf2   : > { %p11060_p5 = pnand %p11059_p3, %p11053_p7 }
  0xf4   : > { %11063 = shalt.err (!%p11060_p5)
}
  0xf5   : > { %10720 = dma.hbm_to_vmem [thread:$0]  (!%p16934_p11), %s11550_s28, 18432, %s11553_s25, %s11437_s5, %s16930_s18, %s16930_s18, %s16929_s7  }
  0xf6   : > { %s11584_s24 = scalar_lea.hbm %s16630_s3, %s11422_s22  ;;  %s412_s23 = scalar_lea.vmem [#allocation11], %s11419_s16 }
  0xf7   : > { %s419_s27 = sshll.u32 %s412_s23, 4  ;;  %s16935_s29 = sand.u32 1, %s11180_s12   ;;  %s11587_s27 = int_to_ptr.vmem [resolvable:$true] %s419_s27 }
  0xf8   : > { %s11591_s11 = scalar_lea.sflag [#allocation12], %s16935_s29  ;;  %s11064_s20 = scalar_lea.hbm %s11584_s24, 18432 }
  0xf9   : > { %p11065_p10 = scmp.ne.s32.totalorder %s11584_s24, %s11064_s20  ;;  %s11069_s22 = scalar_lea.hbm %s16630_s3, 36864 }
  0xfa   : > { %p11070_p4 = scmp.lt.u32.totalorder %s11584_s24, %s16630_s3  ;;  %p11071_p8 = scmp.lt.u32.totalorder %s11069_s22, %s11064_s20 }
  0xfb   : > { %p11067_p12 = pnand %p11065_p10, %p16933_p13  ;;  %p11073_p9 = scmp.lt.u32.totalorder %s11064_s20, %s11584_s24 }
  0xfc   : > { %p11072_p0 = por %p11071_p8, %p11070_p4 }
  0xfd   : > { %p11068_p1 = pneg %p11067_p12 }
  0xfe   : > { %p11074_p7 = por %p11073_p9, %p11072_p0 }
 0x100   : > { %p11075_p2 = pnand %p11074_p7, %p11068_p1 }
 0x102   : > { %11078 = shalt.err (!%p11075_p2)
}
 0x103   : > { %s11079_s16 = scalar_lea.vmem %s11587_s27, 18432  ;;  %s11192_s26 = smov [#allocation11]  }
 0x104   : > { %p11080_p6 = scmp.ne.s32.totalorder %s11587_s27, %s11079_s16  ;;  %s11084_s13 = sshll.u32 %s11192_s26, 4  ;;  %s11085_s13 = int_to_ptr.vmem [resolvable:$false] %s11084_s13 }
 0x105   : > { %s11086_s21 = scalar_lea.vmem %s11085_s13, 36864  ;;  %p11087_p10 = scmp.lt.s32.totalorder %s11587_s27, %s11085_s13 }
 0x106   : > { %p11082_p3 = pnand %p11080_p6, %p16933_p13  ;;  %p11088_p12 = scmp.lt.s32.totalorder %s11086_s21, %s11079_s16 }
 0x108   : > { %p11083_p5 = pneg %p11082_p3  ;;  %p11089_p4 = por %p11088_p12, %p11087_p10 }
 0x10a   : > { %p11090_p8 = pnand %p11089_p4, %p11083_p5 }
 0x10c   : > { %11093 = shalt.err (!%p11090_p8)
}
 0x10d   : > { %10723 = dma.hbm_to_vmem [thread:$0]  (!%p16934_p11), %s11584_s24, 18432, %s11587_s27, %s11591_s11, %s16930_s18, %s16930_s18, %s16929_s7  }
 0x10e   : > { %p16936_p13 = scmp.ne.s32.totalorder %s16914_s17, 0 }
 0x110   : > { %431 = sbr.rel (%p16936_p13) target bundleno = 1731 (0x6c3), region = 56 }
 0x117   : > { %s11621_s9 = sand.u32 1, %s11172_s10   ;;  %p16937_p1 = scmp.ne.s32.totalorder %s16911_s15, 0 }
 0x118   : > { %s7589_s14 = sshll.u32 %s11621_s9, 7  ;;  %s434_s4 = scalar_lea.sflag [#allocation6], %s11621_s9 }
 0x119   : > { %s11625_s1 = scalar_lea.vmem [#allocation5], %s7589_s14 }
 0x11a   : > { %11139 = dma.done.wait (%p16937_p1), %s434_s4, 2048  }
 0x11b   : > { %11141 = vsyncadd (%p16937_p1), %s434_s4, 4294965248  ;;  %s16938_s19 = sld [smem:[#allocation30_spill]]  ;;  %s10664_s7 = smul.u32 1152, %s11621_s9 }
 0x11d   : > { %s11633_s24 = scalar_lea.vmem [#allocation8], %s10664_s7 }
 0x121   : > { %s442_s17 = sand.u32 1, %s16938_s19  }
 0x122   : > { %s443_s18 = scalar_lea.sflag [#allocation9], %s442_s17 }
 0x123   : > { %11143 = dma.done.wait (%p16937_p1), %s443_s18, 36864  }
 0x124   : > { %11145 = vsyncadd (%p16937_p1), %s443_s18, 4294930432  ;;  %s11639_s23 = scalar_lea.vmem [#allocation10], %s10664_s7  ;;  %s461_s27 = scalar_lea.sflag [#allocation12], %s442_s17 }
 0x125   : > { %s11641_s29 = scalar_lea.vmem [#allocation11], %s10664_s7 }
 0x126   : > { %11147 = dma.done.wait (%p16937_p1), %s461_s27, 18432  }
 0x127   : > { %11149 = vsyncadd (%p16937_p1), %s461_s27, 4294948864  ;;  %p16939_p11 = scmp.eq.s32.totalorder %s16938_s19, 0 }
 0x129   : > { %11151 = dma.done.wait (%p16939_p11), [#allocation12], 128   ;;  %p16940_p0 = pmov %p16939_p11 }
 0x12b   : > { %11153 = vsyncadd (%p16940_p0), [#allocation12], 4294967168  ;;  %p16941_p9 = pmov %p16940_p0 }
 0x12c   : > { %p16942_p7 = pmov %p16940_p0 }
 0x12d   : > { %11155 = dma.done.wait (%p16941_p9), [#allocation15], 1168  }
 0x12e   : > { %11157 = vsyncadd (%p16942_p7), [#allocation15], 4294966128  ;;  %p16943_p2 = pmov %p16940_p0 }
 0x12f   : > { %p16944_p6 = pmov %p16940_p0 }
 0x130   : > { %11159 = dma.done.wait (%p16943_p2), [#allocation18], 32  }
 0x131   : > { %11161 = vsyncadd (%p16944_p6), [#allocation18], 4294967264  ;;  %v10792_v0 = vld [vmem:[#allocation13] sm:$0xff]   ;;  %vm662_vm0 = vcmask 130048   ;;  %v10794_v2 = vld [vmem:[%s11625_s1 + $0x8] sm:$0xff]   ;;  %vm872_vm1 = vcmask 31744  }
 0x132   : > { %v10793_v1 = vld [vmem:[%s11625_s1] sm:$0xff]   ;;  %10606 = vmatprep.subr.bf16.mxu0 %v10792_v0  ;;  %v10795_v3 = vld [vmem:[%s11625_s1 + $0x10] sm:$0xff]   ;;  %v10796_v4 = vld [vmem:[%s11625_s1 + $0x18] sm:$0xff]   ;;  %v16663_v17 = vmov 0.0   ;;  %vm916_vm2 = vcmask 28672   ;;  %vm983_vm3 = vcmask 123904  }
 0x133   : > { %10607 = vmatpush3.bf16.msra.mxu0 %v10792_v0  ;;  %10608 = vmatprep.mubr.msk.bf16.mxu0 %vm662_vm0, %v10793_v1  ;;  %v10797_v5 = vld [vmem:[%s11625_s1 + $0x20] sm:$0xff]   ;;  %v10798_v6 = vld [vmem:[%s11625_s1 + $0x28] sm:$0xff]   ;;  %v10799_v7 = vld [vmem:[%s11625_s1 + $0x30] sm:$0xff]   ;;  %981 = vst.msk [vmem:[#allocation3] sm:$0xff] %vm662_vm0, %v16663_v17  ;;  %s11194_s15 = smov 16   ;;  %s11195_s11 = smov 32  }
 0x134   : > { %v10800_v8 = vld [vmem:[%s11625_s1 + $0x38] sm:$0xff]   ;;  %v10801_v9 = vld [vmem:[%s11625_s1 + $0x40] sm:$0xff]   ;;  %v10802_v10 = vld [vmem:[%s11625_s1 + $0x48] sm:$0xff]   ;;  %982 = vst.msk [vmem:[#allocation3 + $0x8] sm:$0xff] %vm662_vm0, %v16663_v17  ;;  %vm876_vm4 = vcmask 25600   ;;  %s11196_s20 = smov 4  }
 0x135   : > { %v10803_v11 = vld [vmem:[%s11625_s1 + $0x50] sm:$0xff]   ;;  %v10804_v12 = vld [vmem:[%s11625_s1 + $0x58] sm:$0xff]   ;;  %v10805_v13 = vld [vmem:[%s11625_s1 + $0x60] sm:$0xff]   ;;  %873 = vst.msk [vmem:[#allocation2] sm:$0xff] %vm872_vm1, %v16663_v17  ;;  %s11197_s5 = smov 8   ;;  %s11198_s28 = smov 12  }
 0x136   : > { %10609 = vmatmul.mubr.msk.bf16.vlgmr.msra.gmra.mrb[0].mxu0 %vm662_vm0, %v10794_v2  ;;  %v10806_v14 = vld [vmem:[%s11625_s1 + $0x68] sm:$0xff]   ;;  %v10807_v15 = vld [vmem:[%s11625_s1 + $0x70] sm:$0xff]   ;;  %v10808_v16 = vld [vmem:[%s11625_s1 + $0x78] sm:$0xff]   ;;  %874 = vst.msk [vmem:[#allocation2 + $0x8] sm:$0xff] %vm872_vm1, %v16663_v17  ;;  %vm6063_vm5 = vcmask 261248   ;;  %vm6192_vm6 = vcmask 392448  }
 0x137   : > { %10612 = vmatprep.mubr.msk.bf16.mxu0 %vm662_vm0, %v10795_v3  ;;  %875 = vst.msk [vmem:[#allocation2 + $0x10] sm:$0xff] %vm872_vm1, %v16663_v17  ;;  %878 = vst.msk [vmem:[#allocation2 + $0x20] sm:$0xff] %vm872_vm1, %v16663_v17  ;;  %v8433_v24 = vld [vmem:[%s11633_s24] sm:$0xff]   ;;  %v12030_v3 = vld [vmem:[%s11639_s23 + $0x108] sm:$0xff]   ;;  %vm2633_vm7 = vcmask 64544   ;;  %vm4244_vm8 = vcmask 97344  }
 0x138   : > { %879 = vst.msk [vmem:[#allocation2 + $0x28] sm:$0xff] %vm872_vm1, %v16663_v17  ;;  %880 = vst.msk [vmem:[#allocation2 + $0x30] sm:$0xff] %vm872_vm1, %v16663_v17  ;;  %v10175_v25 = vld [vmem:[%s11633_s24 + $0x80] sm:$0xff]   ;;  %v8434_v26 = vunpack.c.l.bf16 %v8433_v24  ;;  %v8435_v31 = vunpack.c.h.bf16 %v8433_v24  ;;  %v12034_v61 = vld [vmem:[%s11633_s24 + $0x410] sm:$0xff]   ;;  %vm5854_vm9 = vcmask 130144   ;;  %vm990_vm10 = vcmask 122880  }
 0x139   : > { %882 = vst.msk [vmem:[#allocation2 + $0x40] sm:$0xff] %vm872_vm1, %v16663_v17  ;;  %883 = vst.msk [vmem:[#allocation2 + $0x48] sm:$0xff] %vm872_vm1, %v16663_v17  ;;  %v8498_v27 = vunpack.c.l.bf16 %v10175_v25  ;;  %v10191_v30 = vld [vmem:[%s11633_s24 + $0x100] sm:$0xff]   ;;  %v8499_v32 = vunpack.c.h.bf16 %v10175_v25  ;;  %s11199_s22 = smov 48   ;;  %s11200_s25 = smov 64   ;;  %vm6321_vm11 = vcmask 523648  }
 0x13a   : > { %884 = vst.msk [vmem:[#allocation2 + $0x50] sm:$0xff] %vm872_vm1, %v16663_v17  ;;  %886 = vst.msk [vmem:[#allocation2 + $0x60] sm:$0xff] %vm872_vm1, %v16663_v17  ;;  %v9009_v33 = vld [vmem:[%s11639_s23] sm:$0xff]   ;;  %v8562_v37 = vunpack.c.l.bf16 %v10191_v30  ;;  %v8563_v47 = vunpack.c.h.bf16 %v10191_v30  ;;  %v12021_v30 = vld [vmem:[%s11633_s24 + $0x310] sm:$0xff]   ;;  %s11201_s30 = smov 80   ;;  %s11203_s16 = smov 112  }
 0x13b   : > { %887 = vst.msk [vmem:[#allocation2 + $0x68] sm:$0xff] %vm872_vm1, %v16663_v17  ;;  %888 = vst.msk [vmem:[#allocation2 + $0x70] sm:$0xff] %vm872_vm1, %v16663_v17  ;;  %v5951_v18 = vld [vmem:[#allocation3 + $0x1] sm:$0xff]  ;;  %v10318_v34 = vld [vmem:[%s11639_s23 + $0x80] sm:$0xff]   ;;  %v9010_v43 = vunpack.c.l.bf16 %v9009_v33  ;;  %v9011_v59 = vunpack.c.h.bf16 %v9009_v33  ;;  %s11204_s26 = smov 96   ;;  %vm6450_vm12 = vcmask 654848  }
 0x13c   : > { %890 = vst.msk [vmem:[#allocation2 + $0x80] sm:$0xff] %vm872_vm1, %v16663_v17  ;;  %891 = vst.msk [vmem:[#allocation2 + $0x88] sm:$0xff] %vm872_vm1, %v16663_v17  ;;  %v6080_v21 = vld [vmem:[#allocation3 + $0x2] sm:$0xff]  ;;  %v11848_v41 = vld [vmem:[%s11633_s24 + $0x300] sm:$0xff]   ;;  %v9074_v44 = vunpack.c.l.bf16 %v10318_v34  ;;  %v9075_v60 = vunpack.c.h.bf16 %v10318_v34  ;;  %vm6579_vm13 = vcmask 786048   ;;  %vm6709_vm14 = vcmask 917248  }
 0x13d   : > { %892 = vst.msk [vmem:[#allocation2 + $0x90] sm:$0xff] %vm872_vm1, %v16663_v17  ;;  %895 = vst.msk [vmem:[#allocation2 + $0x2a0] sm:$0xff] %vm872_vm1, %v16663_v17  ;;  %v11851_v42 = vld [vmem:[%s11633_s24 + $0x380] sm:$0xff]   ;;  %v11906_v34 = vld [vmem:[%s11633_s24 + $0x88] sm:$0xff]   ;;  %vm6838_vm15 = vcmask 1048448   ;;  %s7595_s13 = sshll.u32 %s11621_s9, 8 }
 0x13e   : > { %10613 = vmatmul.mubr.msk.bf16.gmra.mrb[4].mxu0 %vm662_vm0, %v10796_v4  ;;  %896 = vst.msk [vmem:[#allocation2 + $0x2a8] sm:$0xff] %vm872_vm1, %v16663_v17  ;;  %897 = vst.msk [vmem:[#allocation2 + $0x2b0] sm:$0xff] %vm872_vm1, %v16663_v17  ;;  %v10334_v50 = vld [vmem:[%s11639_s23 + $0x100] sm:$0xff]   ;;  %s16449_s21 = scalar_lea.vmem [#allocation20], %s7595_s13  ;;  %s17503_s14 = sld [smem:[#allocation34_spill]] }
 0x13f   : > { %10616 = vmatprep.mubr.msk.bf16.mxu0 %vm662_vm0, %v10797_v5  ;;  %899 = vst.msk [vmem:[#allocation2 + $0x2c0] sm:$0xff] %vm872_vm1, %v16663_v17  ;;  %900 = vst.msk [vmem:[#allocation2 + $0x2c8] sm:$0xff] %vm872_vm1, %v16663_v17  ;;  %v11856_v53 = vld [vmem:[%s11633_s24 + $0x180] sm:$0xff]   ;;  %v9138_v0 = vunpack.c.l.bf16 %v10334_v50  ;;  %s8431_s4 = sshll.u32 %s16938_s19, 12  ;;  %s7388_s1 = sshll.u32 %s16449_s21, 4  ;;  %s16580_s1 = int_to_ptr.vmem [resolvable:$true] %s7388_s1 }
 0x140   : > { %901 = vst.msk [vmem:[#allocation2 + $0x2d0] sm:$0xff] %vm872_vm1, %v16663_v17  ;;  %903 = vst.msk [vmem:[#allocation2 + $0x2e0] sm:$0xff] %vm872_vm1, %v16663_v17  ;;  %v2667_v48 = vld [vmem:[#allocation2 + $0x42] sm:$0xff]  ;;  %v11859_v54 = vld [vmem:[%s11633_s24 + $0x200] sm:$0xff]   ;;  %s17504_s18 = sld [smem:[#allocation154_spill]]  ;;  %s7375_s19 = scalar_lea.sflag [#allocation7], %s11621_s9 }
 0x141   : > { %904 = vst.msk [vmem:[#allocation2 + $0x2e8] sm:$0xff] %vm872_vm1, %v16663_v17  ;;  %905 = vst.msk [vmem:[#allocation2 + $0x2f0] sm:$0xff] %vm872_vm1, %v16663_v17  ;;  %v2827_v49 = vld [vmem:[#allocation2 + $0x45] sm:$0xff]  ;;  %v11862_v56 = vld [vmem:[%s11633_s24 + $0x280] sm:$0xff]   ;;  %v2763_v62 = vmul.f32 %v9010_v43, %v2667_v48  ;;  %s11205_s27 = smov [#allocation20]  }
 0x142   : > { %907 = vst.msk [vmem:[#allocation2 + $0x300] sm:$0xff] %vm872_vm1, %v16663_v17  ;;  %908 = vst.msk [vmem:[#allocation2 + $0x308] sm:$0xff] %vm872_vm1, %v16663_v17  ;;  %v11866_v58 = vld [vmem:[%s11633_s24 + $0x400] sm:$0xff]   ;;  %v2924_v63 = vmul.f32 %v9074_v44, %v2827_v49  ;;  %v11920_v43 = vld [vmem:[%s11633_s24 + $0x208] sm:$0xff]  }
 0x143   : > { %909 = vst.msk [vmem:[#allocation2 + $0x310] sm:$0xff] %vm872_vm1, %v16663_v17  ;;  %911 = vst.msk [vmem:[#allocation2 + $0x320] sm:$0xff] %vm872_vm1, %v16663_v17  ;;  %v1056_v28 = vld [vmem:[#allocation2 + $0x84] sm:$0xff]  ;;  %v2828_v2 = vld [vmem:[#allocation2 + $0x4d] sm:$0xff] }
 0x144   : > { %912 = vst.msk [vmem:[#allocation2 + $0x328] sm:$0xff] %vm872_vm1, %v16663_v17  ;;  %913 = vst.msk [vmem:[#allocation2 + $0x330] sm:$0xff] %vm872_vm1, %v16663_v17  ;;  %v11839_v29 = vld [vmem:[#allocation2 + $0x85] sm:$0xff]  ;;  %v1152_v35 = vmul.f32 %v8434_v26, %v1056_v28  ;;  %v11845_v39 = vld [vmem:[#allocation2 + $0x8d] sm:$0xff]  ;;  %v2956_v24 = vadd.f32 %v2924_v63, %v2763_v62  ;;  %p17505_p5 = scmp.ne.s32.totalorder %s17503_s14, 0 }
 0x145   : > { %986 = vst.msk [vmem:[#allocation3 + $0x198] sm:$0xff] %vm662_vm0, %v16663_v17  ;;  %987 = vst.msk [vmem:[#allocation3 + $0x1a0] sm:$0xff] %vm662_vm0, %v16663_v17  ;;  %v1313_v36 = vmul.f32 %v8498_v27, %v11839_v29  ;;  %v1057_v38 = vld [vmem:[#allocation2 + $0x8c] sm:$0xff]  ;;  %v1314_v46 = vmul.f32 %v8499_v32, %v11845_v39  ;;  %v11895_v27 = vld [vmem:[%s11633_s24 + $0x8] sm:$0xff]  }
 0x146   : > { %10617 = vmatmul.mubr.msk.bf16.gmra.mrb[8].mxu0 %vm662_vm0, %v10798_v6  ;;  %917 = vst.msk [vmem:[#allocation2 + $0xa0] sm:$0x1f] %vm916_vm2, %v16663_v17  ;;  %918 = vst.msk [vmem:[#allocation2 + $0xc0] sm:$0x1f] %vm916_vm2, %v16663_v17  ;;  %v1377_v40 = vld [vmem:[#allocation2 + $0x86] sm:$0xff]  ;;  %v1153_v45 = vmul.f32 %v8435_v31, %v1057_v38  ;;  %v1378_v55 = vld [vmem:[#allocation2 + $0x8e] sm:$0xff] }
 0x147   : > { %10620 = vmatprep.mubr.msk.bf16.mxu0 %vm662_vm0, %v10799_v7  ;;  %919 = vst.msk [vmem:[#allocation2 + $0xe0] sm:$0x1f] %vm916_vm2, %v16663_v17  ;;  %920 = vst.msk [vmem:[#allocation2 + $0x100] sm:$0x1f] %vm916_vm2, %v16663_v17  ;;  %v1345_v51 = vadd.f32 %v1313_v36, %v1152_v35  ;;  %v1474_v52 = vmul.f32 %v8562_v37, %v1377_v40  ;;  %v2668_v1 = vld [vmem:[#allocation2 + $0x4a] sm:$0xff]  ;;  %v1475_v6 = vmul.f32 %v8563_v47, %v1378_v55  ;;  %v11909_v35 = vld [vmem:[%s11633_s24 + $0x188] sm:$0xff]  }
 0x148   : > { %921 = vst.msk [vmem:[#allocation2 + $0x120] sm:$0x1f] %vm916_vm2, %v16663_v17  ;;  %922 = vst.msk [vmem:[#allocation2 + $0x140] sm:$0x1f] %vm916_vm2, %v16663_v17  ;;  %v1346_v5 = vadd.f32 %v1314_v46, %v1153_v45  ;;  %v2988_v7 = vld [vmem:[#allocation2 + $0x48] sm:$0xff]  ;;  %v2989_v26 = vld [vmem:[#allocation2 + $0x50] sm:$0xff] }
 0x149   : > { %923 = vst.msk [vmem:[#allocation2 + $0x160] sm:$0x1f] %vm916_vm2, %v16663_v17  ;;  %924 = vst.msk [vmem:[#allocation2 + $0x180] sm:$0x1f] %vm916_vm2, %v16663_v17  ;;  %v3085_v25 = vmul.f32 %v9138_v0, %v2988_v7  ;;  %v11903_v33 = vld [vmem:[%s11639_s23 + $0x300] sm:$0xff]   ;;  %v11955_v0 = vld [vmem:[%s11633_s24 + $0x90] sm:$0xff]  }
 0x14a   : > { %925 = vst.msk [vmem:[#allocation2 + $0x1a0] sm:$0x1f] %vm916_vm2, %v16663_v17  ;;  %926 = vst.msk [vmem:[#allocation2 + $0x1c0] sm:$0x1f] %vm916_vm2, %v16663_v17  ;;  %v11897_v28 = vadd.f32 %v1475_v6, %v1346_v5  ;;  %v11914_v38 = vld [vmem:[%s11639_s23 + $0x380] sm:$0xff]   ;;  %v11942_v6 = vld [vmem:[%s11633_s24 + $0x288] sm:$0xff]  }
 0x14b   : > { %927 = vst.msk [vmem:[#allocation2 + $0x1e0] sm:$0x1f] %vm916_vm2, %v16663_v17  ;;  %928 = vst.msk [vmem:[#allocation2 + $0x200] sm:$0x1f] %vm916_vm2, %v16663_v17  ;;  %v11917_v40 = vld [vmem:[%s11639_s23 + $0x400] sm:$0xff]   ;;  %v11929_v55 = vadd.f32 %v3085_v25, %v2956_v24  ;;  %v11971_v5 = vld [vmem:[%s11633_s24 + $0x408] sm:$0xff]  }
 0x14c   : > { %929 = vst.msk [vmem:[#allocation2 + $0x220] sm:$0x1f] %vm916_vm2, %v16663_v17  ;;  %930 = vst.msk [vmem:[#allocation2 + $0x240] sm:$0x1f] %vm916_vm2, %v16663_v17  ;;  %v4598_v62 = vld [vmem:[#allocation2 + $0xa] sm:$0xff]  ;;  %v11978_v63 = vld [vmem:[%s11639_s23 + $0x8] sm:$0xff]  }
 0x14d   : > { %931 = vst.msk [vmem:[#allocation2 + $0x260] sm:$0x1f] %vm916_vm2, %v16663_v17  ;;  %932 = vst.msk [vmem:[#allocation2 + $0x280] sm:$0x1f] %vm916_vm2, %v16663_v17  ;;  %v11983_v49 = vld [vmem:[%s11641_s29 + $0x180] sm:$0xff]   ;;  %v11992_v48 = vld [vmem:[%s11633_s24 + $0x190] sm:$0xff]  }
 0x14e   : > { %10621 = vmatmul.mubr.msk.bf16.gmra.mrb[12].mxu0 %vm662_vm0, %v10800_v8  ;;  %933 = vst.msk [vmem:[#allocation2 + $0xb5] sm:$0x1f] %vm916_vm2, %v16663_v17  ;;  %934 = vst.msk [vmem:[#allocation2 + $0xd5] sm:$0x1f] %vm916_vm2, %v16663_v17  ;;  %v11871_v8 = vadd.f32 %v1474_v52, %v1345_v51  ;;  %v4437_v51 = vld [vmem:[#allocation2 + $0x5] sm:$0xff]  ;;  %v11927_v52 = vld [vmem:[%s11641_s29 + $0x100] sm:$0xff]  }
 0x14f   : > { %10624 = vmatprep.mubr.msk.bf16.mxu0 %vm662_vm0, %v10801_v9  ;;  %935 = vst.msk [vmem:[#allocation2 + $0xf5] sm:$0x1f] %vm916_vm2, %v16663_v17  ;;  %936 = vst.msk [vmem:[#allocation2 + $0x115] sm:$0x1f] %vm916_vm2, %v16663_v17  ;;  %v9714_v24 = vunpack.c.l.bf16 %v11927_v52  ;;  %v11997_v31 = vld [vmem:[%s11641_s29 + $0x200] sm:$0xff]   ;;  %v2829_v37 = vld [vmem:[#allocation2 + $0x65] sm:$0xff] }
 0x150   : > { %937 = vst.msk [vmem:[#allocation2 + $0x135] sm:$0x1f] %vm916_vm2, %v16663_v17  ;;  %938 = vst.msk [vmem:[#allocation2 + $0x155] sm:$0x1f] %vm916_vm2, %v16663_v17  ;;  %v4438_v7 = vld [vmem:[#allocation2 + $0xd] sm:$0xff]  ;;  %v12018_v9 = vld [vmem:[%s11633_s24 + $0x290] sm:$0xff]  }
 0x151   : > { %939 = vst.msk [vmem:[#allocation2 + $0x175] sm:$0x1f] %vm916_vm2, %v16663_v17  ;;  %940 = vst.msk [vmem:[#allocation2 + $0x195] sm:$0x1f] %vm916_vm2, %v16663_v17  ;;  %v12037_v57 = vld [vmem:[%s11641_s29 + $0x280] sm:$0xff]  }
 0x152   : > { %941 = vst.msk [vmem:[#allocation2 + $0x1b5] sm:$0x1f] %vm916_vm2, %v16663_v17  ;;  %942 = vst.msk [vmem:[#allocation2 + $0x1d5] sm:$0x1f] %vm916_vm2, %v16663_v17 }
 0x153   : > { %943 = vst.msk [vmem:[#allocation2 + $0x1f5] sm:$0x1f] %vm916_vm2, %v16663_v17  ;;  %944 = vst.msk [vmem:[#allocation2 + $0x215] sm:$0x1f] %vm916_vm2, %v16663_v17 }
 0x154   : > { %945 = vst.msk [vmem:[#allocation2 + $0x235] sm:$0x1f] %vm916_vm2, %v16663_v17  ;;  %946 = vst.msk [vmem:[#allocation2 + $0x255] sm:$0x1f] %vm916_vm2, %v16663_v17 }
 0x155   : > { %947 = vst.msk [vmem:[#allocation2 + $0x275] sm:$0x1f] %vm916_vm2, %v16663_v17  ;;  %948 = vst.msk [vmem:[#allocation2 + $0x295] sm:$0x1f] %vm916_vm2, %v16663_v17 }
 0x156   : > { %10625 = vmatmul.mubr.msk.bf16.gmra.mrb[16].mxu0 %vm662_vm0, %v10802_v10  ;;  %984 = vst.msk [vmem:[#allocation3 + $0x10] sm:$0x3] %vm983_vm3, %v16663_v17  ;;  %988 = vst.msk [vmem:[#allocation3 + $0x1a8] sm:$0x3] %vm983_vm3, %v16663_v17 }
 0x157   : > { %10628 = vmatprep.mubr.msk.bf16.mxu0 %vm662_vm0, %v10803_v11  ;;  %877 = vst.msk [vmem:[#allocation2 + $0x18] sm:$0x3] %vm876_vm4, %v16663_v17  ;;  %881 = vst.msk [vmem:[#allocation2 + $0x38] sm:$0x3] %vm876_vm4, %v16663_v17  ;;  %v12012_v11 = vld [vmem:[%s11633_s24 + $0x210] sm:$0xff]  }
 0x158   : > { %885 = vst.msk [vmem:[#allocation2 + $0x58] sm:$0x3] %vm876_vm4, %v16663_v17  ;;  %889 = vst.msk [vmem:[#allocation2 + $0x78] sm:$0x3] %vm876_vm4, %v16663_v17 }
 0x159   : > { %893 = vst.msk [vmem:[#allocation2 + $0x98] sm:$0x3] %vm876_vm4, %v16663_v17  ;;  %898 = vst.msk [vmem:[#allocation2 + $0x2b8] sm:$0x3] %vm876_vm4, %v16663_v17 }
 0x15a   : > { %902 = vst.msk [vmem:[#allocation2 + $0x2d8] sm:$0x3] %vm876_vm4, %v16663_v17  ;;  %906 = vst.msk [vmem:[#allocation2 + $0x2f8] sm:$0x3] %vm876_vm4, %v16663_v17 }
 0x15b   : > { %910 = vst.msk [vmem:[#allocation2 + $0x318] sm:$0x3] %vm876_vm4, %v16663_v17  ;;  %914 = vst.msk [vmem:[#allocation2 + $0x338] sm:$0x3] %vm876_vm4, %v16663_v17  ;;  %v11986_v17 = vld [vmem:[%s11639_s23 + $0x88] sm:$0xff]  }
 0x15c   : > { %16946 = vst [vmem:[#allocation36_spill] sm:$0xff] %v11955_v0  ;;  %16948 = vst [vmem:[#allocation38_spill] sm:$0xff] %v11971_v5  ;;  %v4602_v5 = vld [vmem:[#allocation2 + $0x4a] sm:$0xff] }
 0x15d   : > { %v5952_v19 = vld [vmem:[#allocation3 + $0x9] sm:$0xff]  ;;  %16949 = vst [vmem:[#allocation39_spill] sm:$0xff] %v11983_v49  ;;  %16950 = vst [vmem:[#allocation40_spill] sm:$0xff] %v11997_v31 }
 0x15e   : > { %10629 = vmatmul.mubr.msk.bf16.gmra.mrb[20].mxu0 %vm662_vm0, %v10804_v12  ;;  %v5983_v20 = vpack.c.bf16 %v5952_v19, %v5951_v18  ;;  %v6081_v22 = vld [vmem:[#allocation3 + $0xa] sm:$0xff]  ;;  %v2925_v18 = vmul.f32 %v9075_v60, %v2828_v2  ;;  %v9139_v19 = vunpack.c.h.bf16 %v10334_v50  ;;  %v4277_v50 = vld [vmem:[#allocation2] sm:$0xff]  ;;  %v4695_v60 = vmul.f32 %v9714_v24, %v4598_v62  ;;  %16952 = vst [vmem:[#allocation42_spill] sm:$0xff] %v12021_v30 }
 0x15f   : > { %10632 = vmatprep.mubr.msk.bf16.mxu0 %vm662_vm0, %v10805_v13  ;;  %v6112_v23 = vpack.c.bf16 %v6081_v22, %v6080_v21  ;;  %v11877_v12 = vld [vmem:[%s11639_s23 + $0x180] sm:$0xff]   ;;  %v10320_v24 = vld [vmem:[%s11639_s23 + $0x90] sm:$0xff]   ;;  %16954 = vst [vmem:[#allocation44_spill] sm:$0xff] %v12034_v61  ;;  %16955 = vst [vmem:[#allocation45_spill] sm:$0xff] %v12037_v57 }
 0x160   : > { %6015 = vrot.lane.b32.xlu0 %v5983_v20, %s11194_s15  ;;  %v11880_v13 = vld [vmem:[%s11639_s23 + $0x200] sm:$0xff]   ;;  %v3086_v47 = vmul.f32 %v9139_v19, %v2989_v26  ;;  %v2669_v22 = vld [vmem:[#allocation2 + $0x62] sm:$0xff]  ;;  %v9082_v36 = vunpack.c.l.bf16 %v10320_v24 }
 0x161   : > { %v11887_v20 = vld [vmem:[%s11641_s29] sm:$0xff]   ;;  %v10336_v2 = vld [vmem:[%s11639_s23 + $0x110] sm:$0xff]  }
 0x162   : > { %v11890_v21 = vld [vmem:[%s11641_s29 + $0x80] sm:$0xff]   ;;  %v9586_v44 = vunpack.c.l.bf16 %v11887_v20  ;;  %v9587_v62 = vunpack.c.h.bf16 %v11887_v20  ;;  %v9078_v20 = vunpack.c.l.bf16 %v11986_v17 }
 0x163   : > { %v9650_v45 = vunpack.c.l.bf16 %v11890_v21 }
 0x164   : > { %6144 = vrot.lane.b32.xlu0 %v6112_v23, %s11195_s11  ;;  %v2926_v0 = vmul.f32 %v9078_v20, %v2829_v37  ;;  %v2992_v20 = vld [vmem:[#allocation2 + $0x88] sm:$0xff] }
 0x165   : > { %v4534_v19 = vmul.f32 %v9650_v45, %v4437_v51  ;;  %v11960_v45 = vld [vmem:[%s11633_s24 + $0x308] sm:$0xff]   ;;  %v11968_v51 = vld [vmem:[%s11633_s24 + $0x110] sm:$0xff]  }
 0x166   : > { %10633 = vmatmul.mubr.msk.bf16.gmra.mrb[24].mxu0 %vm662_vm0, %v10806_v14  ;;  %16947 = vst [vmem:[#allocation37_spill] sm:$0xff] %v11968_v51  ;;  %v9083_v14 = vunpack.c.h.bf16 %v10320_v24 }
 0x167   : > { %10636 = vmatprep.mubr.msk.bf16.mxu0 %vm662_vm0, %v10807_v15  ;;  %v11884_v15 = vld [vmem:[%s11639_s23 + $0x280] sm:$0xff]  }
 0x16e   : > { %10637 = vmatmul.mubr.msk.bf16.gmra.mrb[28].mxu0 %vm662_vm0, %v10808_v16  ;;  %v2764_v16 = vmul.f32 %v9011_v59, %v2668_v1  ;;  %v11937_v1 = vld [vmem:[%s11633_s24 + $0x108] sm:$0xff]  }
 0x170   : > { %v2957_v46 = vadd.f32 %v2925_v18, %v2764_v16  ;;  %v11946_v16 = vld [vmem:[%s11633_s24 + $0x10] sm:$0xff]   ;;  %v4373_v18 = vmul.f32 %v9586_v44, %v4277_v50  ;;  %v9014_v50 = vunpack.c.l.bf16 %v11978_v63  ;;  %v4278_v44 = vld [vmem:[#allocation2 + $0x8] sm:$0xff] }
 0x171   : > { %16945 = vst [vmem:[#allocation35_spill] sm:$0xff] %v11946_v16  ;;  %v4374_v10 = vmul.f32 %v9587_v62, %v4278_v44  ;;  %v9142_v16 = vunpack.c.l.bf16 %v12030_v3 }
 0x172   : > { %v11949_v25 = vadd.f32 %v3086_v47, %v2957_v46  ;;  %v11963_v46 = vld [vmem:[%s11633_s24 + $0x388] sm:$0xff]   ;;  %v4566_v59 = vadd.f32 %v4534_v19, %v4373_v18  ;;  %v9651_v18 = vunpack.c.h.bf16 %v11890_v21  ;;  %v10304_v19 = vld [vmem:[%s11639_s23 + $0x10] sm:$0xff]   ;;  %v2765_v32 = vmul.f32 %v9014_v50, %v2669_v22  ;;  %v2672_v50 = vld [vmem:[#allocation2 + $0x8a] sm:$0xff] }
 0x173   : > { %v12024_v21 = vld [vmem:[%s11633_s24 + $0x390] sm:$0xff]   ;;  %v9018_v23 = vunpack.c.l.bf16 %v10304_v19  ;;  %v9019_v51 = vunpack.c.h.bf16 %v10304_v19  ;;  %v9146_v47 = vunpack.c.l.bf16 %v10336_v2  ;;  %v9147_v22 = vunpack.c.h.bf16 %v10336_v2  ;;  %v12073_v19 = vld [vmem:[%s11641_s29 + $0x300] sm:$0xff]  }
 0x174   : > { %v12014_v26 = vadd.f32 %v4695_v60, %v4566_v59  ;;  %16953 = vst [vmem:[#allocation43_spill] sm:$0xff] %v12024_v21  ;;  %v4535_v4 = vmul.f32 %v9651_v18, %v4438_v7  ;;  %v9715_v59 = vunpack.c.h.bf16 %v11927_v52  ;;  %v2671_v60 = vld [vmem:[#allocation2 + $0x82] sm:$0xff]  ;;  %v2928_v18 = vmul.f32 %v9082_v36, %v11839_v29  ;;  %v2993_v36 = vld [vmem:[#allocation2 + $0x90] sm:$0xff]  ;;  %16961 = vst [vmem:[#allocation51_spill] sm:$0xff] %v12073_v19 }
 0x175   : > { %v2767_v62 = vmul.f32 %v9018_v23, %v2671_v60  ;;  %v2990_v7 = vld [vmem:[#allocation2 + $0x68] sm:$0xff]  ;;  %v2768_v44 = vmul.f32 %v9019_v51, %v2672_v50  ;;  %v2929_v52 = vmul.f32 %v9083_v14, %v11845_v39  ;;  %v2958_v49 = vadd.f32 %v2926_v0, %v2765_v32  ;;  %v12054_v14 = vld [vmem:[%s11639_s23 + $0x188] sm:$0xff]   ;;  %v12062_v50 = vld [vmem:[%s11639_s23 + $0x190] sm:$0xff]  }
 0x176   : > { %16951 = vst [vmem:[#allocation41_spill] sm:$0xff] %v12014_v26  ;;  %v4599_v26 = vld [vmem:[#allocation2 + $0x12] sm:$0xff]  ;;  %v4567_v37 = vadd.f32 %v4535_v4, %v4374_v10  ;;  %v9015_v60 = vunpack.c.h.bf16 %v11978_v63  ;;  %v9079_v4 = vunpack.c.h.bf16 %v11986_v17  ;;  %v3089_v51 = vmul.f32 %v9146_v47, %v2992_v20  ;;  %16956 = vst [vmem:[#allocation46_spill] sm:$0xff] %v12054_v14  ;;  %v2670_v32 = vld [vmem:[#allocation2 + $0x6a] sm:$0xff] }
 0x177   : > { %v4696_v24 = vmul.f32 %v9715_v59, %v4599_v26  ;;  %v2960_v26 = vadd.f32 %v2928_v18, %v2767_v62  ;;  %v3087_v39 = vmul.f32 %v9142_v16, %v2990_v7  ;;  %v2830_v0 = vld [vmem:[#allocation2 + $0x6d] sm:$0xff]  ;;  %16958 = vst [vmem:[#allocation48_spill] sm:$0xff] %v12062_v50  ;;  %v12065_v47 = vld [vmem:[%s11639_s23 + $0x210] sm:$0xff]   ;;  %v2961_v18 = vadd.f32 %v2929_v52, %v2768_v44  ;;  %v12077_v59 = vld [vmem:[%s11639_s23 + $0x208] sm:$0xff]  }
 0x178   : > { %16959 = vst [vmem:[#allocation49_spill] sm:$0xff] %v12065_v47  ;;  %v12070_v62 = vld [vmem:[%s11639_s23 + $0x290] sm:$0xff]   ;;  %v3090_v20 = vmul.f32 %v9147_v22, %v2993_v36  ;;  %16962 = vst [vmem:[#allocation52_spill] sm:$0xff] %v12077_v59  ;;  %v9143_v2 = vunpack.c.h.bf16 %v12030_v3  ;;  %v12081_v16 = vld [vmem:[%s11641_s29 + $0x380] sm:$0xff]  }
 0x179   : > { %v12059_v17 = vadd.f32 %v4696_v24, %v4567_v37  ;;  %16960 = vst [vmem:[#allocation50_spill] sm:$0xff] %v12070_v62  ;;  %v2766_v37 = vmul.f32 %v9015_v60, %v2670_v32  ;;  %v2927_v24 = vmul.f32 %v9079_v4, %v2830_v0  ;;  %16963 = vst [vmem:[#allocation53_spill] sm:$0xff] %v12081_v16  ;;  %v12084_v7 = vld [vmem:[%s11641_s29 + $0x400] sm:$0xff]   ;;  %v12094_v4 = vld [vmem:[%s11639_s23 + $0x310] sm:$0xff]  }
 0x17a   : > { %16964 = vst [vmem:[#allocation54_spill] sm:$0xff] %v12084_v7  ;;  %v12086_v10 = vadd.f32 %v3089_v51, %v2960_v26  ;;  %v12090_v22 = vadd.f32 %v3087_v39, %v2958_v49  ;;  %v2991_v36 = vld [vmem:[#allocation2 + $0x70] sm:$0xff]  ;;  %16967 = vst [vmem:[#allocation57_spill] sm:$0xff] %v12094_v4  ;;  %v12100_v51 = vld [vmem:[%s11639_s23 + $0x288] sm:$0xff]   ;;  %v12107_v63 = vadd.f32 %v3090_v20, %v2961_v18 }
 0x17b   : > { %16957 = vst [vmem:[#allocation47_spill] sm:$0xff] %v12059_v17  ;;  %16968 = vst [vmem:[#allocation58_spill] sm:$0xff] %v12100_v51  ;;  %v12105_v39 = vld [vmem:[%s11639_s23 + $0x390] sm:$0xff]   ;;  %v2959_v52 = vadd.f32 %v2927_v24, %v2766_v37  ;;  %v3088_v44 = vmul.f32 %v9143_v2, %v2991_v36  ;;  %v12126_v32 = vld [vmem:[%s11633_s24 + $0x18] sm:$0xff]  }
 0x17c   : > { %16965 = vst [vmem:[#allocation55_spill] sm:$0xff] %v12086_v10  ;;  %16966 = vst [vmem:[#allocation56_spill] sm:$0xff] %v12090_v22  ;;  %v12113_v3 = vld [vmem:[%s11639_s23 + $0x410] sm:$0xff]   ;;  %v12129_v29 = vld [vmem:[%s11633_s24 + $0x98] sm:$0xff]  }
 0x17d   : > { %16969 = vst [vmem:[#allocation59_spill] sm:$0xff] %v12105_v39  ;;  %16970 = vst [vmem:[#allocation60_spill] sm:$0xff] %v12107_v63  ;;  %v12116_v49 = vld [vmem:[%s11641_s29 + $0x10] sm:$0xff]   ;;  %v12132_v2 = vld [vmem:[%s11633_s24 + $0x20] sm:$0xff]   ;;  %v12162_v26 = vadd.f32 %v3088_v44, %v2959_v52 }
 0x17e   : > { %16971 = vst [vmem:[#allocation61_spill] sm:$0xff] %v12113_v3  ;;  %v12119_v0 = vld [vmem:[%s11641_s29 + $0x90] sm:$0xff]   ;;  %16972 = vst [vmem:[#allocation62_spill] sm:$0xff] %v12126_v32  ;;  %v12136_v24 = vld [vmem:[%s11639_s23 + $0x308] sm:$0xff]   ;;  %v9594_v62 = vunpack.c.l.bf16 %v12116_v49  ;;  %v9595_v14 = vunpack.c.h.bf16 %v12116_v49 }
 0x17f   : > { %16973 = vst [vmem:[#allocation63_spill] sm:$0xff] %v12129_v29  ;;  %16974 = vst [vmem:[#allocation64_spill] sm:$0xff] %v12132_v2  ;;  %v12139_v36 = vld [vmem:[%s11639_s23 + $0x388] sm:$0xff]   ;;  %v12150_v22 = vld [vmem:[%s11633_s24 + $0x118] sm:$0xff]   ;;  %v9658_v20 = vunpack.c.l.bf16 %v12119_v0  ;;  %v9659_v4 = vunpack.c.h.bf16 %v12119_v0 }
 0x180   : > { %16975 = vst [vmem:[#allocation65_spill] sm:$0xff] %v12136_v24  ;;  %16976 = vst [vmem:[#allocation66_spill] sm:$0xff] %v12139_v36  ;;  %v12142_v18 = vld [vmem:[%s11639_s23 + $0x408] sm:$0xff]   ;;  %v12153_v37 = vld [vmem:[%s11633_s24 + $0x198] sm:$0xff]  }
 0x181   : > { %16977 = vst [vmem:[#allocation67_spill] sm:$0xff] %v12142_v18  ;;  %16978 = vst [vmem:[#allocation68_spill] sm:$0xff] %v12150_v22  ;;  %v12156_v63 = vld [vmem:[%s11633_s24 + $0x218] sm:$0xff]   ;;  %v4281_v23 = vld [vmem:[#allocation2 + $0x40] sm:$0xff] }
 0x182   : > { %16979 = vst [vmem:[#allocation69_spill] sm:$0xff] %v12153_v37  ;;  %16980 = vst [vmem:[#allocation70_spill] sm:$0xff] %v12156_v63  ;;  %v4441_v51 = vld [vmem:[#allocation2 + $0x45] sm:$0xff]  ;;  %v4377_v10 = vmul.f32 %v9594_v62, %v4281_v23  ;;  %v12187_v44 = vld [vmem:[%s11633_s24 + $0x120] sm:$0xff]  }
 0x183   : > { %16981 = vst [vmem:[#allocation71_spill] sm:$0xff] %v12162_v26  ;;  %v12166_v59 = vld [vmem:[%s11641_s29 + $0x110] sm:$0xff]   ;;  %v12172_v50 = vld [vmem:[%s11633_s24 + $0x298] sm:$0xff]   ;;  %v12181_v26 = vld [vmem:[%s11633_s24 + $0xa0] sm:$0xff]   ;;  %v4538_v3 = vmul.f32 %v9658_v20, %v4441_v51 }
 0x184   : > { %16982 = vst [vmem:[#allocation72_spill] sm:$0xff] %v12172_v50  ;;  %16983 = vst [vmem:[#allocation73_spill] sm:$0xff] %v12181_v26  ;;  %v9722_v47 = vunpack.c.l.bf16 %v12166_v59  ;;  %v12196_v60 = vld [vmem:[%s11641_s29 + $0x190] sm:$0xff]   ;;  %v4282_v39 = vld [vmem:[#allocation2 + $0x48] sm:$0xff]  ;;  %v9723_v24 = vunpack.c.h.bf16 %v12166_v59 }
 0x185   : > { %16984 = vst [vmem:[#allocation74_spill] sm:$0xff] %v12187_v44  ;;  %16985 = vst [vmem:[#allocation75_spill] sm:$0xff] %v12196_v60  ;;  %v4442_v52 = vld [vmem:[#allocation2 + $0x4d] sm:$0xff]  ;;  %v12206_v62 = vld [vmem:[%s11641_s29 + $0x8] sm:$0xff]   ;;  %v4570_v49 = vadd.f32 %v4538_v3, %v4377_v10  ;;  %v4378_v18 = vmul.f32 %v9595_v14, %v4282_v39 }
 0x186   : > { %v12203_v32 = vld [vmem:[%s11639_s23 + $0x20] sm:$0xff]   ;;  %v12209_v20 = vld [vmem:[%s11641_s29 + $0x88] sm:$0xff]   ;;  %v12212_v51 = vld [vmem:[%s11633_s24 + $0x318] sm:$0xff]   ;;  %v4699_v23 = vmul.f32 %v9722_v47, %v4602_v5  ;;  %v4539_v36 = vmul.f32 %v9659_v4, %v4442_v52  ;;  %v9590_v5 = vunpack.c.l.bf16 %v12206_v62 }
 0x187   : > { %16986 = vst [vmem:[#allocation76_spill] sm:$0xff] %v12203_v32  ;;  %16987 = vst [vmem:[#allocation77_spill] sm:$0xff] %v12212_v51  ;;  %v12215_v63 = vld [vmem:[%s11633_s24 + $0x398] sm:$0xff]   ;;  %v12223_v50 = vld [vmem:[%s11633_s24 + $0x1a0] sm:$0xff]   ;;  %v9654_v47 = vunpack.c.l.bf16 %v12209_v20 }
 0x188   : > { %16988 = vst [vmem:[#allocation78_spill] sm:$0xff] %v12215_v63  ;;  %v12218_v37 = vld [vmem:[%s11633_s24 + $0x418] sm:$0xff]   ;;  %16990 = vst [vmem:[#allocation80_spill] sm:$0xff] %v12223_v50  ;;  %v12228_v17 = vld [vmem:[%s11633_s24 + $0x220] sm:$0xff]   ;;  %v12247_v14 = vadd.f32 %v4699_v23, %v4570_v49  ;;  %v4571_v26 = vadd.f32 %v4539_v36, %v4378_v18  ;;  %v9591_v18 = vunpack.c.h.bf16 %v12206_v62 }
 0x189   : > { %16989 = vst [vmem:[#allocation79_spill] sm:$0xff] %v12218_v37  ;;  %16991 = vst [vmem:[#allocation81_spill] sm:$0xff] %v12228_v17  ;;  %v12232_v16 = vld [vmem:[%s11641_s29 + $0x210] sm:$0xff]   ;;  %v4603_v29 = vld [vmem:[#allocation2 + $0x52] sm:$0xff] }
 0x18a   : > { %16992 = vst [vmem:[#allocation82_spill] sm:$0xff] %v12232_v16  ;;  %v4279_v39 = vld [vmem:[#allocation2 + $0x20] sm:$0xff]  ;;  %v12242_v22 = vld [vmem:[%s11641_s29 + $0x108] sm:$0xff]   ;;  %16993 = vst [vmem:[#allocation83_spill] sm:$0xff] %v12247_v14  ;;  %v4700_v2 = vmul.f32 %v9723_v24, %v4603_v29  ;;  %v9655_v24 = vunpack.c.h.bf16 %v12209_v20 }
 0x18b   : > { %v4439_v52 = vld [vmem:[#allocation2 + $0x25] sm:$0xff]  ;;  %v12255_v44 = vld [vmem:[%s11633_s24 + $0x2a0] sm:$0xff]   ;;  %v4375_v49 = vmul.f32 %v9590_v5, %v4279_v39  ;;  %v9718_v14 = vunpack.c.l.bf16 %v12242_v22  ;;  %v12297_v62 = vld [vmem:[%s11641_s29 + $0x208] sm:$0xff]   ;;  %v9719_v23 = vunpack.c.h.bf16 %v12242_v22 }
 0x18c   : > { %v12250_v4 = vld [vmem:[%s11641_s29 + $0x290] sm:$0xff]   ;;  %16995 = vst [vmem:[#allocation85_spill] sm:$0xff] %v12255_v44  ;;  %v12258_v19 = vld [vmem:[%s11633_s24 + $0x320] sm:$0xff]   ;;  %v4536_v0 = vmul.f32 %v9654_v47, %v4439_v52  ;;  %v4280_v52 = vld [vmem:[#allocation2 + $0x28] sm:$0xff]  ;;  %v12282_v20 = vadd.f32 %v4700_v2, %v4571_v26 }
 0x18d   : > { %16994 = vst [vmem:[#allocation84_spill] sm:$0xff] %v12250_v4  ;;  %16996 = vst [vmem:[#allocation86_spill] sm:$0xff] %v12258_v19  ;;  %v12261_v10 = vld [vmem:[%s11633_s24 + $0x3a0] sm:$0xff]   ;;  %v12290_v4 = vld [vmem:[%s11641_s29 + $0x188] sm:$0xff]   ;;  %v4376_v26 = vmul.f32 %v9591_v18, %v4280_v52  ;;  %v17069_v19 = vunpack.c.h.bf16 %v11856_v53 }
 0x18e   : > { %16997 = vst [vmem:[#allocation87_spill] sm:$0xff] %v12261_v10  ;;  %v12264_v7 = vld [vmem:[%s11633_s24 + $0x420] sm:$0xff]   ;;  %17000 = vst [vmem:[#allocation90_spill] sm:$0xff] %v12282_v20  ;;  %v4568_v16 = vadd.f32 %v4536_v0, %v4375_v49  ;;  %v12294_v60 = vld [vmem:[%s11641_s29 + $0x310] sm:$0xff]  }
 0x18f   : > { %16998 = vst [vmem:[#allocation88_spill] sm:$0xff] %v12264_v7  ;;  %v12271_v37 = vld [vmem:[%s11639_s23 + $0xa0] sm:$0xff]   ;;  %17002 = vst [vmem:[#allocation92_spill] sm:$0xff] %v12290_v4  ;;  %v12307_v49 = vld [vmem:[%s11641_s29 + $0x410] sm:$0xff]  }
 0x190   : > { %16999 = vst [vmem:[#allocation89_spill] sm:$0xff] %v12271_v37  ;;  %v4600_v29 = vld [vmem:[#allocation2 + $0x2a] sm:$0xff]  ;;  %17003 = vst [vmem:[#allocation93_spill] sm:$0xff] %v12294_v60  ;;  %v4601_v18 = vld [vmem:[#allocation2 + $0x32] sm:$0xff] }
 0x191   : > { %v4440_v3 = vld [vmem:[#allocation2 + $0x2d] sm:$0xff]  ;;  %v4697_v39 = vmul.f32 %v9718_v14, %v4600_v29  ;;  %17004 = vst [vmem:[#allocation94_spill] sm:$0xff] %v12297_v62  ;;  %v12304_v14 = vld [vmem:[%s11641_s29 + $0x390] sm:$0xff]   ;;  %17006 = vst [vmem:[#allocation96_spill] sm:$0xff] %v12307_v49 }
 0x192   : > { %v12285_v36 = vld [vmem:[%s11639_s23 + $0x120] sm:$0xff]   ;;  %v4537_v2 = vmul.f32 %v9655_v24, %v4440_v3  ;;  %17005 = vst [vmem:[#allocation95_spill] sm:$0xff] %v12304_v14  ;;  %v12315_v0 = vld [vmem:[%s11641_s29 + $0x288] sm:$0xff]   ;;  %v12326_v22 = vld [vmem:[%s11639_s23 + $0x18] sm:$0xff]  }
 0x193   : > { %17001 = vst [vmem:[#allocation91_spill] sm:$0xff] %v12285_v36  ;;  %17007 = vst [vmem:[#allocation97_spill] sm:$0xff] %v12315_v0  ;;  %v12320_v29 = vld [vmem:[%s11639_s23 + $0x1a0] sm:$0xff]   ;;  %v12322_v59 = vadd.f32 %v4697_v39, %v4568_v16  ;;  %v12329_v24 = vld [vmem:[%s11639_s23 + $0x98] sm:$0xff]   ;;  %v4698_v39 = vmul.f32 %v9719_v23, %v4601_v18 }
 0x194   : > { %17008 = vst [vmem:[#allocation98_spill] sm:$0xff] %v12320_v29  ;;  %17010 = vst [vmem:[#allocation100_spill] sm:$0xff] %v12326_v22  ;;  %v12334_v47 = vld [vmem:[%s11639_s23 + $0x220] sm:$0xff]   ;;  %v4569_v16 = vadd.f32 %v4537_v2, %v4376_v26  ;;  %v12350_v52 = vld [vmem:[%s11639_s23 + $0x118] sm:$0xff]  }
 0x195   : > { %17009 = vst [vmem:[#allocation99_spill] sm:$0xff] %v12322_v59  ;;  %17011 = vst [vmem:[#allocation101_spill] sm:$0xff] %v12329_v24  ;;  %v12337_v37 = vld [vmem:[%s11639_s23 + $0x2a0] sm:$0xff]   ;;  %v12368_v2 = vld [vmem:[%s11639_s23 + $0x198] sm:$0xff]  }
 0x196   : > { %17012 = vst [vmem:[#allocation102_spill] sm:$0xff] %v12334_v47  ;;  %17013 = vst [vmem:[#allocation103_spill] sm:$0xff] %v12337_v37  ;;  %v12340_v5 = vld [vmem:[%s11639_s23 + $0x320] sm:$0xff]   ;;  %v12364_v26 = vadd.f32 %v4698_v39, %v4569_v16  ;;  %v12371_v0 = vld [vmem:[%s11639_s23 + $0x218] sm:$0xff]  }
 0x197   : > { %17014 = vst [vmem:[#allocation104_spill] sm:$0xff] %v12340_v5  ;;  %v12345_v32 = vld [vmem:[%s11639_s23 + $0x3a0] sm:$0xff]   ;;  %17016 = vst [vmem:[#allocation106_spill] sm:$0xff] %v12350_v52  ;;  %v12374_v18 = vld [vmem:[%s11639_s23 + $0x298] sm:$0xff]  }
 0x198   : > { %17015 = vst [vmem:[#allocation105_spill] sm:$0xff] %v12345_v32  ;;  %v12353_v60 = vld [vmem:[%s11639_s23 + $0x420] sm:$0xff]   ;;  %17018 = vst [vmem:[#allocation108_spill] sm:$0xff] %v12364_v26  ;;  %v12380_v4 = vld [vmem:[%s11641_s29 + $0x308] sm:$0xff]  }
 0x199   : > { %17017 = vst [vmem:[#allocation107_spill] sm:$0xff] %v12353_v60  ;;  %17019 = vst [vmem:[#allocation109_spill] sm:$0xff] %v12368_v2  ;;  %v12383_v16 = vld [vmem:[%s11641_s29 + $0x388] sm:$0xff]   ;;  %v12402_v26 = vld [vmem:[%s11639_s23 + $0x318] sm:$0xff]  }
 0x19a   : > { %17020 = vst [vmem:[#allocation110_spill] sm:$0xff] %v12371_v0  ;;  %17021 = vst [vmem:[#allocation111_spill] sm:$0xff] %v12374_v18  ;;  %v12386_v39 = vld [vmem:[%s11641_s29 + $0x408] sm:$0xff]   ;;  %v12408_v59 = vld [vmem:[%s11639_s23 + $0x30] sm:$0xff]  }
 0x19b   : > { %17022 = vst [vmem:[#allocation112_spill] sm:$0xff] %v12380_v4  ;;  %17023 = vst [vmem:[#allocation113_spill] sm:$0xff] %v12383_v16  ;;  %v12395_v22 = vld [vmem:[%s11639_s23 + $0x28] sm:$0xff]   ;;  %v12415_v3 = vld [vmem:[%s11639_s23 + $0x398] sm:$0xff]  }
 0x19c   : > { %17024 = vst [vmem:[#allocation114_spill] sm:$0xff] %v12386_v39  ;;  %17025 = vst [vmem:[#allocation115_spill] sm:$0xff] %v12395_v22  ;;  %v12405_v20 = vld [vmem:[%s11639_s23 + $0xa8] sm:$0xff]   ;;  %v12418_v23 = vld [vmem:[%s11639_s23 + $0x418] sm:$0xff]  }
 0x19d   : > { %17026 = vst [vmem:[#allocation116_spill] sm:$0xff] %v12402_v26  ;;  %17027 = vst [vmem:[#allocation117_spill] sm:$0xff] %v12405_v20  ;;  %v12421_v24 = vld [vmem:[%s11639_s23 + $0x128] sm:$0xff]   ;;  %v12469_v47 = vld [vmem:[%s11633_s24 + $0x30] sm:$0xff]  }
 0x19e   : > { %17028 = vst [vmem:[#allocation118_spill] sm:$0xff] %v12408_v59  ;;  %17029 = vst [vmem:[#allocation119_spill] sm:$0xff] %v12415_v3  ;;  %v12427_v52 = vld [vmem:[%s11633_s24 + $0x28] sm:$0xff]   ;;  %v12493_v3 = vld [vmem:[%s11633_s24 + $0xb0] sm:$0xff]  }
 0x19f   : > { %17030 = vst [vmem:[#allocation120_spill] sm:$0xff] %v12418_v23  ;;  %17031 = vst [vmem:[#allocation121_spill] sm:$0xff] %v12421_v24  ;;  %v12430_v62 = vld [vmem:[%s11633_s24 + $0xa8] sm:$0xff]   ;;  %v12525_v24 = vld [vmem:[%s11633_s24 + $0x1b0] sm:$0xff]  }
 0x1a0   : > { %17032 = vst [vmem:[#allocation122_spill] sm:$0xff] %v12427_v52  ;;  %17033 = vst [vmem:[#allocation123_spill] sm:$0xff] %v12430_v62  ;;  %v12437_v60 = vld [vmem:[%s11633_s24 + $0x128] sm:$0xff]   ;;  %v12531_v49 = vld [vmem:[%s11639_s23 + $0x130] sm:$0xff]  }
 0x1a1   : > { %17034 = vst [vmem:[#allocation124_spill] sm:$0xff] %v12437_v60  ;;  %v12441_v32 = vld [vmem:[%s11639_s23 + $0x1a8] sm:$0xff]   ;;  %17041 = vst [vmem:[#allocation131_spill] sm:$0xff] %v12469_v47  ;;  %v12562_v59 = vld [vmem:[%s11633_s24 + $0x3b0] sm:$0xff]  }
 0x1a2   : > { %17035 = vst [vmem:[#allocation125_spill] sm:$0xff] %v12441_v32  ;;  %v12444_v2 = vld [vmem:[%s11639_s23 + $0x228] sm:$0xff]   ;;  %17045 = vst [vmem:[#allocation135_spill] sm:$0xff] %v12493_v3  ;;  %v12503_v32 = vld [vmem:[%s11639_s23 + $0xb0] sm:$0xff]  }
 0x1a3   : > { %17036 = vst [vmem:[#allocation126_spill] sm:$0xff] %v12444_v2  ;;  %v12446_v39 = vld [vmem:[#allocation14] ss:$0 sm:$0xff]  ;;  %v12496_v2 = vld [vmem:[%s11633_s24 + $0x130] sm:$0xff]   ;;  %17047 = vst [vmem:[#allocation137_spill] sm:$0xff] %v12503_v32 }
 0x1a4   : > { %v12451_v37 = vld [vmem:[%s11633_s24 + $0x1a8] sm:$0xff]   ;;  %17046 = vst [vmem:[#allocation136_spill] sm:$0xff] %v12496_v2  ;;  %17051 = vst [vmem:[#allocation141_spill] sm:$0xff] %v12525_v24  ;;  %v12576_v3 = vld [vmem:[%s11641_s29 + $0x20] sm:$0xff]  }
 0x1a5   : > { %17037 = vst [vmem:[#allocation127_spill] sm:$0xff] %v12451_v37  ;;  %v12455_v22 = vld [vmem:[%s11639_s23 + $0x2a8] sm:$0xff]   ;;  %17053 = vst [vmem:[#allocation143_spill] sm:$0xff] %v12531_v49  ;;  %v17059_v49 = vunpack.c.l.bf16 %v11848_v41 }
 0x1a6   : > { %17038 = vst [vmem:[#allocation128_spill] sm:$0xff] %v12455_v22  ;;  %v12463_v16 = vld [vmem:[%s11633_s24 + $0x228] sm:$0xff]   ;;  %v12528_v22 = vld [vmem:[%s11633_s24 + $0x230] sm:$0xff]   ;;  %17056 = vst [vmem:[#allocation146_spill] sm:$0xff] %v12562_v59 }
 0x1a7   : > { %17039 = vst [vmem:[#allocation129_spill] sm:$0xff] %v12463_v16  ;;  %v12466_v5 = vld [vmem:[%s11633_s24 + $0x2a8] sm:$0xff]   ;;  %17052 = vst [vmem:[#allocation142_spill] sm:$0xff] %v12528_v22 }
 0x1a8   : > { %17040 = vst [vmem:[#allocation130_spill] sm:$0xff] %v12466_v5  ;;  %v12474_v36 = vld [vmem:[%s11633_s24 + $0x328] sm:$0xff]   ;;  %v12545_v5 = vld [vmem:[%s11633_s24 + $0x2b0] sm:$0xff]   ;;  %17058 = vst [vmem:[#allocation148_spill] sm:$0xff] %v12576_v3 }
 0x1a9   : > { %17042 = vst [vmem:[#allocation132_spill] sm:$0xff] %v12474_v36  ;;  %v12477_v20 = vld [vmem:[%s11633_s24 + $0x3a8] sm:$0xff]   ;;  %17054 = vst [vmem:[#allocation144_spill] sm:$0xff] %v12545_v5 }
 0x1aa   : > { %17043 = vst [vmem:[#allocation133_spill] sm:$0xff] %v12477_v20  ;;  %v12480_v18 = vld [vmem:[%s11633_s24 + $0x428] sm:$0xff]  }
 0x1ab   : > { %17044 = vst [vmem:[#allocation134_spill] sm:$0xff] %v12480_v18  ;;  %v12507_v14 = vld [vmem:[%s11639_s23 + $0x328] sm:$0xff]   ;;  %v17065_v18 = vunpack.c.l.bf16 %v11866_v58 }
 0x1ac   : > { %17048 = vst [vmem:[#allocation138_spill] sm:$0xff] %v12507_v14  ;;  %v12510_v60 = vld [vmem:[%s11639_s23 + $0x3a8] sm:$0xff]  }
 0x1ad   : > { %17049 = vst [vmem:[#allocation139_spill] sm:$0xff] %v12510_v60 }
 0x209   : > { %v10610_v23 = vpop.f32.mrb[0].mxu0 }
 0x20a   : > { %v754_v4 = vadd.f32 %v10610_v23, %v12446_v39  ;;  %v745_v26 = vpop.f32.mrb[1].mxu0  ;;  %v12513_v23 = vld [vmem:[%s11639_s23 + $0x428] sm:$0xff]  }
 0x20b   : > { %v746_v29 = vadd.f32 %v12446_v39, %v745_v26  ;;  %v10611_v0 = vpop.f32.mrb[2].mxu0  ;;  %17050 = vst [vmem:[#allocation140_spill] sm:$0xff] %v12513_v23 }
 0x20c   : > { %951 = vst.msk [vmem:[#allocation2 + $0xc5] sm:$0xff] %vm872_vm1, %v754_v4  ;;  %1025 = vst.msk [vmem:[#allocation3 + $0x31] sm:$0xff] %vm872_vm1, %v754_v4  ;;  %v757_v26 = vadd.f32 %v10611_v0, %v12446_v39  ;;  %v748_v62 = vpop.f32.mrb[3].mxu0 }
 0x20d   : > { %949 = vst.msk [vmem:[#allocation2 + $0xa5] sm:$0xff] %vm872_vm1, %v746_v29  ;;  %1023 = vst.msk [vmem:[#allocation3 + $0x19] sm:$0xff] %vm872_vm1, %v746_v29  ;;  %v749_v4 = vadd.f32 %v12446_v39, %v748_v62  ;;  %v12548_v62 = vld [vmem:[%s11633_s24 + $0x330] sm:$0xff]  }
 0x20e   : > { %952 = vst.msk [vmem:[#allocation2 + $0xcd] sm:$0xff] %vm872_vm1, %v757_v26  ;;  %1026 = vst.msk [vmem:[#allocation3 + $0x39] sm:$0xff] %vm872_vm1, %v757_v26 }
 0x20f   : > { %17055 = vst [vmem:[#allocation145_spill] sm:$0xff] %v12548_v62  ;;  %950 = vst.msk [vmem:[#allocation2 + $0xad] sm:$0xff] %vm872_vm1, %v749_v4 }
 0x210   : > { %1024 = vst.msk [vmem:[#allocation3 + $0x21] sm:$0xff] %vm872_vm1, %v749_v4  ;;  %v12565_v4 = vld [vmem:[%s11633_s24 + $0x430] sm:$0xff]  }
 0x211   : > { %17057 = vst [vmem:[#allocation147_spill] sm:$0xff] %v12565_v4  ;;  %v10614_v26 = vpop.f32.mrb[4].mxu0  ;;  %v17061_v4 = vunpack.c.l.bf16 %v11856_v53  ;;  %v17074_v53 = vunpack.c.h.bf16 %v11866_v58 }
 0x212   : > { %v770_v24 = vadd.f32 %v10614_v26, %v12446_v39  ;;  %v761_v10 = vpop.f32.mrb[5].mxu0  ;;  %v17060_v26 = vunpack.c.l.bf16 %v11851_v42 }
 0x213   : > { %v762_v23 = vadd.f32 %v12446_v39, %v761_v10  ;;  %v10615_v52 = vpop.f32.mrb[6].mxu0  ;;  %v12579_v60 = vld [vmem:[#allocation2 + $0xc4] sm:$0xff] }
 0x214   : > { %v12581_v0 = vld [vmem:[#allocation2 + $0xc5] sm:$0xff]  ;;  %955 = vst.msk [vmem:[#allocation2 + $0x105] sm:$0xff] %vm872_vm1, %v770_v24  ;;  %1029 = vst.msk [vmem:[#allocation3 + $0x61] sm:$0xff] %vm872_vm1, %v770_v24  ;;  %v773_v22 = vadd.f32 %v10615_v52, %v12446_v39  ;;  %v764_v7 = vpop.f32.mrb[7].mxu0  ;;  %v12596_v32 = vmul.f32 %v17059_v49, %v12579_v60  ;;  %v17063_v24 = vunpack.c.l.bf16 %v11909_v35 }
 0x215   : > { %v12589_v2 = vld [vmem:[#allocation2 + $0xa4] sm:$0xff]  ;;  %v12601_v47 = vmul.f32 %v17060_v26, %v12581_v0  ;;  %953 = vst.msk [vmem:[#allocation2 + $0xe5] sm:$0xff] %vm872_vm1, %v762_v23  ;;  %1027 = vst.msk [vmem:[#allocation3 + $0x49] sm:$0xff] %vm872_vm1, %v762_v23  ;;  %v765_v52 = vadd.f32 %v12446_v39, %v764_v7  ;;  %v12612_v62 = vld [vmem:[#allocation2 + $0xcc] sm:$0xff]  ;;  %v17062_v26 = vunpack.c.l.bf16 %v11877_v12  ;;  %v17064_v7 = vunpack.c.l.bf16 %v11859_v54 }
 0x216   : > { %v12591_v10 = vld [vmem:[#allocation2 + $0xa5] sm:$0xff]  ;;  %v1635_v59 = vmul.f32 %v17061_v4, %v12589_v2  ;;  %v12614_v5 = vld [vmem:[#allocation2 + $0xcd] sm:$0xff]  ;;  %v12621_v3 = vmul.f32 %v17063_v24, %v12579_v60  ;;  %956 = vst.msk [vmem:[#allocation2 + $0x10d] sm:$0xff] %vm872_vm1, %v773_v22  ;;  %1030 = vst.msk [vmem:[#allocation3 + $0x69] sm:$0xff] %vm872_vm1, %v773_v22  ;;  %v17066_v24 = vunpack.c.h.bf16 %v11848_v41  ;;  %v17067_v22 = vunpack.c.h.bf16 %v11851_v42 }
 0x217   : > { %v3149_v29 = vld [vmem:[#allocation2 + $0xa2] sm:$0xff]  ;;  %v1796_v23 = vmul.f32 %v17064_v7, %v12591_v10  ;;  %954 = vst.msk [vmem:[#allocation2 + $0xed] sm:$0xff] %vm872_vm1, %v765_v52  ;;  %1028 = vst.msk [vmem:[#allocation3 + $0x51] sm:$0xff] %vm872_vm1, %v765_v52  ;;  %v17068_v7 = vunpack.c.l.bf16 %v11862_v56  ;;  %v12658_v44 = vld [vmem:[#allocation2 + $0xce] sm:$0xff]  ;;  %v17070_v42 = vunpack.c.l.bf16 %v11880_v13  ;;  %v17073_v52 = vunpack.c.h.bf16 %v11862_v56 }
 0x218   : > { %v12610_v49 = vld [vmem:[#allocation2 + $0xc6] sm:$0xff]  ;;  %v3246_v14 = vmul.f32 %v17062_v26, %v3149_v29  ;;  %v2120_v36 = vmul.f32 %v17066_v24, %v12612_v62  ;;  %v12645_v16 = vmul.f32 %v17067_v22, %v12614_v5  ;;  %v12656_v24 = vld [vmem:[#allocation2 + $0xae] sm:$0xff]  ;;  %v17076_v56 = vunpack.c.h.bf16 %v11877_v12 }
 0x219   : > { %v12628_v4 = vld [vmem:[#allocation2 + $0xa6] sm:$0xff]  ;;  %v12633_v20 = vmul.f32 %v17065_v18, %v12610_v49  ;;  %v1667_v18 = vadd.f32 %v1635_v59, %v11871_v8  ;;  %v3407_v22 = vmul.f32 %v17070_v42, %v12591_v10  ;;  %v17072_v8 = vunpack.c.h.bf16 %v11859_v54  ;;  %v3472_v42 = vld [vmem:[#allocation2 + $0xb0] sm:$0xff]  ;;  %v10618_v51 = vpop.f32.mrb[8].mxu0 }
 0x21a   : > { %v12635_v29 = vld [vmem:[#allocation2 + $0xac] sm:$0xff]  ;;  %v1957_v37 = vmul.f32 %v17068_v7, %v12628_v4  ;;  %v1958_v7 = vmul.f32 %v17073_v52, %v12656_v24  ;;  %v3278_v50 = vadd.f32 %v3246_v14, %v11929_v55  ;;  %v17075_v54 = vunpack.c.l.bf16 %v11884_v15 }
 0x21b   : > { %v12637_v26 = vld [vmem:[#allocation2 + $0xad] sm:$0xff]  ;;  %v1636_v41 = vmul.f32 %v17069_v19, %v12635_v29  ;;  %v12674_v19 = vmul.f32 %v17074_v53, %v12658_v44  ;;  %v1828_v57 = vadd.f32 %v1796_v23, %v1667_v18  ;;  %v786_v58 = vadd.f32 %v10618_v51, %v12446_v39  ;;  %v777_v53 = vpop.f32.mrb[9].mxu0  ;;  %v12693_v30 = vld [vmem:[#allocation2 + $0x105] sm:$0xff] }
 0x21c   : > { %v12663_v17 = vld [vmem:[#allocation2 + $0xa8] sm:$0xff]  ;;  %v1797_v59 = vmul.f32 %v17072_v8, %v12637_v26  ;;  %v3439_v61 = vadd.f32 %v3407_v22, %v3278_v50  ;;  %v17077_v55 = vunpack.c.h.bf16 %v11880_v13  ;;  %v17078_v23 = vunpack.c.h.bf16 %v11884_v15 }
 0x21d   : > { %17071 = vst [vmem:[#allocation149_spill] sm:$0xff] %v12663_v17  ;;  %v12677_v63 = vld [vmem:[#allocation2 + $0xaa] sm:$0xff]  ;;  %v1668_v31 = vadd.f32 %v1636_v41, %v11897_v28  ;;  %v3568_v8 = vmul.f32 %v17075_v54, %v12663_v17  ;;  %v778_v28 = vadd.f32 %v12446_v39, %v777_v53  ;;  %v10619_v41 = vpop.f32.mrb[10].mxu0  ;;  %v1989_v21 = vadd.f32 %v1957_v37, %v1828_v57  ;;  %v3633_v17 = vld [vmem:[#allocation2 + $0x102] sm:$0xff] }
 0x21e   : > { %v3247_v52 = vmul.f32 %v17076_v56, %v12677_v63  ;;  %v3408_v14 = vmul.f32 %v17077_v55, %v12637_v26  ;;  %v3569_v18 = vmul.f32 %v17078_v23, %v3472_v42  ;;  %959 = vst.msk [vmem:[#allocation2 + $0x145] sm:$0xff] %vm872_vm1, %v786_v58  ;;  %1033 = vst.msk [vmem:[#allocation3 + $0x91] sm:$0xff] %vm872_vm1, %v786_v58  ;;  %v780_v50 = vpop.f32.mrb[11].mxu0  ;;  %v17079_v15 = vunpack.c.l.bf16 %v11903_v33  ;;  %v3955_v42 = vld [vmem:[#allocation2 + $0x108] sm:$0xff]  ;;  %v3956_v23 = vld [vmem:[#allocation2 + $0x110] sm:$0xff] }
 0x21f   : > { %v1829_v54 = vadd.f32 %v1797_v59, %v1668_v31  ;;  %v789_v13 = vadd.f32 %v10619_v41, %v12446_v39  ;;  %v3600_v51 = vadd.f32 %v3568_v8, %v3439_v61  ;;  %v17080_v57 = vunpack.c.l.bf16 %v11914_v38  ;;  %957 = vst.msk [vmem:[#allocation2 + $0x125] sm:$0xff] %vm872_vm1, %v778_v28  ;;  %1031 = vst.msk [vmem:[#allocation3 + $0x79] sm:$0xff] %vm872_vm1, %v778_v28  ;;  %v12708_v61 = vld [vmem:[#allocation2 + $0x10d] sm:$0xff] }
 0x220   : > { %v3279_v12 = vadd.f32 %v3247_v52, %v11949_v25  ;;  %v3730_v22 = vmul.f32 %v17079_v15, %v3633_v17  ;;  %v781_v25 = vadd.f32 %v12446_v39, %v780_v50  ;;  %v2151_v37 = vadd.f32 %v12596_v32, %v1989_v21  ;;  %v3634_v52 = vld [vmem:[#allocation2 + $0x10a] sm:$0xff] }
 0x221   : > { %v3891_v31 = vmul.f32 %v17080_v57, %v12693_v30  ;;  %v1990_v59 = vadd.f32 %v1958_v7, %v1829_v54  ;;  %960 = vst.msk [vmem:[#allocation2 + $0x14d] sm:$0xff] %vm872_vm1, %v789_v13  ;;  %1034 = vst.msk [vmem:[#allocation3 + $0x99] sm:$0xff] %vm872_vm1, %v789_v13  ;;  %v17081_v8 = vunpack.c.l.bf16 %v11917_v40  ;;  %v17082_v53 = vunpack.c.h.bf16 %v11903_v33 }
 0x222   : > { %v3440_v56 = vadd.f32 %v3408_v14, %v3279_v12  ;;  %v3762_v17 = vadd.f32 %v3730_v22, %v3600_v51  ;;  %v17083_v21 = vunpack.c.l.bf16 %v11895_v27  ;;  %958 = vst.msk [vmem:[#allocation2 + $0x12d] sm:$0xff] %vm872_vm1, %v781_v25  ;;  %1032 = vst.msk [vmem:[#allocation3 + $0x81] sm:$0xff] %vm872_vm1, %v781_v25  ;;  %v2312_v7 = vadd.f32 %v12601_v47, %v2151_v37  ;;  %v10622_v22 = vpop.f32.mrb[12].mxu0 }
 0x223   : > { %v4052_v58 = vmul.f32 %v17081_v8, %v3955_v42  ;;  %v3731_v55 = vmul.f32 %v17082_v53, %v3634_v52  ;;  %v2152_v14 = vadd.f32 %v2120_v36, %v1990_v59  ;;  %v17084_v41 = vunpack.c.h.bf16 %v11914_v38  ;;  %v12752_v53 = vld [vmem:[#allocation2 + $0xe5] sm:$0xff] }
 0x224   : > { %v1154_v32 = vmul.f32 %v17083_v21, %v12589_v2  ;;  %v3601_v28 = vadd.f32 %v3569_v18, %v3440_v56  ;;  %v3923_v12 = vadd.f32 %v3891_v31, %v3762_v17  ;;  %v17085_v33 = vunpack.c.h.bf16 %v11917_v40  ;;  %v793_v31 = vpop.f32.mrb[13].mxu0  ;;  %v12744_v56 = vld [vmem:[#allocation2 + $0xe6] sm:$0xff] }
 0x225   : > { %v3892_v54 = vmul.f32 %v17084_v41, %v12708_v61  ;;  %v17086_v50 = vunpack.c.l.bf16 %v11906_v34  ;;  %v17087_v51 = vunpack.c.l.bf16 %v11937_v1  ;;  %v2473_v36 = vadd.f32 %v12633_v20, %v2312_v7  ;;  %v12767_v41 = vld [vmem:[#allocation2 + $0xed] sm:$0xff] }
 0x226   : > { %v4053_v13 = vmul.f32 %v17085_v33, %v3956_v23  ;;  %v2313_v47 = vadd.f32 %v12645_v16, %v2152_v14  ;;  %v3763_v18 = vadd.f32 %v3731_v55, %v3601_v28  ;;  %v17088_v38 = vunpack.c.l.bf16 %v11920_v43  ;;  %v10623_v16 = vpop.f32.mrb[14].mxu0  ;;  %v12765_v28 = vld [vmem:[#allocation2 + $0xec] sm:$0xff]  ;;  %v17093_v33 = vld [vmem:[#allocation38_spill] sm:$0xff] }
 0x227   : > { %v1315_v2 = vmul.f32 %v17086_v50, %v12591_v10  ;;  %v1476_v15 = vmul.f32 %v17087_v51, %v12628_v4  ;;  %v802_v40 = vadd.f32 %v10622_v22, %v12446_v39  ;;  %v4084_v25 = vadd.f32 %v4052_v58, %v3923_v12  ;;  %v12742_v4 = vld [vmem:[#allocation2 + $0xe4] sm:$0xff]  ;;  %2537 = vrot.lane.b32.xlu0 %v2473_v36, %s11196_s20  ;;  %v796_v23 = vpop.f32.mrb[15].mxu0 }
 0x228   : > { %v1798_v57 = vmul.f32 %v17088_v38, %v12581_v0  ;;  %v17089_v59 = vunpack.c.l.bf16 %v11942_v6  ;;  %v794_v20 = vadd.f32 %v12446_v39, %v793_v31  ;;  %v2474_v52 = vadd.f32 %v12674_v19, %v2313_v47 }
 0x229   : > { %v1347_v37 = vadd.f32 %v1315_v2, %v1154_v32  ;;  %v3924_v17 = vadd.f32 %v3892_v54, %v3763_v18  ;;  %v17090_v8 = vunpack.c.l.bf16 %v11960_v45  ;;  %963 = vst.msk [vmem:[#allocation2 + $0x185] sm:$0xff] %vm872_vm1, %v802_v40  ;;  %1037 = vst.msk [vmem:[#allocation3 + $0xc1] sm:$0xff] %vm872_vm1, %v802_v40  ;;  %v805_v55 = vadd.f32 %v10623_v16, %v12446_v39 }
 0x22a   : > { %v1959_v42 = vmul.f32 %v17089_v59, %v12610_v49  ;;  %v17091_v32 = vunpack.c.l.bf16 %v11963_v46  ;;  %v17092_v19 = vunpack.c.h.bf16 %v11895_v27  ;;  %961 = vst.msk [vmem:[#allocation2 + $0x165] sm:$0xff] %vm872_vm1, %v794_v20  ;;  %1035 = vst.msk [vmem:[#allocation3 + $0xa9] sm:$0xff] %vm872_vm1, %v794_v20  ;;  %v797_v54 = vadd.f32 %v12446_v39, %v796_v23  ;;  %2539 = vrot.lane.b32.xlu1 %v2474_v52, %s11196_s20 }
 0x22b   : > { %v2121_v58 = vmul.f32 %v17090_v8, %v12742_v4  ;;  %v1508_v21 = vadd.f32 %v1476_v15, %v1347_v37  ;;  %v4085_v12 = vadd.f32 %v4053_v13, %v3924_v17  ;;  %v17094_v50 = vunpack.c.l.bf16 %v17093_v33  ;;  %964 = vst.msk [vmem:[#allocation2 + $0x18d] sm:$0xff] %vm872_vm1, %v805_v55  ;;  %1038 = vst.msk [vmem:[#allocation3 + $0xc9] sm:$0xff] %vm872_vm1, %v805_v55  ;;  %v17102_v37 = vld [vmem:[#allocation35_spill] sm:$0xff] }
 0x22c   : > { %v12760_v7 = vmul.f32 %v17091_v32, %v12752_v53  ;;  %v1155_v14 = vmul.f32 %v17092_v19, %v12635_v29  ;;  %v17095_v27 = vunpack.c.h.bf16 %v11906_v34  ;;  %v17096_v15 = vunpack.c.h.bf16 %v11937_v1  ;;  %v12793_v34 = vld [vmem:[#allocation2 + $0xee] sm:$0xff]  ;;  %962 = vst.msk [vmem:[#allocation2 + $0x16d] sm:$0xff] %vm872_vm1, %v797_v54  ;;  %1036 = vst.msk [vmem:[#allocation3 + $0xb1] sm:$0xff] %vm872_vm1, %v797_v54  ;;  %4148 = vrot.lane.b32.xlu0 %v4084_v25, %s11197_s5 }
 0x22d   : > { %v12776_v2 = vmul.f32 %v17094_v50, %v12744_v56  ;;  %v1669_v51 = vadd.f32 %v12621_v3, %v1508_v21  ;;  %v17097_v13 = vunpack.c.h.bf16 %v11909_v35  ;;  %v17098_v47 = vunpack.c.h.bf16 %v11920_v43  ;;  %v17104_v25 = vld [vmem:[#allocation36_spill] sm:$0xff]  ;;  %v12836_v50 = vld [vmem:[#allocation2 + $0x106] sm:$0xff] }
 0x22e   : > { %v1316_v29 = vmul.f32 %v17095_v27, %v12637_v26  ;;  %v1477_v22 = vmul.f32 %v17096_v15, %v12656_v24  ;;  %v17099_v1 = vunpack.c.h.bf16 %v11942_v6  ;;  %v17100_v35 = vunpack.c.h.bf16 %v11960_v45  ;;  %v17106_v6 = vld [vmem:[#allocation37_spill] sm:$0xff]  ;;  %v10626_v45 = vpop.f32.mrb[16].mxu0  ;;  %4150 = vrot.lane.b32.xlu1 %v4085_v12, %s11197_s5  ;;  %v17112_v15 = vld [vmem:[#allocation42_spill] sm:$0xff] }
 0x22f   : > { %v1638_v36 = vmul.f32 %v17097_v13, %v12612_v62  ;;  %v1799_v18 = vmul.f32 %v17098_v47, %v12614_v5  ;;  %v17101_v43 = vunpack.c.h.bf16 %v11963_v46  ;;  %v1830_v31 = vadd.f32 %v1798_v57, %v1669_v51  ;;  %v17114_v47 = vld [vmem:[#allocation43_spill] sm:$0xff] }
 0x230   : > { %v1348_v3 = vadd.f32 %v1316_v29, %v1155_v14  ;;  %v1960_v24 = vmul.f32 %v17099_v1, %v12658_v44  ;;  %v2122_v38 = vmul.f32 %v17100_v35, %v12765_v28  ;;  %v17103_v59 = vunpack.c.l.bf16 %v17102_v37 }
 0x231   : > { %v12807_v40 = vmul.f32 %v17101_v43, %v12767_v41  ;;  %v17105_v16 = vunpack.c.l.bf16 %v17104_v25  ;;  %v17107_v17 = vunpack.c.l.bf16 %v17106_v6  ;;  %v17108_v46 = vunpack.c.h.bf16 %v17093_v33  ;;  %v12834_v33 = vld [vmem:[#allocation2 + $0x104] sm:$0xff] }
 0x232   : > { %v1156_v20 = vmul.f32 %v17103_v59, %v12579_v60  ;;  %v1509_v55 = vadd.f32 %v1477_v22, %v1348_v3  ;;  %v17109_v60 = vunpack.c.l.bf16 %v11992_v48  ;;  %v818_v32 = vadd.f32 %v10626_v45, %v12446_v39  ;;  %v12864_v45 = vld [vmem:[#allocation2 + $0x10c] sm:$0xff] }
 0x233   : > { %v1317_v52 = vmul.f32 %v17105_v16, %v12581_v0  ;;  %v1478_v8 = vmul.f32 %v17107_v17, %v12610_v49  ;;  %v12822_v57 = vmul.f32 %v17108_v46, %v12793_v34  ;;  %v17110_v0 = vunpack.c.l.bf16 %v12012_v11  ;;  %v809_v49 = vpop.f32.mrb[17].mxu0  ;;  %v17117_v16 = vld [vmem:[#allocation44_spill] sm:$0xff] }
 0x234   : > { %v1639_v23 = vmul.f32 %v17109_v60, %v12742_v4  ;;  %v1991_v19 = vadd.f32 %v1959_v42, %v1830_v31  ;;  %v17111_v54 = vunpack.c.l.bf16 %v12018_v9  ;;  %v810_v27 = vadd.f32 %v12446_v39, %v809_v49  ;;  %v10627_v29 = vpop.f32.mrb[18].mxu0  ;;  %967 = vst.msk [vmem:[#allocation2 + $0x1c5] sm:$0xff] %vm872_vm1, %v818_v32  ;;  %1041 = vst.msk [vmem:[#allocation3 + $0xf1] sm:$0xff] %vm872_vm1, %v818_v32 }
 0x235   : > { %v1800_v21 = vmul.f32 %v17110_v0, %v12752_v53  ;;  %v1349_v14 = vadd.f32 %v1317_v52, %v1156_v20  ;;  %v1670_v51 = vadd.f32 %v1638_v36, %v1509_v55  ;;  %v17113_v22 = vunpack.c.l.bf16 %v17112_v15  ;;  %v812_v43 = vpop.f32.mrb[19].mxu0  ;;  %v12875_v0 = vld [vmem:[#allocation2 + $0x10e] sm:$0xff] }
 0x236   : > { %v1961_v12 = vmul.f32 %v17111_v54, %v12744_v56  ;;  %v17115_v42 = vunpack.c.l.bf16 %v17114_v47  ;;  %v821_v1 = vadd.f32 %v10627_v29, %v12446_v39  ;;  %v2153_v35 = vadd.f32 %v2121_v58, %v1991_v19  ;;  %965 = vst.msk [vmem:[#allocation2 + $0x1a5] sm:$0xff] %vm872_vm1, %v810_v27  ;;  %1039 = vst.msk [vmem:[#allocation3 + $0xd9] sm:$0xff] %vm872_vm1, %v810_v27  ;;  %v10630_v29 = vpop.f32.mrb[20].mxu0 }
 0x237   : > { %v2123_v13 = vmul.f32 %v17113_v22, %v12834_v33  ;;  %v1510_v31 = vadd.f32 %v1478_v8, %v1349_v14  ;;  %v17116_v36 = vunpack.c.h.bf16 %v17102_v37  ;;  %v1831_v20 = vadd.f32 %v1799_v18, %v1670_v51  ;;  %v17127_v22 = vld [vmem:[#allocation39_spill] sm:$0xff] }
 0x238   : > { %v12845_v3 = vmul.f32 %v17115_v42, %v12693_v30  ;;  %v813_v30 = vadd.f32 %v12446_v39, %v812_v43  ;;  %v17118_v52 = vunpack.c.l.bf16 %v17117_v16  ;;  %v17119_v58 = vunpack.c.h.bf16 %v17104_v25  ;;  %968 = vst.msk [vmem:[#allocation2 + $0x1cd] sm:$0xff] %vm872_vm1, %v821_v1  ;;  %1042 = vst.msk [vmem:[#allocation3 + $0xf9] sm:$0xff] %vm872_vm1, %v821_v1  ;;  %v5243_v42 = vld [vmem:[#allocation2 + $0x140] sm:$0xff] }
 0x239   : > { %v1157_v59 = vmul.f32 %v17116_v36, %v12612_v62  ;;  %v2314_v62 = vadd.f32 %v12760_v7, %v2153_v35  ;;  %v1671_v37 = vadd.f32 %v1639_v23, %v1510_v31  ;;  %v17120_v18 = vunpack.c.h.bf16 %v17106_v6  ;;  %v12901_v1 = vld [vmem:[#allocation2 + $0x145] sm:$0xff]  ;;  %v17131_v31 = vld [vmem:[#allocation45_spill] sm:$0xff] }
 0x23a   : > { %v12859_v17 = vmul.f32 %v17118_v52, %v12836_v50  ;;  %v1318_v8 = vmul.f32 %v17119_v58, %v12614_v5  ;;  %v17121_v46 = vunpack.c.h.bf16 %v11992_v48  ;;  %v4759_v5 = vld [vmem:[#allocation2 + $0xa0] sm:$0xff]  ;;  %966 = vst.msk [vmem:[#allocation2 + $0x1ad] sm:$0xff] %vm872_vm1, %v813_v30  ;;  %1040 = vst.msk [vmem:[#allocation3 + $0xe1] sm:$0xff] %vm872_vm1, %v813_v30  ;;  %v1992_v25 = vadd.f32 %v1960_v24, %v1831_v20  ;;  %v17133_v58 = vld [vmem:[#allocation41_spill] sm:$0xff] }
 0x23b   : > { %v1479_v55 = vmul.f32 %v17120_v18, %v12658_v44  ;;  %v17122_v7 = vunpack.c.h.bf16 %v12012_v11  ;;  %v17123_v44 = vunpack.c.h.bf16 %v12018_v9  ;;  %v2475_v48 = vadd.f32 %v12776_v2, %v2314_v62 }
 0x23c   : > { %v1640_v60 = vmul.f32 %v17121_v46, %v12765_v28  ;;  %v1350_v32 = vadd.f32 %v1318_v8, %v1157_v59  ;;  %v1832_v49 = vadd.f32 %v1800_v21, %v1671_v37  ;;  %v17124_v19 = vunpack.c.h.bf16 %v17112_v15 }
 0x23d   : > { %v1801_v23 = vmul.f32 %v17122_v7, %v12767_v41  ;;  %v1962_v6 = vmul.f32 %v17123_v44, %v12793_v34  ;;  %v17125_v54 = vunpack.c.h.bf16 %v17114_v47  ;;  %v2154_v27 = vadd.f32 %v2122_v38, %v1992_v25  ;;  %2541 = vrot.lane.b32.xlu0 %v2475_v48, %s11196_s20  ;;  %v825_v47 = vpop.f32.mrb[21].mxu0  ;;  %v17129_v38 = vld [vmem:[#allocation40_spill] sm:$0xff] }
 0x23e   : > { %v2124_v14 = vmul.f32 %v17124_v19, %v12864_v45  ;;  %v1511_v11 = vadd.f32 %v1479_v55, %v1350_v32  ;;  %v17126_v51 = vunpack.c.h.bf16 %v17117_v16  ;;  %v17128_v2 = vunpack.c.l.bf16 %v17127_v22  ;;  %v10631_v52 = vpop.f32.mrb[22].mxu0  ;;  %v5565_v7 = vld [vmem:[#allocation2 + $0x14a] sm:$0xff] }
 0x23f   : > { %v12892_v24 = vmul.f32 %v17125_v54, %v12708_v61  ;;  %v1993_v15 = vadd.f32 %v1961_v12, %v1832_v49  ;;  %v834_v61 = vadd.f32 %v10630_v29, %v12446_v39  ;;  %v17130_v35 = vunpack.c.l.bf16 %v17129_v38  ;;  %v828_v46 = vpop.f32.mrb[23].mxu0  ;;  %v12926_v48 = vld [vmem:[#allocation2 + $0x14d] sm:$0xff]  ;;  %v3153_v49 = vld [vmem:[#allocation2 + $0xe2] sm:$0xff] }
 0x240   : > { %v12897_v9 = vmul.f32 %v17126_v51, %v12875_v0  ;;  %v4856_v21 = vmul.f32 %v17128_v2, %v4759_v5  ;;  %v17132_v36 = vunpack.c.l.bf16 %v17131_v31  ;;  %v2315_v30 = vadd.f32 %v12807_v40, %v2154_v27  ;;  %v5244_v5 = vld [vmem:[#allocation2 + $0x148] sm:$0xff]  ;;  %v17138_v54 = vld [vmem:[#allocation54_spill] sm:$0xff]  ;;  %v17140_v27 = vld [vmem:[#allocation149_spill] sm:$0xff] }
 0x241   : > { %v5017_v43 = vmul.f32 %v17130_v35, %v12591_v10  ;;  %v1672_v20 = vadd.f32 %v1640_v60, %v1511_v11  ;;  %v826_v16 = vadd.f32 %v12446_v39, %v825_v47  ;;  %v2155_v12 = vadd.f32 %v2123_v13, %v1993_v15  ;;  %971 = vst.msk [vmem:[#allocation2 + $0x205] sm:$0xff] %vm872_vm1, %v834_v61  ;;  %v17134_v10 = vld [vmem:[#allocation51_spill] sm:$0xff]  ;;  %v5082_v60 = vld [vmem:[#allocation2 + $0xb2] sm:$0xff] }
 0x242   : > { %v5178_v59 = vmul.f32 %v17132_v36, %v12677_v63  ;;  %v4888_v8 = vadd.f32 %v4856_v21, %v17133_v58  ;;  %1045 = vst.msk [vmem:[#allocation3 + $0x121] sm:$0xff] %vm872_vm1, %v834_v61  ;;  %v837_v62 = vadd.f32 %v10631_v52, %v12446_v39  ;;  %v17135_v37 = vunpack.c.l.bf16 %v17134_v10  ;;  %v17136_v63 = vld [vmem:[#allocation53_spill] sm:$0xff]  ;;  %v12946_v35 = vld [vmem:[#allocation2 + $0xe8] sm:$0xff] }
 0x243   : > { %v17137_v55 = vunpack.c.l.bf16 %v17136_v63  ;;  %v2476_v25 = vadd.f32 %v12822_v57, %v2315_v30  ;;  %v1833_v32 = vadd.f32 %v1801_v23, %v1672_v20  ;;  %969 = vst.msk [vmem:[#allocation2 + $0x1e5] sm:$0xff] %vm872_vm1, %v826_v16  ;;  %1043 = vst.msk [vmem:[#allocation3 + $0x109] sm:$0xff] %vm872_vm1, %v826_v16  ;;  %v829_v44 = vadd.f32 %v12446_v39, %v828_v46  ;;  %v5566_v21 = vld [vmem:[#allocation2 + $0x152] sm:$0xff] }
 0x244   : > { %v5340_v18 = vmul.f32 %v17135_v37, %v5243_v42  ;;  %v5049_v13 = vadd.f32 %v5017_v43, %v4888_v8  ;;  %v2316_v19 = vadd.f32 %v12845_v3, %v2155_v12  ;;  %972 = vst.msk [vmem:[#allocation2 + $0x20d] sm:$0xff] %vm872_vm1, %v837_v62  ;;  %1046 = vst.msk [vmem:[#allocation3 + $0x129] sm:$0xff] %vm872_vm1, %v837_v62  ;;  %v17139_v57 = vunpack.c.l.bf16 %v17138_v54  ;;  %v3637_v43 = vld [vmem:[#allocation2 + $0x142] sm:$0xff]  ;;  %v17147_v30 = vld [vmem:[#allocation48_spill] sm:$0xff]  ;;  %v10634_v37 = vpop.f32.mrb[24].mxu0 }
 0x245   : > { %v5501_v40 = vmul.f32 %v17137_v55, %v12901_v1  ;;  %v17141_v29 = vunpack.c.h.bf16 %v17127_v22  ;;  %v17142_v51 = vunpack.c.h.bf16 %v17129_v38  ;;  %2543 = vrot.lane.b32.xlu1 %v2476_v25, %s11196_s20  ;;  %v1994_v42 = vadd.f32 %v1962_v6, %v1833_v32  ;;  %970 = vst.msk [vmem:[#allocation2 + $0x1ed] sm:$0xff] %vm872_vm1, %v829_v44  ;;  %1044 = vst.msk [vmem:[#allocation3 + $0x111] sm:$0xff] %vm872_vm1, %v829_v44  ;;  %v17145_v38 = vld [vmem:[#allocation47_spill] sm:$0xff]  ;;  %v17150_v12 = vld [vmem:[#allocation49_spill] sm:$0xff] }
 0x246   : > { %v5662_v23 = vmul.f32 %v17139_v57, %v5565_v7  ;;  %v5210_v3 = vadd.f32 %v5178_v59, %v5049_v13  ;;  %v17143_v15 = vunpack.c.h.bf16 %v17131_v31  ;;  %v17144_v47 = vunpack.c.h.bf16 %v17134_v10  ;;  %v17155_v25 = vld [vmem:[#allocation57_spill] sm:$0xff]  ;;  %v17157_v57 = vld [vmem:[#allocation59_spill] sm:$0xff] }
 0x247   : > { %v4857_v11 = vmul.f32 %v17141_v29, %v17140_v27  ;;  %v5018_v2 = vmul.f32 %v17142_v51, %v12637_v26  ;;  %v2477_v26 = vadd.f32 %v12859_v17, %v2316_v19  ;;  %v17146_v6 = vunpack.c.h.bf16 %v17136_v63  ;;  %v12960_v17 = vld [vmem:[#allocation2 + $0xea] sm:$0xff] }
 0x248   : > { %v5179_v61 = vmul.f32 %v17143_v15, %v5082_v60  ;;  %v5341_v22 = vmul.f32 %v17144_v47, %v5244_v5  ;;  %v17148_v20 = vunpack.c.l.bf16 %v17147_v30  ;;  %v2156_v52 = vadd.f32 %v2124_v14, %v1994_v42  ;;  %v17152_v63 = vld [vmem:[#allocation55_spill] sm:$0xff]  ;;  %v17153_v60 = vld [vmem:[#allocation50_spill] sm:$0xff]  ;;  %v3476_v44 = vld [vmem:[#allocation2 + $0xf0] sm:$0xff] }
 0x249   : > { %v4889_v36 = vadd.f32 %v4857_v11, %v17145_v38  ;;  %v5502_v59 = vmul.f32 %v17146_v6, %v12926_v48  ;;  %v5372_v31 = vadd.f32 %v5340_v18, %v5210_v3  ;;  %v17149_v58 = vunpack.c.h.bf16 %v17138_v54  ;;  %2545 = vrot.lane.b32.xlu0 %v2477_v26, %s11196_s20  ;;  %v17159_v42 = vld [vmem:[#allocation61_spill] sm:$0xff] }
 0x24a   : > { %v3250_v16 = vmul.f32 %v17148_v20, %v3153_v49  ;;  %v17151_v62 = vunpack.c.l.bf16 %v17150_v12  ;;  %v17154_v14 = vunpack.c.l.bf16 %v17153_v60  ;;  %v17156_v32 = vunpack.c.l.bf16 %v17155_v25  ;;  %v841_v49 = vpop.f32.mrb[25].mxu0  ;;  %v12980_v38 = vld [vmem:[%s11641_s29 + $0xa0] sm:$0xff]   ;;  %v12990_v20 = vld [vmem:[#allocation2 + $0xc2] sm:$0xff] }
 0x24b   : > { %v5663_v8 = vmul.f32 %v17149_v58, %v5566_v21  ;;  %v5050_v55 = vadd.f32 %v5018_v2, %v4889_v36  ;;  %v2317_v19 = vadd.f32 %v12892_v24, %v2156_v52  ;;  %v5533_v54 = vadd.f32 %v5501_v40, %v5372_v31  ;;  %v10635_v51 = vpop.f32.mrb[26].mxu0  ;;  %17162 = vst [vmem:[#allocation38_spill] sm:$0xff] %v12980_v38  ;;  %v17165_v31 = vld [vmem:[#allocation60_spill] sm:$0xff] }
 0x24c   : > { %v3411_v10 = vmul.f32 %v17151_v62, %v12752_v53  ;;  %v3282_v46 = vadd.f32 %v3250_v16, %v17152_v63  ;;  %v3572_v18 = vmul.f32 %v17154_v14, %v12946_v35  ;;  %v3734_v13 = vmul.f32 %v17156_v32, %v3637_v43  ;;  %v844_v26 = vpop.f32.mrb[27].mxu0  ;;  %v3960_v62 = vld [vmem:[#allocation2 + $0x150] sm:$0xff] }
 0x24d   : > { %v17158_v27 = vunpack.c.l.bf16 %v17157_v57  ;;  %v850_v11 = vadd.f32 %v10634_v37, %v12446_v39  ;;  %v5211_v2 = vadd.f32 %v5179_v61, %v5050_v55  ;;  %v17160_v3 = vunpack.c.l.bf16 %v17159_v42  ;;  %v12999_v37 = vld [vmem:[#allocation2 + $0x122] sm:$0xff] }
 0x24e   : > { %v3443_v21 = vadd.f32 %v3411_v10, %v3282_v46  ;;  %v17161_v47 = vunpack.c.h.bf16 %v17147_v30  ;;  %v2478_v24 = vadd.f32 %v12897_v9, %v2317_v19  ;;  %v5694_v40 = vadd.f32 %v5662_v23, %v5533_v54  ;;  %v12992_v30 = vld [vmem:[#allocation2 + $0xc5] sm:$0xff] }
 0x24f   : > { %v3895_v29 = vmul.f32 %v17158_v27, %v12901_v1  ;;  %v4056_v15 = vmul.f32 %v17160_v3, %v5244_v5  ;;  %975 = vst.msk [vmem:[#allocation2 + $0x245] sm:$0xff] %vm872_vm1, %v850_v11  ;;  %1049 = vst.msk [vmem:[#allocation3 + $0x151] sm:$0xff] %vm872_vm1, %v850_v11  ;;  %v17163_v61 = vunpack.c.h.bf16 %v17150_v12  ;;  %v17164_v5 = vunpack.c.h.bf16 %v17153_v60  ;;  %v12997_v10 = vld [vmem:[#allocation2 + $0xc8] sm:$0xff]  ;;  %v17173_v11 = vld [vmem:[#allocation58_spill] sm:$0xff] }
 0x250   : > { %v3251_v43 = vmul.f32 %v17161_v47, %v12960_v17  ;;  %v5373_v16 = vadd.f32 %v5341_v22, %v5211_v2  ;;  %v3604_v52 = vadd.f32 %v3572_v18, %v3443_v21  ;;  %v17166_v23 = vunpack.c.h.bf16 %v17155_v25  ;;  %2547 = vrot.lane.b32.xlu1 %v2478_v24, %s11196_s20  ;;  %5758 = vrot.lane.b32.xlu0 %v5694_v40, %s11198_s28  ;;  %v17168_v18 = vld [vmem:[#allocation46_spill] sm:$0xff]  ;;  %v13014_v19 = vld [vmem:[#allocation2 + $0x128] sm:$0xff]  ;;  %v17175_v21 = vld [vmem:[#allocation65_spill] sm:$0xff] }
 0x251   : > { %v3412_v36 = vmul.f32 %v17163_v61, %v12767_v41  ;;  %v3573_v6 = vmul.f32 %v17164_v5, %v3476_v44  ;;  %v17167_v12 = vunpack.c.h.bf16 %v17157_v57  ;;  %v842_v55 = vadd.f32 %v12446_v39, %v841_v49  ;;  %v13012_v44 = vld [vmem:[#allocation2 + $0x125] sm:$0xff]  ;;  %v13033_v47 = vld [vmem:[#allocation2 + $0xcd] sm:$0xff] }
 0x252   : > { %v3283_v9 = vadd.f32 %v3251_v43, %v17165_v31  ;;  %v3735_v58 = vmul.f32 %v17166_v23, %v5565_v7  ;;  %v853_v63 = vadd.f32 %v10635_v51, %v12446_v39  ;;  %v5534_v46 = vadd.f32 %v5502_v59, %v5373_v16  ;;  %v13016_v54 = vld [vmem:[#allocation2 + $0xca] sm:$0xff]  ;;  %v10638_v43 = vpop.f32.mrb[28].mxu0  ;;  %v17179_v23 = vld [vmem:[#allocation66_spill] sm:$0xff] }
 0x253   : > { %v3896_v22 = vmul.f32 %v17167_v12, %v12926_v48  ;;  %v3766_v60 = vadd.f32 %v3734_v13, %v3604_v52  ;;  %v17169_v25 = vunpack.c.l.bf16 %v17168_v18  ;;  %v17170_v57 = vunpack.c.h.bf16 %v17159_v42  ;;  %973 = vst.msk [vmem:[#allocation2 + $0x225] sm:$0xff] %vm872_vm1, %v842_v55  ;;  %1047 = vst.msk [vmem:[#allocation3 + $0x139] sm:$0xff] %vm872_vm1, %v842_v55  ;;  %v17171_v59 = vld [vmem:[#allocation52_spill] sm:$0xff]  ;;  %v17181_v55 = vld [vmem:[#allocation67_spill] sm:$0xff] }
 0x254   : > { %v3444_v14 = vadd.f32 %v3412_v36, %v3283_v9  ;;  %976 = vst.msk [vmem:[#allocation2 + $0x24d] sm:$0xff] %vm872_vm1, %v853_v63  ;;  %1050 = vst.msk [vmem:[#allocation3 + $0x159] sm:$0xff] %vm872_vm1, %v853_v63  ;;  %v17172_v13 = vunpack.c.l.bf16 %v17171_v59  ;;  %v17174_v51 = vunpack.c.l.bf16 %v17173_v11  ;;  %v17176_v42 = vunpack.c.l.bf16 %v17175_v21  ;;  %v17177_v36 = vld [vmem:[#allocation56_spill] sm:$0xff]  ;;  %v13042_v9 = vpop.f32.mrb[29].mxu0  ;;  %v17205_v7 = vld [vmem:[#allocation78_spill] sm:$0xff] }
 0x255   : > { %v3248_v32 = vmul.f32 %v17169_v25, %v12990_v20  ;;  %v4057_v49 = vmul.f32 %v17170_v57, %v3960_v62  ;;  %v5695_v24 = vadd.f32 %v5663_v8, %v5534_v46  ;;  %v3927_v40 = vadd.f32 %v3895_v29, %v3766_v60  ;;  %v13036_v16 = vld [vmem:[#allocation2 + $0xd0] sm:$0xff]  ;;  %v10639_v60 = vpop.f32.mrb[30].mxu0 }
 0x256   : > { %v3409_v27 = vmul.f32 %v17172_v13, %v12992_v30  ;;  %v3570_v2 = vmul.f32 %v17174_v51, %v12997_v10  ;;  %v3732_v3 = vmul.f32 %v17176_v42, %v12999_v37  ;;  %v3605_v61 = vadd.f32 %v3573_v6, %v3444_v14  ;;  %v13038_v52 = vld [vmem:[#allocation2 + $0x12a] sm:$0xff]  ;;  %v13060_v42 = vpop.f32.mrb[31].mxu0 }
 0x257   : > { %v3280_v5 = vadd.f32 %v3248_v32, %v17177_v36  ;;  %17178 = vst [vmem:[#allocation35_spill] sm:$0xff] %v13038_v52  ;;  %v13040_v31 = vld [vmem:[#allocation2 + $0x12d] sm:$0xff]  ;;  %v17180_v62 = vunpack.c.l.bf16 %v17179_v23  ;;  %v17182_v63 = vunpack.c.l.bf16 %v17181_v55  ;;  %v845_v29 = vadd.f32 %v12446_v39, %v844_v26  ;;  %5760 = vrot.lane.b32.xlu1 %v5695_v24, %s11198_s28 }
 0x258   : > { %v17183_v6 = vunpack.c.h.bf16 %v17168_v18  ;;  %v4088_v14 = vadd.f32 %v4056_v15, %v3927_v40  ;;  %v3767_v25 = vadd.f32 %v3735_v58, %v3605_v61  ;;  %v17184_v57 = vunpack.c.h.bf16 %v17171_v59  ;;  %v13058_v51 = vld [vmem:[#allocation2 + $0x130] sm:$0xff]  ;;  %v17186_v26 = vld [vmem:[#allocation71_spill] sm:$0xff] }
 0x259   : > { %v3893_v12 = vmul.f32 %v17180_v62, %v13012_v44  ;;  %v4054_v8 = vmul.f32 %v17182_v63, %v13014_v19  ;;  %v3441_v32 = vadd.f32 %v3409_v27, %v3280_v5  ;;  %17185 = vst [vmem:[#allocation36_spill] sm:$0xff] %v13058_v51  ;;  %974 = vst.msk [vmem:[#allocation2 + $0x22d] sm:$0xff] %vm872_vm1, %v845_v29  ;;  %v17187_v24 = vunpack.c.h.bf16 %v17173_v11  ;;  %v17190_v5 = vld [vmem:[#allocation62_spill] sm:$0xff] }
 0x25a   : > { %v3249_v46 = vmul.f32 %v17183_v6, %v13016_v54  ;;  %v3410_v13 = vmul.f32 %v17184_v57, %v13033_v47  ;;  %1048 = vst.msk [vmem:[#allocation3 + $0x141] sm:$0xff] %vm872_vm1, %v845_v29  ;;  %v17188_v58 = vunpack.c.h.bf16 %v17175_v21  ;;  %v17189_v59 = vunpack.c.h.bf16 %v17179_v23  ;;  %4156 = vrot.lane.b32.xlu0 %v4088_v14, %s11197_s5  ;;  %v17192_v29 = vld [vmem:[#allocation63_spill] sm:$0xff]  ;;  %v17195_v23 = vld [vmem:[#allocation68_spill] sm:$0xff] }
 0x25b   : > { %v3571_v15 = vmul.f32 %v17187_v24, %v13036_v16  ;;  %v3928_v61 = vadd.f32 %v3896_v22, %v3767_v25  ;;  %v3602_v36 = vadd.f32 %v3570_v2, %v3441_v32  ;;  %v17191_v62 = vunpack.c.l.bf16 %v17190_v5  ;;  %v17197_v22 = vld [vmem:[#allocation69_spill] sm:$0xff]  ;;  %v13090_v25 = vld [vmem:[#allocation2 + $0x105] sm:$0xff] }
 0x25c   : > { %v3281_v18 = vadd.f32 %v3249_v46, %v17186_v26  ;;  %v3733_v27 = vmul.f32 %v17188_v58, %v13038_v52  ;;  %v3894_v40 = vmul.f32 %v17189_v59, %v13040_v31  ;;  %v17193_v11 = vunpack.c.l.bf16 %v17192_v29  ;;  %v13095_v59 = vld [vmem:[#allocation2 + $0x124] sm:$0xff] }
 0x25d   : > { %v1158_v63 = vmul.f32 %v17191_v62, %v12742_v4  ;;  %v17194_v21 = vunpack.c.h.bf16 %v17181_v55  ;;  %v17196_v26 = vunpack.c.l.bf16 %v17195_v23  ;;  %v17198_v2 = vunpack.c.l.bf16 %v17197_v22  ;;  %v17201_v62 = vld [vmem:[#allocation72_spill] sm:$0xff] }
 0x25e   : > { %v1319_v6 = vmul.f32 %v17193_v11, %v12752_v53  ;;  %v3442_v46 = vadd.f32 %v3410_v13, %v3281_v18  ;;  %v4089_v4 = vadd.f32 %v4057_v49, %v3928_v61  ;;  %v3764_v32 = vadd.f32 %v3732_v3, %v3602_v36  ;;  %v17199_v53 = vld [vmem:[#allocation70_spill] sm:$0xff]  ;;  %v13106_v61 = vld [vmem:[#allocation2 + $0x10d] sm:$0xff] }
 0x25f   : > { %v4055_v57 = vmul.f32 %v17194_v21, %v13058_v51  ;;  %v1480_v24 = vmul.f32 %v17196_v26, %v12744_v56  ;;  %v1641_v14 = vmul.f32 %v17198_v2, %v12834_v33  ;;  %v17200_v13 = vunpack.c.l.bf16 %v17199_v53  ;;  %v17203_v21 = vld [vmem:[#allocation77_spill] sm:$0xff] }
 0x260   : > { %v1351_v58 = vadd.f32 %v1319_v6, %v1158_v63  ;;  %v3603_v55 = vadd.f32 %v3571_v15, %v3442_v46  ;;  %v17202_v11 = vunpack.c.l.bf16 %v17201_v62  ;;  %v17204_v26 = vunpack.c.l.bf16 %v17203_v21  ;;  %4158 = vrot.lane.b32.xlu1 %v4089_v4, %s11197_s5  ;;  %v13109_v6 = vld [vmem:[#allocation2 + $0x126] sm:$0xff] }
 0x261   : > { %v1802_v18 = vmul.f32 %v17200_v13, %v13090_v25  ;;  %v17206_v49 = vunpack.c.l.bf16 %v17205_v7  ;;  %v3925_v36 = vadd.f32 %v3893_v12, %v3764_v32  ;;  %v866_v15 = vadd.f32 %v10638_v43, %v12446_v39 }
 0x262   : > { %v1963_v56 = vmul.f32 %v17202_v11, %v12836_v50  ;;  %v2125_v2 = vmul.f32 %v17204_v26, %v13095_v59  ;;  %v1512_v63 = vadd.f32 %v1480_v24, %v1351_v58  ;;  %v17207_v46 = vunpack.c.h.bf16 %v17190_v5  ;;  %v17208_v26 = vld [vmem:[#allocation79_spill] sm:$0xff]  ;;  %v2351_v58 = vld [vmem:[#allocation2 + $0x12e] sm:$0xff] }
 0x263   : > { %v2286_v3 = vmul.f32 %v17206_v49, %v13012_v44  ;;  %v3765_v11 = vadd.f32 %v3733_v27, %v3603_v55  ;;  %v17209_v38 = vunpack.c.l.bf16 %v17208_v26  ;;  %v17210_v49 = vunpack.c.h.bf16 %v17192_v29  ;;  %979 = vst.msk [vmem:[#allocation2 + $0x285] sm:$0xff] %vm872_vm1, %v866_v15  ;;  %1053 = vst.msk [vmem:[#allocation3 + $0x181] sm:$0xff] %vm872_vm1, %v866_v15  ;;  %v2029_v5 = vld [vmem:[#allocation2 + $0x12c] sm:$0xff] }
 0x264   : > { %v1159_v13 = vmul.f32 %v17207_v46, %v12765_v28  ;;  %v17211_v12 = vunpack.c.h.bf16 %v17195_v23  ;;  %v4086_v4 = vadd.f32 %v4054_v8, %v3925_v36  ;;  %v1673_v32 = vadd.f32 %v1641_v14, %v1512_v63  ;;  %v17219_v46 = vld [vmem:[#allocation73_spill] sm:$0xff] }
 0x265   : > { %v2447_v51 = vmul.f32 %v17209_v38, %v13109_v6  ;;  %v1320_v52 = vmul.f32 %v17210_v49, %v12767_v41  ;;  %v17212_v28 = vunpack.c.h.bf16 %v17197_v22  ;;  %v17213_v38 = vunpack.c.h.bf16 %v17199_v53 }
 0x266   : > { %v1481_v24 = vmul.f32 %v17211_v12, %v12793_v34  ;;  %v3926_v41 = vadd.f32 %v3894_v40, %v3765_v11  ;;  %v17214_v34 = vunpack.c.h.bf16 %v17201_v62  ;;  %v17215_v23 = vunpack.c.h.bf16 %v17203_v21  ;;  %4152 = vrot.lane.b32.xlu0 %v4086_v4, %s11197_s5  ;;  %v17217_v62 = vld [vmem:[#allocation64_spill] sm:$0xff] }
 0x267   : > { %v1642_v43 = vmul.f32 %v17212_v28, %v12864_v45  ;;  %v1803_v27 = vmul.f32 %v17213_v38, %v13106_v61  ;;  %v1352_v29 = vadd.f32 %v1320_v52, %v1159_v13  ;;  %v1834_v55 = vadd.f32 %v1802_v18, %v1673_v32  ;;  %v17228_v28 = vld [vmem:[#allocation85_spill] sm:$0xff] }
 0x268   : > { %v1964_v8 = vmul.f32 %v17214_v34, %v12875_v0  ;;  %v2126_v14 = vmul.f32 %v17215_v23, %v2029_v5  ;;  %v17216_v22 = vunpack.c.h.bf16 %v17205_v7  ;;  %v858_v53 = vadd.f32 %v12446_v39, %v13042_v9  ;;  %v13173_v34 = vld [vmem:[#allocation2 + $0x146] sm:$0xff]  ;;  %v17230_v23 = vld [vmem:[#allocation86_spill] sm:$0xff] }
 0x269   : > { %v869_v52 = vadd.f32 %v10639_v60, %v12446_v39  ;;  %v4087_v40 = vadd.f32 %v4055_v57, %v3926_v41  ;;  %v1513_v63 = vadd.f32 %v1481_v24, %v1352_v29  ;;  %v17218_v15 = vunpack.c.l.bf16 %v17217_v62  ;;  %v17222_v39 = vld [vmem:[#allocation74_spill] sm:$0xff]  ;;  %v17224_v60 = vld [vmem:[#allocation80_spill] sm:$0xff]  ;;  %v17226_v24 = vld [vmem:[#allocation81_spill] sm:$0xff] }
 0x26a   : > { %v2287_v36 = vmul.f32 %v17216_v22, %v13040_v31  ;;  %v17220_v13 = vunpack.c.l.bf16 %v17219_v46  ;;  %v1995_v18 = vadd.f32 %v1963_v56, %v1834_v55  ;;  %v17221_v49 = vunpack.c.h.bf16 %v17208_v26  ;;  %977 = vst.msk [vmem:[#allocation2 + $0x265] sm:$0xff] %vm872_vm1, %v858_v53  ;;  %1051 = vst.msk [vmem:[#allocation3 + $0x169] sm:$0xff] %vm872_vm1, %v858_v53  ;;  %v13171_v29 = vld [vmem:[#allocation2 + $0x144] sm:$0xff] }
 0x26b   : > { %v1160_v21 = vmul.f32 %v17218_v15, %v12834_v33  ;;  %980 = vst.msk [vmem:[#allocation2 + $0x28d] sm:$0xff] %vm872_vm1, %v869_v52  ;;  %1054 = vst.msk [vmem:[#allocation3 + $0x189] sm:$0xff] %vm872_vm1, %v869_v52  ;;  %v17223_v33 = vunpack.c.l.bf16 %v17222_v39  ;;  %v17225_v57 = vunpack.c.l.bf16 %v17224_v60  ;;  %4154 = vrot.lane.b32.xlu1 %v4087_v40, %s11197_s5  ;;  %v1674_v26 = vadd.f32 %v1642_v43, %v1513_v63  ;;  %v17232_v43 = vld [vmem:[#allocation87_spill] sm:$0xff]  ;;  %v10818_v40 = vld [vmem:[#allocation14] ss:$0 sm:$0xff] }
 0x26c   : > { %v1321_v11 = vmul.f32 %v17220_v13, %v13090_v25  ;;  %v13152_v7 = vmul.f32 %v17221_v49, %v2351_v58  ;;  %v17227_v4 = vunpack.c.l.bf16 %v17226_v24  ;;  %v17229_v38 = vunpack.c.l.bf16 %v17228_v28 }
 0x26d   : > { %v1482_v9 = vmul.f32 %v17223_v33, %v12836_v50  ;;  %v1643_v56 = vmul.f32 %v17225_v57, %v13095_v59  ;;  %v2157_v50 = vadd.f32 %v2125_v2, %v1995_v18  ;;  %v17231_v55 = vunpack.c.l.bf16 %v17230_v23  ;;  %v17236_v33 = vld [vmem:[#allocation88_spill] sm:$0xff] }
 0x26e   : > { %v1353_v12 = vadd.f32 %v1321_v11, %v1160_v21  ;;  %v1804_v32 = vmul.f32 %v17227_v4, %v13012_v44  ;;  %v1965_v41 = vmul.f32 %v17229_v38, %v13109_v6  ;;  %v17233_v53 = vunpack.c.l.bf16 %v17232_v43  ;;  %v13201_v38 = vld [vmem:[#allocation2 + $0x14c] sm:$0xff] }
 0x26f   : > { %v2127_v22 = vmul.f32 %v17231_v55, %v13171_v29  ;;  %v861_v63 = vadd.f32 %v10818_v40, %v13060_v42  ;;  %v1835_v15 = vadd.f32 %v1803_v27, %v1674_v26  ;;  %v17234_v13 = vunpack.c.h.bf16 %v17217_v62  ;;  %v4763_v62 = vld [vmem:[#allocation2 + $0xe0] sm:$0xff] }
 0x270   : > { %v2288_v52 = vmul.f32 %v17233_v53, %v12901_v1  ;;  %v1514_v21 = vadd.f32 %v1482_v9, %v1353_v12  ;;  %v17235_v2 = vunpack.c.h.bf16 %v17219_v46  ;;  %v2318_v49 = vadd.f32 %v2286_v3, %v2157_v50  ;;  %v13203_v50 = vld [vmem:[#allocation2 + $0x14e] sm:$0xff]  ;;  %v5247_v55 = vld [vmem:[#allocation2 + $0x180] sm:$0xff] }
 0x271   : > { %v1161_v11 = vmul.f32 %v17234_v13, %v12864_v45  ;;  %v17237_v57 = vunpack.c.l.bf16 %v17236_v33  ;;  %978 = vst.msk [vmem:[#allocation2 + $0x26d] sm:$0xff] %vm872_vm1, %v861_v63  ;;  %1052 = vst.msk [vmem:[#allocation3 + $0x171] sm:$0xff] %vm872_vm1, %v861_v63  ;;  %v17238_v1 = vunpack.c.h.bf16 %v17222_v39  ;;  %v17239_v27 = vunpack.c.h.bf16 %v17224_v60 }
 0x272   : > { %v1322_v18 = vmul.f32 %v17235_v2, %v13106_v61  ;;  %v1996_v9 = vadd.f32 %v1964_v8, %v1835_v15  ;;  %v1675_v46 = vadd.f32 %v1643_v56, %v1514_v21  ;;  %v17240_v3 = vunpack.c.h.bf16 %v17226_v24  ;;  %17241 = vst [vmem:[#allocation37_spill] sm:$0xff] %v13203_v50  ;;  %v17245_v15 = vld [vmem:[#allocation75_spill] sm:$0xff] }
 0x273   : > { %v2449_v4 = vmul.f32 %v17237_v57, %v13173_v34  ;;  %v1483_v42 = vmul.f32 %v17238_v1, %v12875_v0  ;;  %v1644_v45 = vmul.f32 %v17239_v27, %v2029_v5  ;;  %v2479_v53 = vadd.f32 %v2447_v51, %v2318_v49  ;;  %v13217_v51 = vld [vmem:[#allocation2 + $0x185] sm:$0xff]  ;;  %v17252_v49 = vld [vmem:[#allocation93_spill] sm:$0xff] }
 0x274   : > { %v1354_v26 = vadd.f32 %v1322_v18, %v1161_v11  ;;  %v1805_v12 = vmul.f32 %v17240_v3, %v13040_v31  ;;  %v17242_v39 = vunpack.c.h.bf16 %v17228_v28  ;;  %v17243_v5 = vunpack.c.h.bf16 %v17230_v23  ;;  %v13215_v11 = vld [vmem:[#allocation2 + $0xe5] sm:$0xff]  ;;  %v4925_v28 = vld [vmem:[#allocation2 + $0xed] sm:$0xff] }
 0x275   : > { %v17244_v8 = vunpack.c.h.bf16 %v17232_v43  ;;  %v2158_v40 = vadd.f32 %v2126_v14, %v1996_v9  ;;  %v1836_v24 = vadd.f32 %v1804_v32, %v1675_v46  ;;  %v17246_v21 = vunpack.c.l.bf16 %v17245_v15  ;;  %2549 = vrot.lane.b32.xlu0 %v2479_v53, %s11196_s20  ;;  %v17248_v43 = vld [vmem:[#allocation82_spill] sm:$0xff]  ;;  %v17250_v32 = vld [vmem:[#allocation84_spill] sm:$0xff]  ;;  %v17254_v46 = vld [vmem:[#allocation83_spill] sm:$0xff] }
 0x276   : > { %v1966_v0 = vmul.f32 %v17242_v39, %v2351_v58  ;;  %v2128_v60 = vmul.f32 %v17243_v5, %v13201_v38  ;;  %v1515_v63 = vadd.f32 %v1483_v42, %v1354_v26  ;;  %v17247_v58 = vunpack.c.h.bf16 %v17236_v33  ;;  %v5086_v42 = vld [vmem:[#allocation2 + $0xf2] sm:$0xff]  ;;  %v5569_v3 = vld [vmem:[#allocation2 + $0x18a] sm:$0xff] }
 0x277   : > { %v2289_v56 = vmul.f32 %v17244_v8, %v12926_v48  ;;  %v4860_v13 = vmul.f32 %v17246_v21, %v4763_v62  ;;  %v17249_v48 = vunpack.c.l.bf16 %v17248_v43  ;;  %v17251_v2 = vunpack.c.l.bf16 %v17250_v32  ;;  %v5248_v33 = vld [vmem:[#allocation2 + $0x188] sm:$0xff] }
 0x278   : > { %v2450_v23 = vmul.f32 %v17247_v58, %v13203_v50  ;;  %v17253_v57 = vunpack.c.l.bf16 %v17252_v49  ;;  %v2319_v27 = vadd.f32 %v2287_v36, %v2158_v40  ;;  %v1997_v62 = vadd.f32 %v1965_v41, %v1836_v24  ;;  %v13232_v53 = vld [vmem:[#allocation2 + $0x18d] sm:$0xff] }
 0x279   : > { %v5021_v14 = vmul.f32 %v17249_v48, %v13215_v11  ;;  %v5182_v18 = vmul.f32 %v17251_v2, %v12960_v17  ;;  %v1676_v9 = vadd.f32 %v1644_v45, %v1515_v63  ;;  %v4892_v26 = vadd.f32 %v4860_v13, %v17254_v46  ;;  %v17255_v39 = vld [vmem:[#allocation95_spill] sm:$0xff]  ;;  %v17257_v21 = vld [vmem:[#allocation96_spill] sm:$0xff]  ;;  %v17261_v2 = vld [vmem:[#allocation90_spill] sm:$0xff] }
 0x27a   : > { %v5344_v1 = vmul.f32 %v17253_v57, %v5247_v55  ;;  %v17256_v5 = vunpack.c.l.bf16 %v17255_v39  ;;  %v17258_v58 = vunpack.c.l.bf16 %v17257_v21  ;;  %v17259_v55 = vunpack.c.h.bf16 %v17245_v15  ;;  %v5570_v13 = vld [vmem:[#allocation2 + $0x192] sm:$0xff] }
 0x27b   : > { %v17260_v36 = vunpack.c.h.bf16 %v17248_v43  ;;  %v2480_v45 = vadd.f32 %v13152_v7, %v2319_v27  ;;  %v2159_v40 = vadd.f32 %v2127_v22, %v1997_v62  ;;  %v1837_v24 = vadd.f32 %v1805_v12, %v1676_v9  ;;  %v17265_v12 = vld [vmem:[#allocation76_spill] sm:$0xff] }
 0x27c   : > { %v5505_v8 = vmul.f32 %v17256_v5, %v13217_v51  ;;  %v5666_v17 = vmul.f32 %v17258_v58, %v5569_v3  ;;  %v4861_v48 = vmul.f32 %v17259_v55, %v12946_v35  ;;  %v5053_v63 = vadd.f32 %v5021_v14, %v4892_v26  ;;  %v17270_v26 = vld [vmem:[#allocation91_spill] sm:$0xff] }
 0x27d   : > { %v5022_v41 = vmul.f32 %v17260_v36, %v4925_v28  ;;  %v17262_v46 = vunpack.c.h.bf16 %v17250_v32  ;;  %v17263_v58 = vunpack.c.h.bf16 %v17252_v49  ;;  %v17264_v35 = vunpack.c.h.bf16 %v17255_v39  ;;  %2551 = vrot.lane.b32.xlu1 %v2480_v45, %s11196_s20  ;;  %v17268_v49 = vld [vmem:[#allocation89_spill] sm:$0xff]  ;;  %v17272_v36 = vld [vmem:[#allocation98_spill] sm:$0xff] }
 0x27e   : > { %v4893_v57 = vadd.f32 %v4861_v48, %v17261_v2  ;;  %v2320_v28 = vadd.f32 %v2288_v52, %v2159_v40  ;;  %v1998_v7 = vadd.f32 %v1966_v0, %v1837_v24  ;;  %v5214_v22 = vadd.f32 %v5182_v18, %v5053_v63  ;;  %v3641_v48 = vld [vmem:[#allocation2 + $0x182] sm:$0xff] }
 0x27f   : > { %v5183_v5 = vmul.f32 %v17262_v46, %v5086_v42  ;;  %v5345_v50 = vmul.f32 %v17263_v58, %v5248_v33  ;;  %v5506_v15 = vmul.f32 %v17264_v35, %v13232_v53  ;;  %v17266_v43 = vunpack.c.l.bf16 %v17265_v12  ;;  %v17280_v35 = vld [vmem:[#allocation105_spill] sm:$0xff] }
 0x280   : > { %v5054_v27 = vadd.f32 %v5022_v41, %v4893_v57  ;;  %v17267_v32 = vunpack.c.h.bf16 %v17257_v21  ;;  %v17269_v62 = vunpack.c.l.bf16 %v17268_v49  ;;  %v17271_v39 = vunpack.c.l.bf16 %v17270_v26  ;;  %v17274_v21 = vld [vmem:[#allocation102_spill] sm:$0xff] }
 0x281   : > { %v2771_v14 = vmul.f32 %v17266_v43, %v12990_v20  ;;  %v2481_v52 = vadd.f32 %v2449_v4, %v2320_v28  ;;  %v2160_v0 = vadd.f32 %v2128_v60, %v1998_v7  ;;  %v5376_v18 = vadd.f32 %v5344_v1, %v5214_v22  ;;  %v17278_v60 = vld [vmem:[#allocation104_spill] sm:$0xff] }
 0x282   : > { %v5667_v42 = vmul.f32 %v17267_v32, %v5570_v13  ;;  %v2932_v9 = vmul.f32 %v17269_v62, %v12992_v30  ;;  %v3093_v55 = vmul.f32 %v17271_v39, %v12997_v10  ;;  %v17273_v45 = vunpack.c.l.bf16 %v17272_v36  ;;  %v17276_v13 = vld [vmem:[#allocation103_spill] sm:$0xff] }
 0x283   : > { %v5215_v41 = vadd.f32 %v5183_v5, %v5054_v27  ;;  %v17275_v24 = vunpack.c.l.bf16 %v17274_v21  ;;  %v17277_v2 = vunpack.c.l.bf16 %v17276_v13  ;;  %2553 = vrot.lane.b32.xlu0 %v2481_v52, %s11196_s20  ;;  %v2321_v46 = vadd.f32 %v2289_v56, %v2160_v0  ;;  %v4761_v0 = vld [vmem:[#allocation2 + $0xc0] sm:$0xff] }
 0x284   : > { %v3254_v20 = vmul.f32 %v17273_v45, %v12999_v37  ;;  %v2964_v40 = vadd.f32 %v2932_v9, %v2771_v14  ;;  %v5537_v4 = vadd.f32 %v5505_v8, %v5376_v18  ;;  %v17279_v1 = vunpack.c.l.bf16 %v17278_v60  ;;  %v17284_v14 = vld [vmem:[#allocation107_spill] sm:$0xff] }
 0x285   : > { %v3415_v63 = vmul.f32 %v17275_v24, %v13012_v44  ;;  %v3576_v57 = vmul.f32 %v17277_v2, %v13014_v19  ;;  %v17281_v37 = vunpack.c.l.bf16 %v17280_v35  ;;  %v5377_v28 = vadd.f32 %v5345_v50, %v5215_v41  ;;  %v5245_v45 = vld [vmem:[#allocation2 + $0x160] sm:$0xff] }
 0x286   : > { %v3738_v58 = vmul.f32 %v17279_v1, %v3641_v48  ;;  %v3125_v7 = vadd.f32 %v3093_v55, %v2964_v40  ;;  %v17282_v44 = vunpack.c.h.bf16 %v17265_v12  ;;  %v17283_v19 = vunpack.c.h.bf16 %v17268_v49  ;;  %v17287_v12 = vld [vmem:[#allocation35_spill] sm:$0xff]  ;;  %v3964_v49 = vld [vmem:[#allocation2 + $0x190] sm:$0xff] }
 0x287   : > { %v3899_v5 = vmul.f32 %v17281_v37, %v13217_v51  ;;  %v2482_v56 = vadd.f32 %v2450_v23, %v2321_v46  ;;  %v5698_v8 = vadd.f32 %v5666_v17, %v5537_v4  ;;  %v17285_v27 = vunpack.c.l.bf16 %v17284_v14  ;;  %v13297_v23 = vld [vmem:[%s11639_s23 + $0x1b0] sm:$0xff]  }
 0x288   : > { %v2772_v22 = vmul.f32 %v17282_v44, %v13016_v54  ;;  %v2933_v43 = vmul.f32 %v17283_v19, %v13033_v47  ;;  %v17286_v62 = vunpack.c.h.bf16 %v17270_v26  ;;  %v5538_v9 = vadd.f32 %v5506_v15, %v5377_v28  ;;  %v13311_v41 = vld [vmem:[%s11639_s23 + $0x230] sm:$0xff]   ;;  %v5084_v44 = vld [vmem:[#allocation2 + $0xd2] sm:$0xff] }
 0x289   : > { %v13288_v32 = vmul.f32 %v17285_v27, %v5248_v33  ;;  %v3286_v39 = vadd.f32 %v3254_v20, %v3125_v7  ;;  %v17288_v48 = vunpack.c.h.bf16 %v17272_v36  ;;  %2555 = vrot.lane.b32.xlu1 %v2482_v56, %s11196_s20  ;;  %5766 = vrot.lane.b32.xlu0 %v5698_v8, %s11198_s28  ;;  %v17289_v33 = vunpack.c.h.bf16 %v17274_v21  ;;  %v13316_v21 = vld [vmem:[#allocation2 + $0x165] sm:$0xff]  ;;  %v17301_v8 = vld [vmem:[#allocation112_spill] sm:$0xff] }
 0x28a   : > { %v3094_v50 = vmul.f32 %v17286_v62, %v13036_v16  ;;  %v2965_v55 = vadd.f32 %v2933_v43, %v2772_v22  ;;  %v17290_v16 = vld [vmem:[#allocation36_spill] sm:$0xff]  ;;  %v17291_v15 = vunpack.c.h.bf16 %v17276_v13  ;;  %v17292_v18 = vunpack.c.h.bf16 %v17278_v60  ;;  %v17297_v28 = vld [vmem:[#allocation94_spill] sm:$0xff] }
 0x28b   : > { %v3255_v52 = vmul.f32 %v17288_v48, %v17287_v12  ;;  %v3416_v17 = vmul.f32 %v17289_v33, %v13040_v31  ;;  %v3447_v40 = vadd.f32 %v3415_v63, %v3286_v39  ;;  %v17293_v2 = vunpack.c.h.bf16 %v17280_v35  ;;  %v17299_v35 = vld [vmem:[#allocation97_spill] sm:$0xff]  ;;  %v13331_v62 = vld [vmem:[#allocation2 + $0x16a] sm:$0xff]  ;;  %v17307_v12 = vld [vmem:[#allocation114_spill] sm:$0xff] }
 0x28c   : > { %v3577_v26 = vmul.f32 %v17291_v15, %v17290_v16  ;;  %v3739_v36 = vmul.f32 %v17292_v18, %v5569_v3  ;;  %v3126_v24 = vadd.f32 %v3094_v50, %v2965_v55  ;;  %v5699_v13 = vadd.f32 %v5667_v42, %v5538_v9  ;;  %v17295_v3 = vld [vmem:[#allocation92_spill] sm:$0xff]  ;;  %v2673_v50 = vld [vmem:[#allocation2 + $0xa2] sm:$0xff] }
 0x28d   : > { %v3900_v46 = vmul.f32 %v17293_v2, %v13232_v53  ;;  %v17294_v4 = vunpack.c.h.bf16 %v17284_v14  ;;  %v17296_v1 = vunpack.c.l.bf16 %v17295_v3  ;;  %v17298_v7 = vunpack.c.l.bf16 %v17297_v28  ;;  %v13333_v14 = vld [vmem:[#allocation2 + $0x168] sm:$0xff] }
 0x28e   : > { %v3608_v22 = vadd.f32 %v3576_v57, %v3447_v40  ;;  %v3287_v19 = vadd.f32 %v3255_v52, %v3126_v24  ;;  %v17300_v43 = vunpack.c.l.bf16 %v17299_v35  ;;  %v17302_v27 = vunpack.c.l.bf16 %v17301_v8  ;;  %17303 = vst [vmem:[#allocation42_spill] sm:$0xff] %v13333_v14  ;;  %5768 = vrot.lane.b32.xlu1 %v5699_v13, %s11198_s28  ;;  %v17304_v9 = vld [vmem:[#allocation99_spill] sm:$0xff]  ;;  %v5568_v13 = vld [vmem:[#allocation2 + $0x172] sm:$0xff] }
 0x28f   : > { %v4061_v60 = vmul.f32 %v17294_v4, %v3964_v49  ;;  %v4858_v37 = vmul.f32 %v17296_v1, %v4761_v0  ;;  %v5019_v63 = vmul.f32 %v17298_v7, %v12992_v30  ;;  %v17305_v30 = vld [vmem:[#allocation113_spill] sm:$0xff]  ;;  %v17308_v48 = vunpack.c.l.bf16 %v17307_v12  ;;  %v2833_v0 = vld [vmem:[#allocation2 + $0xa5] sm:$0xff]  ;;  %v13351_v2 = vld [vmem:[#allocation2 + $0x16d] sm:$0xff] }
 0x290   : > { %v5180_v56 = vmul.f32 %v17300_v43, %v13016_v54  ;;  %v5342_v42 = vmul.f32 %v17302_v27, %v5245_v45  ;;  %v17306_v57 = vunpack.c.l.bf16 %v17305_v30  ;;  %v17309_v52 = vunpack.c.h.bf16 %v17295_v3  ;;  %v2994_v33 = vld [vmem:[#allocation2 + $0xa8] sm:$0xff]  ;;  %v17318_v43 = vld [vmem:[#allocation106_spill] sm:$0xff] }
 0x291   : > { %v4890_v39 = vadd.f32 %v4858_v37, %v17304_v9  ;;  %v5664_v54 = vmul.f32 %v17308_v48, %v13331_v62  ;;  %v3770_v16 = vadd.f32 %v3738_v58, %v3608_v22  ;;  %v3448_v15 = vadd.f32 %v3416_v17, %v3287_v19  ;;  %v17312_v1 = vld [vmem:[#allocation108_spill] sm:$0xff]  ;;  %v13359_v22 = vld [vmem:[#allocation2 + $0x102] sm:$0xff]  ;;  %v17316_v19 = vld [vmem:[#allocation101_spill] sm:$0xff] }
 0x292   : > { %v5503_v55 = vmul.f32 %v17306_v57, %v13316_v21  ;;  %v4859_v49 = vmul.f32 %v17309_v52, %v12997_v10  ;;  %v17310_v18 = vunpack.c.h.bf16 %v17297_v28  ;;  %v17311_v40 = vunpack.c.h.bf16 %v17299_v35  ;;  %v17314_v7 = vld [vmem:[#allocation100_spill] sm:$0xff] }
 0x293   : > { %v5051_v4 = vadd.f32 %v5019_v63, %v4890_v39  ;;  %v17313_v10 = vunpack.c.h.bf16 %v17301_v8  ;;  %v17315_v58 = vunpack.c.l.bf16 %v17314_v7  ;;  %v3931_v28 = vadd.f32 %v3899_v5, %v3770_v16  ;;  %v13365_v63 = vld [vmem:[#allocation2 + $0x108] sm:$0xff] }
 0x294   : > { %v5020_v45 = vmul.f32 %v17310_v18, %v13033_v47  ;;  %v5181_v24 = vmul.f32 %v17311_v40, %v5084_v44  ;;  %v4891_v37 = vadd.f32 %v4859_v49, %v17312_v1  ;;  %v3609_v47 = vadd.f32 %v3577_v26, %v3448_v15  ;;  %v13372_v49 = vld [vmem:[#allocation2 + $0x162] sm:$0xff]  ;;  %v2674_v5 = vld [vmem:[#allocation2 + $0xaa] sm:$0xff] }
 0x295   : > { %v5343_v3 = vmul.f32 %v17313_v10, %v13333_v14  ;;  %v2769_v17 = vmul.f32 %v17315_v58, %v2673_v50  ;;  %v17317_v35 = vunpack.c.l.bf16 %v17316_v19  ;;  %v17319_v27 = vunpack.c.l.bf16 %v17318_v43  ;;  %17322 = vst [vmem:[#allocation43_spill] sm:$0xff] %v13372_v49  ;;  %v2995_v10 = vld [vmem:[#allocation2 + $0xb0] sm:$0xff] }
 0x296   : > { %v5212_v39 = vadd.f32 %v5180_v56, %v5051_v4  ;;  %v5052_v57 = vadd.f32 %v5020_v45, %v4891_v37  ;;  %v17320_v8 = vunpack.c.h.bf16 %v17305_v30  ;;  %v17321_v50 = vunpack.c.h.bf16 %v17307_v12  ;;  %v2834_v56 = vld [vmem:[#allocation2 + $0xad] sm:$0xff]  ;;  %v17325_v30 = vld [vmem:[#allocation110_spill] sm:$0xff] }
 0x297   : > { %v2930_v44 = vmul.f32 %v17317_v35, %v2833_v0  ;;  %v3091_v9 = vmul.f32 %v17319_v27, %v2994_v33  ;;  %v4092_v26 = vadd.f32 %v13288_v32, %v3931_v28  ;;  %v3771_v0 = vadd.f32 %v3739_v36, %v3609_v47  ;;  %v17323_v33 = vld [vmem:[#allocation109_spill] sm:$0xff]  ;;  %v17327_v12 = vld [vmem:[#allocation111_spill] sm:$0xff]  ;;  %v17329_v58 = vld [vmem:[#allocation116_spill] sm:$0xff] }
 0x298   : > { %v5504_v48 = vmul.f32 %v17320_v8, %v13351_v2  ;;  %v5665_v52 = vmul.f32 %v17321_v50, %v5568_v13  ;;  %v17324_v15 = vunpack.c.l.bf16 %v17323_v33  ;;  %v5374_v45 = vadd.f32 %v5342_v42, %v5212_v39  ;;  %v13390_v47 = vld [vmem:[#allocation2 + $0x10a] sm:$0xff] }
 0x299   : > { %v2962_v16 = vadd.f32 %v2930_v44, %v2769_v17  ;;  %v5213_v40 = vadd.f32 %v5181_v24, %v5052_v57  ;;  %v17326_v4 = vunpack.c.l.bf16 %v17325_v30  ;;  %v17328_v13 = vunpack.c.l.bf16 %v17327_v12  ;;  %4164 = vrot.lane.b32.xlu0 %v4092_v26, %s11197_s5  ;;  %v17332_v44 = vld [vmem:[#allocation119_spill] sm:$0xff]  ;;  %v17335_v26 = vld [vmem:[#allocation120_spill] sm:$0xff] }
 0x29a   : > { %v3252_v18 = vmul.f32 %v17324_v15, %v13359_v22  ;;  %v3932_v32 = vadd.f32 %v3900_v46, %v3771_v0  ;;  %v17330_v17 = vunpack.c.l.bf16 %v17329_v58  ;;  %v17331_v42 = vunpack.c.h.bf16 %v17314_v7  ;;  %v13397_v46 = vld [vmem:[#allocation2 + $0x110] sm:$0xff] }
 0x29b   : > { %v3413_v1 = vmul.f32 %v17326_v4, %v13090_v25  ;;  %v3574_v37 = vmul.f32 %v17328_v13, %v13365_v63  ;;  %v3123_v36 = vadd.f32 %v3091_v9, %v2962_v16  ;;  %v5535_v35 = vadd.f32 %v5503_v55, %v5374_v45  ;;  %v13404_v55 = vld [vmem:[#allocation2 + $0x125] sm:$0xff]  ;;  %v17373_v20 = vld [vmem:[#allocation128_spill] sm:$0xff] }
 0x29c   : > { %v3736_v28 = vmul.f32 %v17330_v17, %v13372_v49  ;;  %v2770_v24 = vmul.f32 %v17331_v42, %v2674_v5  ;;  %v5375_v25 = vadd.f32 %v5343_v3, %v5213_v40  ;;  %v17333_v27 = vunpack.c.l.bf16 %v17332_v44  ;;  %17338 = vst [vmem:[#allocation44_spill] sm:$0xff] %v13404_v55  ;;  %v13409_v40 = vld [vmem:[#allocation2 + $0x170] sm:$0xff]  ;;  %v2677_v42 = vld [vmem:[#allocation2 + $0xe2] sm:$0xff] }
 0x29d   : > { %v17334_v57 = vunpack.c.h.bf16 %v17316_v19  ;;  %v4093_v9 = vadd.f32 %v4061_v60, %v3932_v32  ;;  %v3284_v50 = vadd.f32 %v3252_v18, %v3123_v36  ;;  %v17336_v0 = vunpack.c.l.bf16 %v17335_v26 }
 0x29e   : > { %v3897_v39 = vmul.f32 %v17333_v27, %v13316_v21  ;;  %v17337_v5 = vunpack.c.h.bf16 %v17318_v43  ;;  %v5696_v3 = vadd.f32 %v5664_v54, %v5535_v35  ;;  %v5536_v15 = vadd.f32 %v5504_v48, %v5375_v25  ;;  %v17349_v27 = vld [vmem:[#allocation124_spill] sm:$0xff] }
 0x29f   : > { %v2931_v8 = vmul.f32 %v17334_v57, %v2834_v56  ;;  %v4058_v7 = vmul.f32 %v17336_v0, %v13333_v14  ;;  %v17339_v19 = vunpack.c.h.bf16 %v17323_v33  ;;  %4166 = vrot.lane.b32.xlu1 %v4093_v9, %s11197_s5  ;;  %v3445_v60 = vadd.f32 %v3413_v1, %v3284_v50  ;;  %v17344_v1 = vld [vmem:[#allocation122_spill] sm:$0xff]  ;;  %v2998_v9 = vld [vmem:[#allocation2 + $0xe8] sm:$0xff] }
 0x2a0   : > { %v3092_v16 = vmul.f32 %v17337_v5, %v2995_v10  ;;  %v17340_v18 = vunpack.c.h.bf16 %v17325_v30  ;;  %v17341_v43 = vunpack.c.h.bf16 %v17327_v12  ;;  %v17342_v54 = vunpack.c.h.bf16 %v17329_v58  ;;  %5762 = vrot.lane.b32.xlu0 %v5696_v3, %s11198_s28  ;;  %v17351_v0 = vld [vmem:[#allocation127_spill] sm:$0xff] }
 0x2a1   : > { %v2963_v45 = vadd.f32 %v2931_v8, %v2770_v24  ;;  %v3253_v56 = vmul.f32 %v17339_v19, %v13390_v47  ;;  %v17343_v10 = vunpack.c.h.bf16 %v17332_v44  ;;  %v17345_v36 = vunpack.c.l.bf16 %v17344_v1  ;;  %v13437_v8 = vld [vmem:[#allocation2 + $0x145] sm:$0xff] }
 0x2a2   : > { %v3414_v4 = vmul.f32 %v17340_v18, %v13106_v61  ;;  %v3575_v13 = vmul.f32 %v17341_v43, %v13397_v46  ;;  %v3737_v48 = vmul.f32 %v17342_v54, %v13331_v62  ;;  %v17346_v61 = vld [vmem:[#allocation123_spill] sm:$0xff]  ;;  %v5697_v24 = vadd.f32 %v5665_v52, %v5536_v15  ;;  %v17353_v52 = vld [vmem:[#allocation129_spill] sm:$0xff] }
 0x2a3   : > { %v3124_v33 = vadd.f32 %v3092_v16, %v2963_v45  ;;  %v3898_v32 = vmul.f32 %v17343_v10, %v13351_v2  ;;  %v1162_v30 = vmul.f32 %v17345_v36, %v13095_v59  ;;  %v17347_v17 = vunpack.c.l.bf16 %v17346_v61  ;;  %v13445_v15 = vld [vmem:[#allocation2 + $0x164] sm:$0xff] }
 0x2a4   : > { %v3606_v35 = vadd.f32 %v3574_v37, %v3445_v60  ;;  %v17348_v58 = vunpack.c.h.bf16 %v17335_v26  ;;  %v17350_v57 = vunpack.c.l.bf16 %v17349_v27  ;;  %v17352_v5 = vunpack.c.l.bf16 %v17351_v0  ;;  %v3159_v26 = vld [vmem:[#allocation2 + $0x142] sm:$0xff]  ;;  %5764 = vrot.lane.b32.xlu1 %v5697_v24, %s11198_s28 }
 0x2a5   : > { %v1323_v12 = vmul.f32 %v17347_v17, %v13404_v55  ;;  %v3285_v50 = vadd.f32 %v3253_v56, %v3124_v33  ;;  %v17354_v37 = vunpack.c.l.bf16 %v17353_v52  ;;  %v17357_v56 = vld [vmem:[#allocation132_spill] sm:$0xff]  ;;  %v13454_v54 = vld [vmem:[#allocation2 + $0x166] sm:$0xff]  ;;  %v17361_v17 = vld [vmem:[#allocation117_spill] sm:$0xff]  ;;  %v17374_v55 = vunpack.c.l.bf16 %v17373_v20 }
 0x2a6   : > { %v4059_v25 = vmul.f32 %v17348_v58, %v13409_v40  ;;  %v1484_v44 = vmul.f32 %v17350_v57, %v13109_v6  ;;  %v1645_v16 = vmul.f32 %v17352_v5, %v13171_v29  ;;  %v3768_v45 = vadd.f32 %v3736_v28, %v3606_v35  ;;  %v17355_v6 = vld [vmem:[#allocation130_spill] sm:$0xff]  ;;  %v17359_v29 = vld [vmem:[#allocation115_spill] sm:$0xff]  ;;  %v17363_v28 = vld [vmem:[#allocation121_spill] sm:$0xff] }
 0x2a7   : > { %v1355_v59 = vadd.f32 %v1323_v12, %v1162_v30  ;;  %v1806_v3 = vmul.f32 %v17354_v37, %v13437_v8  ;;  %v17356_v19 = vunpack.c.l.bf16 %v17355_v6  ;;  %v17358_v18 = vunpack.c.l.bf16 %v17357_v56  ;;  %v3481_v57 = vld [vmem:[#allocation2 + $0x148] sm:$0xff] }
 0x2a8   : > { %v17360_v33 = vunpack.c.l.bf16 %v17359_v29  ;;  %v3446_v36 = vadd.f32 %v3414_v4, %v3285_v50  ;;  %v17362_v12 = vunpack.c.l.bf16 %v17361_v17  ;;  %v17364_v35 = vunpack.c.l.bf16 %v17363_v28  ;;  %v1067_v5 = vld [vmem:[#allocation2 + $0x12c] sm:$0xff]  ;;  %v17367_v29 = vld [vmem:[#allocation134_spill] sm:$0xff] }
 0x2a9   : > { %v1967_v60 = vmul.f32 %v17356_v19, %v13173_v34  ;;  %v2129_v43 = vmul.f32 %v17358_v18, %v13445_v15  ;;  %v1516_v30 = vadd.f32 %v1484_v44, %v1355_v59  ;;  %v3643_v34 = vld [vmem:[#allocation2 + $0x1a2] sm:$0xff]  ;;  %v3929_v37 = vadd.f32 %v3897_v39, %v3768_v45  ;;  %v17365_v19 = vld [vmem:[#allocation133_spill] sm:$0xff] }
 0x2aa   : > { %v2773_v10 = vmul.f32 %v17360_v33, %v2677_v42  ;;  %v2934_v24 = vmul.f32 %v17362_v12, %v13215_v11  ;;  %v3095_v58 = vmul.f32 %v17364_v35, %v2998_v9  ;;  %v17366_v18 = vunpack.c.l.bf16 %v17365_v19  ;;  %v17369_v44 = vld [vmem:[#allocation125_spill] sm:$0xff]  ;;  %v13471_v33 = vld [vmem:[#allocation2 + $0x12d] sm:$0xff]  ;;  %v17371_v12 = vld [vmem:[#allocation126_spill] sm:$0xff] }
 0x2ab   : > { %v17368_v42 = vunpack.c.l.bf16 %v17367_v29  ;;  %v17370_v50 = vunpack.c.l.bf16 %v17369_v44  ;;  %v3607_v11 = vadd.f32 %v3575_v13, %v3446_v36  ;;  %v1677_v17 = vadd.f32 %v1645_v16, %v1516_v30  ;;  %v13476_v45 = vld [vmem:[#allocation2 + $0x1a5] sm:$0xff]  ;;  %v1388_v35 = vld [vmem:[#allocation2 + $0x12e] sm:$0xff] }
 0x2ac   : > { %v2290_v31 = vmul.f32 %v17366_v18, %v13316_v21  ;;  %v2966_v9 = vadd.f32 %v2934_v24, %v2773_v10  ;;  %v17372_v28 = vunpack.c.l.bf16 %v17371_v12  ;;  %v4090_v18 = vadd.f32 %v4058_v7, %v3929_v37  ;;  %v13484_v36 = vld [vmem:[#allocation2 + $0x1a8] sm:$0xff] }
 0x2ad   : > { %v2451_v4 = vmul.f32 %v17368_v42, %v13454_v54  ;;  %v3256_v59 = vmul.f32 %v17370_v50, %v3159_v26  ;;  %v3578_v14 = vmul.f32 %v17374_v55, %v3481_v57  ;;  %v17375_v42 = vld [vmem:[#allocation138_spill] sm:$0xff]  ;;  %v17377_v26 = vunpack.c.h.bf16 %v17344_v1  ;;  %v17379_v20 = vld [vmem:[#allocation139_spill] sm:$0xff] }
 0x2ae   : > { %v3417_v39 = vmul.f32 %v17372_v28, %v13437_v8  ;;  %v17376_v49 = vunpack.c.l.bf16 %v17375_v42  ;;  %v3769_v13 = vadd.f32 %v3737_v48, %v3607_v11  ;;  %v1838_v16 = vadd.f32 %v1806_v3, %v1677_v17  ;;  %4160 = vrot.lane.b32.xlu0 %v4090_v18, %s11197_s5  ;;  %v13501_v17 = vld [vmem:[#allocation2 + $0x14d] sm:$0xff]  ;;  %v17386_v18 = vld [vmem:[#allocation37_spill] sm:$0xff] }
 0x2af   : > { %v1163_v50 = vmul.f32 %v17377_v26, %v1067_v5  ;;  %v3127_v10 = vadd.f32 %v3095_v58, %v2966_v9  ;;  %v17378_v30 = vunpack.c.h.bf16 %v17346_v61  ;;  %v17380_v7 = vunpack.c.l.bf16 %v17379_v20  ;;  %v13503_v9 = vld [vmem:[#allocation2 + $0x16c] sm:$0xff] }
 0x2b0   : > { %v3740_v44 = vmul.f32 %v17376_v49, %v3643_v34  ;;  %v17381_v49 = vld [vmem:[#allocation140_spill] sm:$0xff]  ;;  %v17383_v48 = vunpack.c.h.bf16 %v17349_v27  ;;  %v17384_v58 = vunpack.c.h.bf16 %v17351_v0  ;;  %v3930_v5 = vadd.f32 %v3898_v32, %v3769_v13  ;;  %v17389_v32 = vld [vmem:[#allocation131_spill] sm:$0xff] }
 0x2b1   : > { %v1324_v24 = vmul.f32 %v17378_v30, %v13471_v33  ;;  %v3901_v55 = vmul.f32 %v17380_v7, %v13476_v45  ;;  %v17382_v57 = vunpack.c.l.bf16 %v17381_v49  ;;  %v1999_v61 = vadd.f32 %v1967_v60, %v1838_v16  ;;  %v17393_v20 = vld [vmem:[#allocation135_spill] sm:$0xff] }
 0x2b2   : > { %v1485_v3 = vmul.f32 %v17383_v48, %v1388_v35  ;;  %v1646_v34 = vmul.f32 %v17384_v58, %v13201_v38  ;;  %v3288_v37 = vadd.f32 %v3256_v59, %v3127_v10  ;;  %v17385_v12 = vunpack.c.h.bf16 %v17353_v52  ;;  %v13517_v10 = vld [vmem:[#allocation2 + $0x16e] sm:$0xff]  ;;  %v1068_v49 = vld [vmem:[#allocation2 + $0x144] sm:$0xff] }
 0x2b3   : > { %v4062_v1 = vmul.f32 %v17382_v57, %v13484_v36  ;;  %v1356_v11 = vadd.f32 %v1324_v24, %v1163_v50  ;;  %v17387_v27 = vunpack.c.h.bf16 %v17355_v6  ;;  %v17388_v0 = vunpack.c.h.bf16 %v17357_v56  ;;  %v13519_v52 = vld [vmem:[#allocation2 + $0x18c] sm:$0xff] }
 0x2b4   : > { %v1807_v28 = vmul.f32 %v17385_v12, %v13501_v17  ;;  %v17390_v60 = vunpack.c.h.bf16 %v17389_v32  ;;  %v4091_v26 = vadd.f32 %v4059_v25, %v3930_v5  ;;  %v2161_v50 = vadd.f32 %v2129_v43, %v1999_v61  ;;  %v17395_v25 = vld [vmem:[#allocation136_spill] sm:$0xff] }
 0x2b5   : > { %v1968_v35 = vmul.f32 %v17387_v27, %v17386_v18  ;;  %v2130_v42 = vmul.f32 %v17388_v0, %v13503_v9  ;;  %v3449_v13 = vadd.f32 %v3417_v39, %v3288_v37  ;;  %v1517_v16 = vadd.f32 %v1485_v3, %v1356_v11  ;;  %v17399_v37 = vld [vmem:[#allocation142_spill] sm:$0xff]  ;;  %v17401_v27 = vld [vmem:[#allocation144_spill] sm:$0xff] }
 0x2b6   : > { %v1165_v59 = vmul.f32 %v17390_v60, %v13201_v38  ;;  %v17391_v6 = vunpack.c.h.bf16 %v17365_v19  ;;  %v17392_v56 = vunpack.c.h.bf16 %v17367_v29  ;;  %v17394_v7 = vunpack.c.h.bf16 %v17393_v20  ;;  %4162 = vrot.lane.b32.xlu1 %v4091_v26, %s11197_s5  ;;  %v17397_v19 = vld [vmem:[#allocation141_spill] sm:$0xff]  ;;  %v1389_v29 = vld [vmem:[#allocation2 + $0x146] sm:$0xff] }
 0x2b7   : > { %v17396_v43 = vunpack.c.h.bf16 %v17395_v25  ;;  %v2322_v57 = vadd.f32 %v2290_v31, %v2161_v50  ;;  %v3610_v48 = vadd.f32 %v3578_v14, %v3449_v13  ;;  %v1678_v3 = vadd.f32 %v1646_v34, %v1517_v16  ;;  %v17403_v60 = vld [vmem:[#allocation145_spill] sm:$0xff]  ;;  %v13546_v14 = vld [vmem:[#allocation2 + $0x18e] sm:$0xff] }
 0x2b8   : > { %v2291_v30 = vmul.f32 %v17391_v6, %v13351_v2  ;;  %v2452_v24 = vmul.f32 %v17392_v56, %v13517_v10  ;;  %v1326_v38 = vmul.f32 %v17394_v7, %v13501_v17  ;;  %v17398_v58 = vunpack.c.h.bf16 %v17397_v19  ;;  %v17406_v56 = vld [vmem:[#allocation146_spill] sm:$0xff] }
 0x2b9   : > { %v1487_v39 = vmul.f32 %v17396_v43, %v17386_v18  ;;  %v17400_v11 = vunpack.c.h.bf16 %v17399_v37  ;;  %v17402_v0 = vunpack.c.h.bf16 %v17401_v27  ;;  %v17404_v26 = vunpack.c.h.bf16 %v17403_v60 }
 0x2ba   : > { %v1648_v5 = vmul.f32 %v17398_v58, %v13503_v9  ;;  %v1358_v61 = vadd.f32 %v1326_v38, %v1165_v59  ;;  %v2483_v34 = vadd.f32 %v2451_v4, %v2322_v57  ;;  %v3772_v50 = vadd.f32 %v3740_v44, %v3610_v48 }
 0x2bb   : > { %v1809_v12 = vmul.f32 %v17400_v11, %v13351_v2  ;;  %v1970_v18 = vmul.f32 %v17402_v0, %v13517_v10  ;;  %v2132_v31 = vmul.f32 %v17404_v26, %v13519_v52  ;;  %v1839_v13 = vadd.f32 %v1807_v28, %v1678_v3  ;;  %v13558_v26 = vld [vmem:[#allocation2 + $0x184] sm:$0xff] }
 0x2bc   : > { %v17405_v16 = vunpack.c.l.bf16 %v17389_v32  ;;  %v1519_v6 = vadd.f32 %v1487_v39, %v1358_v61  ;;  %v17407_v7 = vunpack.c.h.bf16 %v17406_v56  ;;  %v17408_v43 = vunpack.c.l.bf16 %v17393_v20  ;;  %2557 = vrot.lane.b32.xlu0 %v2483_v34, %s11196_s20  ;;  %v17410_v28 = vld [vmem:[#allocation147_spill] sm:$0xff]  ;;  %v17416_v34 = vld [vmem:[#allocation118_spill] sm:$0xff] }
 0x2bd   : > { %v17409_v11 = vunpack.c.l.bf16 %v17395_v25  ;;  %v3933_v4 = vadd.f32 %v3901_v55, %v3772_v50  ;;  %v2000_v44 = vadd.f32 %v1968_v35, %v1839_v13  ;;  %v17411_v32 = vunpack.c.h.bf16 %v17410_v28  ;;  %v13567_v20 = vld [vmem:[#allocation2 + $0x10d] sm:$0xff] }
 0x2be   : > { %v1164_v59 = vmul.f32 %v17405_v16, %v1068_v49  ;;  %v2293_v38 = vmul.f32 %v17407_v7, %v13232_v53  ;;  %v1325_v58 = vmul.f32 %v17408_v43, %v13437_v8  ;;  %v17412_v53 = vunpack.c.l.bf16 %v17397_v19  ;;  %v17420_v7 = vld [vmem:[#allocation143_spill] sm:$0xff] }
 0x2bf   : > { %v1486_v0 = vmul.f32 %v17409_v11, %v1389_v29  ;;  %v2454_v39 = vmul.f32 %v17411_v32, %v13546_v14  ;;  %v1680_v8 = vadd.f32 %v1648_v5, %v1519_v6  ;;  %v17413_v57 = vunpack.c.l.bf16 %v17399_v37  ;;  %v17418_v37 = vld [vmem:[#allocation137_spill] sm:$0xff]  ;;  %v10388_v43 = vld [vmem:[%s11639_s23 + $0x2b0] sm:$0xff]  }
 0x2c0   : > { %v1647_v49 = vmul.f32 %v17412_v53, %v13445_v15  ;;  %v1357_v25 = vadd.f32 %v1325_v58, %v1164_v59  ;;  %v17414_v55 = vunpack.c.l.bf16 %v17401_v27  ;;  %v4094_v3 = vadd.f32 %v4062_v1, %v3933_v4  ;;  %v13581_v59 = vld [vmem:[#allocation2 + $0x186] sm:$0xff] }
 0x2c1   : > { %v1808_v48 = vmul.f32 %v17413_v57, %v13316_v21  ;;  %v2162_v29 = vadd.f32 %v2130_v42, %v2000_v44  ;;  %v17415_v19 = vunpack.c.l.bf16 %v17403_v60  ;;  %v17417_v50 = vunpack.c.h.bf16 %v17416_v34  ;;  %v13598_v44 = vld [vmem:[%s11639_s23 + $0x330] sm:$0xff]  }
 0x2c2   : > { %v1969_v35 = vmul.f32 %v17414_v55, %v13454_v54  ;;  %v1841_v13 = vadd.f32 %v1809_v12, %v1680_v8  ;;  %v1518_v16 = vadd.f32 %v1486_v0, %v1357_v25  ;;  %v17419_v6 = vunpack.c.h.bf16 %v17418_v37  ;;  %4168 = vrot.lane.b32.xlu1 %v4094_v3, %s11197_s5  ;;  %v13600_v8 = vld [vmem:[#allocation2 + $0x1ca] sm:$0xff] }
 0x2c3   : > { %v2131_v61 = vmul.f32 %v17415_v19, %v13558_v26  ;;  %v2776_v5 = vmul.f32 %v17417_v50, %v13390_v47  ;;  %v17421_v1 = vunpack.c.h.bf16 %v17420_v7  ;;  %v2323_v60 = vadd.f32 %v2291_v30, %v2162_v29  ;;  %v13603_v30 = vld [vmem:[#allocation2 + $0x105] sm:$0xff] }
 0x2c4   : > { %v2937_v27 = vmul.f32 %v17419_v6, %v13567_v20  ;;  %v17422_v58 = vunpack.c.l.bf16 %v17406_v56  ;;  %v17423_v11 = vunpack.c.h.bf16 %v13297_v23  ;;  %v9355_v4 = vunpack.c.h.bf16 %v10388_v43 }
 0x2c5   : > { %v3098_v42 = vmul.f32 %v17421_v1, %v13397_v46  ;;  %v2002_v32 = vadd.f32 %v1970_v18, %v1841_v13  ;;  %v1679_v53 = vadd.f32 %v1647_v49, %v1518_v16  ;;  %v9419_v25 = vunpack.c.h.bf16 %v13598_v44  ;;  %v13613_v18 = vld [vmem:[%s11639_s23 + $0x3b0] sm:$0xff]  }
 0x2c6   : > { %v2292_v12 = vmul.f32 %v17422_v58, %v13217_v51  ;;  %v3259_v0 = vmul.f32 %v17423_v11, %v13331_v62  ;;  %v2969_v46 = vadd.f32 %v2937_v27, %v2776_v5  ;;  %v2484_v57 = vadd.f32 %v2452_v24, %v2323_v60  ;;  %v13617_v5 = vld [vmem:[%s11639_s23 + $0x430] sm:$0xff]   ;;  %v3968_v60 = vld [vmem:[#allocation2 + $0x1d0] sm:$0xff] }
 0x2c7   : > { %v17424_v51 = vunpack.c.l.bf16 %v17410_v28  ;;  %v17425_v62 = vunpack.c.h.bf16 %v13311_v41  ;;  %v3581_v3 = vmul.f32 %v9355_v4, %v13409_v40  ;;  %v2164_v49 = vadd.f32 %v2132_v31, %v2002_v32  ;;  %v13621_v28 = vld [vmem:[#allocation2 + $0x1cd] sm:$0xff] }
 0x2c8   : > { %v1840_v29 = vadd.f32 %v1808_v48, %v1679_v53  ;;  %v3130_v19 = vadd.f32 %v3098_v42, %v2969_v46  ;;  %v9483_v50 = vunpack.c.h.bf16 %v13613_v18  ;;  %2559 = vrot.lane.b32.xlu0 %v2484_v57, %s11196_s20  ;;  %v3743_v24 = vmul.f32 %v9419_v25, %v13600_v8  ;;  %v17429_v46 = vld [vmem:[#allocation43_spill] sm:$0xff]  ;;  %v13640_v25 = vld [vmem:[%s11641_s29 + $0x120] sm:$0xff]  }
 0x2c9   : > { %v2453_v56 = vmul.f32 %v17424_v51, %v13581_v59  ;;  %v3420_v55 = vmul.f32 %v17425_v62, %v13351_v2  ;;  %v9547_v13 = vunpack.c.h.bf16 %v13617_v5  ;;  %v17426_v2 = vunpack.c.l.bf16 %v17416_v34  ;;  %v3645_v51 = vld [vmem:[#allocation2 + $0x1c2] sm:$0xff]  ;;  %v13645_v62 = vld [vmem:[%s11641_s29 + $0x1a0] sm:$0xff]  }
 0x2ca   : > { %v17427_v31 = vunpack.c.l.bf16 %v17418_v37  ;;  %v2325_v16 = vadd.f32 %v2293_v38, %v2164_v49  ;;  %v2001_v6 = vadd.f32 %v1969_v35, %v1840_v29  ;;  %v3291_v27 = vadd.f32 %v3259_v0, %v3130_v19  ;;  %v4286_v35 = vld [vmem:[#allocation2 + $0x88] sm:$0xff] }
 0x2cb   : > { %v2775_v40 = vmul.f32 %v17426_v2, %v13359_v22  ;;  %v17428_v1 = vunpack.c.l.bf16 %v17420_v7  ;;  %v9226_v11 = vunpack.c.l.bf16 %v13297_v23  ;;  %v9290_v4 = vunpack.c.l.bf16 %v13311_v41  ;;  %v4446_v0 = vld [vmem:[#allocation2 + $0x8d] sm:$0xff] }
 0x2cc   : > { %v2936_v48 = vmul.f32 %v17427_v31, %v13603_v30  ;;  %v9354_v34 = vunpack.c.l.bf16 %v10388_v43  ;;  %v2486_v22 = vadd.f32 %v2454_v39, %v2325_v16  ;;  %v2163_v32 = vadd.f32 %v2131_v61, %v2001_v6  ;;  %v17430_v43 = vld [vmem:[#allocation42_spill] sm:$0xff]  ;;  %v17431_v29 = vld [vmem:[#allocation148_spill] sm:$0xff] }
 0x2cd   : > { %v3097_v42 = vmul.f32 %v17428_v1, %v13365_v63  ;;  %v3452_v37 = vadd.f32 %v3420_v55, %v3291_v27  ;;  %v3904_v38 = vmul.f32 %v9483_v50, %v13621_v28  ;;  %v3258_v7 = vmul.f32 %v9226_v11, %v17429_v46  ;;  %v17433_v50 = vld [vmem:[#allocation38_spill] sm:$0xff]  ;;  %v13653_v31 = vld [vmem:[%s11641_s29 + $0x220] sm:$0xff]   ;;  %v4768_v6 = vld [vmem:[#allocation2 + $0x128] sm:$0xff] }
 0x2ce   : > { %v2968_v58 = vadd.f32 %v2936_v48, %v2775_v40  ;;  %v3419_v63 = vmul.f32 %v9290_v4, %v13316_v21  ;;  %v9418_v23 = vunpack.c.l.bf16 %v13598_v44  ;;  %2563 = vrot.lane.b32.xlu1 %v2486_v22, %s11196_s20  ;;  %v2324_v41 = vadd.f32 %v2292_v12, %v2163_v32  ;;  %v4607_v40 = vld [vmem:[#allocation2 + $0x92] sm:$0xff]  ;;  %v13658_v48 = vld [vmem:[#allocation2 + $0x1c5] sm:$0xff] }
 0x2cf   : > { %v3613_v39 = vadd.f32 %v3581_v3, %v3452_v37  ;;  %v4065_v61 = vmul.f32 %v9547_v13, %v3968_v60  ;;  %v3580_v57 = vmul.f32 %v9354_v34, %v17430_v43  ;;  %v9482_v49 = vunpack.c.l.bf16 %v13613_v18  ;;  %v13656_v12 = vld [vmem:[%s11641_s29 + $0x2a0] sm:$0xff]   ;;  %v3967_v32 = vld [vmem:[#allocation2 + $0x1c8] sm:$0xff] }
 0x2d0   : > { %v3129_v53 = vadd.f32 %v3097_v42, %v2968_v58  ;;  %v17432_v21 = vunpack.c.h.bf16 %v17431_v29  ;;  %v17434_v44 = vunpack.c.h.bf16 %v17433_v50  ;;  %v2485_v3 = vadd.f32 %v2453_v56, %v2324_v41  ;;  %v5090_v11 = vld [vmem:[#allocation2 + $0x132] sm:$0xff] }
 0x2d1   : > { %v3775_v13 = vadd.f32 %v3743_v24, %v3613_v39  ;;  %v9546_v16 = vunpack.c.l.bf16 %v13617_v5  ;;  %v9731_v18 = vunpack.c.h.bf16 %v13640_v25  ;;  %v3742_v1 = vmul.f32 %v9418_v23, %v3645_v51  ;;  %v10545_v5 = vld [vmem:[%s11641_s29 + $0x320] sm:$0xff]   ;;  %v4445_v51 = vld [vmem:[#allocation2 + $0x85] sm:$0xff] }
 0x2d2   : > { %v3290_v55 = vadd.f32 %v3258_v7, %v3129_v53  ;;  %v4382_v19 = vmul.f32 %v17432_v21, %v4286_v35  ;;  %v4543_v2 = vmul.f32 %v17434_v44, %v4446_v0  ;;  %v9795_v60 = vunpack.c.h.bf16 %v13645_v62  ;;  %2561 = vrot.lane.b32.xlu0 %v2485_v3, %s11196_s20  ;;  %v13670_v7 = vld [vmem:[%s11641_s29 + $0x3a0] sm:$0xff]  }
 0x2d3   : > { %v3936_v58 = vadd.f32 %v3904_v38, %v3775_v13  ;;  %v4704_v56 = vmul.f32 %v9731_v18, %v4607_v40  ;;  %v9859_v24 = vunpack.c.h.bf16 %v13653_v31  ;;  %v9923_v4 = vunpack.c.h.bf16 %v13656_v12  ;;  %v10819_v29 = vld [vmem:[%s11641_s29 + $0x20] sm:$0xff]   ;;  %v4767_v40 = vld [vmem:[#allocation2 + $0x120] sm:$0xff] }
 0x2d4   : > { %v3451_v27 = vadd.f32 %v3419_v63, %v3290_v55  ;;  %v4575_v42 = vadd.f32 %v4543_v2, %v4382_v19  ;;  %v3903_v22 = vmul.f32 %v9482_v49, %v13658_v48  ;;  %v4865_v37 = vmul.f32 %v9795_v60, %v4768_v6  ;;  %v13673_v63 = vld [vmem:[%s11641_s29 + $0x420] sm:$0xff]  }
 0x2d5   : > { %v9987_v35 = vunpack.c.h.bf16 %v10545_v5  ;;  %v4097_v0 = vadd.f32 %v4065_v61, %v3936_v58  ;;  %v4064_v53 = vmul.f32 %v9546_v16, %v3967_v32  ;;  %v5026_v38 = vmul.f32 %v9859_v24, %v13471_v33  ;;  %v4606_v55 = vld [vmem:[#allocation2 + $0x8a] sm:$0xff]  ;;  %v5574_v49 = vld [vmem:[#allocation2 + $0x1d2] sm:$0xff] }
 0x2d6   : > { %v3612_v34 = vadd.f32 %v3580_v57, %v3451_v27  ;;  %v4736_v46 = vadd.f32 %v4704_v56, %v4575_v42  ;;  %v5187_v41 = vmul.f32 %v9923_v4, %v5090_v11  ;;  %v10051_v39 = vunpack.c.h.bf16 %v13670_v7  ;;  %v4285_v57 = vld [vmem:[#allocation2 + $0x80] sm:$0xff]  ;;  %v10820_v33 = vld [vmem:[%s11641_s29 + $0xa0] sm:$0xff]  }
 0x2d7   : > { %v10115_v43 = vunpack.c.h.bf16 %v13673_v63  ;;  %4174 = vrot.lane.b32.xlu1 %v4097_v0, %s11197_s5  ;;  %v9602_v21 = vunpack.c.l.bf16 %v10819_v29  ;;  %v9666_v19 = vunpack.c.l.bf16 %v10820_v33  ;;  %v9730_v50 = vunpack.c.l.bf16 %v13640_v25  ;;  %v5089_v58 = vld [vmem:[#allocation2 + $0x12a] sm:$0xff]  ;;  %v5251_v4 = vld [vmem:[#allocation2 + $0x1c0] sm:$0xff]  ;;  %v10824_v29 = vld [vmem:[%s11639_s23 + $0x1a8] sm:$0xff]  }
 0x2d8   : > { %v3774_v23 = vadd.f32 %v3742_v1, %v3612_v34  ;;  %v4897_v61 = vadd.f32 %v4865_v37, %v4736_v46  ;;  %v5349_v2 = vmul.f32 %v9987_v35, %v3967_v32  ;;  %v9794_v3 = vunpack.c.l.bf16 %v13645_v62  ;;  %v2678_v34 = vld [vmem:[#allocation2 + $0xea] sm:$0xff]  ;;  %v10821_v35 = vld [vmem:[%s11639_s23 + $0x28] sm:$0xff]  }
 0x2d9   : > { %v9858_v13 = vunpack.c.l.bf16 %v13653_v31  ;;  %v4381_v18 = vmul.f32 %v9602_v21, %v4285_v57  ;;  %v4542_v6 = vmul.f32 %v9666_v19, %v4445_v51  ;;  %v4703_v27 = vmul.f32 %v9730_v50, %v4606_v55  ;;  %v2838_v31 = vld [vmem:[#allocation2 + $0xed] sm:$0xff]  ;;  %v10823_v51 = vld [vmem:[%s11639_s23 + $0x128] sm:$0xff]  }
 0x2da   : > { %v3935_v44 = vadd.f32 %v3903_v22, %v3774_v23  ;;  %v5058_v16 = vadd.f32 %v5026_v38, %v4897_v61  ;;  %v5510_v42 = vmul.f32 %v10051_v39, %v13621_v28  ;;  %v5671_v60 = vmul.f32 %v10115_v43, %v5574_v49  ;;  %v17435_v22 = vld [vmem:[#allocation44_spill] sm:$0xff]  ;;  %v10825_v33 = vld [vmem:[%s11639_s23 + $0x228] sm:$0xff]  }
 0x2db   : > { %v9922_v25 = vunpack.c.l.bf16 %v13656_v12  ;;  %v4574_v24 = vadd.f32 %v4542_v6, %v4381_v18  ;;  %v4864_v11 = vmul.f32 %v9794_v3, %v4767_v40  ;;  %v9986_v62 = vunpack.c.l.bf16 %v10545_v5  ;;  %v13692_v55 = vld [vmem:[#allocation2 + $0x14a] sm:$0xff]  ;;  %v10826_v40 = vld [vmem:[%s11639_s23 + $0x2a8] sm:$0xff]  }
 0x2dc   : > { %v4096_v1 = vadd.f32 %v4064_v53, %v3935_v44  ;;  %v5219_v56 = vadd.f32 %v5187_v41, %v5058_v16  ;;  %v5025_v32 = vmul.f32 %v9858_v13, %v17435_v22  ;;  %v10050_v37 = vunpack.c.l.bf16 %v13670_v7  ;;  %v10822_v53 = vld [vmem:[%s11639_s23 + $0xa8] sm:$0xff]   ;;  %v2999_v41 = vld [vmem:[#allocation2 + $0xf0] sm:$0xff]  ;;  %v13701_v13 = vld [vmem:[%s11641_s29 + $0x18] sm:$0xff]  }
 0x2dd   : > { %v9031_v0 = vunpack.c.h.bf16 %v10821_v35  ;;  %v9095_v46 = vunpack.c.h.bf16 %v10822_v53  ;;  %v4735_v38 = vadd.f32 %v4703_v27, %v4574_v24  ;;  %v5186_v23 = vmul.f32 %v9922_v25, %v5089_v58  ;;  %v13696_v19 = vld [vmem:[#allocation2 + $0x150] sm:$0xff]  ;;  %v13704_v16 = vld [vmem:[%s11641_s29 + $0x98] sm:$0xff]   ;;  %v10828_v22 = vld [vmem:[%s11639_s23 + $0x3a8] sm:$0xff]  }
 0x2de   : > { %4172 = vrot.lane.b32.xlu0 %v4096_v1, %s11197_s5  ;;  %v5381_v12 = vadd.f32 %v5349_v2, %v5219_v56  ;;  %v10114_v5 = vunpack.c.l.bf16 %v13673_v63  ;;  %v5348_v39 = vmul.f32 %v9986_v62, %v5251_v4  ;;  %v9159_v7 = vunpack.c.h.bf16 %v10823_v51  ;;  %v10827_v1 = vld [vmem:[%s11639_s23 + $0x328] sm:$0xff]   ;;  %v13709_v58 = vld [vmem:[%s11641_s29 + $0x118] sm:$0xff]   ;;  %v4283_v62 = vld [vmem:[#allocation2 + $0x60] sm:$0xff] }
 0x2df   : > { %v2774_v43 = vmul.f32 %v9031_v0, %v2678_v34  ;;  %v2935_v57 = vmul.f32 %v9095_v46, %v2838_v31  ;;  %v4896_v49 = vadd.f32 %v4864_v11, %v4735_v38  ;;  %v9223_v21 = vunpack.c.h.bf16 %v10824_v29  ;;  %v13712_v25 = vld [vmem:[%s11641_s29 + $0x198] sm:$0xff]   ;;  %v4765_v0 = vld [vmem:[#allocation2 + $0x100] sm:$0xff]  ;;  %v10829_v46 = vld [vmem:[%s11639_s23 + $0x428] sm:$0xff]  }
 0x2e0   : > { %v5542_v61 = vadd.f32 %v5510_v42, %v5381_v12  ;;  %v9287_v63 = vunpack.c.h.bf16 %v10825_v33  ;;  %v5509_v50 = vmul.f32 %v10050_v37, %v13658_v48  ;;  %v3096_v2 = vmul.f32 %v9159_v7, %v2999_v41  ;;  %v4443_v34 = vld [vmem:[#allocation2 + $0x65] sm:$0xff]  ;;  %v13734_v51 = vld [vmem:[#allocation2 + $0x1ad] sm:$0xff] }
 0x2e1   : > { %v2967_v44 = vadd.f32 %v2935_v57, %v2774_v43  ;;  %v9351_v3 = vunpack.c.h.bf16 %v10826_v40  ;;  %v5057_v6 = vadd.f32 %v5025_v32, %v4896_v49  ;;  %v3257_v27 = vmul.f32 %v9223_v21, %v13692_v55  ;;  %v4604_v35 = vld [vmem:[#allocation2 + $0x6a] sm:$0xff] }
 0x2e2   : > { %v5703_v18 = vadd.f32 %v5671_v60, %v5542_v61  ;;  %v9415_v42 = vunpack.c.h.bf16 %v10827_v1  ;;  %v5670_v56 = vmul.f32 %v10114_v5, %v13600_v8  ;;  %v3418_v11 = vmul.f32 %v9287_v63, %v13501_v17  ;;  %v13717_v60 = vld [vmem:[#allocation2 + $0x1aa] sm:$0xff] }
 0x2e3   : > { %v3128_v24 = vadd.f32 %v3096_v2, %v2967_v44  ;;  %v3579_v4 = vmul.f32 %v9351_v3, %v13696_v19  ;;  %v5218_v31 = vadd.f32 %v5186_v23, %v5057_v6  ;;  %v9479_v32 = vunpack.c.h.bf16 %v10828_v22  ;;  %v13724_v17 = vld [vmem:[%s11641_s29 + $0x218] sm:$0xff]   ;;  %v13736_v7 = vld [vmem:[#allocation2 + $0x1b0] sm:$0xff] }
 0x2e4   : > { %5776 = vrot.lane.b32.xlu1 %v5703_v18, %s11198_s28  ;;  %v9598_v37 = vunpack.c.l.bf16 %v13701_v13  ;;  %v9662_v8 = vunpack.c.l.bf16 %v13704_v16  ;;  %v9543_v12 = vunpack.c.h.bf16 %v10829_v46  ;;  %v9726_v38 = vunpack.c.l.bf16 %v13709_v58  ;;  %v10528_v23 = vld [vmem:[%s11641_s29 + $0x298] sm:$0xff]   ;;  %v5249_v18 = vld [vmem:[#allocation2 + $0x1a0] sm:$0xff] }
 0x2e5   : > { %v3289_v53 = vadd.f32 %v3257_v27, %v3128_v24  ;;  %v9790_v5 = vunpack.c.l.bf16 %v13712_v25  ;;  %v13731_v41 = vld [vmem:[%s11641_s29 + $0x318] sm:$0xff]   ;;  %v5380_v43 = vadd.f32 %v5348_v39, %v5218_v31  ;;  %v3741_v57 = vmul.f32 %v9415_v42, %v13717_v60 }
 0x2e6   : > { %v4379_v61 = vmul.f32 %v9598_v37, %v4283_v62  ;;  %v4540_v49 = vmul.f32 %v9662_v8, %v4443_v34  ;;  %v4701_v21 = vmul.f32 %v9726_v38, %v4604_v35  ;;  %v9854_v63 = vunpack.c.l.bf16 %v13724_v17  ;;  %v13740_v44 = vld [vmem:[%s11641_s29 + $0x398] sm:$0xff]  }
 0x2e7   : > { %v3450_v29 = vadd.f32 %v3418_v11, %v3289_v53  ;;  %v4862_v33 = vmul.f32 %v9790_v5, %v4765_v0  ;;  %v13743_v2 = vld [vmem:[%s11641_s29 + $0x418] sm:$0xff]   ;;  %v5541_v40 = vadd.f32 %v5509_v50, %v5380_v43  ;;  %v9918_v39 = vunpack.c.l.bf16 %v10528_v23  ;;  %v4605_v0 = vld [vmem:[#allocation2 + $0x72] sm:$0xff] }
 0x2e8   : > { %v4572_v3 = vadd.f32 %v4540_v49, %v4379_v61  ;;  %v9982_v6 = vunpack.c.l.bf16 %v13731_v41  ;;  %v3902_v1 = vmul.f32 %v9479_v32, %v13734_v51  ;;  %v4063_v42 = vmul.f32 %v9543_v12, %v13736_v7  ;;  %v4284_v22 = vld [vmem:[#allocation2 + $0x68] sm:$0xff] }
 0x2e9   : > { %v3611_v27 = vadd.f32 %v3579_v4, %v3450_v29  ;;  %v5023_v24 = vmul.f32 %v9854_v63, %v13603_v30  ;;  %v5702_v11 = vadd.f32 %v5670_v56, %v5541_v40  ;;  %v10046_v34 = vunpack.c.l.bf16 %v13740_v44  ;;  %v4444_v4 = vld [vmem:[#allocation2 + $0x6d] sm:$0xff] }
 0x2ea   : > { %v4733_v62 = vadd.f32 %v4701_v21, %v4572_v3  ;;  %v10110_v31 = vunpack.c.l.bf16 %v13743_v2  ;;  %v5184_v37 = vmul.f32 %v9918_v39, %v13390_v47  ;;  %v5346_v8 = vmul.f32 %v9982_v6, %v5249_v18  ;;  %v4766_v53 = vld [vmem:[#allocation2 + $0x108] sm:$0xff] }
 0x2eb   : > { %v3773_v50 = vadd.f32 %v3741_v57, %v3611_v27  ;;  %v9599_v35 = vunpack.c.h.bf16 %v13701_v13  ;;  %5774 = vrot.lane.b32.xlu0 %v5702_v11, %s11198_s28  ;;  %v9663_v56 = vunpack.c.h.bf16 %v13704_v16  ;;  %v9727_v32 = vunpack.c.h.bf16 %v13709_v58  ;;  %v5088_v13 = vld [vmem:[#allocation2 + $0x112] sm:$0xff]  ;;  %v13760_v29 = vld [vmem:[%s11633_s24 + $0x38] sm:$0xff]  }
 0x2ec   : > { %v4894_v30 = vadd.f32 %v4862_v33, %v4733_v62  ;;  %v9791_v46 = vunpack.c.h.bf16 %v13712_v25  ;;  %v9855_v38 = vunpack.c.h.bf16 %v13724_v17  ;;  %v9919_v5 = vunpack.c.h.bf16 %v10528_v23  ;;  %v13763_v16 = vld [vmem:[%s11633_s24 + $0xb8] sm:$0xff]  }
 0x2ed   : > { %v3934_v12 = vadd.f32 %v3902_v1, %v3773_v50  ;;  %v4380_v47 = vmul.f32 %v9599_v35, %v4284_v22  ;;  %v5507_v57 = vmul.f32 %v10046_v34, %v13476_v45  ;;  %v4541_v61 = vmul.f32 %v9663_v56, %v4444_v4  ;;  %v13766_v58 = vld [vmem:[%s11633_s24 + $0x138] sm:$0xff]  }
 0x2ee   : > { %v5055_v43 = vadd.f32 %v5023_v24, %v4894_v30  ;;  %v4702_v49 = vmul.f32 %v9727_v32, %v4605_v0  ;;  %v5668_v21 = vmul.f32 %v10110_v31, %v13717_v60  ;;  %v4863_v17 = vmul.f32 %v9791_v46, %v4766_v53  ;;  %v10214_v39 = vld [vmem:[%s11633_s24 + $0x1b8] sm:$0xff]   ;;  %v5572_v31 = vld [vmem:[#allocation2 + $0x1b2] sm:$0xff] }
 0x2ef   : > { %v4095_v25 = vadd.f32 %v4063_v42, %v3934_v12  ;;  %v9983_v23 = vunpack.c.h.bf16 %v13731_v41  ;;  %v4573_v63 = vadd.f32 %v4541_v61, %v4380_v47  ;;  %v5024_v40 = vmul.f32 %v9855_v38, %v13567_v20  ;;  %v10230_v42 = vld [vmem:[%s11633_s24 + $0x238] sm:$0xff]  }
 0x2f0   : > { %v5216_v33 = vadd.f32 %v5184_v37, %v5055_v43  ;;  %v5185_v3 = vmul.f32 %v9919_v5, %v5088_v13  ;;  %v10047_v18 = vunpack.c.h.bf16 %v13740_v44  ;;  %v8462_v6 = vunpack.c.l.bf16 %v13760_v29  ;;  %v13779_v41 = vld [vmem:[%s11633_s24 + $0x2b8] sm:$0xff]  }
 0x2f1   : > { %4170 = vrot.lane.b32.xlu1 %v4095_v25, %s11197_s5  ;;  %v8526_v27 = vunpack.c.l.bf16 %v13763_v16  ;;  %v8590_v1 = vunpack.c.l.bf16 %v13766_v58  ;;  %v4734_v11 = vadd.f32 %v4702_v49, %v4573_v63  ;;  %v5347_v20 = vmul.f32 %v9983_v23, %v13484_v36  ;;  %v13783_v34 = vld [vmem:[#allocation2 + $0x165] sm:$0xff] }
 0x2f2   : > { %v5378_v24 = vadd.f32 %v5346_v8, %v5216_v33  ;;  %v10111_v62 = vunpack.c.h.bf16 %v13743_v2  ;;  %v13786_v44 = vld [vmem:[%s11633_s24 + $0x338] sm:$0xff]   ;;  %v1166_v22 = vmul.f32 %v8462_v6, %v13445_v15  ;;  %v8654_v35 = vunpack.c.l.bf16 %v10214_v39 }
 0x2f3   : > { %v1327_v50 = vmul.f32 %v8526_v27, %v13783_v34  ;;  %v1488_v37 = vmul.f32 %v8590_v1, %v13454_v54  ;;  %v13792_v4 = vld [vmem:[%s11633_s24 + $0x3b8] sm:$0xff]   ;;  %v4895_v0 = vadd.f32 %v4863_v17, %v4734_v11  ;;  %v8718_v30 = vunpack.c.l.bf16 %v10230_v42 }
 0x2f4   : > { %v5539_v8 = vadd.f32 %v5507_v57, %v5378_v24  ;;  %v8782_v36 = vunpack.c.l.bf16 %v13779_v41  ;;  %v13796_v2 = vld [vmem:[%s11633_s24 + $0x438] sm:$0xff]   ;;  %v5508_v56 = vmul.f32 %v10047_v18, %v13734_v51  ;;  %v1649_v53 = vmul.f32 %v8654_v35, %v13558_v26 }
 0x2f5   : > { %v1359_v32 = vadd.f32 %v1327_v50, %v1166_v22  ;;  %v8846_v15 = vunpack.c.l.bf16 %v13786_v44  ;;  %v5056_v12 = vadd.f32 %v5024_v40, %v4895_v0  ;;  %v5669_v54 = vmul.f32 %v10111_v62, %v5572_v31  ;;  %v13801_v47 = vld [vmem:[#allocation2 + $0x185] sm:$0xff]  ;;  %v13816_v40 = vld [vmem:[#allocation2 + $0x16d] sm:$0xff] }
 0x2f6   : > { %v5700_v46 = vadd.f32 %v5668_v21, %v5539_v8  ;;  %v13803_v38 = vld [vmem:[#allocation2 + $0x1a4] sm:$0xff]  ;;  %v8910_v13 = vunpack.c.l.bf16 %v13792_v4  ;;  %v1810_v43 = vmul.f32 %v8718_v30, %v13801_v47  ;;  %v1971_v57 = vmul.f32 %v8782_v36, %v13581_v59  ;;  %v13828_v62 = vld [vmem:[#allocation2 + $0x18d] sm:$0xff] }
 0x2f7   : > { %v1520_v5 = vadd.f32 %v1488_v37, %v1359_v32  ;;  %v8974_v61 = vunpack.c.l.bf16 %v13796_v2  ;;  %v5217_v49 = vadd.f32 %v5185_v3, %v5056_v12  ;;  %v13810_v25 = vld [vmem:[#allocation2 + $0x1a6] sm:$0xff]  ;;  %v8463_v21 = vunpack.c.h.bf16 %v13760_v29  ;;  %v13822_v29 = vld [vmem:[%s11633_s24 + $0x40] sm:$0xff]  }
 0x2f8   : > { %5770 = vrot.lane.b32.xlu0 %v5700_v46, %s11198_s28  ;;  %v8527_v17 = vunpack.c.h.bf16 %v13763_v16  ;;  %v8591_v23 = vunpack.c.h.bf16 %v13766_v58  ;;  %v2133_v63 = vmul.f32 %v8846_v15, %v13803_v38  ;;  %v8655_v18 = vunpack.c.h.bf16 %v10214_v39  ;;  %v10183_v22 = vld [vmem:[%s11633_s24 + $0xc0] sm:$0xff]  }
 0x2f9   : > { %v1681_v33 = vadd.f32 %v1649_v53, %v1520_v5  ;;  %v8719_v6 = vunpack.c.h.bf16 %v10230_v42  ;;  %v5379_v27 = vadd.f32 %v5347_v20, %v5217_v49  ;;  %v1167_v1 = vmul.f32 %v8463_v21, %v13503_v9  ;;  %v10199_v8 = vld [vmem:[%s11633_s24 + $0x140] sm:$0xff]  }
 0x2fa   : > { %v1328_v3 = vmul.f32 %v8527_v17, %v13816_v40  ;;  %v1489_v24 = vmul.f32 %v8591_v23, %v13517_v10  ;;  %v2294_v58 = vmul.f32 %v8910_v13, %v13476_v45  ;;  %v2455_v11 = vmul.f32 %v8974_v61, %v13810_v25  ;;  %v13830_v10 = vld [vmem:[#allocation2 + $0x1ac] sm:$0xff] }
 0x2fb   : > { %v1842_v16 = vadd.f32 %v1810_v43, %v1681_v33  ;;  %v8783_v39 = vunpack.c.h.bf16 %v13779_v41  ;;  %v5540_v42 = vadd.f32 %v5508_v56, %v5379_v27  ;;  %v1650_v9 = vmul.f32 %v8655_v18, %v13519_v52  ;;  %v10215_v0 = vld [vmem:[%s11633_s24 + $0x1c0] sm:$0xff]  }
 0x2fc   : > { %v1360_v20 = vadd.f32 %v1328_v3, %v1167_v1  ;;  %v8847_v31 = vunpack.c.h.bf16 %v13786_v44  ;;  %v1811_v37 = vmul.f32 %v8719_v6, %v13828_v62  ;;  %v8911_v35 = vunpack.c.h.bf16 %v13792_v4  ;;  %v13840_v30 = vld [vmem:[%s11633_s24 + $0x240] sm:$0xff]  }
 0x2fd   : > { %v2003_v50 = vadd.f32 %v1971_v57, %v1842_v16  ;;  %v8466_v41 = vunpack.c.l.bf16 %v13822_v29  ;;  %v5701_v36 = vadd.f32 %v5669_v54, %v5540_v42  ;;  %v1972_v32 = vmul.f32 %v8783_v39, %v13546_v14  ;;  %v13845_v44 = vld [vmem:[%s11633_s24 + $0x2c0] sm:$0xff]  }
 0x2fe   : > { %v1521_v56 = vadd.f32 %v1489_v24, %v1360_v20  ;;  %v8975_v53 = vunpack.c.h.bf16 %v13796_v2  ;;  %v2134_v46 = vmul.f32 %v8847_v31, %v13830_v10  ;;  %v13848_v12 = vld [vmem:[#allocation2 + $0x1ae] sm:$0xff]  ;;  %v8530_v13 = vunpack.c.l.bf16 %v10183_v22  ;;  %v13864_v24 = vld [vmem:[#allocation2 + $0x1c4] sm:$0xff] }
 0x2ff   : > { %v2165_v15 = vadd.f32 %v2133_v63, %v2003_v50  ;;  %v1168_v4 = vmul.f32 %v8466_v41, %v13558_v26  ;;  %v10263_v5 = vld [vmem:[%s11633_s24 + $0x340] sm:$0xff]   ;;  %5772 = vrot.lane.b32.xlu1 %v5701_v36, %s11198_s28  ;;  %v8594_v43 = vunpack.c.l.bf16 %v10199_v8  ;;  %v8658_v57 = vunpack.c.l.bf16 %v10215_v0 }
 0x300   : > { %v1682_v54 = vadd.f32 %v1650_v9, %v1521_v56  ;;  %v8722_v2 = vunpack.c.l.bf16 %v13840_v30  ;;  %v2295_v49 = vmul.f32 %v8911_v35, %v13734_v51  ;;  %v1329_v21 = vmul.f32 %v8530_v13, %v13801_v47  ;;  %v13858_v23 = vld [vmem:[%s11633_s24 + $0x3c0] sm:$0xff]  }
 0x301   : > { %v2326_v61 = vadd.f32 %v2294_v58, %v2165_v15  ;;  %v8786_v17 = vunpack.c.l.bf16 %v13845_v44  ;;  %v2456_v33 = vmul.f32 %v8975_v53, %v13848_v12  ;;  %v1490_v63 = vmul.f32 %v8594_v43, %v13581_v59  ;;  %v13867_v16 = vld [vmem:[%s11633_s24 + $0x440] sm:$0xff]   ;;  %v13886_v15 = vld [vmem:[%s11641_s29 + $0x30] sm:$0xff]  }
 0x302   : > { %v1843_v26 = vadd.f32 %v1811_v37, %v1682_v54  ;;  %v8850_v18 = vunpack.c.l.bf16 %v10263_v5  ;;  %v1361_v27 = vadd.f32 %v1329_v21, %v1168_v4  ;;  %v1651_v1 = vmul.f32 %v8658_v57, %v13803_v38  ;;  %v13883_v53 = vld [vmem:[#allocation2 + $0x1cc] sm:$0xff]  ;;  %v10467_v54 = vld [vmem:[%s11641_s29 + $0xb0] sm:$0xff]  }
 0x303   : > { %v2487_v6 = vadd.f32 %v2455_v11, %v2326_v61  ;;  %v1812_v3 = vmul.f32 %v8722_v2, %v13476_v45  ;;  %v1973_v39 = vmul.f32 %v8786_v17, %v13810_v25  ;;  %v8914_v42 = vunpack.c.l.bf16 %v13858_v23  ;;  %v13895_v43 = vld [vmem:[%s11641_s29 + $0x1b0] sm:$0xff]  }
 0x304   : > { %v2004_v58 = vadd.f32 %v1972_v32, %v1843_v26  ;;  %v8467_v20 = vunpack.c.h.bf16 %v13822_v29  ;;  %v1522_v59 = vadd.f32 %v1490_v63, %v1361_v27  ;;  %v8531_v11 = vunpack.c.h.bf16 %v10183_v22  ;;  %v13877_v29 = vld [vmem:[#allocation2 + $0x1c6] sm:$0xff] }
 0x305   : > { %2565 = vrot.lane.b32.xlu0 %v2487_v6, %s11196_s20  ;;  %v8595_v9 = vunpack.c.h.bf16 %v10199_v8  ;;  %v8659_v31 = vunpack.c.h.bf16 %v10215_v0  ;;  %v2135_v45 = vmul.f32 %v8850_v18, %v13864_v24  ;;  %v8978_v37 = vunpack.c.l.bf16 %v13867_v16  ;;  %v4289_v2 = vld [vmem:[#allocation2 + $0xc0] sm:$0xff]  ;;  %v4610_v63 = vld [vmem:[#allocation2 + $0xca] sm:$0xff] }
 0x306   : > { %v2166_v50 = vadd.f32 %v2134_v46, %v2004_v58  ;;  %v1169_v35 = vmul.f32 %v8467_v20, %v13519_v52  ;;  %v1683_v41 = vadd.f32 %v1651_v1, %v1522_v59  ;;  %v2296_v36 = vmul.f32 %v8914_v42, %v13658_v48  ;;  %v13901_v61 = vld [vmem:[%s11641_s29 + $0x230] sm:$0xff]   ;;  %v13909_v18 = vld [vmem:[#allocation2 + $0x1ce] sm:$0xff] }
 0x307   : > { %v1330_v22 = vmul.f32 %v8531_v11, %v13828_v62  ;;  %v1491_v8 = vmul.f32 %v8595_v9, %v13546_v14  ;;  %v8723_v56 = vunpack.c.h.bf16 %v13840_v30  ;;  %v8787_v32 = vunpack.c.h.bf16 %v13845_v44  ;;  %v13892_v14 = vld [vmem:[%s11641_s29 + $0x130] sm:$0xff]  }
 0x308   : > { %v2327_v0 = vadd.f32 %v2295_v49, %v2166_v50  ;;  %v8851_v52 = vunpack.c.h.bf16 %v10263_v5  ;;  %v1844_v46 = vadd.f32 %v1812_v3, %v1683_v41  ;;  %v1652_v4 = vmul.f32 %v8659_v31, %v13830_v10  ;;  %v4449_v26 = vld [vmem:[#allocation2 + $0xc5] sm:$0xff] }
 0x309   : > { %v1362_v48 = vadd.f32 %v1330_v22, %v1169_v35  ;;  %v8915_v13 = vunpack.c.h.bf16 %v13858_v23  ;;  %v2457_v44 = vmul.f32 %v8978_v37, %v13877_v29  ;;  %v1813_v57 = vmul.f32 %v8723_v56, %v13734_v51  ;;  %v13913_v3 = vld [vmem:[#allocation2 + $0x160] sm:$0xff] }
 0x30a   : > { %v2488_v30 = vadd.f32 %v2456_v33, %v2327_v0  ;;  %v8979_v5 = vunpack.c.h.bf16 %v13867_v16  ;;  %v2005_v49 = vadd.f32 %v1973_v39, %v1844_v46  ;;  %v1974_v17 = vmul.f32 %v8787_v32, %v13848_v12  ;;  %v13906_v33 = vld [vmem:[%s11641_s29 + $0x2b0] sm:$0xff]  }
 0x30b   : > { %v1523_v21 = vadd.f32 %v1491_v8, %v1362_v48  ;;  %v2136_v23 = vmul.f32 %v8851_v52, %v13883_v53  ;;  %v9610_v6 = vunpack.c.l.bf16 %v13886_v15  ;;  %v9674_v27 = vunpack.c.l.bf16 %v10467_v54  ;;  %v13919_v59 = vld [vmem:[%s11641_s29 + $0x330] sm:$0xff]   ;;  %v13927_v8 = vld [vmem:[#allocation2 + $0x16a] sm:$0xff] }
 0x30c   : > { %2567 = vrot.lane.b32.xlu1 %v2488_v30, %s11196_s20  ;;  %v9738_v1 = vunpack.c.l.bf16 %v13892_v14  ;;  %v9802_v16 = vunpack.c.l.bf16 %v13895_v43  ;;  %v2167_v58 = vadd.f32 %v2135_v45, %v2005_v49  ;;  %v2297_v42 = vmul.f32 %v8915_v13, %v13621_v28  ;;  %v13922_v11 = vld [vmem:[%s11641_s29 + $0x3b0] sm:$0xff]   ;;  %v4290_v48 = vld [vmem:[#allocation2 + $0xc8] sm:$0xff] }
 0x30d   : > { %v1684_v39 = vadd.f32 %v1652_v4, %v1523_v21  ;;  %v9866_v20 = vunpack.c.l.bf16 %v13901_v61  ;;  %v4385_v9 = vmul.f32 %v9610_v6, %v4289_v2  ;;  %v4546_v31 = vmul.f32 %v9674_v27, %v4449_v26  ;;  %v13929_v28 = vld [vmem:[#allocation2 + $0x200] sm:$0xff]  ;;  %v4611_v26 = vld [vmem:[#allocation2 + $0xd2] sm:$0xff] }
 0x30e   : > { %v4707_v50 = vmul.f32 %v9738_v1, %v4610_v63  ;;  %v9930_v37 = vunpack.c.l.bf16 %v13906_v33  ;;  %v2328_v35 = vadd.f32 %v2296_v36, %v2167_v58  ;;  %v2458_v22 = vmul.f32 %v8979_v5, %v13909_v18  ;;  %v13932_v0 = vld [vmem:[%s11641_s29 + $0x430] sm:$0xff]   ;;  %v4450_v36 = vld [vmem:[#allocation2 + $0xcd] sm:$0xff] }
 0x30f   : > { %v1845_v41 = vadd.f32 %v1813_v57, %v1684_v39  ;;  %v4868_v45 = vmul.f32 %v9802_v16, %v13913_v3  ;;  %v4578_v56 = vadd.f32 %v4546_v31, %v4385_v9  ;;  %v5029_v32 = vmul.f32 %v9866_v20, %v13783_v34  ;;  %v13940_v21 = vld [vmem:[#allocation2 + $0x205] sm:$0xff]  ;;  %v13949_v16 = vld [vmem:[#allocation2 + $0x172] sm:$0xff] }
 0x310   : > { %v9994_v52 = vunpack.c.l.bf16 %v13919_v59  ;;  %v10058_v46 = vunpack.c.l.bf16 %v13922_v11  ;;  %v2489_v4 = vadd.f32 %v2457_v44, %v2328_v35  ;;  %v9611_v30 = vunpack.c.h.bf16 %v13886_v15  ;;  %v13953_v20 = vld [vmem:[#allocation2 + $0x20a] sm:$0xff] }
 0x311   : > { %v2006_v13 = vadd.f32 %v1974_v17, %v1845_v41  ;;  %v9675_v57 = vunpack.c.h.bf16 %v10467_v54  ;;  %v4739_v5 = vadd.f32 %v4707_v50, %v4578_v56  ;;  %v5190_v2 = vmul.f32 %v9930_v37, %v13927_v8  ;;  %v13945_v54 = vld [vmem:[#allocation2 + $0x168] sm:$0xff]  ;;  %v13956_v31 = vld [vmem:[%s11639_s23 + $0x40] sm:$0xff]  }
 0x312   : > { %v5352_v49 = vmul.f32 %v9994_v52, %v13929_v28  ;;  %v10122_v34 = vunpack.c.l.bf16 %v13932_v0  ;;  %2569 = vrot.lane.b32.xlu0 %v2489_v4, %s11196_s20  ;;  %v4386_v44 = vmul.f32 %v9611_v30, %v4290_v48  ;;  %v9739_v15 = vunpack.c.h.bf16 %v13892_v14  ;;  %v13959_v50 = vld [vmem:[%s11639_s23 + $0xc0] sm:$0xff]  }
 0x313   : > { %v2168_v63 = vadd.f32 %v2136_v23, %v2006_v13  ;;  %v4547_v17 = vmul.f32 %v9675_v57, %v4450_v36  ;;  %v4900_v6 = vadd.f32 %v4868_v45, %v4739_v5  ;;  %v9803_v27 = vunpack.c.h.bf16 %v13895_v43  ;;  %v13974_v36 = vld [vmem:[#allocation2 + $0x20d] sm:$0xff]  ;;  %v13984_v5 = vld [vmem:[#allocation2 + $0x145] sm:$0xff] }
 0x314   : > { %v9867_v1 = vunpack.c.h.bf16 %v13901_v61  ;;  %v9931_v58 = vunpack.c.h.bf16 %v13906_v33  ;;  %v5513_v23 = vmul.f32 %v10058_v46, %v13940_v21  ;;  %v4708_v14 = vmul.f32 %v9739_v15, %v4611_v26  ;;  %v13965_v33 = vld [vmem:[%s11639_s23 + $0x140] sm:$0xff]   ;;  %v13972_v46 = vld [vmem:[#allocation2 + $0x208] sm:$0xff]  ;;  %17436 = vst [vmem:[#allocation39_spill] sm:$0xff] %v13974_v36 }
 0x315   : > { %v2329_v39 = vadd.f32 %v2297_v42, %v2168_v63  ;;  %v4579_v9 = vadd.f32 %v4547_v17, %v4386_v44  ;;  %v5061_v37 = vadd.f32 %v5029_v32, %v4900_v6  ;;  %v5674_v43 = vmul.f32 %v10122_v34, %v13953_v20  ;;  %v13968_v42 = vld [vmem:[%s11639_s23 + $0x1c0] sm:$0xff]   ;;  %v2683_v32 = vld [vmem:[#allocation2 + $0x142] sm:$0xff] }
 0x316   : > { %v4869_v61 = vmul.f32 %v9803_v27, %v13945_v54  ;;  %v9995_v35 = vunpack.c.h.bf16 %v13919_v59  ;;  %v5030_v56 = vmul.f32 %v9867_v1, %v13816_v40  ;;  %v5191_v52 = vmul.f32 %v9931_v58, %v13949_v16  ;;  %v13980_v30 = vld [vmem:[%s11639_s23 + $0x240] sm:$0xff]   ;;  %v13998_v27 = vld [vmem:[#allocation2 + $0x1a5] sm:$0xff] }
 0x317   : > { %v2490_v41 = vadd.f32 %v2458_v22, %v2329_v39  ;;  %v4740_v45 = vadd.f32 %v4708_v14, %v4579_v9  ;;  %v5222_v48 = vadd.f32 %v5190_v2, %v5061_v37  ;;  %v10059_v59 = vunpack.c.h.bf16 %v13922_v11  ;;  %v3165_v22 = vld [vmem:[#allocation2 + $0x1a2] sm:$0xff]  ;;  %v10390_v34 = vld [vmem:[%s11639_s23 + $0x2c0] sm:$0xff]  }
 0x318   : > { %v9042_v4 = vunpack.c.l.bf16 %v13956_v31  ;;  %v9106_v13 = vunpack.c.l.bf16 %v13959_v50  ;;  %v10123_v57 = vunpack.c.h.bf16 %v13932_v0  ;;  %v9170_v2 = vunpack.c.l.bf16 %v13965_v33  ;;  %v13990_v26 = vld [vmem:[%s11639_s23 + $0x340] sm:$0xff]   ;;  %v13996_v0 = vld [vmem:[#allocation2 + $0x148] sm:$0xff] }
 0x319   : > { %2571 = vrot.lane.b32.xlu1 %v2490_v41, %s11196_s20  ;;  %v4901_v40 = vadd.f32 %v4869_v61, %v4740_v45  ;;  %v9234_v11 = vunpack.c.l.bf16 %v13968_v42  ;;  %v5384_v63 = vadd.f32 %v5352_v49, %v5222_v48  ;;  %v5353_v44 = vmul.f32 %v9995_v35, %v13972_v46  ;;  %v13993_v17 = vld [vmem:[#allocation2 + $0x212] sm:$0xff]  ;;  %v3487_v35 = vld [vmem:[#allocation2 + $0x1a8] sm:$0xff] }
 0x31a   : > { %17437 = vst [vmem:[#allocation40_spill] sm:$0xff] %v13993_v17  ;;  %v2779_v15 = vmul.f32 %v9042_v4, %v2683_v32  ;;  %v2940_v6 = vmul.f32 %v9106_v13, %v13984_v5  ;;  %v3101_v58 = vmul.f32 %v9170_v2, %v13996_v0  ;;  %v9298_v9 = vunpack.c.l.bf16 %v13980_v30  ;;  %v14003_v14 = vld [vmem:[%s11639_s23 + $0x3c0] sm:$0xff]   ;;  %v3649_v45 = vld [vmem:[#allocation2 + $0x202] sm:$0xff] }
 0x31b   : > { %v5062_v1 = vadd.f32 %v5030_v56, %v4901_v40  ;;  %v3262_v39 = vmul.f32 %v9234_v11, %v3165_v22  ;;  %v14006_v49 = vld [vmem:[%s11639_s23 + $0x440] sm:$0xff]   ;;  %v5545_v37 = vadd.f32 %v5513_v23, %v5384_v63  ;;  %v9362_v41 = vunpack.c.l.bf16 %v10390_v34 }
 0x31c   : > { %v2972_v61 = vadd.f32 %v2940_v6, %v2779_v15  ;;  %v9426_v32 = vunpack.c.l.bf16 %v13990_v26  ;;  %v5514_v4 = vmul.f32 %v10059_v59, %v13974_v36  ;;  %v5675_v56 = vmul.f32 %v10123_v57, %v13993_v17 }
 0x31d   : > { %v5223_v48 = vadd.f32 %v5191_v52, %v5062_v1  ;;  %v3423_v13 = vmul.f32 %v9298_v9, %v13998_v27  ;;  %v5706_v22 = vadd.f32 %v5674_v43, %v5545_v37  ;;  %v9490_v2 = vunpack.c.l.bf16 %v14003_v14  ;;  %v14015_v52 = vld [vmem:[#allocation2 + $0x14d] sm:$0xff] }
 0x31e   : > { %v3133_v40 = vadd.f32 %v3101_v58, %v2972_v61  ;;  %v9554_v11 = vunpack.c.l.bf16 %v14006_v49  ;;  %v3584_v63 = vmul.f32 %v9362_v41, %v3487_v35  ;;  %v3746_v15 = vmul.f32 %v9426_v32, %v3649_v45  ;;  %v14027_v41 = vld [vmem:[%s11641_s29 + $0x28] sm:$0xff]   ;;  %v4287_v32 = vld [vmem:[#allocation2 + $0xa0] sm:$0xff] }
 0x31f   : > { %v5385_v23 = vadd.f32 %v5353_v44, %v5223_v48  ;;  %v9043_v6 = vunpack.c.h.bf16 %v13956_v31  ;;  %5782 = vrot.lane.b32.xlu0 %v5706_v22, %s11198_s28  ;;  %v9107_v43 = vunpack.c.h.bf16 %v13959_v50  ;;  %v9171_v57 = vunpack.c.h.bf16 %v13965_v33  ;;  %v14030_v50 = vld [vmem:[%s11641_s29 + $0xa8] sm:$0xff]   ;;  %v4447_v22 = vld [vmem:[#allocation2 + $0xa5] sm:$0xff] }
 0x320   : > { %v3294_v59 = vadd.f32 %v3262_v39, %v3133_v40  ;;  %v9235_v1 = vunpack.c.h.bf16 %v13968_v42  ;;  %v9299_v9 = vunpack.c.h.bf16 %v13980_v30  ;;  %v9363_v37 = vunpack.c.h.bf16 %v10390_v34  ;;  %v14033_v33 = vld [vmem:[%s11641_s29 + $0x128] sm:$0xff]   ;;  %v4608_v40 = vld [vmem:[#allocation2 + $0xaa] sm:$0xff] }
 0x321   : > { %v5546_v58 = vadd.f32 %v5514_v4, %v5385_v23  ;;  %v2780_v44 = vmul.f32 %v9043_v6, %v13692_v55  ;;  %v3907_v61 = vmul.f32 %v9490_v2, %v13940_v21  ;;  %v2941_v35 = vmul.f32 %v9107_v43, %v14015_v52  ;;  %v14041_v2 = vld [vmem:[%s11641_s29 + $0x1a8] sm:$0xff]   ;;  %v4769_v43 = vld [vmem:[#allocation2 + $0x140] sm:$0xff] }
 0x322   : > { %v3455_v31 = vadd.f32 %v3423_v13, %v3294_v59  ;;  %v3102_v39 = vmul.f32 %v9171_v57, %v13696_v19  ;;  %v4068_v45 = vmul.f32 %v9554_v11, %v13972_v46  ;;  %v3263_v30 = vmul.f32 %v9235_v1, %v13717_v60  ;;  %v14049_v23 = vld [vmem:[%s11641_s29 + $0x228] sm:$0xff]   ;;  %v3972_v57 = vld [vmem:[#allocation2 + $0x210] sm:$0xff] }
 0x323   : > { %v5707_v42 = vadd.f32 %v5675_v56, %v5546_v58  ;;  %v9427_v34 = vunpack.c.h.bf16 %v13990_v26  ;;  %v2973_v4 = vadd.f32 %v2941_v35, %v2780_v44  ;;  %v3424_v19 = vmul.f32 %v9299_v9, %v13734_v51  ;;  %v14052_v51 = vld [vmem:[%s11641_s29 + $0x2a8] sm:$0xff]  }
 0x324   : > { %v3616_v48 = vadd.f32 %v3584_v63, %v3455_v31  ;;  %v3585_v13 = vmul.f32 %v9363_v37, %v13736_v7  ;;  %v9491_v56 = vunpack.c.h.bf16 %v14003_v14  ;;  %v9606_v60 = vunpack.c.l.bf16 %v14027_v41  ;;  %v14057_v14 = vld [vmem:[%s11641_s29 + $0x328] sm:$0xff]  }
 0x325   : > { %5784 = vrot.lane.b32.xlu1 %v5707_v42, %s11198_s28  ;;  %v9670_v26 = vunpack.c.l.bf16 %v14030_v50  ;;  %v9734_v11 = vunpack.c.l.bf16 %v14033_v33  ;;  %v3134_v63 = vadd.f32 %v3102_v39, %v2973_v4  ;;  %v3747_v6 = vmul.f32 %v9427_v34, %v13953_v20  ;;  %v14061_v37 = vld [vmem:[%s11641_s29 + $0x3a8] sm:$0xff]  }
 0x326   : > { %v3778_v7 = vadd.f32 %v3746_v15, %v3616_v48  ;;  %v9555_v59 = vunpack.c.h.bf16 %v14006_v49  ;;  %v4383_v1 = vmul.f32 %v9606_v60, %v4287_v32  ;;  %v9798_v9 = vunpack.c.l.bf16 %v14041_v2  ;;  %v14066_v42 = vld [vmem:[%s11641_s29 + $0x428] sm:$0xff]   ;;  %v5253_v60 = vld [vmem:[#allocation2 + $0x1e0] sm:$0xff] }
 0x327   : > { %v4544_v58 = vmul.f32 %v9670_v26, %v4447_v22  ;;  %v4705_v44 = vmul.f32 %v9734_v11, %v4608_v40  ;;  %v3295_v35 = vadd.f32 %v3263_v30, %v3134_v63  ;;  %v9862_v15 = vunpack.c.l.bf16 %v14049_v23 }
 0x328   : > { %v3939_v31 = vadd.f32 %v3907_v61, %v3778_v7  ;;  %v9926_v39 = vunpack.c.l.bf16 %v14052_v51  ;;  %v3908_v49 = vmul.f32 %v9491_v56, %v13974_v36  ;;  %v4866_v48 = vmul.f32 %v9798_v9, %v4769_v43  ;;  %v14073_v7 = vld [vmem:[#allocation2 + $0x1e5] sm:$0xff]  ;;  %v4609_v43 = vld [vmem:[#allocation2 + $0xb2] sm:$0xff] }
 0x329   : > { %v4576_v34 = vadd.f32 %v4544_v58, %v4383_v1  ;;  %v9990_v32 = vunpack.c.l.bf16 %v14057_v14  ;;  %v3456_v22 = vadd.f32 %v3424_v19, %v3295_v35  ;;  %v4069_v40 = vmul.f32 %v9555_v59, %v3972_v57  ;;  %v4288_v56 = vld [vmem:[#allocation2 + $0xa8] sm:$0xff] }
 0x32a   : > { %v4100_v4 = vadd.f32 %v4068_v45, %v3939_v31  ;;  %v10054_v26 = vunpack.c.l.bf16 %v14061_v37  ;;  %v5027_v30 = vmul.f32 %v9862_v15, %v13984_v5  ;;  %v5188_v11 = vmul.f32 %v9926_v39, %v13692_v55  ;;  %v4448_v1 = vld [vmem:[#allocation2 + $0xad] sm:$0xff] }
 0x32b   : > { %v4737_v61 = vadd.f32 %v4705_v44, %v4576_v34  ;;  %v10118_v63 = vunpack.c.l.bf16 %v14066_v42  ;;  %v3617_v45 = vadd.f32 %v3585_v13, %v3456_v22  ;;  %v9607_v19 = vunpack.c.h.bf16 %v14027_v41  ;;  %v14083_v35 = vld [vmem:[#allocation2 + $0x1ea] sm:$0xff]  ;;  %v5092_v34 = vld [vmem:[#allocation2 + $0x152] sm:$0xff] }
 0x32c   : > { %4180 = vrot.lane.b32.xlu0 %v4100_v4, %s11197_s5  ;;  %v9671_v59 = vunpack.c.h.bf16 %v14030_v50  ;;  %v9735_v57 = vunpack.c.h.bf16 %v14033_v33  ;;  %v5350_v58 = vmul.f32 %v9990_v32, %v5253_v60  ;;  %v9799_v55 = vunpack.c.h.bf16 %v14041_v2  ;;  %v14086_v41 = vld [vmem:[%s11639_s23 + $0x38] sm:$0xff]  }
 0x32d   : > { %v4898_v5 = vadd.f32 %v4866_v48, %v4737_v61  ;;  %v9863_v44 = vunpack.c.h.bf16 %v14049_v23  ;;  %v3779_v9 = vadd.f32 %v3747_v6, %v3617_v45  ;;  %v5511_v31 = vmul.f32 %v10054_v26, %v14073_v7  ;;  %v14090_v23 = vpop.permute.xlu0 %6015  ;;  %v14093_v4 = vld [vmem:[#allocation2 + $0x1e8] sm:$0xff] }
 0x32e   : > { %v4384_v13 = vmul.f32 %v9607_v19, %v4288_v56  ;;  %v4545_v15 = vmul.f32 %v9671_v59, %v4448_v1  ;;  %v5672_v39 = vmul.f32 %v10118_v63, %v14083_v35  ;;  %v4706_v33 = vmul.f32 %v9735_v57, %v4609_v43  ;;  %v2681_v60 = vld [vmem:[#allocation2 + $0x122] sm:$0xff]  ;;  %v14109_v19 = vld [vmem:[#allocation2 + $0x1ed] sm:$0xff] }
 0x32f   : > { %v5059_v50 = vadd.f32 %v5027_v30, %v4898_v5  ;;  %v9927_v2 = vunpack.c.h.bf16 %v14052_v51  ;;  %v3940_v6 = vadd.f32 %v3908_v49, %v3779_v9  ;;  %v4867_v32 = vmul.f32 %v9799_v55, %v13996_v0  ;;  %v14097_v26 = vld [vmem:[%s11639_s23 + $0xb8] sm:$0xff]   ;;  %v5576_v57 = vld [vmem:[#allocation2 + $0x1f2] sm:$0xff] }
 0x330   : > { %v4577_v48 = vadd.f32 %v4545_v15, %v4384_v13  ;;  %v9991_v22 = vunpack.c.h.bf16 %v14057_v14  ;;  %v5028_v30 = vmul.f32 %v9863_v44, %v14015_v52  ;;  %v10055_v63 = vunpack.c.h.bf16 %v14061_v37  ;;  %v10341_v56 = vld [vmem:[%s11639_s23 + $0x138] sm:$0xff]  }
 0x331   : > { %v5220_v61 = vadd.f32 %v5188_v11, %v5059_v50  ;;  %v9038_v51 = vunpack.c.l.bf16 %v14086_v41  ;;  %v14104_v49 = vld [vmem:[%s11639_s23 + $0x1b8] sm:$0xff]   ;;  %v4101_v1 = vadd.f32 %v4069_v40, %v3940_v6  ;;  %v5189_v14 = vmul.f32 %v9927_v2, %v5092_v34 }
 0x332   : > { %v14107_v0 = vld [vmem:[%s11639_s23 + $0x238] sm:$0xff]   ;;  %v4738_v45 = vadd.f32 %v4706_v33, %v4577_v48  ;;  %v10119_v59 = vunpack.c.h.bf16 %v14066_v42  ;;  %v5351_v37 = vmul.f32 %v9991_v22, %v14093_v4  ;;  %v9102_v55 = vunpack.c.l.bf16 %v14097_v26  ;;  %v14132_v22 = vpop.permute.xlu0 %6144 }
 0x333   : > { %v2841_v11 = vld [vmem:[#allocation2 + $0x125] sm:$0xff]  ;;  %v5382_v52 = vadd.f32 %v5350_v58, %v5220_v61  ;;  %v2777_v5 = vmul.f32 %v9038_v51, %v2681_v60  ;;  %4182 = vrot.lane.b32.xlu1 %v4101_v1, %s11197_s5  ;;  %v9166_v13 = vunpack.c.l.bf16 %v10341_v56  ;;  %v9230_v42 = vunpack.c.l.bf16 %v14104_v49 }
 0x334   : > { %v14113_v43 = vld [vmem:[%s11639_s23 + $0x2b8] sm:$0xff]   ;;  %v4899_v40 = vadd.f32 %v4867_v32, %v4738_v45  ;;  %v9294_v58 = vunpack.c.l.bf16 %v14107_v0  ;;  %v5512_v33 = vmul.f32 %v10055_v63, %v14109_v19  ;;  %v2938_v34 = vmul.f32 %v9102_v55, %v2841_v11 }
 0x335   : > { %v3002_v44 = vld [vmem:[#allocation2 + $0x128] sm:$0xff]  ;;  %v5543_v50 = vadd.f32 %v5511_v31, %v5382_v52  ;;  %v9358_v6 = vunpack.c.l.bf16 %v14113_v43  ;;  %v5673_v60 = vmul.f32 %v10119_v59, %v5576_v57  ;;  %v9039_v59 = vunpack.c.h.bf16 %v14086_v41 }
 0x336   : > { %v14118_v9 = vld [vmem:[%s11639_s23 + $0x338] sm:$0xff]   ;;  %v5060_v32 = vadd.f32 %v5028_v30, %v4899_v40  ;;  %v3099_v61 = vmul.f32 %v9166_v13, %v3002_v44  ;;  %v2970_v45 = vadd.f32 %v2938_v34, %v2777_v5  ;;  %v3421_v63 = vmul.f32 %v9294_v58, %v13801_v47  ;;  %v3003_v44 = vld [vmem:[#allocation2 + $0x130] sm:$0xff] }
 0x337   : > { %v14121_v15 = vld [vmem:[#allocation2 + $0x182] sm:$0xff]  ;;  %v9422_v51 = vunpack.c.l.bf16 %v14118_v9  ;;  %v5704_v1 = vadd.f32 %v5672_v39, %v5543_v50  ;;  %v2682_v55 = vld [vmem:[#allocation2 + $0x12a] sm:$0xff]  ;;  %v9103_v5 = vunpack.c.h.bf16 %v14097_v26  ;;  %v9167_v47 = vunpack.c.h.bf16 %v10341_v56  ;;  %v14153_v56 = vpop.permute.xlu0 %2537 }
 0x338   : > { %v14126_v2 = vld [vmem:[#allocation2 + $0x188] sm:$0xff]  ;;  %v3260_v31 = vmul.f32 %v9230_v42, %v14121_v15  ;;  %v5221_v17 = vadd.f32 %v5189_v14, %v5060_v32  ;;  %v3131_v39 = vadd.f32 %v3099_v61, %v2970_v45  ;;  %v9231_v40 = vunpack.c.h.bf16 %v14104_v49  ;;  %v14155_v49 = vpop.permute.xlu1 %2539  ;;  %v14158_v32 = vld [vmem:[#allocation2 + $0x190] sm:$0xff]  ;;  %2634 = vst.msk [vmem:[#allocation3 + $0x19] sm:$0xff] %vm2633_vm7, %v14153_v56 }
 0x339   : > { %v14130_v48 = vld [vmem:[%s11639_s23 + $0x3b8] sm:$0xff]   ;;  %v3582_v36 = vmul.f32 %v9358_v6, %v14126_v2  ;;  %5778 = vrot.lane.b32.xlu0 %v5704_v1, %s11198_s28  ;;  %v2778_v58 = vmul.f32 %v9039_v59, %v2682_v55  ;;  %v3100_v26 = vmul.f32 %v9167_v47, %v3003_v44  ;;  %17439 = vst [vmem:[#allocation41_spill] sm:$0xff] %v14158_v32  ;;  %v9359_v61 = vunpack.c.h.bf16 %v14113_v43  ;;  %v10168_v1 = vld [vmem:[%s11633_s24 + $0x48] sm:$0xff]  }
 0x33a   : > { %v14137_v11 = vld [vmem:[#allocation2 + $0x1e2] sm:$0xff]  ;;  %v9486_v30 = vunpack.c.l.bf16 %v14130_v48  ;;  %v2842_v57 = vld [vmem:[#allocation2 + $0x12d] sm:$0xff]  ;;  %v5383_v13 = vadd.f32 %v5351_v37, %v5221_v17  ;;  %v3292_v41 = vadd.f32 %v3260_v31, %v3131_v39  ;;  %v9295_v37 = vunpack.c.h.bf16 %v14107_v0  ;;  %v10184_v59 = vld [vmem:[%s11633_s24 + $0xc8] sm:$0xff]   ;;  %2635 = vst.msk [vmem:[#allocation3 + $0x21] sm:$0xff] %vm2633_vm7, %v14155_v49 }
 0x33b   : > { %v14140_v52 = vld [vmem:[%s11639_s23 + $0x438] sm:$0xff]   ;;  %v3744_v14 = vmul.f32 %v9422_v51, %v14137_v11  ;;  %v2939_v6 = vmul.f32 %v9103_v5, %v2842_v57  ;;  %v9423_v51 = vunpack.c.h.bf16 %v14118_v9  ;;  %v14167_v57 = vld [vmem:[%s11633_s24 + $0x148] sm:$0xff]  }
 0x33c   : > { %v9550_v42 = vunpack.c.l.bf16 %v14140_v52  ;;  %v14150_v50 = vld [vmem:[#allocation2 + $0x18a] sm:$0xff]  ;;  %v3905_v34 = vmul.f32 %v9486_v30, %v14073_v7  ;;  %v5544_v17 = vadd.f32 %v5512_v33, %v5383_v13  ;;  %v3453_v45 = vadd.f32 %v3421_v63, %v3292_v41  ;;  %v14170_v33 = vld [vmem:[%s11633_s24 + $0x1c8] sm:$0xff]  }
 0x33d   : > { %17438 = vst [vmem:[#allocation45_spill] sm:$0xff] %v14150_v50  ;;  %v2971_v31 = vadd.f32 %v2939_v6, %v2778_v58  ;;  %v3261_v55 = vmul.f32 %v9231_v40, %v14150_v50  ;;  %v9487_v30 = vunpack.c.h.bf16 %v14130_v48  ;;  %v3422_v43 = vmul.f32 %v9295_v37, %v13828_v62  ;;  %v14176_v39 = vld [vmem:[%s11633_s24 + $0x248] sm:$0xff]   ;;  %v14198_v37 = vpop.permute.xlu1 %4150 }
 0x33e   : > { %v5705_v0 = vadd.f32 %v5673_v60, %v5544_v17  ;;  %v4066_v44 = vmul.f32 %v9550_v42, %v14093_v4  ;;  %v9551_v9 = vunpack.c.h.bf16 %v14140_v52  ;;  %v3614_v63 = vadd.f32 %v3582_v36, %v3453_v45  ;;  %v14181_v40 = vld [vmem:[%s11633_s24 + $0x2c8] sm:$0xff]   ;;  %v14184_v60 = vld [vmem:[#allocation2 + $0x1f0] sm:$0xff]  ;;  %v14196_v17 = vpop.permute.xlu0 %4148  ;;  %17441 = vst [vmem:[#allocation53_spill] sm:$0xff] %v14198_v37  ;;  %v5265_v37 = vld [vmem:[#allocation2 + $0x2a0] sm:$0xff] }
 0x33f   : > { %v3132_v5 = vadd.f32 %v3100_v26, %v2971_v31  ;;  %v3583_v48 = vmul.f32 %v9359_v61, %v14158_v32  ;;  %v3745_v47 = vmul.f32 %v9423_v51, %v14083_v35  ;;  %17440 = vst [vmem:[#allocation51_spill] sm:$0xff] %v14184_v60  ;;  %v8470_v13 = vunpack.c.l.bf16 %v10168_v1  ;;  %v14191_v35 = vld [vmem:[%s11633_s24 + $0x348] sm:$0xff]   ;;  %4245 = vst.msk [vmem:[#allocation3 + $0x19] sm:$0xff] %vm4244_vm8, %v14196_v17 }
 0x340   : > { %5780 = vrot.lane.b32.xlu1 %v5705_v0, %s11198_s28  ;;  %v8534_v62 = vunpack.c.l.bf16 %v10184_v59  ;;  %v8598_v52 = vunpack.c.l.bf16 %v14167_v57  ;;  %v8662_v42 = vunpack.c.l.bf16 %v14170_v33  ;;  %v3776_v58 = vadd.f32 %v3744_v14, %v3614_v63  ;;  %v14194_v26 = vld [vmem:[%s11633_s24 + $0x3c8] sm:$0xff]   ;;  %v14206_v63 = vld [vmem:[#allocation2 + $0x1c5] sm:$0xff] }
 0x341   : > { %v3293_v36 = vadd.f32 %v3261_v55, %v3132_v5  ;;  %v3906_v41 = vmul.f32 %v9487_v30, %v14109_v19  ;;  %v8726_v6 = vunpack.c.l.bf16 %v14176_v39  ;;  %v1170_v61 = vmul.f32 %v8470_v13, %v13803_v38  ;;  %v14208_v5 = vld [vmem:[#allocation2 + $0x1e4] sm:$0xff]  ;;  %v14211_v32 = vld [vmem:[%s11633_s24 + $0x448] sm:$0xff]  }
 0x342   : > { %v1331_v51 = vmul.f32 %v8534_v62, %v13998_v27  ;;  %v1492_v14 = vmul.f32 %v8598_v52, %v13810_v25  ;;  %v8790_v45 = vunpack.c.l.bf16 %v14181_v40  ;;  %v3937_v31 = vadd.f32 %v3905_v34, %v3776_v58 }
 0x343   : > { %v3454_v55 = vadd.f32 %v3422_v43, %v3293_v36  ;;  %v4067_v30 = vmul.f32 %v9551_v9, %v14184_v60  ;;  %v1653_v0 = vmul.f32 %v8662_v42, %v13864_v24  ;;  %v1814_v38 = vmul.f32 %v8726_v6, %v14206_v63  ;;  %v14219_v36 = vld [vmem:[#allocation2 + $0x1ad] sm:$0xff] }
 0x344   : > { %v1363_v50 = vadd.f32 %v1331_v51, %v1170_v61  ;;  %v8854_v13 = vunpack.c.l.bf16 %v14191_v35  ;;  %v8918_v25 = vunpack.c.l.bf16 %v14194_v26  ;;  %v4098_v62 = vadd.f32 %v4066_v44, %v3937_v31  ;;  %v14222_v61 = vld [vmem:[#allocation2 + $0x1e6] sm:$0xff] }
 0x345   : > { %v3615_v34 = vadd.f32 %v3583_v48, %v3454_v55  ;;  %v8471_v43 = vunpack.c.h.bf16 %v10168_v1  ;;  %v8535_v52 = vunpack.c.h.bf16 %v10184_v59  ;;  %v1975_v24 = vmul.f32 %v8790_v45, %v13877_v29  ;;  %v14227_v29 = vpop.permute.xlu0 %2541  ;;  %v14229_v59 = vpop.permute.xlu1 %2543  ;;  %v14291_v60 = vld [vmem:[%s11641_s29 + $0x458] sm:$0xff]  }
 0x346   : > { %v1524_v9 = vadd.f32 %v1492_v14, %v1363_v50  ;;  %v2137_v42 = vmul.f32 %v8854_v13, %v14208_v5  ;;  %v8982_v58 = vunpack.c.l.bf16 %v14211_v32  ;;  %4176 = vrot.lane.b32.xlu0 %v4098_v62, %s11197_s5  ;;  %v8599_v50 = vunpack.c.h.bf16 %v14167_v57  ;;  %v14237_v57 = vld [vmem:[%s11641_s29 + $0x58] sm:$0xff]   ;;  %2636 = vst.msk [vmem:[#allocation3 + $0x31] sm:$0xff] %vm2633_vm7, %v14227_v29  ;;  %2637 = vst.msk [vmem:[#allocation3 + $0x39] sm:$0xff] %vm2633_vm7, %v14229_v59 }
 0x347   : > { %v3777_v6 = vadd.f32 %v3745_v47, %v3615_v34  ;;  %v1171_v44 = vmul.f32 %v8471_v43, %v13830_v10  ;;  %v1332_v1 = vmul.f32 %v8535_v52, %v14219_v36  ;;  %v8663_v51 = vunpack.c.h.bf16 %v14170_v33  ;;  %v14240_v13 = vld [vmem:[%s11641_s29 + $0xd8] sm:$0xff]  }
 0x348   : > { %v1685_v48 = vadd.f32 %v1653_v0, %v1524_v9  ;;  %v8727_v47 = vunpack.c.h.bf16 %v14176_v39  ;;  %v8791_v14 = vunpack.c.h.bf16 %v14181_v40  ;;  %v2298_v10 = vmul.f32 %v8918_v25, %v14073_v7  ;;  %v14244_v34 = vld [vmem:[#allocation2 + $0x1cd] sm:$0xff]  ;;  %v14257_v9 = vld [vmem:[#allocation2 + $0x165] sm:$0xff] }
 0x349   : > { %v3938_v45 = vadd.f32 %v3906_v41, %v3777_v6  ;;  %v1364_v31 = vadd.f32 %v1332_v1, %v1171_v44  ;;  %v1493_v55 = vmul.f32 %v8599_v50, %v13848_v12  ;;  %v2459_v0 = vmul.f32 %v8982_v58, %v14222_v61  ;;  %v14248_v40 = vld [vmem:[%s11641_s29 + $0x158] sm:$0xff]   ;;  %17442 = vst [vmem:[#allocation54_spill] sm:$0xff] %v14257_v9 }
 0x34a   : > { %v1846_v62 = vadd.f32 %v1814_v38, %v1685_v48  ;;  %v1654_v33 = vmul.f32 %v8663_v51, %v13883_v53  ;;  %v8855_v39 = vunpack.c.h.bf16 %v14191_v35  ;;  %v14251_v41 = vld [vmem:[%s11641_s29 + $0x1d8] sm:$0xff]   ;;  %v1815_v43 = vmul.f32 %v8727_v47, %v14244_v34  ;;  %v14275_v48 = vpop.permute.xlu0 %2545  ;;  %v14277_v51 = vpop.permute.xlu1 %2547 }
 0x34b   : > { %v4099_v25 = vadd.f32 %v4067_v30, %v3938_v45  ;;  %v1525_v12 = vadd.f32 %v1493_v55, %v1364_v31  ;;  %v1976_v38 = vmul.f32 %v8791_v14, %v13909_v18  ;;  %v14255_v52 = vld [vmem:[#allocation2 + $0x1ec] sm:$0xff]  ;;  %v8919_v58 = vunpack.c.h.bf16 %v14194_v26  ;;  %2638 = vst.msk [vmem:[#allocation3 + $0x49] sm:$0xff] %vm2633_vm7, %v14275_v48  ;;  %2639 = vst.msk [vmem:[#allocation3 + $0x51] sm:$0xff] %vm2633_vm7, %v14277_v51 }
 0x34c   : > { %v2007_v53 = vadd.f32 %v1975_v24, %v1846_v62  ;;  %v9630_v35 = vunpack.c.l.bf16 %v14237_v57  ;;  %v9694_v6 = vunpack.c.l.bf16 %v14240_v13  ;;  %v14263_v44 = vld [vmem:[%s11641_s29 + $0x258] sm:$0xff]   ;;  %v8983_v1 = vunpack.c.h.bf16 %v14211_v32 }
 0x34d   : > { %4178 = vrot.lane.b32.xlu1 %v4099_v25, %s11197_s5  ;;  %v1686_v30 = vadd.f32 %v1654_v33, %v1525_v12  ;;  %v9758_v18 = vunpack.c.l.bf16 %v14248_v40  ;;  %v9822_v50 = vunpack.c.l.bf16 %v14251_v41  ;;  %v14270_v24 = vld [vmem:[%s11641_s29 + $0x2d8] sm:$0xff]   ;;  %v2138_v14 = vmul.f32 %v8855_v39, %v14255_v52 }
 0x34e   : > { %v14273_v26 = vld [vmem:[%s11641_s29 + $0x358] sm:$0xff]   ;;  %v2169_v47 = vadd.f32 %v2137_v42, %v2007_v53  ;;  %v4395_v32 = vmul.f32 %v9630_v35, %v13913_v3  ;;  %v4556_v31 = vmul.f32 %v9694_v6, %v14257_v9  ;;  %v9886_v25 = vunpack.c.l.bf16 %v14263_v44 }
 0x34f   : > { %v14280_v45 = vld [vmem:[#allocation2 + $0x1ee] sm:$0xff]  ;;  %v1847_v55 = vadd.f32 %v1815_v43, %v1686_v30  ;;  %v4717_v62 = vmul.f32 %v9758_v18, %v13927_v8  ;;  %v4878_v33 = vmul.f32 %v9822_v50, %v13929_v28  ;;  %v9950_v39 = vunpack.c.l.bf16 %v14270_v24  ;;  %v5887_v30 = vld [vmem:[#allocation3] sm:$0xff] }
 0x350   : > { %v14288_v12 = vld [vmem:[%s11641_s29 + $0x3d8] sm:$0xff]   ;;  %v2330_v42 = vadd.f32 %v2298_v10, %v2169_v47  ;;  %v4588_v53 = vadd.f32 %v4556_v31, %v4395_v32  ;;  %v10014_v3 = vunpack.c.l.bf16 %v14273_v26  ;;  %v2299_v43 = vmul.f32 %v8919_v58, %v14109_v19  ;;  %v14303_v58 = vpop.permute.xlu0 %5758 }
 0x351   : > { %v2008_v35 = vadd.f32 %v1976_v38, %v1847_v55  ;;  %v2460_v8 = vmul.f32 %v8983_v1, %v14280_v45  ;;  %v5039_v28 = vmul.f32 %v9886_v25, %v13940_v21  ;;  %v5888_v6 = vld [vmem:[#allocation3 + $0x8] sm:$0xff]  ;;  %v10078_v9 = vunpack.c.l.bf16 %v14288_v12  ;;  %17443 = vst [vmem:[#allocation149_spill] sm:$0xff] %v14303_v58  ;;  %v14305_v1 = vpop.permute.xlu1 %5760 }
 0x352   : > { %v2491_v18 = vadd.f32 %v2459_v0, %v2330_v42  ;;  %v4749_v50 = vadd.f32 %v4717_v62, %v4588_v53  ;;  %v10142_v10 = vunpack.c.l.bf16 %v14291_v60  ;;  %v5200_v32 = vmul.f32 %v9950_v39, %v13953_v20  ;;  %v14301_v38 = vld [vmem:[#allocation2 + $0x16d] sm:$0xff]  ;;  %17444 = vst [vmem:[#allocation47_spill] sm:$0xff] %v14305_v1  ;;  %v5426_v55 = vld [vmem:[#allocation2 + $0x2a5] sm:$0xff] }
 0x353   : > { %v2170_v47 = vadd.f32 %v2138_v14, %v2008_v35  ;;  %v5362_v31 = vmul.f32 %v10014_v3, %v5265_v37  ;;  %v5587_v62 = vld [vmem:[#allocation2 + $0x2aa] sm:$0xff]  ;;  %v5919_v25 = vpack.c.bf16 %v5888_v6, %v5887_v30  ;;  %v9631_v14 = vunpack.c.h.bf16 %v14237_v57  ;;  %v14318_v57 = vld [vmem:[%s11633_s24 + $0x50] sm:$0xff]  }
 0x354   : > { %2573 = vrot.lane.b32.xlu0 %v2491_v18, %s11196_s20  ;;  %v4910_v0 = vadd.f32 %v4878_v33, %v4749_v50  ;;  %v9695_v20 = vunpack.c.h.bf16 %v14240_v13  ;;  %v9759_v42 = vunpack.c.h.bf16 %v14248_v40  ;;  %v9823_v53 = vunpack.c.h.bf16 %v14251_v41  ;;  %v14321_v13 = vld [vmem:[%s11633_s24 + $0xd0] sm:$0xff]   ;;  %v14480_v29 = vld [vmem:[#allocation2 + $0x24a] sm:$0xff] }
 0x355   : > { %v2331_v37 = vadd.f32 %v2299_v43, %v2170_v47  ;;  %v9887_v39 = vunpack.c.h.bf16 %v14263_v44  ;;  %5935 = vst.msk [vmem:[#allocation4] sm:$0xff] %vm662_vm0, %v5919_v25  ;;  %v4396_v33 = vmul.f32 %v9631_v14, %v13945_v54  ;;  %v9951_v6 = vunpack.c.h.bf16 %v14270_v24  ;;  %v14327_v44 = vld [vmem:[%s11633_s24 + $0x150] sm:$0xff]   ;;  %v5266_v24 = vld [vmem:[#allocation2 + $0x2a8] sm:$0xff] }
 0x356   : > { %v5071_v3 = vadd.f32 %v5039_v28, %v4910_v0  ;;  %v4557_v35 = vmul.f32 %v9695_v20, %v14301_v38  ;;  %v5523_v30 = vmul.f32 %v10078_v9, %v5426_v55  ;;  %v5684_v40 = vmul.f32 %v10142_v10, %v5587_v62  ;;  %6064 = vst.msk [vmem:[#allocation4] sm:$0xff] %vm6063_vm5, %v14090_v23  ;;  %v1076_v47 = vld [vmem:[#allocation2 + $0x1c4] sm:$0xff]  ;;  %v17446_v25 = vld [vmem:[#allocation40_spill] sm:$0xff] }
 0x357   : > { %v2492_v43 = vadd.f32 %v2460_v8, %v2331_v37  ;;  %v4718_v41 = vmul.f32 %v9759_v42, %v13949_v16  ;;  %v4879_v18 = vmul.f32 %v9823_v53, %v13972_v46  ;;  %v10015_v50 = vunpack.c.h.bf16 %v14273_v26  ;;  %v17445_v9 = vld [vmem:[#allocation39_spill] sm:$0xff]  ;;  %v14339_v46 = vpop.permute.xlu0 %4156  ;;  %v14341_v26 = vpop.permute.xlu1 %4158  ;;  %6193 = vst.msk [vmem:[#allocation4] sm:$0xff] %vm6192_vm6, %v14132_v22 }
 0x358   : > { %v5232_v54 = vadd.f32 %v5200_v32, %v5071_v3  ;;  %v4589_v28 = vadd.f32 %v4557_v35, %v4396_v33  ;;  %v5040_v8 = vmul.f32 %v9887_v39, %v17445_v9  ;;  %v10079_v23 = vunpack.c.h.bf16 %v14288_v12  ;;  %v1397_v32 = vld [vmem:[#allocation2 + $0x1c6] sm:$0xff]  ;;  %4249 = vst.msk [vmem:[#allocation3 + $0x49] sm:$0xff] %vm4244_vm8, %v14339_v46  ;;  %4250 = vst.msk [vmem:[#allocation3 + $0x51] sm:$0xff] %vm4244_vm8, %v14341_v26 }
 0x359   : > { %2575 = vrot.lane.b32.xlu1 %v2492_v43, %s11196_s20  ;;  %v8474_v16 = vunpack.c.l.bf16 %v14318_v57  ;;  %v8538_v10 = vunpack.c.l.bf16 %v14321_v13  ;;  %v14337_v0 = vld [vmem:[%s11633_s24 + $0x1d0] sm:$0xff]   ;;  %v5201_v14 = vmul.f32 %v9951_v6, %v17446_v25  ;;  %v5427_v20 = vld [vmem:[#allocation2 + $0x2ad] sm:$0xff]  ;;  %v8602_v12 = vunpack.c.l.bf16 %v14327_v44 }
 0x35a   : > { %v5394_v55 = vadd.f32 %v5362_v31, %v5232_v54  ;;  %v4750_v62 = vadd.f32 %v4718_v41, %v4589_v28  ;;  %v14346_v37 = vld [vmem:[%s11633_s24 + $0x250] sm:$0xff]   ;;  %v5363_v53 = vmul.f32 %v10015_v50, %v5266_v24  ;;  %v10143_v39 = vunpack.c.h.bf16 %v14291_v60  ;;  %v5588_v41 = vld [vmem:[#allocation2 + $0x2b2] sm:$0xff]  ;;  %v14482_v48 = vld [vmem:[#allocation2 + $0x1a8] sm:$0xff] }
 0x35b   : > { %v14349_v42 = vld [vmem:[%s11633_s24 + $0x2d0] sm:$0xff]   ;;  %v1172_v3 = vmul.f32 %v8474_v16, %v1076_v47  ;;  %v1333_v33 = vmul.f32 %v8538_v10, %v14206_v63  ;;  %v1494_v6 = vmul.f32 %v8602_v12, %v1397_v32  ;;  %v8666_v54 = vunpack.c.l.bf16 %v14337_v0  ;;  %v1077_v12 = vld [vmem:[#allocation2 + $0x1cc] sm:$0xff] }
 0x35c   : > { %v14354_v35 = vld [vmem:[%s11633_s24 + $0x350] sm:$0xff]   ;;  %v5555_v31 = vadd.f32 %v5523_v30, %v5394_v55  ;;  %v4911_v43 = vadd.f32 %v4879_v18, %v4750_v62  ;;  %v5524_v25 = vmul.f32 %v10079_v23, %v5427_v20  ;;  %v8730_v58 = vunpack.c.l.bf16 %v14346_v37  ;;  %v14371_v62 = vpop.permute.xlu0 %4152  ;;  %v14373_v20 = vpop.permute.xlu1 %4154 }
 0x35d   : > { %v14358_v28 = vld [vmem:[%s11633_s24 + $0x3d0] sm:$0xff]   ;;  %v1365_v1 = vadd.f32 %v1333_v33, %v1172_v3  ;;  %v8794_v24 = vunpack.c.l.bf16 %v14349_v42  ;;  %v1655_v16 = vmul.f32 %v8666_v54, %v14208_v5  ;;  %v8858_v30 = vunpack.c.l.bf16 %v14354_v35  ;;  %4247 = vst.msk [vmem:[#allocation3 + $0x31] sm:$0xff] %vm4244_vm8, %v14371_v62  ;;  %4248 = vst.msk [vmem:[#allocation3 + $0x39] sm:$0xff] %vm4244_vm8, %v14373_v20 }
 0x35e   : > { %v14363_v60 = vld [vmem:[%s11633_s24 + $0x450] sm:$0xff]   ;;  %v5716_v50 = vadd.f32 %v5684_v40, %v5555_v31  ;;  %v5072_v47 = vadd.f32 %v5040_v8, %v4911_v43  ;;  %v5685_v18 = vmul.f32 %v10143_v39, %v5588_v41  ;;  %v1816_v32 = vmul.f32 %v8730_v58, %v14073_v7 }
 0x35f   : > { %v1526_v10 = vadd.f32 %v1494_v6, %v1365_v1  ;;  %v14368_v55 = vld [vmem:[#allocation2 + $0x204] sm:$0xff]  ;;  %v8922_v23 = vunpack.c.l.bf16 %v14358_v28  ;;  %v1977_v8 = vmul.f32 %v8794_v24, %v14222_v61  ;;  %v8986_v5 = vunpack.c.l.bf16 %v14363_v60  ;;  %v1398_v1 = vld [vmem:[#allocation2 + $0x1ce] sm:$0xff] }
 0x360   : > { %17447 = vst [vmem:[#allocation48_spill] sm:$0xff] %v14368_v55  ;;  %5802 = vrot.lane.b32.xlu0 %v5716_v50, %s11198_s28  ;;  %v5233_v40 = vadd.f32 %v5201_v14, %v5072_v47  ;;  %v14378_v39 = vld [vmem:[#allocation2 + $0x206] sm:$0xff]  ;;  %v8475_v3 = vunpack.c.h.bf16 %v14318_v57  ;;  %v8539_v33 = vunpack.c.h.bf16 %v14321_v13  ;;  %v8603_v14 = vunpack.c.h.bf16 %v14327_v44  ;;  %v14390_v50 = vld [vmem:[%s11641_s29 + $0x40] sm:$0xff]  }
 0x361   : > { %v1687_v58 = vadd.f32 %v1655_v16, %v1526_v10  ;;  %17448 = vst [vmem:[#allocation49_spill] sm:$0xff] %v14378_v39  ;;  %v2139_v61 = vmul.f32 %v8858_v30, %v14368_v55  ;;  %v8667_v43 = vunpack.c.h.bf16 %v14337_v0  ;;  %v8731_v41 = vunpack.c.h.bf16 %v14346_v37  ;;  %v4293_v0 = vld [vmem:[#allocation2 + $0x100] sm:$0xff]  ;;  %v14396_v30 = vld [vmem:[#allocation2 + $0x20c] sm:$0xff] }
 0x362   : > { %v5395_v31 = vadd.f32 %v5363_v53, %v5233_v40  ;;  %v1173_v54 = vmul.f32 %v8475_v3, %v1077_v12  ;;  %v1334_v24 = vmul.f32 %v8539_v33, %v14244_v34  ;;  %v1495_v22 = vmul.f32 %v8603_v14, %v1398_v1  ;;  %17449 = vst [vmem:[#allocation55_spill] sm:$0xff] %v14396_v30  ;;  %v4453_v33 = vld [vmem:[#allocation2 + $0x105] sm:$0xff] }
 0x363   : > { %v1848_v6 = vadd.f32 %v1816_v32, %v1687_v58  ;;  %v2300_v13 = vmul.f32 %v8922_v23, %v13940_v21  ;;  %v2461_v44 = vmul.f32 %v8986_v5, %v14378_v39  ;;  %v8795_v53 = vunpack.c.h.bf16 %v14349_v42  ;;  %v14400_v32 = vld [vmem:[%s11641_s29 + $0xc0] sm:$0xff]   ;;  %v14405_v21 = vpop.permute.xlu0 %2549  ;;  %v14407_v23 = vpop.permute.xlu1 %2551 }
 0x364   : > { %v5556_v57 = vadd.f32 %v5524_v25, %v5395_v31  ;;  %v1366_v47 = vadd.f32 %v1334_v24, %v1173_v54  ;;  %v1656_v16 = vmul.f32 %v8667_v43, %v14255_v52  ;;  %v8859_v10 = vunpack.c.h.bf16 %v14354_v35  ;;  %v14403_v25 = vld [vmem:[%s11641_s29 + $0x140] sm:$0xff]   ;;  %v14432_v54 = vld [vmem:[#allocation2 + $0x1a0] sm:$0xff]  ;;  %2640 = vst.msk [vmem:[#allocation3 + $0x61] sm:$0xff] %vm2633_vm7, %v14405_v21  ;;  %2641 = vst.msk [vmem:[#allocation3 + $0x69] sm:$0xff] %vm2633_vm7, %v14407_v23 }
 0x365   : > { %v2009_v37 = vadd.f32 %v1977_v8, %v1848_v6  ;;  %v1817_v40 = vmul.f32 %v8731_v41, %v14109_v19  ;;  %v8923_v8 = vunpack.c.h.bf16 %v14358_v28  ;;  %v9618_v52 = vunpack.c.l.bf16 %v14390_v50  ;;  %v14413_v5 = vld [vmem:[%s11641_s29 + $0x1c0] sm:$0xff]  }
 0x366   : > { %v5717_v42 = vadd.f32 %v5685_v18, %v5556_v57  ;;  %v14416_v35 = vld [vmem:[%s11641_s29 + $0x240] sm:$0xff]   ;;  %v1527_v1 = vadd.f32 %v1495_v22, %v1366_v47  ;;  %v1978_v58 = vmul.f32 %v8795_v53, %v14280_v45  ;;  %v8987_v3 = vunpack.c.h.bf16 %v14363_v60 }
 0x367   : > { %v2171_v12 = vadd.f32 %v2139_v61, %v2009_v37  ;;  %v4614_v14 = vld [vmem:[#allocation2 + $0x10a] sm:$0xff]  ;;  %v2140_v28 = vmul.f32 %v8859_v10, %v14396_v30  ;;  %v4389_v43 = vmul.f32 %v9618_v52, %v4293_v0  ;;  %v9682_v41 = vunpack.c.l.bf16 %v14400_v32  ;;  %v2556_v30 = vpop.permute.xlu1 %2555 }
 0x368   : > { %v14421_v18 = vld [vmem:[%s11641_s29 + $0x2c0] sm:$0xff]   ;;  %5804 = vrot.lane.b32.xlu1 %v5717_v42, %s11198_s28  ;;  %v9746_v61 = vunpack.c.l.bf16 %v14403_v25  ;;  %v1688_v60 = vadd.f32 %v1656_v16, %v1527_v1  ;;  %v9810_v24 = vunpack.c.l.bf16 %v14413_v5  ;;  %v9874_v22 = vunpack.c.l.bf16 %v14416_v35  ;;  %v2554_v1 = vpop.permute.xlu0 %2553  ;;  %2643 = vst.msk [vmem:[#allocation3 + $0x81] sm:$0xff] %vm2633_vm7, %v2556_v30 }
 0x369   : > { %v14425_v31 = vld [vmem:[#allocation2 + $0x20e] sm:$0xff]  ;;  %v2332_v45 = vadd.f32 %v2300_v13, %v2171_v12  ;;  %v2301_v53 = vmul.f32 %v8923_v8, %v17445_v9  ;;  %v4550_v0 = vmul.f32 %v9682_v41, %v4453_v33  ;;  %v9938_v47 = vunpack.c.l.bf16 %v14421_v18  ;;  %v14451_v33 = vld [vmem:[#allocation2 + $0x240] sm:$0xff]  ;;  %2642 = vst.msk [vmem:[#allocation3 + $0x79] sm:$0xff] %vm2633_vm7, %v2554_v1 }
 0x36a   : > { %v14430_v6 = vld [vmem:[%s11641_s29 + $0x340] sm:$0xff]   ;;  %v4711_v37 = vmul.f32 %v9746_v61, %v4614_v14  ;;  %v1849_v52 = vadd.f32 %v1817_v40, %v1688_v60  ;;  %v2462_v13 = vmul.f32 %v8987_v3, %v14425_v31  ;;  %v4872_v55 = vmul.f32 %v9810_v24, %v14432_v54  ;;  %v4294_v14 = vld [vmem:[#allocation2 + $0x108] sm:$0xff]  ;;  %v14511_v1 = vld [vmem:[%s11639_s23 + $0x250] sm:$0xff]  }
 0x36b   : > { %v14436_v57 = vld [vmem:[#allocation2 + $0x1aa] sm:$0xff]  ;;  %v2493_v42 = vadd.f32 %v2461_v44, %v2332_v45  ;;  %v10002_v16 = vunpack.c.l.bf16 %v14430_v6  ;;  %v4582_v39 = vadd.f32 %v4550_v0, %v4389_v43  ;;  %v5033_v9 = vmul.f32 %v9874_v22, %v13998_v27  ;;  %v4615_v61 = vld [vmem:[#allocation2 + $0x112] sm:$0xff]  ;;  %v14494_v22 = vld [vmem:[%s11639_s23 + $0x50] sm:$0xff]  }
 0x36c   : > { %v14441_v10 = vld [vmem:[%s11641_s29 + $0x3c0] sm:$0xff]   ;;  %v5194_v8 = vmul.f32 %v9938_v47, %v14436_v57  ;;  %v2010_v44 = vadd.f32 %v1978_v58, %v1849_v52  ;;  %v9619_v3 = vunpack.c.h.bf16 %v14390_v50  ;;  %v14456_v45 = vld [vmem:[#allocation2 + $0x245] sm:$0xff]  ;;  %v9683_v60 = vunpack.c.h.bf16 %v14400_v32 }
 0x36d   : > { %v14446_v12 = vld [vmem:[%s11641_s29 + $0x440] sm:$0xff]   ;;  %2577 = vrot.lane.b32.xlu0 %v2493_v42, %s11196_s20  ;;  %v10066_v40 = vunpack.c.l.bf16 %v14441_v10  ;;  %v4743_v43 = vadd.f32 %v4711_v37, %v4582_v39  ;;  %v9747_v24 = vunpack.c.h.bf16 %v14403_v25  ;;  %v5356_v49 = vmul.f32 %v10002_v16, %v14451_v33  ;;  %v14499_v47 = vld [vmem:[%s11639_s23 + $0xd0] sm:$0xff]  }
 0x36e   : > { %v4454_v41 = vld [vmem:[#allocation2 + $0x10d] sm:$0xff]  ;;  %v10130_v27 = vunpack.c.l.bf16 %v14446_v12  ;;  %v2172_v56 = vadd.f32 %v2140_v28, %v2010_v44  ;;  %v4390_v59 = vmul.f32 %v9619_v3, %v4294_v14  ;;  %v9811_v51 = vunpack.c.h.bf16 %v14413_v5  ;;  %v14505_v42 = vld [vmem:[%s11639_s23 + $0x1d0] sm:$0xff]  }
 0x36f   : > { %v4904_v39 = vadd.f32 %v4872_v55, %v4743_v43  ;;  %v4551_v50 = vmul.f32 %v9683_v60, %v4454_v41  ;;  %v4712_v32 = vmul.f32 %v9747_v24, %v4615_v61  ;;  %v9875_v25 = vunpack.c.h.bf16 %v14416_v35  ;;  %v14486_v30 = vld [vmem:[#allocation2 + $0x1b2] sm:$0xff]  ;;  %v14490_v28 = vld [vmem:[#allocation2 + $0x248] sm:$0xff]  ;;  %v14518_v41 = vld [vmem:[%s11639_s23 + $0x2d0] sm:$0xff]  }
 0x370   : > { %v2333_v21 = vadd.f32 %v2301_v53, %v2172_v56  ;;  %v5517_v23 = vmul.f32 %v10066_v40, %v14456_v45  ;;  %v9939_v58 = vunpack.c.h.bf16 %v14421_v18  ;;  %v10003_v5 = vunpack.c.h.bf16 %v14430_v6  ;;  %v14502_v53 = vld [vmem:[%s11639_s23 + $0x150] sm:$0xff]   ;;  %v14513_v44 = vld [vmem:[#allocation2 + $0x24d] sm:$0xff] }
 0x371   : > { %v5065_v55 = vadd.f32 %v5033_v9, %v4904_v39  ;;  %v5678_v0 = vmul.f32 %v10130_v27, %v14480_v29  ;;  %v4583_v37 = vadd.f32 %v4551_v50, %v4390_v59  ;;  %v4873_v35 = vmul.f32 %v9811_v51, %v14482_v48  ;;  %v14528_v43 = vld [vmem:[%s11639_s23 + $0x350] sm:$0xff]  }
 0x372   : > { %v2494_v18 = vadd.f32 %v2462_v13, %v2333_v21  ;;  %v5034_v52 = vmul.f32 %v9875_v25, %v14219_v36  ;;  %v5195_v6 = vmul.f32 %v9939_v58, %v14486_v30  ;;  %v10067_v16 = vunpack.c.h.bf16 %v14441_v10  ;;  %v14522_v13 = vld [vmem:[#allocation2 + $0x252] sm:$0xff]  ;;  %v14531_v24 = vld [vmem:[#allocation2 + $0x185] sm:$0xff] }
 0x373   : > { %v5226_v9 = vadd.f32 %v5194_v8, %v5065_v55  ;;  %v4744_v14 = vadd.f32 %v4712_v32, %v4583_v37  ;;  %v10131_v40 = vunpack.c.h.bf16 %v14446_v12  ;;  %v9050_v3 = vunpack.c.l.bf16 %v14494_v22  ;;  %v14539_v32 = vld [vmem:[%s11639_s23 + $0x3d0] sm:$0xff]  }
 0x374   : > { %2579 = vrot.lane.b32.xlu1 %v2494_v18, %s11196_s20  ;;  %v5357_v36 = vmul.f32 %v10003_v5, %v14490_v28  ;;  %v9114_v10 = vunpack.c.l.bf16 %v14499_v47  ;;  %v9178_v8 = vunpack.c.l.bf16 %v14502_v53  ;;  %v9242_v61 = vunpack.c.l.bf16 %v14505_v42  ;;  %v14542_v58 = vld [vmem:[#allocation2 + $0x242] sm:$0xff] }
 0x375   : > { %v5388_v12 = vadd.f32 %v5356_v49, %v5226_v9  ;;  %v4905_v27 = vadd.f32 %v4873_v35, %v4744_v14  ;;  %v2783_v60 = vmul.f32 %v9050_v3, %v14121_v15  ;;  %v9306_v56 = vunpack.c.l.bf16 %v14511_v1  ;;  %v14546_v5 = vld [vmem:[%s11639_s23 + $0x450] sm:$0xff]  }
 0x376   : > { %v5518_v59 = vmul.f32 %v10067_v16, %v14513_v44  ;;  %v2944_v51 = vmul.f32 %v9114_v10, %v14531_v24  ;;  %v3105_v39 = vmul.f32 %v9178_v8, %v14126_v2  ;;  %v9370_v50 = vunpack.c.l.bf16 %v14518_v41 }
 0x377   : > { %v5549_v25 = vadd.f32 %v5517_v23, %v5388_v12  ;;  %v5066_v21 = vadd.f32 %v5034_v52, %v4905_v27  ;;  %v5679_v49 = vmul.f32 %v10131_v40, %v14522_v13  ;;  %v9434_v15 = vunpack.c.l.bf16 %v14528_v43 }
 0x378   : > { %v2976_v55 = vadd.f32 %v2944_v51, %v2783_v60  ;;  %v3266_v37 = vmul.f32 %v9242_v61, %v14137_v11  ;;  %v3427_v35 = vmul.f32 %v9306_v56, %v14073_v7  ;;  %v3588_v2 = vmul.f32 %v9370_v50, %v14093_v4  ;;  %v17450_v11 = vld [vmem:[#allocation53_spill] sm:$0xff]  ;;  %v14582_v61 = vld [vmem:[%s11641_s29 + $0x38] sm:$0xff]   ;;  %v14593_v56 = vpop.permute.xlu0 %5766 }
 0x379   : > { %v5710_v18 = vadd.f32 %v5678_v0, %v5549_v25  ;;  %v5227_v16 = vadd.f32 %v5195_v6, %v5066_v21  ;;  %v9498_v23 = vunpack.c.l.bf16 %v14539_v32  ;;  %v3750_v9 = vmul.f32 %v9434_v15, %v14542_v58  ;;  %4246 = vst.msk [vmem:[#allocation3 + $0x21] sm:$0xff] %vm4244_vm8, %v17450_v11  ;;  %v17451_v0 = vld [vmem:[#allocation45_spill] sm:$0xff]  ;;  %v14574_v6 = vld [vmem:[#allocation2 + $0x18d] sm:$0xff]  ;;  %v4291_v15 = vld [vmem:[#allocation2 + $0xe0] sm:$0xff] }
 0x37a   : > { %v3137_v52 = vadd.f32 %v3105_v39, %v2976_v55  ;;  %v9562_v14 = vunpack.c.l.bf16 %v14546_v5  ;;  %v9051_v40 = vunpack.c.h.bf16 %v14494_v22  ;;  %v9115_v4 = vunpack.c.h.bf16 %v14499_v47  ;;  %v14570_v22 = vld [vmem:[#allocation2 + $0x1ea] sm:$0xff]  ;;  %5859 = vst.msk [vmem:[#allocation3 + $0x49] sm:$0xff] %vm5854_vm9, %v14593_v56 }
 0x37b   : > { %5790 = vrot.lane.b32.xlu0 %v5710_v18, %s11198_s28  ;;  %v5389_v7 = vadd.f32 %v5357_v36, %v5227_v16  ;;  %v9179_v17 = vunpack.c.h.bf16 %v14502_v53  ;;  %v9243_v46 = vunpack.c.h.bf16 %v14505_v42  ;;  %v9307_v20 = vunpack.c.h.bf16 %v14511_v1  ;;  %v17452_v53 = vld [vmem:[#allocation41_spill] sm:$0xff]  ;;  %v14585_v42 = vld [vmem:[%s11641_s29 + $0xb8] sm:$0xff]  }
 0x37c   : > { %v3298_v26 = vadd.f32 %v3266_v37, %v3137_v52  ;;  %v2784_v62 = vmul.f32 %v9051_v40, %v17451_v0  ;;  %v9371_v3 = vunpack.c.h.bf16 %v14518_v41  ;;  %v3911_v36 = vmul.f32 %v9498_v23, %v14456_v45  ;;  %v14591_v41 = vld [vmem:[%s11641_s29 + $0x138] sm:$0xff]  }
 0x37d   : > { %v5550_v10 = vadd.f32 %v5518_v59, %v5389_v7  ;;  %v2945_v47 = vmul.f32 %v9115_v4, %v14574_v6  ;;  %v3106_v8 = vmul.f32 %v9179_v17, %v17452_v53  ;;  %v4072_v27 = vmul.f32 %v9562_v14, %v14490_v28  ;;  %v14595_v59 = vpop.permute.xlu1 %5768  ;;  %v17453_v25 = vld [vmem:[#allocation51_spill] sm:$0xff]  ;;  %v14620_v4 = vld [vmem:[#allocation2 + $0x250] sm:$0xff] }
 0x37e   : > { %v3459_v12 = vadd.f32 %v3427_v35, %v3298_v26  ;;  %v3267_v60 = vmul.f32 %v9243_v46, %v14570_v22  ;;  %v9435_v1 = vunpack.c.h.bf16 %v14528_v43  ;;  %v3428_v50 = vmul.f32 %v9307_v20, %v14109_v19  ;;  %v4451_v55 = vld [vmem:[#allocation2 + $0xe5] sm:$0xff]  ;;  %5860 = vst.msk [vmem:[#allocation3 + $0x51] sm:$0xff] %vm5854_vm9, %v14595_v59 }
 0x37f   : > { %v5711_v51 = vadd.f32 %v5679_v49, %v5550_v10  ;;  %v2977_v39 = vadd.f32 %v2945_v47, %v2784_v62  ;;  %v3589_v21 = vmul.f32 %v9371_v3, %v17453_v25  ;;  %v14600_v37 = vld [vmem:[%s11641_s29 + $0x1b8] sm:$0xff]   ;;  %v9499_v35 = vunpack.c.h.bf16 %v14539_v32  ;;  %v14615_v32 = vld [vmem:[#allocation2 + $0x180] sm:$0xff] }
 0x380   : > { %v3620_v43 = vadd.f32 %v3588_v2, %v3459_v12  ;;  %v9614_v18 = vunpack.c.l.bf16 %v14582_v61  ;;  %v9678_v16 = vunpack.c.l.bf16 %v14585_v42  ;;  %v4612_v23 = vld [vmem:[#allocation2 + $0xea] sm:$0xff]  ;;  %v3751_v14 = vmul.f32 %v9435_v1, %v14480_v29  ;;  %v4165_v1 = vpop.permute.xlu0 %4164 }
 0x381   : > { %v14606_v52 = vld [vmem:[%s11641_s29 + $0x238] sm:$0xff]   ;;  %5792 = vrot.lane.b32.xlu1 %v5711_v51, %s11198_s28  ;;  %v3138_v19 = vadd.f32 %v3106_v8, %v2977_v39  ;;  %v9563_v40 = vunpack.c.h.bf16 %v14546_v5  ;;  %v9742_v2 = vunpack.c.l.bf16 %v14591_v41  ;;  %v9806_v26 = vunpack.c.l.bf16 %v14600_v37  ;;  %v4167_v51 = vpop.permute.xlu1 %4166  ;;  %4253 = vst.msk [vmem:[#allocation3 + $0x79] sm:$0xff] %vm4244_vm8, %v4165_v1 }
 0x382   : > { %v14609_v49 = vld [vmem:[%s11641_s29 + $0x2b8] sm:$0xff]   ;;  %v3782_v7 = vadd.f32 %v3750_v9, %v3620_v43  ;;  %v4387_v17 = vmul.f32 %v9614_v18, %v4291_v15  ;;  %v4548_v46 = vmul.f32 %v9678_v16, %v4451_v55  ;;  %v9870_v3 = vunpack.c.l.bf16 %v14606_v52  ;;  %v14629_v9 = vld [vmem:[#allocation2 + $0x220] sm:$0xff]  ;;  %4254 = vst.msk [vmem:[#allocation3 + $0x81] sm:$0xff] %vm4244_vm8, %v4167_v51  ;;  %v14668_v51 = vld [vmem:[%s11639_s23 + $0xc8] sm:$0xff]  }
 0x383   : > { %v14618_v11 = vld [vmem:[%s11641_s29 + $0x338] sm:$0xff]   ;;  %v3299_v62 = vadd.f32 %v3267_v60, %v3138_v19  ;;  %v4709_v20 = vmul.f32 %v9742_v2, %v4612_v23  ;;  %v9934_v5 = vunpack.c.l.bf16 %v14609_v49  ;;  %v4870_v8 = vmul.f32 %v9806_v26, %v14615_v32  ;;  %17454 = vst [vmem:[#allocation50_spill] sm:$0xff] %v14629_v9 }
 0x384   : > { %v14626_v10 = vld [vmem:[%s11641_s29 + $0x3b8] sm:$0xff]   ;;  %v3943_v47 = vadd.f32 %v3911_v36, %v3782_v7  ;;  %v4580_v53 = vadd.f32 %v4548_v46, %v4387_v17  ;;  %v9998_v12 = vunpack.c.l.bf16 %v14618_v11  ;;  %v3912_v60 = vmul.f32 %v9499_v35, %v14513_v44  ;;  %v4613_v7 = vld [vmem:[#allocation2 + $0xf2] sm:$0xff] }
 0x385   : > { %v3460_v39 = vadd.f32 %v3428_v50, %v3299_v62  ;;  %v4073_v25 = vmul.f32 %v9563_v40, %v14620_v4  ;;  %v5031_v15 = vmul.f32 %v9870_v3, %v14531_v24  ;;  %v14636_v55 = vld [vmem:[%s11641_s29 + $0x438] sm:$0xff]   ;;  %v5192_v18 = vmul.f32 %v9934_v5, %v17451_v0 }
 0x386   : > { %v4104_v36 = vadd.f32 %v4072_v27, %v3943_v47  ;;  %v4741_v43 = vadd.f32 %v4709_v20, %v4580_v53  ;;  %v10062_v16 = vunpack.c.l.bf16 %v14626_v10  ;;  %v4292_v23 = vld [vmem:[#allocation2 + $0xe8] sm:$0xff]  ;;  %v5354_v35 = vmul.f32 %v9998_v12, %v14629_v9  ;;  %v14659_v53 = vld [vmem:[%s11639_s23 + $0x48] sm:$0xff]  }
 0x387   : > { %v4452_v50 = vld [vmem:[#allocation2 + $0xed] sm:$0xff]  ;;  %v3621_v19 = vadd.f32 %v3589_v21, %v3460_v39  ;;  %v14643_v40 = vld [vmem:[#allocation2 + $0x225] sm:$0xff]  ;;  %v9615_v24 = vunpack.c.h.bf16 %v14582_v61  ;;  %v9679_v2 = vunpack.c.h.bf16 %v14585_v42  ;;  %v10126_v0 = vunpack.c.l.bf16 %v14636_v55 }
 0x388   : > { %4188 = vrot.lane.b32.xlu0 %v4104_v36, %s11197_s5  ;;  %v4902_v27 = vadd.f32 %v4870_v8, %v4741_v43  ;;  %v9743_v17 = vunpack.c.h.bf16 %v14591_v41  ;;  %v14650_v46 = vld [vmem:[#allocation2 + $0x188] sm:$0xff]  ;;  %v9807_v21 = vunpack.c.h.bf16 %v14600_v37  ;;  %v9871_v61 = vunpack.c.h.bf16 %v14606_v52  ;;  %v14654_v42 = vld [vmem:[#allocation2 + $0x192] sm:$0xff] }
 0x389   : > { %17455 = vst [vmem:[#allocation57_spill] sm:$0xff] %v14650_v46  ;;  %v3783_v26 = vadd.f32 %v3751_v14, %v3621_v19  ;;  %v4388_v62 = vmul.f32 %v9615_v24, %v4292_v23  ;;  %v4549_v20 = vmul.f32 %v9679_v2, %v4452_v50  ;;  %17456 = vst [vmem:[#allocation59_spill] sm:$0xff] %v14654_v42  ;;  %v9935_v41 = vunpack.c.h.bf16 %v14609_v49  ;;  %v14661_v37 = vld [vmem:[#allocation2 + $0x22a] sm:$0xff]  ;;  %v2685_v36 = vld [vmem:[#allocation2 + $0x162] sm:$0xff] }
 0x38a   : > { %v5063_v3 = vadd.f32 %v5031_v15, %v4902_v27  ;;  %v5515_v5 = vmul.f32 %v10062_v16, %v14643_v40  ;;  %v4710_v47 = vmul.f32 %v9743_v17, %v4613_v7  ;;  %v4871_v12 = vmul.f32 %v9807_v21, %v14650_v46  ;;  %v14664_v52 = vld [vmem:[#allocation2 + $0x228] sm:$0xff]  ;;  %v10343_v43 = vld [vmem:[%s11639_s23 + $0x148] sm:$0xff]  }
 0x38b   : > { %v3944_v8 = vadd.f32 %v3912_v60, %v3783_v26  ;;  %v4581_v14 = vadd.f32 %v4549_v20, %v4388_v62  ;;  %v9999_v1 = vunpack.c.h.bf16 %v14618_v11  ;;  %v5676_v15 = vmul.f32 %v10126_v0, %v14661_v37  ;;  %v14675_v16 = vld [vmem:[%s11639_s23 + $0x1c8] sm:$0xff]   ;;  %v14686_v7 = vld [vmem:[#allocation2 + $0x22d] sm:$0xff] }
 0x38c   : > { %v5224_v39 = vadd.f32 %v5192_v18, %v5063_v3  ;;  %v5032_v49 = vmul.f32 %v9871_v61, %v14574_v6  ;;  %v5193_v60 = vmul.f32 %v9935_v41, %v14654_v42  ;;  %v10063_v19 = vunpack.c.h.bf16 %v14626_v10  ;;  %v14680_v24 = vld [vmem:[%s11639_s23 + $0x248] sm:$0xff]   ;;  %v3489_v41 = vld [vmem:[#allocation2 + $0x1c8] sm:$0xff] }
 0x38d   : > { %v4105_v23 = vadd.f32 %v4073_v25, %v3944_v8  ;;  %v4742_v50 = vadd.f32 %v4710_v47, %v4581_v14  ;;  %v9046_v11 = vunpack.c.l.bf16 %v14659_v53  ;;  %v14683_v18 = vld [vmem:[%s11639_s23 + $0x2c8] sm:$0xff]   ;;  %v5355_v6 = vmul.f32 %v9999_v1, %v14664_v52  ;;  %v3006_v25 = vld [vmem:[#allocation2 + $0x168] sm:$0xff] }
 0x38e   : > { %v5386_v2 = vadd.f32 %v5354_v35, %v5224_v39  ;;  %v10127_v27 = vunpack.c.h.bf16 %v14636_v55  ;;  %v9110_v0 = vunpack.c.l.bf16 %v14668_v51  ;;  %v14691_v17 = vld [vmem:[%s11639_s23 + $0x348] sm:$0xff]   ;;  %v9174_v62 = vunpack.c.l.bf16 %v10343_v43  ;;  %v3167_v35 = vld [vmem:[#allocation2 + $0x1c2] sm:$0xff] }
 0x38f   : > { %4190 = vrot.lane.b32.xlu1 %v4105_v23, %s11197_s5  ;;  %v4903_v10 = vadd.f32 %v4871_v12, %v4742_v50  ;;  %v14694_v21 = vld [vmem:[#allocation2 + $0x232] sm:$0xff]  ;;  %v2781_v26 = vmul.f32 %v9046_v11, %v2685_v36  ;;  %v9238_v20 = vunpack.c.l.bf16 %v14675_v16  ;;  %v17458_v3 = vld [vmem:[#allocation54_spill] sm:$0xff]  ;;  %v9302_v47 = vunpack.c.l.bf16 %v14680_v24 }
 0x390   : > { %17457 = vst [vmem:[#allocation61_spill] sm:$0xff] %v14694_v21  ;;  %v5547_v61 = vadd.f32 %v5515_v5, %v5386_v2  ;;  %v2942_v55 = vmul.f32 %v9110_v0, %v17458_v3  ;;  %v9366_v8 = vunpack.c.l.bf16 %v14683_v18  ;;  %v14701_v14 = vld [vmem:[%s11639_s23 + $0x3c8] sm:$0xff]   ;;  %v5516_v12 = vmul.f32 %v10063_v19, %v14686_v7  ;;  %v3651_v2 = vld [vmem:[#allocation2 + $0x222] sm:$0xff] }
 0x391   : > { %v5064_v1 = vadd.f32 %v5032_v49, %v4903_v10  ;;  %v3103_v39 = vmul.f32 %v9174_v62, %v3006_v25  ;;  %v9430_v36 = vunpack.c.l.bf16 %v14691_v17  ;;  %v5677_v50 = vmul.f32 %v10127_v27, %v14694_v21  ;;  %v14707_v0 = vld [vmem:[%s11639_s23 + $0x448] sm:$0xff]   ;;  %v2686_v49 = vld [vmem:[#allocation2 + $0x16a] sm:$0xff] }
 0x392   : > { %v5708_v23 = vadd.f32 %v5676_v15, %v5547_v61  ;;  %v2974_v11 = vadd.f32 %v2942_v55, %v2781_v26  ;;  %v3264_v5 = vmul.f32 %v9238_v20, %v3167_v35  ;;  %v3425_v42 = vmul.f32 %v9302_v47, %v14206_v63  ;;  %v3007_v10 = vld [vmem:[#allocation2 + $0x170] sm:$0xff] }
 0x393   : > { %v5225_v3 = vadd.f32 %v5193_v60, %v5064_v1  ;;  %v3586_v46 = vmul.f32 %v9366_v8, %v3489_v41  ;;  %v9494_v9 = vunpack.c.l.bf16 %v14701_v14  ;;  %v9047_v15 = vunpack.c.h.bf16 %v14659_v53  ;;  %v3168_v60 = vld [vmem:[#allocation2 + $0x1ca] sm:$0xff] }
 0x394   : > { %5786 = vrot.lane.b32.xlu0 %v5708_v23, %s11198_s28  ;;  %v3135_v19 = vadd.f32 %v3103_v39, %v2974_v11  ;;  %v9111_v27 = vunpack.c.h.bf16 %v14668_v51  ;;  %v9175_v25 = vunpack.c.h.bf16 %v10343_v43  ;;  %v3748_v62 = vmul.f32 %v9430_v36, %v3651_v2  ;;  %v3490_v43 = vld [vmem:[#allocation2 + $0x1d0] sm:$0xff]  ;;  %v14722_v36 = vld [vmem:[%s11633_s24 + $0x58] sm:$0xff]  }
 0x395   : > { %v5387_v26 = vadd.f32 %v5355_v6, %v5225_v3  ;;  %v9558_v35 = vunpack.c.l.bf16 %v14707_v0  ;;  %v9239_v63 = vunpack.c.h.bf16 %v14675_v16  ;;  %v2782_v61 = vmul.f32 %v9047_v15, %v2686_v49  ;;  %v14725_v23 = vld [vmem:[%s11633_s24 + $0xd8] sm:$0xff]  }
 0x396   : > { %v3296_v20 = vadd.f32 %v3264_v5, %v3135_v19  ;;  %v2943_v55 = vmul.f32 %v9111_v27, %v14301_v38  ;;  %v3104_v47 = vmul.f32 %v9175_v25, %v3007_v10  ;;  %v3909_v53 = vmul.f32 %v9494_v9, %v14643_v40  ;;  %v14728_v38 = vld [vmem:[%s11633_s24 + $0x158] sm:$0xff]   ;;  %v14730_v9 = vpop.permute.xlu0 %5762 }
 0x397   : > { %v5548_v41 = vadd.f32 %v5516_v12, %v5387_v26  ;;  %v9303_v51 = vunpack.c.h.bf16 %v14680_v24  ;;  %v9367_v6 = vunpack.c.h.bf16 %v14683_v18  ;;  %v3265_v39 = vmul.f32 %v9239_v63, %v3168_v60  ;;  %v14732_v24 = vpop.permute.xlu1 %5764  ;;  %v14738_v5 = vld [vmem:[%s11633_s24 + $0x1d8] sm:$0xff]   ;;  %5857 = vst.msk [vmem:[#allocation3 + $0x31] sm:$0xff] %vm5854_vm9, %v14730_v9 }
 0x398   : > { %v3457_v8 = vadd.f32 %v3425_v42, %v3296_v20  ;;  %v2975_v1 = vadd.f32 %v2943_v55, %v2782_v61  ;;  %v9431_v16 = vunpack.c.h.bf16 %v14691_v17  ;;  %v4070_v11 = vmul.f32 %v9558_v35, %v14664_v52  ;;  %v14741_v17 = vld [vmem:[%s11633_s24 + $0x258] sm:$0xff]   ;;  %5858 = vst.msk [vmem:[#allocation3 + $0x39] sm:$0xff] %vm5854_vm9, %v14732_v24 }
 0x399   : > { %v5709_v12 = vadd.f32 %v5677_v50, %v5548_v41  ;;  %v3426_v42 = vmul.f32 %v9303_v51, %v14244_v34  ;;  %v9495_v18 = vunpack.c.h.bf16 %v14701_v14  ;;  %v3587_v49 = vmul.f32 %v9367_v6, %v3490_v43  ;;  %v1078_v19 = vld [vmem:[#allocation2 + $0x1e4] sm:$0xff]  ;;  %v3974_v14 = vld [vmem:[#allocation2 + $0x230] sm:$0xff] }
 0x39a   : > { %v3618_v2 = vadd.f32 %v3586_v46, %v3457_v8  ;;  %v3136_v3 = vadd.f32 %v3104_v47, %v2975_v1  ;;  %v9559_v10 = vunpack.c.h.bf16 %v14707_v0  ;;  %v1399_v15 = vld [vmem:[#allocation2 + $0x1e6] sm:$0xff]  ;;  %v3749_v34 = vmul.f32 %v9431_v16, %v14661_v37  ;;  %v4161_v16 = vpop.permute.xlu0 %4160 }
 0x39b   : > { %v14745_v27 = vld [vmem:[%s11633_s24 + $0x2d8] sm:$0xff]   ;;  %5788 = vrot.lane.b32.xlu1 %v5709_v12, %s11198_s28  ;;  %v8478_v50 = vunpack.c.l.bf16 %v14722_v36  ;;  %v8542_v25 = vunpack.c.l.bf16 %v14725_v23  ;;  %v8606_v46 = vunpack.c.l.bf16 %v14728_v38  ;;  %v8670_v60 = vunpack.c.l.bf16 %v14738_v5  ;;  %v4163_v12 = vpop.permute.xlu1 %4162  ;;  %4251 = vst.msk [vmem:[#allocation3 + $0x61] sm:$0xff] %vm4244_vm8, %v4161_v16 }
 0x39c   : > { %v3780_v26 = vadd.f32 %v3748_v62, %v3618_v2  ;;  %v3297_v0 = vadd.f32 %v3265_v39, %v3136_v3  ;;  %v14752_v35 = vld [vmem:[#allocation2 + $0x1e5] sm:$0xff]  ;;  %v8734_v20 = vunpack.c.l.bf16 %v14741_v17  ;;  %v8798_v51 = vunpack.c.l.bf16 %v14745_v27  ;;  %v17459_v3 = vld [vmem:[#allocation48_spill] sm:$0xff]  ;;  %4252 = vst.msk [vmem:[#allocation3 + $0x69] sm:$0xff] %vm4244_vm8, %v4163_v12 }
 0x39d   : > { %v14755_v63 = vld [vmem:[#allocation2 + $0x205] sm:$0xff]  ;;  %v1174_v55 = vmul.f32 %v8478_v50, %v1078_v19  ;;  %v1335_v47 = vmul.f32 %v8542_v25, %v14752_v35  ;;  %v1496_v41 = vmul.f32 %v8606_v46, %v1399_v15  ;;  %v3910_v8 = vmul.f32 %v9495_v18, %v14686_v7  ;;  %v17460_v46 = vld [vmem:[#allocation49_spill] sm:$0xff] }
 0x39e   : > { %v14759_v61 = vld [vmem:[%s11633_s24 + $0x358] sm:$0xff]   ;;  %v3941_v62 = vadd.f32 %v3909_v53, %v3780_v26  ;;  %v3458_v6 = vadd.f32 %v3426_v42, %v3297_v0  ;;  %v4071_v1 = vmul.f32 %v9559_v10, %v3974_v14  ;;  %v1657_v21 = vmul.f32 %v8670_v60, %v17459_v3 }
 0x39f   : > { %v14764_v43 = vld [vmem:[%s11633_s24 + $0x3d8] sm:$0xff]   ;;  %v1367_v2 = vadd.f32 %v1335_v47, %v1174_v55  ;;  %v1818_v19 = vmul.f32 %v8734_v20, %v14755_v63  ;;  %v8862_v15 = vunpack.c.l.bf16 %v14759_v61  ;;  %v8479_v10 = vunpack.c.h.bf16 %v14722_v36 }
 0x3a0   : > { %v14768_v39 = vld [vmem:[%s11633_s24 + $0x458] sm:$0xff]   ;;  %v4102_v53 = vadd.f32 %v4070_v11, %v3941_v62  ;;  %v3619_v42 = vadd.f32 %v3587_v49, %v3458_v6  ;;  %v8926_v18 = vunpack.c.l.bf16 %v14764_v43  ;;  %v1979_v26 = vmul.f32 %v8798_v51, %v17460_v46 }
 0x3a1   : > { %v14772_v50 = vld [vmem:[#allocation2 + $0x224] sm:$0xff]  ;;  %v1079_v25 = vld [vmem:[#allocation2 + $0x1ec] sm:$0xff]  ;;  %v1528_v14 = vadd.f32 %v1496_v41, %v1367_v2  ;;  %v8990_v0 = vunpack.c.l.bf16 %v14768_v39  ;;  %v8543_v60 = vunpack.c.h.bf16 %v14725_v23  ;;  %v8607_v49 = vunpack.c.h.bf16 %v14728_v38 }
 0x3a2   : > { %v1400_v20 = vld [vmem:[#allocation2 + $0x1ee] sm:$0xff]  ;;  %4184 = vrot.lane.b32.xlu0 %v4102_v53, %s11197_s5  ;;  %v3781_v55 = vadd.f32 %v3749_v34, %v3619_v42  ;;  %v2141_v47 = vmul.f32 %v8862_v15, %v14772_v50  ;;  %v1175_v16 = vmul.f32 %v8479_v10, %v1079_v25  ;;  %v14787_v41 = vld [vmem:[#allocation2 + $0x226] sm:$0xff]  ;;  %v8671_v23 = vunpack.c.h.bf16 %v14738_v5  ;;  %v14799_v42 = vld [vmem:[%s11639_s23 + $0x68] sm:$0xff]  }
 0x3a3   : > { %v14784_v11 = vld [vmem:[#allocation2 + $0x1ed] sm:$0xff]  ;;  %v1689_v36 = vadd.f32 %v1657_v21, %v1528_v14  ;;  %v8735_v34 = vunpack.c.h.bf16 %v14741_v17  ;;  %v2302_v12 = vmul.f32 %v8926_v18, %v14643_v40  ;;  %v1497_v2 = vmul.f32 %v8607_v49, %v1400_v20  ;;  %v14802_v5 = vld [vmem:[%s11639_s23 + $0xe8] sm:$0xff]   ;;  %v2693_v20 = vld [vmem:[#allocation2 + $0x1e2] sm:$0xff] }
 0x3a4   : > { %v1336_v51 = vmul.f32 %v8543_v60, %v14784_v11  ;;  %v14791_v62 = vld [vmem:[#allocation2 + $0x20d] sm:$0xff]  ;;  %v3942_v6 = vadd.f32 %v3910_v8, %v3781_v55  ;;  %v8799_v38 = vunpack.c.h.bf16 %v14745_v27  ;;  %v8863_v53 = vunpack.c.h.bf16 %v14759_v61  ;;  %v14805_v10 = vld [vmem:[%s11639_s23 + $0x168] sm:$0xff]  }
 0x3a5   : > { %v1850_v3 = vadd.f32 %v1818_v19, %v1689_v36  ;;  %v17461_v15 = vld [vmem:[#allocation55_spill] sm:$0xff]  ;;  %v2463_v8 = vmul.f32 %v8990_v0, %v14787_v41  ;;  %v1819_v18 = vmul.f32 %v8735_v34, %v14791_v62  ;;  %v14813_v14 = vld [vmem:[%s11639_s23 + $0x1e8] sm:$0xff]   ;;  %v8927_v60 = vunpack.c.h.bf16 %v14764_v43 }
 0x3a6   : > { %v1368_v21 = vadd.f32 %v1336_v51, %v1175_v16  ;;  %v1658_v25 = vmul.f32 %v8671_v23, %v17461_v15  ;;  %v4103_v17 = vadd.f32 %v4071_v1, %v3942_v6  ;;  %v1980_v27 = vmul.f32 %v8799_v38, %v14425_v31  ;;  %v14810_v19 = vld [vmem:[#allocation2 + $0x22c] sm:$0xff]  ;;  %v14817_v55 = vld [vmem:[%s11639_s23 + $0x268] sm:$0xff]  }
 0x3a7   : > { %v2011_v46 = vadd.f32 %v1979_v26, %v1850_v3  ;;  %v8991_v1 = vunpack.c.h.bf16 %v14768_v39  ;;  %v17462_v0 = vld [vmem:[#allocation149_spill] sm:$0xff]  ;;  %v17463_v31 = vld [vmem:[#allocation47_spill] sm:$0xff]  ;;  %v9062_v26 = vunpack.c.l.bf16 %v14799_v42  ;;  %v9126_v16 = vunpack.c.l.bf16 %v14802_v5  ;;  %v14840_v23 = vld [vmem:[#allocation2 + $0x22e] sm:$0xff] }
 0x3a8   : > { %v1529_v61 = vadd.f32 %v1497_v2, %v1368_v21  ;;  %4186 = vrot.lane.b32.xlu1 %v4103_v17, %s11197_s5  ;;  %5855 = vst.msk [vmem:[#allocation3 + $0x19] sm:$0xff] %vm5854_vm9, %v17462_v0  ;;  %5856 = vst.msk [vmem:[#allocation3 + $0x21] sm:$0xff] %vm5854_vm9, %v17463_v31  ;;  %v9190_v43 = vunpack.c.l.bf16 %v14805_v10  ;;  %v14829_v49 = vld [vmem:[%s11639_s23 + $0x2e8] sm:$0xff]   ;;  %v2142_v51 = vmul.f32 %v8863_v53, %v14810_v19  ;;  %v14842_v34 = vld [vmem:[#allocation2 + $0x1e8] sm:$0xff]  ;;  %v9254_v56 = vunpack.c.l.bf16 %v14813_v14  ;;  %v2558_v53 = vpop.permute.xlu0 %2557  ;;  %v4169_v17 = vpop.permute.xlu1 %4168 }
 0x3a9   : > { %v2173_v39 = vadd.f32 %v2141_v47, %v2011_v46  ;;  %v14846_v6 = vld [vmem:[%s11639_s23 + $0x368] sm:$0xff]   ;;  %v2789_v59 = vmul.f32 %v9062_v26, %v2693_v20  ;;  %v2950_v2 = vmul.f32 %v9126_v16, %v14752_v35  ;;  %v9318_v24 = vunpack.c.l.bf16 %v14817_v55  ;;  %v3659_v0 = vld [vmem:[#allocation2 + $0x2a2] sm:$0xff]  ;;  %2644 = vst.msk [vmem:[#allocation3 + $0x91] sm:$0xff] %vm2633_vm7, %v2558_v53 }
 0x3aa   : > { %v1690_v36 = vadd.f32 %v1658_v25, %v1529_v61  ;;  %v3111_v9 = vmul.f32 %v9190_v43, %v14842_v34  ;;  %v14852_v47 = vld [vmem:[%s11639_s23 + $0x3e8] sm:$0xff]   ;;  %v2303_v21 = vmul.f32 %v8927_v60, %v14686_v7  ;;  %v9382_v15 = vunpack.c.l.bf16 %v14829_v49  ;;  %4255 = vst.msk [vmem:[#allocation3 + $0x91] sm:$0xff] %vm4244_vm8, %v4169_v17 }
 0x3ab   : > { %v2334_v38 = vadd.f32 %v2302_v12, %v2173_v39  ;;  %v14857_v25 = vld [vmem:[%s11639_s23 + $0x468] sm:$0xff]   ;;  %v2464_v46 = vmul.f32 %v8991_v1, %v14840_v23  ;;  %v2982_v61 = vadd.f32 %v2950_v2, %v2789_v59  ;;  %v3272_v20 = vmul.f32 %v9254_v56, %v14542_v58  ;;  %v3015_v39 = vld [vmem:[#allocation2 + $0x1f0] sm:$0xff]  ;;  %v3981_v56 = vld [vmem:[#allocation2 + $0x2a8] sm:$0xff] }
 0x3ac   : > { %v1851_v3 = vadd.f32 %v1819_v18, %v1690_v36  ;;  %v9446_v31 = vunpack.c.l.bf16 %v14846_v6  ;;  %v3433_v60 = vmul.f32 %v9318_v24, %v14456_v45  ;;  %v9510_v26 = vunpack.c.l.bf16 %v14852_v47  ;;  %v14878_v17 = vld [vmem:[%s11641_s29 + $0x68] sm:$0xff]  }
 0x3ad   : > { %v2495_v12 = vadd.f32 %v2463_v8, %v2334_v38  ;;  %v3143_v16 = vadd.f32 %v3111_v9, %v2982_v61  ;;  %v3594_v43 = vmul.f32 %v9382_v15, %v14490_v28  ;;  %v9574_v1 = vunpack.c.l.bf16 %v14857_v25 }
 0x3ae   : > { %v2012_v18 = vadd.f32 %v1980_v27, %v1851_v3  ;;  %v9063_v58 = vunpack.c.h.bf16 %v14799_v42  ;;  %v3756_v8 = vmul.f32 %v9446_v31, %v3659_v0  ;;  %v3820_v27 = vld [vmem:[#allocation2 + $0x2a5] sm:$0xff]  ;;  %v9127_v59 = vunpack.c.h.bf16 %v14802_v5 }
 0x3af   : > { %2581 = vrot.lane.b32.xlu0 %v2495_v12, %s11196_s20  ;;  %v9191_v2 = vunpack.c.h.bf16 %v14805_v10  ;;  %v3304_v9 = vadd.f32 %v3272_v20, %v3143_v16  ;;  %v9255_v38 = vunpack.c.h.bf16 %v14813_v14  ;;  %v9319_v42 = vunpack.c.h.bf16 %v14817_v55  ;;  %v14885_v14 = vld [vmem:[%s11641_s29 + $0x168] sm:$0xff]   ;;  %v4463_v16 = vld [vmem:[#allocation2 + $0x1a5] sm:$0xff] }
 0x3b0   : > { %v2174_v36 = vadd.f32 %v2142_v51, %v2012_v18  ;;  %v2790_v24 = vmul.f32 %v9063_v58, %v14570_v22  ;;  %v2951_v51 = vmul.f32 %v9127_v59, %v14784_v11  ;;  %v9383_v53 = vunpack.c.h.bf16 %v14829_v49  ;;  %v14882_v22 = vld [vmem:[%s11641_s29 + $0xe8] sm:$0xff]   ;;  %v3660_v49 = vld [vmem:[#allocation2 + $0x2aa] sm:$0xff] }
 0x3b1   : > { %v3112_v15 = vmul.f32 %v9191_v2, %v3015_v39  ;;  %v3465_v5 = vadd.f32 %v3433_v60, %v3304_v9  ;;  %v3917_v61 = vmul.f32 %v9510_v26, %v3820_v27  ;;  %v4078_v10 = vmul.f32 %v9574_v1, %v3981_v56  ;;  %v14890_v12 = vld [vmem:[%s11641_s29 + $0x1e8] sm:$0xff]   ;;  %v3821_v58 = vld [vmem:[#allocation2 + $0x2ad] sm:$0xff] }
 0x3b2   : > { %v2335_v3 = vadd.f32 %v2303_v21, %v2174_v36  ;;  %v9447_v20 = vunpack.c.h.bf16 %v14846_v6  ;;  %v2983_v21 = vadd.f32 %v2951_v51, %v2790_v24  ;;  %v3273_v0 = vmul.f32 %v9255_v38, %v14480_v29  ;;  %v14896_v1 = vld [vmem:[%s11641_s29 + $0x268] sm:$0xff]   ;;  %v3982_v59 = vld [vmem:[#allocation2 + $0x2b0] sm:$0xff] }
 0x3b3   : > { %v3434_v31 = vmul.f32 %v9319_v42, %v14513_v44  ;;  %v3626_v18 = vadd.f32 %v3594_v43, %v3465_v5  ;;  %v3595_v60 = vmul.f32 %v9383_v53, %v14620_v4  ;;  %v9511_v6 = vunpack.c.h.bf16 %v14852_v47  ;;  %v10538_v27 = vld [vmem:[%s11641_s29 + $0x2e8] sm:$0xff]  }
 0x3b4   : > { %v2496_v55 = vadd.f32 %v2464_v46, %v2335_v3  ;;  %v9638_v26 = vunpack.c.l.bf16 %v14878_v17  ;;  %v3144_v46 = vadd.f32 %v3112_v15, %v2983_v21  ;;  %v9575_v39 = vunpack.c.h.bf16 %v14857_v25  ;;  %v14904_v4 = vld [vmem:[%s11641_s29 + $0x368] sm:$0xff]  }
 0x3b5   : > { %v9702_v36 = vunpack.c.l.bf16 %v14882_v22  ;;  %v9766_v43 = vunpack.c.l.bf16 %v14885_v14  ;;  %v3788_v47 = vadd.f32 %v3756_v8, %v3626_v18  ;;  %v3757_v56 = vmul.f32 %v9447_v20, %v3660_v49  ;;  %v14911_v3 = vld [vmem:[%s11641_s29 + $0x3e8] sm:$0xff]   ;;  %v2560_v20 = vpop.permute.xlu0 %2559  ;;  %v5269_v18 = vld [vmem:[#allocation2 + $0x2e0] sm:$0xff] }
 0x3b6   : > { %2583 = vrot.lane.b32.xlu1 %v2496_v55, %s11196_s20  ;;  %v4399_v2 = vmul.f32 %v9638_v26, %v14432_v54  ;;  %v9830_v9 = vunpack.c.l.bf16 %v14890_v12  ;;  %v3305_v24 = vadd.f32 %v3273_v0, %v3144_v46  ;;  %v9894_v25 = vunpack.c.l.bf16 %v14896_v1  ;;  %v14915_v8 = vld [vmem:[%s11641_s29 + $0x468] sm:$0xff]   ;;  %v2564_v55 = vpop.permute.xlu1 %2563  ;;  %2645 = vst.msk [vmem:[#allocation3 + $0x99] sm:$0xff] %vm2633_vm7, %v2560_v20 }
 0x3b7   : > { %v4560_v38 = vmul.f32 %v9702_v36, %v4463_v16  ;;  %v4721_v42 = vmul.f32 %v9766_v43, %v14436_v57  ;;  %v3949_v51 = vadd.f32 %v3917_v61, %v3788_v47  ;;  %v3918_v15 = vmul.f32 %v9511_v6, %v3821_v58  ;;  %2647 = vst.msk [vmem:[#allocation3 + $0xb1] sm:$0xff] %vm2633_vm7, %v2564_v55  ;;  %v5430_v58 = vld [vmem:[#allocation2 + $0x2e5] sm:$0xff] }
 0x3b8   : > { %v9958_v53 = vunpack.c.l.bf16 %v10538_v27  ;;  %v10022_v5 = vunpack.c.l.bf16 %v14904_v4  ;;  %v3466_v54 = vadd.f32 %v3434_v31, %v3305_v24  ;;  %v4079_v21 = vmul.f32 %v9575_v39, %v3982_v59  ;;  %v5591_v43 = vld [vmem:[#allocation2 + $0x2ea] sm:$0xff] }
 0x3b9   : > { %v4592_v49 = vadd.f32 %v4560_v38, %v4399_v2  ;;  %v4882_v0 = vmul.f32 %v9830_v9, %v14451_v33  ;;  %v4110_v57 = vadd.f32 %v4078_v10, %v3949_v51  ;;  %v5043_v61 = vmul.f32 %v9894_v25, %v14456_v45  ;;  %v4464_v33 = vld [vmem:[#allocation2 + $0x1ad] sm:$0xff] }
 0x3ba   : > { %v5204_v6 = vmul.f32 %v9958_v53, %v14480_v29  ;;  %v10086_v26 = vunpack.c.l.bf16 %v14911_v3  ;;  %v3627_v16 = vadd.f32 %v3595_v60, %v3466_v54  ;;  %v10150_v31 = vunpack.c.l.bf16 %v14915_v8 }
 0x3bb   : > { %v4753_v46 = vadd.f32 %v4721_v42, %v4592_v49  ;;  %v9639_v39 = vunpack.c.h.bf16 %v14878_v17  ;;  %4200 = vrot.lane.b32.xlu0 %v4110_v57, %s11197_s5  ;;  %v5366_v36 = vmul.f32 %v10022_v5, %v5269_v18  ;;  %v9703_v10 = vunpack.c.h.bf16 %v14882_v22  ;;  %v14933_v42 = vld [vmem:[%s11633_s24 + $0x60] sm:$0xff]  }
 0x3bc   : > { %v9767_v45 = vunpack.c.h.bf16 %v14885_v14  ;;  %v9831_v29 = vunpack.c.h.bf16 %v14890_v12  ;;  %v3789_v60 = vadd.f32 %v3757_v56, %v3627_v16  ;;  %v9895_v2 = vunpack.c.h.bf16 %v14896_v1  ;;  %v5270_v12 = vld [vmem:[#allocation2 + $0x2e8] sm:$0xff]  ;;  %v10203_v5 = vld [vmem:[%s11633_s24 + $0x160] sm:$0xff]  }
 0x3bd   : > { %v4914_v47 = vadd.f32 %v4882_v0, %v4753_v46  ;;  %v4400_v59 = vmul.f32 %v9639_v39, %v14482_v48  ;;  %v5527_v17 = vmul.f32 %v10086_v26, %v5430_v58  ;;  %v4561_v9 = vmul.f32 %v9703_v10, %v4464_v33  ;;  %v14937_v48 = vld [vmem:[%s11633_s24 + $0xe0] sm:$0xff]   ;;  %v2046_v33 = vld [vmem:[#allocation2 + $0x244] sm:$0xff] }
 0x3be   : > { %v4722_v24 = vmul.f32 %v9767_v45, %v14486_v30  ;;  %v9959_v38 = vunpack.c.h.bf16 %v10538_v27  ;;  %v3950_v22 = vadd.f32 %v3918_v15, %v3789_v60  ;;  %v5688_v25 = vmul.f32 %v10150_v31, %v5591_v43  ;;  %v1080_v27 = vld [vmem:[#allocation2 + $0x204] sm:$0xff]  ;;  %v10219_v15 = vld [vmem:[%s11633_s24 + $0x1e0] sm:$0xff]   ;;  %v4175_v60 = vpop.permute.xlu1 %4174 }
 0x3bf   : > { %v5075_v14 = vadd.f32 %v5043_v61, %v4914_v47  ;;  %v10023_v56 = vunpack.c.h.bf16 %v14904_v4  ;;  %v4593_v1 = vadd.f32 %v4561_v9, %v4400_v59  ;;  %v4883_v51 = vmul.f32 %v9831_v29, %v14490_v28  ;;  %v14947_v4 = vld [vmem:[%s11633_s24 + $0x260] sm:$0xff]   ;;  %v1401_v61 = vld [vmem:[#allocation2 + $0x206] sm:$0xff]  ;;  %4258 = vst.msk [vmem:[#allocation3 + $0xb1] sm:$0xff] %vm4244_vm8, %v4175_v60 }
 0x3c0   : > { %v5044_v53 = vmul.f32 %v9895_v2, %v14513_v44  ;;  %v5205_v30 = vmul.f32 %v9959_v38, %v14522_v13  ;;  %v4111_v20 = vadd.f32 %v4079_v21, %v3950_v22  ;;  %v10087_v54 = vunpack.c.h.bf16 %v14911_v3  ;;  %v14950_v0 = vld [vmem:[%s11633_s24 + $0x2e0] sm:$0xff]  }
 0x3c1   : > { %v5236_v55 = vadd.f32 %v5204_v6, %v5075_v14  ;;  %v8482_v49 = vunpack.c.l.bf16 %v14933_v42  ;;  %v4754_v18 = vadd.f32 %v4722_v24, %v4593_v1  ;;  %v5367_v28 = vmul.f32 %v10023_v56, %v5270_v12  ;;  %v5431_v57 = vld [vmem:[#allocation2 + $0x2ed] sm:$0xff] }
 0x3c2   : > { %v10151_v44 = vunpack.c.h.bf16 %v14915_v8  ;;  %v8546_v13 = vunpack.c.l.bf16 %v14937_v48  ;;  %v14955_v26 = vld [vmem:[%s11633_s24 + $0x360] sm:$0xff]   ;;  %4202 = vrot.lane.b32.xlu1 %v4111_v20, %s11197_s5  ;;  %v8610_v16 = vunpack.c.l.bf16 %v10203_v5  ;;  %v8674_v46 = vunpack.c.l.bf16 %v10219_v15 }
 0x3c3   : > { %v5398_v21 = vadd.f32 %v5366_v36, %v5236_v55  ;;  %v5592_v3 = vld [vmem:[#allocation2 + $0x2f2] sm:$0xff]  ;;  %v1176_v6 = vmul.f32 %v8482_v49, %v1080_v27  ;;  %v4915_v58 = vadd.f32 %v4883_v51, %v4754_v18  ;;  %v8738_v39 = vunpack.c.l.bf16 %v14947_v4  ;;  %v2562_v36 = vpop.permute.xlu0 %2561  ;;  %v2207_v49 = vld [vmem:[#allocation2 + $0x245] sm:$0xff] }
 0x3c4   : > { %v1337_v31 = vmul.f32 %v8546_v13, %v14755_v63  ;;  %v8802_v8 = vunpack.c.l.bf16 %v14950_v0  ;;  %v5528_v10 = vmul.f32 %v10087_v54, %v5431_v57  ;;  %v1498_v45 = vmul.f32 %v8610_v16, %v1401_v61  ;;  %v14964_v24 = vld [vmem:[%s11633_s24 + $0x3e0] sm:$0xff]   ;;  %2646 = vst.msk [vmem:[#allocation3 + $0xa9] sm:$0xff] %vm2633_vm7, %v2562_v36 }
 0x3c5   : > { %v5559_v43 = vadd.f32 %v5527_v17, %v5398_v21  ;;  %v8866_v29 = vunpack.c.l.bf16 %v14955_v26  ;;  %v5076_v47 = vadd.f32 %v5044_v53, %v4915_v58  ;;  %v5689_v59 = vmul.f32 %v10151_v44, %v5592_v3  ;;  %v14967_v63 = vld [vmem:[%s11633_s24 + $0x460] sm:$0xff]  }
 0x3c6   : > { %v1369_v2 = vadd.f32 %v1337_v31, %v1176_v6  ;;  %v1659_v9 = vmul.f32 %v8674_v46, %v14772_v50  ;;  %v1820_v38 = vmul.f32 %v8738_v39, %v14643_v40  ;;  %v1981_v22 = vmul.f32 %v8802_v8, %v14787_v41  ;;  %v1081_v12 = vld [vmem:[#allocation2 + $0x20c] sm:$0xff] }
 0x3c7   : > { %v5720_v17 = vadd.f32 %v5688_v25, %v5559_v43  ;;  %v2143_v14 = vmul.f32 %v8866_v29, %v2046_v33  ;;  %v5237_v56 = vadd.f32 %v5205_v30, %v5076_v47  ;;  %v8483_v51 = vunpack.c.h.bf16 %v14933_v42  ;;  %v1402_v53 = vld [vmem:[#allocation2 + $0x20e] sm:$0xff]  ;;  %v2368_v30 = vld [vmem:[#allocation2 + $0x246] sm:$0xff] }
 0x3c8   : > { %v1530_v1 = vadd.f32 %v1498_v45, %v1369_v2  ;;  %v8547_v50 = vunpack.c.h.bf16 %v14937_v48  ;;  %v8930_v27 = vunpack.c.l.bf16 %v14964_v24  ;;  %v8994_v20 = vunpack.c.l.bf16 %v14967_v63  ;;  %v14984_v3 = vld [vmem:[%s11641_s29 + $0x60] sm:$0xff]  }
 0x3c9   : > { %5810 = vrot.lane.b32.xlu0 %v5720_v17, %s11198_s28  ;;  %v8611_v25 = vunpack.c.h.bf16 %v10203_v5  ;;  %v8675_v55 = vunpack.c.h.bf16 %v10219_v15  ;;  %v5399_v54 = vadd.f32 %v5367_v28, %v5237_v56  ;;  %v1177_v18 = vmul.f32 %v8483_v51, %v1081_v12  ;;  %v2047_v28 = vld [vmem:[#allocation2 + $0x24c] sm:$0xff] }
 0x3ca   : > { %v1691_v41 = vadd.f32 %v1659_v9, %v1530_v1  ;;  %v1338_v42 = vmul.f32 %v8547_v50, %v14791_v62  ;;  %v8739_v44 = vunpack.c.h.bf16 %v14947_v4  ;;  %v8803_v13 = vunpack.c.h.bf16 %v14950_v0  ;;  %v14987_v62 = vld [vmem:[%s11641_s29 + $0xe0] sm:$0xff]  }
 0x3cb   : > { %v1499_v48 = vmul.f32 %v8611_v25, %v1402_v53  ;;  %v1660_v57 = vmul.f32 %v8675_v55, %v14810_v19  ;;  %v5560_v5 = vadd.f32 %v5528_v10, %v5399_v54  ;;  %v8867_v21 = vunpack.c.h.bf16 %v14955_v26  ;;  %v14992_v46 = vld [vmem:[%s11641_s29 + $0x160] sm:$0xff]   ;;  %v4461_v26 = vld [vmem:[#allocation2 + $0x185] sm:$0xff]  ;;  %v4173_v53 = vpop.permute.xlu0 %4172 }
 0x3cc   : > { %v1852_v15 = vadd.f32 %v1820_v38, %v1691_v41  ;;  %v1370_v61 = vadd.f32 %v1338_v42, %v1177_v18  ;;  %v2304_v6 = vmul.f32 %v8930_v27, %v2207_v49  ;;  %v2465_v16 = vmul.f32 %v8994_v20, %v2368_v30  ;;  %v14995_v0 = vld [vmem:[%s11641_s29 + $0x1e0] sm:$0xff]   ;;  %v5777_v27 = vpop.permute.xlu1 %5776  ;;  %v17464_v55 = vld [vmem:[#allocation50_spill] sm:$0xff]  ;;  %4257 = vst.msk [vmem:[#allocation3 + $0xa9] sm:$0xff] %vm4244_vm8, %v4173_v53 }
 0x3cd   : > { %v1821_v19 = vmul.f32 %v8739_v44, %v14686_v7  ;;  %v1982_v4 = vmul.f32 %v8803_v13, %v14840_v23  ;;  %v5721_v58 = vadd.f32 %v5689_v59, %v5560_v5  ;;  %v8931_v8 = vunpack.c.h.bf16 %v14964_v24  ;;  %v14999_v33 = vld [vmem:[%s11641_s29 + $0x260] sm:$0xff]   ;;  %v5267_v41 = vld [vmem:[#allocation2 + $0x2c0] sm:$0xff]  ;;  %5864 = vst.msk [vmem:[#allocation3 + $0x81] sm:$0xff] %vm5854_vm9, %v5777_v27 }
 0x3ce   : > { %v2013_v31 = vadd.f32 %v1981_v22, %v1852_v15  ;;  %v1531_v39 = vadd.f32 %v1499_v48, %v1370_v61  ;;  %v15002_v43 = vld [vmem:[%s11641_s29 + $0x2e0] sm:$0xff]   ;;  %v2144_v10 = vmul.f32 %v8867_v21, %v2047_v28  ;;  %v8995_v29 = vunpack.c.h.bf16 %v14967_v63  ;;  %v15065_v27 = vld [vmem:[%s11641_s29 + $0x2d0] sm:$0xff]  }
 0x3cf   : > { %v2208_v45 = vld [vmem:[#allocation2 + $0x24d] sm:$0xff]  ;;  %v9634_v23 = vunpack.c.l.bf16 %v14984_v3  ;;  %v9698_v36 = vunpack.c.l.bf16 %v14987_v62  ;;  %5812 = vrot.lane.b32.xlu1 %v5721_v58, %s11198_s28  ;;  %v9762_v9 = vunpack.c.l.bf16 %v14992_v46  ;;  %v9826_v24 = vunpack.c.l.bf16 %v14995_v0 }
 0x3d0   : > { %v4622_v60 = vld [vmem:[#allocation2 + $0x18a] sm:$0xff]  ;;  %v2175_v47 = vadd.f32 %v2143_v14, %v2013_v31  ;;  %v1692_v59 = vadd.f32 %v1660_v57, %v1531_v39  ;;  %v9890_v22 = vunpack.c.l.bf16 %v14999_v33  ;;  %v9954_v12 = vunpack.c.l.bf16 %v15002_v43 }
 0x3d1   : > { %v2369_v2 = vld [vmem:[#allocation2 + $0x24e] sm:$0xff]  ;;  %v4397_v38 = vmul.f32 %v9634_v23, %v14615_v32  ;;  %v4558_v63 = vmul.f32 %v9698_v36, %v4461_v26  ;;  %v2305_v51 = vmul.f32 %v8931_v8, %v2208_v45  ;;  %v4719_v14 = vmul.f32 %v9762_v9, %v4622_v60  ;;  %v17466_v31 = vld [vmem:[#allocation59_spill] sm:$0xff] }
 0x3d2   : > { %v15011_v17 = vld [vmem:[%s11641_s29 + $0x360] sm:$0xff]   ;;  %v2336_v56 = vadd.f32 %v2304_v6, %v2175_v47  ;;  %v1853_v1 = vadd.f32 %v1821_v19, %v1692_v59  ;;  %v2466_v20 = vmul.f32 %v8995_v29, %v2369_v2  ;;  %v4880_v54 = vmul.f32 %v9826_v24, %v17464_v55  ;;  %v15042_v23 = vld [vmem:[%s11641_s29 + $0x50] sm:$0xff]   ;;  %v5268_v2 = vld [vmem:[#allocation2 + $0x2c8] sm:$0xff] }
 0x3d3   : > { %v15017_v50 = vld [vmem:[%s11641_s29 + $0x3e0] sm:$0xff]   ;;  %v4590_v25 = vadd.f32 %v4558_v63, %v4397_v38  ;;  %v10018_v32 = vunpack.c.l.bf16 %v15011_v17  ;;  %v5041_v42 = vmul.f32 %v9890_v22, %v14643_v40  ;;  %v5202_v48 = vmul.f32 %v9954_v12, %v14661_v37  ;;  %v5428_v37 = vld [vmem:[#allocation2 + $0x2c5] sm:$0xff] }
 0x3d4   : > { %v15022_v49 = vld [vmem:[%s11641_s29 + $0x460] sm:$0xff]   ;;  %v2497_v30 = vadd.f32 %v2465_v16, %v2336_v56  ;;  %v2014_v18 = vadd.f32 %v1982_v4, %v1853_v1  ;;  %v10082_v13 = vunpack.c.l.bf16 %v15017_v50  ;;  %v9635_v5 = vunpack.c.h.bf16 %v14984_v3  ;;  %v15045_v36 = vld [vmem:[%s11641_s29 + $0xd0] sm:$0xff]  }
 0x3d5   : > { %v4462_v57 = vld [vmem:[#allocation2 + $0x18d] sm:$0xff]  ;;  %v4751_v44 = vadd.f32 %v4719_v14, %v4590_v25  ;;  %v9699_v15 = vunpack.c.h.bf16 %v14987_v62  ;;  %v5364_v28 = vmul.f32 %v10018_v32, %v5267_v41  ;;  %v10146_v21 = vunpack.c.l.bf16 %v15022_v49  ;;  %v17465_v19 = vld [vmem:[#allocation57_spill] sm:$0xff]  ;;  %v15052_v9 = vld [vmem:[%s11641_s29 + $0x1d0] sm:$0xff]  }
 0x3d6   : > { %2585 = vrot.lane.b32.xlu0 %v2497_v30, %s11196_s20  ;;  %v2176_v61 = vadd.f32 %v2144_v10, %v2014_v18  ;;  %v9763_v6 = vunpack.c.h.bf16 %v14992_v46  ;;  %v5589_v16 = vld [vmem:[#allocation2 + $0x2ca] sm:$0xff]  ;;  %v4398_v4 = vmul.f32 %v9635_v5, %v17465_v19  ;;  %v9827_v3 = vunpack.c.h.bf16 %v14995_v0  ;;  %v15048_v0 = vld [vmem:[%s11641_s29 + $0x150] sm:$0xff]   ;;  %v5590_v55 = vld [vmem:[#allocation2 + $0x2d2] sm:$0xff] }
 0x3d7   : > { %v4912_v40 = vadd.f32 %v4880_v54, %v4751_v44  ;;  %v4559_v58 = vmul.f32 %v9699_v15, %v4462_v57  ;;  %v9891_v8 = vunpack.c.h.bf16 %v14999_v33  ;;  %v9955_v26 = vunpack.c.h.bf16 %v15002_v43  ;;  %v4297_v43 = vld [vmem:[#allocation2 + $0x140] sm:$0xff]  ;;  %v4618_v12 = vld [vmem:[#allocation2 + $0x14a] sm:$0xff] }
 0x3d8   : > { %v2337_v62 = vadd.f32 %v2305_v51, %v2176_v61  ;;  %v4720_v39 = vmul.f32 %v9763_v6, %v17466_v31  ;;  %v4881_v45 = vmul.f32 %v9827_v3, %v14664_v52  ;;  %v10019_v29 = vunpack.c.h.bf16 %v15011_v17  ;;  %v17467_v17 = vld [vmem:[#allocation61_spill] sm:$0xff]  ;;  %v4457_v22 = vld [vmem:[#allocation2 + $0x145] sm:$0xff]  ;;  %v5429_v1 = vld [vmem:[#allocation2 + $0x2cd] sm:$0xff] }
 0x3d9   : > { %v5073_v10 = vadd.f32 %v5041_v42, %v4912_v40  ;;  %v4591_v46 = vadd.f32 %v4559_v58, %v4398_v4  ;;  %v5525_v47 = vmul.f32 %v10082_v13, %v5428_v37  ;;  %v5686_v59 = vmul.f32 %v10146_v21, %v5589_v16  ;;  %v15057_v56 = vld [vmem:[%s11641_s29 + $0x250] sm:$0xff]   ;;  %v5101_v5 = vld [vmem:[#allocation2 + $0x1ea] sm:$0xff]  ;;  %v4171_v21 = vpop.permute.xlu1 %4170 }
 0x3da   : > { %v2498_v60 = vadd.f32 %v2466_v20, %v2337_v62  ;;  %v5042_v33 = vmul.f32 %v9891_v8, %v14686_v7  ;;  %v5203_v38 = vmul.f32 %v9955_v26, %v17467_v17  ;;  %v10083_v63 = vunpack.c.h.bf16 %v15017_v50  ;;  %v4779_v54 = vld [vmem:[#allocation2 + $0x1e0] sm:$0xff]  ;;  %4256 = vst.msk [vmem:[#allocation3 + $0x99] sm:$0xff] %vm4244_vm8, %v4171_v21  ;;  %v4298_v31 = vld [vmem:[#allocation2 + $0x148] sm:$0xff] }
 0x3db   : > { %v5234_v52 = vadd.f32 %v5202_v48, %v5073_v10  ;;  %v4752_v24 = vadd.f32 %v4720_v39, %v4591_v46  ;;  %v10147_v7 = vunpack.c.h.bf16 %v15022_v49  ;;  %v9626_v51 = vunpack.c.l.bf16 %v15042_v23  ;;  %v15069_v32 = vld [vmem:[%s11641_s29 + $0x350] sm:$0xff]   ;;  %v4458_v46 = vld [vmem:[#allocation2 + $0x14d] sm:$0xff] }
 0x3dc   : > { %2587 = vrot.lane.b32.xlu1 %v2498_v60, %s11196_s20  ;;  %v9690_v14 = vunpack.c.l.bf16 %v15045_v36  ;;  %v9754_v53 = vunpack.c.l.bf16 %v15048_v0  ;;  %v5365_v25 = vmul.f32 %v10019_v29, %v5268_v2  ;;  %v9818_v41 = vunpack.c.l.bf16 %v15052_v9  ;;  %v15073_v48 = vld [vmem:[%s11641_s29 + $0x3d0] sm:$0xff]  }
 0x3dd   : > { %v5396_v50 = vadd.f32 %v5364_v28, %v5234_v52  ;;  %v4913_v20 = vadd.f32 %v4881_v45, %v4752_v24  ;;  %v4393_v49 = vmul.f32 %v9626_v51, %v4297_v43  ;;  %v9882_v42 = vunpack.c.l.bf16 %v15057_v56  ;;  %v15077_v61 = vld [vmem:[%s11641_s29 + $0x450] sm:$0xff]   ;;  %v5775_v28 = vpop.permute.xlu0 %5774  ;;  %v4619_v45 = vld [vmem:[#allocation2 + $0x152] sm:$0xff] }
 0x3de   : > { %v4554_v30 = vmul.f32 %v9690_v14, %v4457_v22  ;;  %v4715_v18 = vmul.f32 %v9754_v53, %v4618_v12  ;;  %v5526_v13 = vmul.f32 %v10083_v63, %v5429_v1  ;;  %v9946_v15 = vunpack.c.l.bf16 %v15065_v27  ;;  %v5263_v16 = vld [vmem:[#allocation2 + $0x280] sm:$0xff]  ;;  %5863 = vst.msk [vmem:[#allocation3 + $0x79] sm:$0xff] %vm5854_vm9, %v5775_v28  ;;  %v5102_v63 = vld [vmem:[#allocation2 + $0x1f2] sm:$0xff]  ;;  %v15104_v1 = vld [vmem:[#allocation2 + $0x288] sm:$0xff] }
 0x3df   : > { %v5557_v57 = vadd.f32 %v5525_v47, %v5396_v50  ;;  %v5074_v44 = vadd.f32 %v5042_v33, %v4913_v20  ;;  %v5687_v6 = vmul.f32 %v10147_v7, %v5590_v55  ;;  %v4876_v37 = vmul.f32 %v9818_v41, %v4779_v54  ;;  %v15089_v47 = vld [vmem:[#allocation2 + $0x285] sm:$0xff]  ;;  %v15111_v7 = vld [vmem:[%s11639_s23 + $0xe0] sm:$0xff]  }
 0x3e0   : > { %v4586_v40 = vadd.f32 %v4554_v30, %v4393_v49  ;;  %v10010_v19 = vunpack.c.l.bf16 %v15069_v32  ;;  %v5037_v3 = vmul.f32 %v9882_v42, %v14752_v35  ;;  %v10074_v62 = vunpack.c.l.bf16 %v15073_v48  ;;  %v15118_v50 = vld [vmem:[%s11639_s23 + $0x160] sm:$0xff]   ;;  %v2691_v41 = vld [vmem:[#allocation2 + $0x1c2] sm:$0xff] }
 0x3e1   : > { %v5718_v4 = vadd.f32 %v5686_v59, %v5557_v57  ;;  %v5235_v58 = vadd.f32 %v5203_v38, %v5074_v44  ;;  %v5198_v8 = vmul.f32 %v9946_v15, %v5101_v5  ;;  %v10138_v26 = vunpack.c.l.bf16 %v15077_v61  ;;  %v15091_v59 = vld [vmem:[#allocation2 + $0x28a] sm:$0xff]  ;;  %v15211_v28 = vld [vmem:[#allocation2 + $0x222] sm:$0xff] }
 0x3e2   : > { %v4747_v39 = vadd.f32 %v4715_v18, %v4586_v40  ;;  %v9627_v10 = vunpack.c.h.bf16 %v15042_v23  ;;  %v15087_v60 = vmul.f32 %v10010_v19, %v5263_v16  ;;  %v9691_v35 = vunpack.c.h.bf16 %v15045_v36  ;;  %v15121_v20 = vld [vmem:[%s11639_s23 + $0x1e0] sm:$0xff]   ;;  %v15200_v42 = vld [vmem:[#allocation2 + $0x1c5] sm:$0xff] }
 0x3e3   : > { %5806 = vrot.lane.b32.xlu0 %v5718_v4, %s11198_s28  ;;  %v5397_v29 = vadd.f32 %v5365_v25, %v5235_v58  ;;  %v9755_v33 = vunpack.c.h.bf16 %v15048_v0  ;;  %v9819_v23 = vunpack.c.h.bf16 %v15052_v9  ;;  %v9883_v52 = vunpack.c.h.bf16 %v15057_v56  ;;  %v15108_v56 = vld [vmem:[%s11639_s23 + $0x60] sm:$0xff]   ;;  %v15208_v5 = vld [vmem:[#allocation2 + $0x1c8] sm:$0xff] }
 0x3e4   : > { %v4908_v2 = vadd.f32 %v4876_v37, %v4747_v39  ;;  %v4394_v43 = vmul.f32 %v9627_v10, %v4298_v31  ;;  %v4555_v17 = vmul.f32 %v9691_v35, %v4458_v46  ;;  %v9947_v22 = vunpack.c.h.bf16 %v15065_v27  ;;  %v15204_v57 = vld [vmem:[%s11639_s23 + $0x2e0] sm:$0xff]   ;;  %v15218_v4 = vld [vmem:[#allocation2 + $0x225] sm:$0xff]  ;;  %v5773_v10 = vpop.permute.xlu1 %5772 }
 0x3e5   : > { %v5558_v24 = vadd.f32 %v5526_v13, %v5397_v29  ;;  %v4716_v38 = vmul.f32 %v9755_v33, %v4619_v45  ;;  %v15099_v36 = vmul.f32 %v10074_v62, %v15089_v47  ;;  %v15102_v0 = vmul.f32 %v10138_v26, %v15091_v59  ;;  %v5586_v37 = vld [vmem:[#allocation2 + $0x292] sm:$0xff]  ;;  %v15221_v58 = vld [vmem:[#allocation2 + $0x228] sm:$0xff]  ;;  %v5771_v26 = vpop.permute.xlu0 %5770  ;;  %5862 = vst.msk [vmem:[#allocation3 + $0x69] sm:$0xff] %vm5854_vm9, %v5773_v10 }
 0x3e6   : > { %v5069_v12 = vadd.f32 %v5037_v3, %v4908_v2  ;;  %v10011_v9 = vunpack.c.h.bf16 %v15069_v32  ;;  %v4587_v14 = vadd.f32 %v4555_v17, %v4394_v43  ;;  %v4877_v53 = vmul.f32 %v9819_v23, %v14842_v34  ;;  %v15127_v32 = vld [vmem:[%s11639_s23 + $0x260] sm:$0xff]   ;;  %5861 = vst.msk [vmem:[#allocation3 + $0x61] sm:$0xff] %vm5854_vm9, %v5771_v26  ;;  %v15287_v26 = vld [vmem:[%s11641_s29 + $0x248] sm:$0xff]  }
 0x3e7   : > { %v5719_v51 = vadd.f32 %v5687_v6, %v5558_v24  ;;  %v15115_v27 = vmul.f32 %v9883_v52, %v14784_v11  ;;  %v15123_v55 = vmul.f32 %v9947_v22, %v5102_v63  ;;  %v10075_v54 = vunpack.c.h.bf16 %v15073_v48  ;;  %v15133_v11 = vld [vmem:[#allocation2 + $0x28d] sm:$0xff] }
 0x3e8   : > { %v5230_v25 = vadd.f32 %v5198_v8, %v5069_v12  ;;  %v4748_v49 = vadd.f32 %v4716_v38, %v4587_v14  ;;  %v15131_v34 = vmul.f32 %v10011_v9, %v15104_v1  ;;  %v17468_v30 = vmov 0.0   ;;  %v15215_v6 = vld [vmem:[%s11639_s23 + $0x360] sm:$0xff]  }
 0x3e9   : > { %5808 = vrot.lane.b32.xlu1 %v5719_v51, %s11198_s28  ;;  %1009 = vst.msk [vmem:[#allocation3 + $0x59] sm:$0x1] %vm990_vm10, %v17468_v30  ;;  %991 = vst.msk [vmem:[#allocation3 + $0x18] sm:$0x1] %vm990_vm10, %v17468_v30  ;;  %v9058_v18 = vunpack.c.l.bf16 %v15108_v56  ;;  %v9122_v48 = vunpack.c.l.bf16 %v15111_v7  ;;  %v10139_v13 = vunpack.c.h.bf16 %v15077_v61  ;;  %v9186_v15 = vunpack.c.l.bf16 %v15118_v50  ;;  %v15228_v8 = vld [vmem:[%s11639_s23 + $0x3e0] sm:$0xff]  }
 0x3ea   : > { %992 = vst.msk [vmem:[#allocation3 + $0x30] sm:$0x1] %vm990_vm10, %v17468_v30  ;;  %993 = vst.msk [vmem:[#allocation3 + $0x48] sm:$0x1] %vm990_vm10, %v17468_v30  ;;  %v5392_v44 = vadd.f32 %v15087_v60, %v5230_v25  ;;  %v9250_v21 = vunpack.c.l.bf16 %v15121_v20  ;;  %v4909_v40 = vadd.f32 %v4877_v53, %v4748_v49  ;;  %v9314_v61 = vunpack.c.l.bf16 %v15127_v32  ;;  %v15232_v60 = vld [vmem:[#allocation2 + $0x282] sm:$0xff]  ;;  %v15236_v33 = vld [vmem:[%s11639_s23 + $0x460] sm:$0xff]  }
 0x3eb   : > { %994 = vst.msk [vmem:[#allocation3 + $0x60] sm:$0x1] %vm990_vm10, %v17468_v30  ;;  %995 = vst.msk [vmem:[#allocation3 + $0x78] sm:$0x1] %vm990_vm10, %v17468_v30  ;;  %v2787_v16 = vmul.f32 %v9058_v18, %v2691_v41  ;;  %v2948_v19 = vmul.f32 %v9122_v48, %v15200_v42  ;;  %v5522_v62 = vmul.f32 %v10075_v54, %v15133_v11  ;;  %v9378_v39 = vunpack.c.l.bf16 %v15204_v57  ;;  %v6857_v23 = vld [vmem:[#allocation3 + $0x4a] sm:$0xff] }
 0x3ec   : > { %996 = vst.msk [vmem:[#allocation3 + $0x90] sm:$0x1] %vm990_vm10, %v17468_v30  ;;  %997 = vst.msk [vmem:[#allocation3 + $0xa8] sm:$0x1] %vm990_vm10, %v17468_v30  ;;  %v5553_v3 = vadd.f32 %v15099_v36, %v5392_v44  ;;  %v3109_v31 = vmul.f32 %v9186_v15, %v15208_v5  ;;  %v5070_v46 = vadd.f32 %v15115_v27, %v4909_v40  ;;  %v9442_v35 = vunpack.c.l.bf16 %v15215_v6  ;;  %v3013_v12 = vld [vmem:[#allocation2 + $0x1d0] sm:$0xff] }
 0x3ed   : > { %998 = vst.msk [vmem:[#allocation3 + $0xc0] sm:$0x1] %vm990_vm10, %v17468_v30  ;;  %999 = vst.msk [vmem:[#allocation3 + $0xd8] sm:$0x1] %vm990_vm10, %v17468_v30  ;;  %v2980_v45 = vadd.f32 %v2948_v19, %v2787_v16  ;;  %v3270_v29 = vmul.f32 %v9250_v21, %v15211_v28  ;;  %v5683_v43 = vmul.f32 %v10139_v13, %v5586_v37  ;;  %v9506_v63 = vunpack.c.l.bf16 %v15228_v8  ;;  %v15249_v51 = vld [vmem:[#allocation2 + $0x1ca] sm:$0xff]  ;;  %v15270_v21 = vld [vmem:[%s11641_s29 + $0x48] sm:$0xff]  }
 0x3ee   : > { %1000 = vst.msk [vmem:[#allocation3 + $0xf0] sm:$0x1] %vm990_vm10, %v17468_v30  ;;  %1001 = vst.msk [vmem:[#allocation3 + $0x108] sm:$0x1] %vm990_vm10, %v17468_v30  ;;  %v5714_v2 = vadd.f32 %v15102_v0, %v5553_v3  ;;  %v3431_v52 = vmul.f32 %v9314_v61, %v15218_v4  ;;  %v3592_v24 = vmul.f32 %v9378_v39, %v15221_v58  ;;  %v9059_v22 = vunpack.c.h.bf16 %v15108_v56  ;;  %v15255_v54 = vld [vmem:[#allocation2 + $0x1cd] sm:$0xff]  ;;  %v15276_v16 = vld [vmem:[%s11641_s29 + $0xc8] sm:$0xff]  }
 0x3ef   : > { %1002 = vst.msk [vmem:[#allocation3 + $0x120] sm:$0x1] %vm990_vm10, %v17468_v30  ;;  %1003 = vst.msk [vmem:[#allocation3 + $0x138] sm:$0x1] %vm990_vm10, %v17468_v30  ;;  %v5231_v17 = vadd.f32 %v15123_v55, %v5070_v46  ;;  %v3141_v38 = vadd.f32 %v3109_v31, %v2980_v45  ;;  %v3754_v9 = vmul.f32 %v9442_v35, %v15232_v60  ;;  %v9570_v0 = vunpack.c.l.bf16 %v15236_v33  ;;  %v15257_v41 = vld [vmem:[#allocation2 + $0x22a] sm:$0xff]  ;;  %v15279_v19 = vld [vmem:[%s11641_s29 + $0x148] sm:$0xff]  }
 0x3f0   : > { %1004 = vst.msk [vmem:[#allocation3 + $0x150] sm:$0x1] %vm990_vm10, %v17468_v30  ;;  %1005 = vst.msk [vmem:[#allocation3 + $0x168] sm:$0x1] %vm990_vm10, %v17468_v30  ;;  %5798 = vrot.lane.b32.xlu0 %v5714_v2, %s11198_s28  ;;  %v6858_v36 = vld [vmem:[#allocation3 + $0x52] sm:$0xff]  ;;  %v9123_v14 = vunpack.c.h.bf16 %v15111_v7  ;;  %v9187_v53 = vunpack.c.h.bf16 %v15118_v50  ;;  %v2788_v56 = vmul.f32 %v9059_v22, %v15249_v51  ;;  %v9251_v7 = vunpack.c.h.bf16 %v15121_v20  ;;  %v4295_v39 = vld [vmem:[#allocation2 + $0x120] sm:$0xff] }
 0x3f1   : > { %1006 = vst.msk [vmem:[#allocation3 + $0x180] sm:$0x1] %vm990_vm10, %v17468_v30  ;;  %1007 = vst.msk [vmem:[#allocation3 + $0x29] sm:$0x1] %vm990_vm10, %v17468_v30  ;;  %v5393_v27 = vadd.f32 %v15131_v34, %v5231_v17  ;;  %v6888_v25 = vpack.c.bf16 %v6858_v36, %v6857_v23  ;;  %v3302_v55 = vadd.f32 %v3270_v29, %v3141_v38  ;;  %v15261_v50 = vld [vmem:[#allocation2 + $0x22d] sm:$0xff]  ;;  %v9315_v34 = vunpack.c.h.bf16 %v15127_v32  ;;  %v15282_v61 = vld [vmem:[%s11641_s29 + $0x1c8] sm:$0xff]  }
 0x3f2   : > { %1008 = vst.msk [vmem:[#allocation3 + $0x41] sm:$0x1] %vm990_vm10, %v17468_v30  ;;  %1010 = vst.msk [vmem:[#allocation3 + $0x71] sm:$0x1] %vm990_vm10, %v17468_v30  ;;  %v2949_v49 = vmul.f32 %v9123_v14, %v15255_v54  ;;  %v3915_v44 = vmul.f32 %v9506_v63, %v15089_v47  ;;  %v15266_v13 = vld [vmem:[#allocation2 + $0x230] sm:$0xff]  ;;  %v9379_v15 = vunpack.c.h.bf16 %v15204_v57  ;;  %v4076_v20 = vmul.f32 %v9570_v0, %v15104_v1  ;;  %v4455_v29 = vld [vmem:[#allocation2 + $0x125] sm:$0xff] }
 0x3f3   : > { %1011 = vst.msk [vmem:[#allocation3 + $0x89] sm:$0x1] %vm990_vm10, %v17468_v30  ;;  %1012 = vst.msk [vmem:[#allocation3 + $0xa1] sm:$0x1] %vm990_vm10, %v17468_v30  ;;  %v5554_v18 = vadd.f32 %v5522_v62, %v5393_v27  ;;  %v3463_v48 = vadd.f32 %v3431_v52, %v3302_v55  ;;  %v3271_v37 = vmul.f32 %v9251_v7, %v15257_v41  ;;  %v9443_v32 = vunpack.c.h.bf16 %v15215_v6  ;;  %v4616_v35 = vld [vmem:[#allocation2 + $0x12a] sm:$0xff]  ;;  %v15305_v22 = vld [vmem:[#allocation2 + $0x1c0] sm:$0xff]  ;;  %v2566_v7 = vpop.permute.xlu0 %2565 }
 0x3f4   : > { %1013 = vst.msk [vmem:[#allocation3 + $0xb9] sm:$0x1] %vm990_vm10, %v17468_v30  ;;  %1014 = vst.msk [vmem:[#allocation3 + $0xd1] sm:$0x1] %vm990_vm10, %v17468_v30  ;;  %v2981_v40 = vadd.f32 %v2949_v49, %v2788_v56  ;;  %v3432_v31 = vmul.f32 %v9315_v34, %v15261_v50  ;;  %v9507_v57 = vunpack.c.h.bf16 %v15228_v8  ;;  %v3593_v6 = vmul.f32 %v9379_v15, %v15266_v13  ;;  %v15313_v27 = vld [vmem:[%s11641_s29 + $0x448] sm:$0xff]   ;;  %v5261_v49 = vld [vmem:[#allocation2 + $0x260] sm:$0xff]  ;;  %v2568_v34 = vpop.permute.xlu1 %2567 }
 0x3f5   : > { %1015 = vst.msk [vmem:[#allocation3 + $0xe9] sm:$0x1] %vm990_vm10, %v17468_v30  ;;  %1016 = vst.msk [vmem:[#allocation3 + $0x101] sm:$0x1] %vm990_vm10, %v17468_v30  ;;  %v5715_v3 = vadd.f32 %v5683_v43, %v5554_v18  ;;  %v3624_v62 = vadd.f32 %v3592_v24, %v3463_v48  ;;  %v9571_v46 = vunpack.c.h.bf16 %v15236_v33  ;;  %v9622_v45 = vunpack.c.l.bf16 %v15270_v21  ;;  %v15293_v43 = vld [vmem:[#allocation2 + $0x290] sm:$0xff]  ;;  %v15299_v24 = vld [vmem:[%s11641_s29 + $0x2c8] sm:$0xff]  }
 0x3f6   : > { %1017 = vst.msk [vmem:[#allocation3 + $0x119] sm:$0x1] %vm990_vm10, %v17468_v30  ;;  %1018 = vst.msk [vmem:[#allocation3 + $0x131] sm:$0x1] %vm990_vm10, %v17468_v30  ;;  %v9686_v8 = vunpack.c.l.bf16 %v15276_v16  ;;  %v9750_v23 = vunpack.c.l.bf16 %v15279_v19  ;;  %v9814_v52 = vunpack.c.l.bf16 %v15282_v61  ;;  %v15302_v33 = vld [vmem:[%s11641_s29 + $0x348] sm:$0xff]   ;;  %v3755_v38 = vmul.f32 %v9443_v32, %v15091_v59  ;;  %v4296_v15 = vld [vmem:[#allocation2 + $0x128] sm:$0xff] }
 0x3f7   : > { %1019 = vst.msk [vmem:[#allocation3 + $0x149] sm:$0x1] %vm990_vm10, %v17468_v30  ;;  %1020 = vst.msk [vmem:[#allocation3 + $0x161] sm:$0x1] %vm990_vm10, %v17468_v30  ;;  %5800 = vrot.lane.b32.xlu1 %v5715_v3, %s11198_s28  ;;  %v3786_v2 = vadd.f32 %v3754_v9, %v3624_v62  ;;  %v4391_v63 = vmul.f32 %v9622_v45, %v4295_v39  ;;  %v3916_v9 = vmul.f32 %v9507_v57, %v15133_v11  ;;  %v4456_v62 = vld [vmem:[#allocation2 + $0x12d] sm:$0xff] }
 0x3f8   : > { %1021 = vst.msk [vmem:[#allocation3 + $0x179] sm:$0x1] %vm990_vm10, %v17468_v30  ;;  %1022 = vst.msk [vmem:[#allocation3 + $0x191] sm:$0x1] %vm990_vm10, %v17468_v30  ;;  %v3110_v30 = vmul.f32 %v9187_v53, %v3013_v12  ;;  %v9878_v12 = vunpack.c.l.bf16 %v15287_v26  ;;  %v4552_v0 = vmul.f32 %v9686_v8, %v4455_v29  ;;  %v4713_v14 = vmul.f32 %v9750_v23, %v4616_v35  ;;  %v15310_v53 = vld [vmem:[%s11641_s29 + $0x3c8] sm:$0xff]   ;;  %v2570_v35 = vpop.permute.xlu0 %2569 }
 0x3f9   : > { %6904 = vst.msk [vmem:[#allocation4 + $0x18] sm:$0xff] %vm662_vm0, %v6888_v25  ;;  %17469 = vst [vmem:[#allocation60_spill] sm:$0xff] %v15305_v22  ;;  %v3947_v36 = vadd.f32 %v3915_v44, %v3786_v2  ;;  %v4077_v55 = vmul.f32 %v9571_v46, %v15293_v43  ;;  %v9942_v56 = vunpack.c.l.bf16 %v15299_v24  ;;  %v4874_v11 = vmul.f32 %v9814_v52, %v15305_v22  ;;  %v2572_v2 = vpop.permute.xlu1 %2571  ;;  %v5100_v52 = vld [vmem:[#allocation2 + $0x1d2] sm:$0xff] }
 0x3fa   : > { %v3142_v10 = vadd.f32 %v3110_v30, %v2981_v40  ;;  %v10006_v30 = vunpack.c.l.bf16 %v15302_v33  ;;  %v4584_v48 = vadd.f32 %v4552_v0, %v4391_v63  ;;  %v5035_v44 = vmul.f32 %v9878_v12, %v15200_v42  ;;  %2648 = vst.msk [vmem:[#allocation3 + $0xc1] sm:$0xff] %vm2633_vm7, %v2566_v7  ;;  %2649 = vst.msk [vmem:[#allocation3 + $0xc9] sm:$0xff] %vm2633_vm7, %v2568_v34  ;;  %v15327_v42 = vld [vmem:[#allocation2 + $0x265] sm:$0xff]  ;;  %v6855_v63 = vld [vmem:[#allocation3 + $0x32] sm:$0xff] }
 0x3fb   : > { %v4108_v18 = vadd.f32 %v4076_v20, %v3947_v36  ;;  %v10134_v32 = vunpack.c.l.bf16 %v15313_v27  ;;  %v9623_v3 = vunpack.c.h.bf16 %v15270_v21  ;;  %v9687_v39 = vunpack.c.h.bf16 %v15276_v16  ;;  %2650 = vst.msk [vmem:[#allocation3 + $0xd9] sm:$0xff] %vm2633_vm7, %v2570_v35  ;;  %2651 = vst.msk [vmem:[#allocation3 + $0xe1] sm:$0xff] %vm2633_vm7, %v2572_v2  ;;  %v6856_v12 = vld [vmem:[#allocation3 + $0x3a] sm:$0xff]  ;;  %v15341_v36 = vld [vmem:[%s11639_s23 + $0x58] sm:$0xff]  }
 0x3fc   : > { %v3303_v17 = vadd.f32 %v3271_v37, %v3142_v10  ;;  %v10070_v37 = vunpack.c.l.bf16 %v15310_v53  ;;  %v4745_v20 = vadd.f32 %v4713_v14, %v4584_v48  ;;  %v5358_v57 = vmul.f32 %v10006_v30, %v5261_v49  ;;  %v4617_v10 = vld [vmem:[#allocation2 + $0x132] sm:$0xff]  ;;  %v2689_v34 = vld [vmem:[#allocation2 + $0x1a2] sm:$0xff] }
 0x3fd   : > { %4196 = vrot.lane.b32.xlu0 %v4108_v18, %s11197_s5  ;;  %v4392_v45 = vmul.f32 %v9623_v3, %v4296_v15  ;;  %v9751_v29 = vunpack.c.h.bf16 %v15279_v19  ;;  %v9815_v21 = vunpack.c.h.bf16 %v15282_v61  ;;  %v4553_v23 = vmul.f32 %v9687_v39, %v4456_v62  ;;  %v2849_v18 = vld [vmem:[#allocation2 + $0x1a5] sm:$0xff] }
 0x3fe   : > { %v3464_v25 = vadd.f32 %v3432_v31, %v3303_v17  ;;  %v5196_v31 = vmul.f32 %v9942_v56, %v15249_v51  ;;  %v4906_v8 = vadd.f32 %v4874_v11, %v4745_v20  ;;  %v9879_v51 = vunpack.c.h.bf16 %v15287_v26  ;;  %v15348_v56 = vld [vmem:[%s11639_s23 + $0xd8] sm:$0xff]   ;;  %v5783_v11 = vpop.permute.xlu0 %5782 }
 0x3ff   : > { %v9943_v16 = vunpack.c.h.bf16 %v15299_v24  ;;  %v5519_v19 = vmul.f32 %v10070_v37, %v15327_v42  ;;  %v4714_v61 = vmul.f32 %v9751_v29, %v4617_v10  ;;  %v4585_v24 = vadd.f32 %v4553_v23, %v4392_v45  ;;  %v15356_v48 = vld [vmem:[%s11639_s23 + $0x1d8] sm:$0xff]   ;;  %5867 = vst.msk [vmem:[#allocation3 + $0xa9] sm:$0xff] %vm5854_vm9, %v5783_v11  ;;  %v5584_v45 = vld [vmem:[#allocation2 + $0x272] sm:$0xff] }
 0x400   : > { %v3625_v40 = vadd.f32 %v3593_v6, %v3464_v25  ;;  %v15330_v6 = vld [vmem:[#allocation2 + $0x26a] sm:$0xff]  ;;  %v5067_v26 = vadd.f32 %v5035_v44, %v4906_v8  ;;  %v4875_v14 = vmul.f32 %v9815_v21, %v15208_v5  ;;  %v5036_v49 = vmul.f32 %v9879_v51, %v15255_v54  ;;  %v5785_v5 = vpop.permute.xlu1 %5784  ;;  %v15378_v21 = vld [vmem:[#allocation2 + $0x202] sm:$0xff] }
 0x401   : > { %17470 = vst [vmem:[#allocation46_spill] sm:$0xff] %v15330_v6  ;;  %v5680_v0 = vmul.f32 %v10134_v32, %v15330_v6  ;;  %v15345_v25 = vld [vmem:[#allocation2 + $0x268] sm:$0xff]  ;;  %v5197_v30 = vmul.f32 %v9943_v16, %v5100_v52  ;;  %v10071_v7 = vunpack.c.h.bf16 %v15310_v53  ;;  %v4746_v15 = vadd.f32 %v4714_v61, %v4585_v24  ;;  %5868 = vst.msk [vmem:[#allocation3 + $0xb1] sm:$0xff] %vm5854_vm9, %v5785_v5 }
 0x402   : > { %v3787_v46 = vadd.f32 %v3755_v38, %v3625_v40  ;;  %v10007_v38 = vunpack.c.h.bf16 %v15302_v33  ;;  %v5228_v44 = vadd.f32 %v5196_v31, %v5067_v26  ;;  %v6887_v40 = vpack.c.bf16 %v6856_v12, %v6855_v63  ;;  %v3010_v32 = vld [vmem:[#allocation2 + $0x1a8] sm:$0xff]  ;;  %v4181_v16 = vpop.permute.xlu0 %4180 }
 0x403   : > { %v9054_v37 = vunpack.c.l.bf16 %v15341_v36  ;;  %v15360_v3 = vld [vmem:[%s11639_s23 + $0x258] sm:$0xff]   ;;  %v10135_v62 = vunpack.c.h.bf16 %v15313_v27  ;;  %v9118_v20 = vunpack.c.l.bf16 %v15348_v56  ;;  %v9246_v35 = vunpack.c.l.bf16 %v15356_v48  ;;  %4261 = vst.msk [vmem:[#allocation3 + $0xd9] sm:$0xff] %vm4244_vm8, %v4181_v16  ;;  %v15422_v16 = vld [vmem:[%s11633_s24 + $0x68] sm:$0xff]  }
 0x404   : > { %v3948_v17 = vadd.f32 %v3916_v9, %v3787_v46  ;;  %v15351_v9 = vld [vmem:[%s11639_s23 + $0x158] sm:$0xff]   ;;  %v5359_v54 = vmul.f32 %v10007_v38, %v15345_v25  ;;  %v5390_v10 = vadd.f32 %v5358_v57, %v5228_v44  ;;  %v4907_v46 = vadd.f32 %v4875_v14, %v4746_v15  ;;  %6903 = vst.msk [vmem:[#allocation4 + $0x8] sm:$0xff] %vm662_vm0, %v6887_v40 }
 0x405   : > { %v15369_v53 = vld [vmem:[#allocation2 + $0x26d] sm:$0xff]  ;;  %v9182_v31 = vunpack.c.l.bf16 %v15351_v9  ;;  %v2785_v29 = vmul.f32 %v9054_v37, %v2689_v34  ;;  %v15381_v2 = vld [vmem:[#allocation2 + $0x205] sm:$0xff]  ;;  %v2946_v27 = vmul.f32 %v9118_v20, %v2849_v18  ;;  %v9310_v23 = vunpack.c.l.bf16 %v15360_v3 }
 0x406   : > { %v4109_v33 = vadd.f32 %v4077_v55, %v3948_v17  ;;  %v15363_v55 = vld [vmem:[%s11639_s23 + $0x2d8] sm:$0xff]   ;;  %17471 = vst [vmem:[#allocation52_spill] sm:$0xff] %v15369_v53  ;;  %v4183_v17 = vpop.permute.xlu1 %4182  ;;  %v5551_v61 = vadd.f32 %v5519_v19, %v5390_v10  ;;  %v5068_v38 = vadd.f32 %v5036_v49, %v4907_v46  ;;  %v5520_v63 = vmul.f32 %v10071_v7, %v15369_v53  ;;  %v5779_v20 = vpop.permute.xlu0 %5778 }
 0x407   : > { %v15375_v39 = vld [vmem:[%s11639_s23 + $0x358] sm:$0xff]   ;;  %v3107_v8 = vmul.f32 %v9182_v31, %v3010_v32  ;;  %v9374_v57 = vunpack.c.l.bf16 %v15363_v55  ;;  %4262 = vst.msk [vmem:[#allocation3 + $0xe1] sm:$0xff] %vm4244_vm8, %v4183_v17  ;;  %v5681_v24 = vmul.f32 %v10135_v62, %v5584_v45  ;;  %v2978_v14 = vadd.f32 %v2946_v27, %v2785_v29  ;;  %v3011_v62 = vld [vmem:[#allocation2 + $0x1b0] sm:$0xff] }
 0x408   : > { %4198 = vrot.lane.b32.xlu1 %v4109_v33, %s11197_s5  ;;  %v15384_v51 = vld [vmem:[#allocation2 + $0x208] sm:$0xff]  ;;  %v9438_v26 = vunpack.c.l.bf16 %v15375_v39  ;;  %v3268_v33 = vmul.f32 %v9246_v35, %v15378_v21  ;;  %v3429_v34 = vmul.f32 %v9310_v23, %v15381_v2  ;;  %v5712_v19 = vadd.f32 %v5680_v0, %v5551_v61  ;;  %5865 = vst.msk [vmem:[#allocation3 + $0x91] sm:$0xff] %vm5854_vm9, %v5779_v20  ;;  %v15417_v27 = vld [vmem:[#allocation2 + $0x210] sm:$0xff] }
 0x409   : > { %v15388_v52 = vld [vmem:[%s11639_s23 + $0x3d8] sm:$0xff]   ;;  %v5229_v49 = vadd.f32 %v5197_v30, %v5068_v38  ;;  %v3590_v7 = vmul.f32 %v9374_v57, %v15384_v51  ;;  %v3139_v15 = vadd.f32 %v3107_v8, %v2978_v14  ;;  %v9055_v37 = vunpack.c.h.bf16 %v15341_v36  ;;  %17474 = vst [vmem:[#allocation56_spill] sm:$0xff] %v15417_v27  ;;  %v15431_v14 = vld [vmem:[%s11633_s24 + $0x168] sm:$0xff]  }
 0x40a   : > { %v15391_v12 = vld [vmem:[#allocation2 + $0x262] sm:$0xff]  ;;  %v9502_v11 = vunpack.c.l.bf16 %v15388_v52  ;;  %v2690_v5 = vld [vmem:[#allocation2 + $0x1aa] sm:$0xff]  ;;  %v9119_v32 = vunpack.c.h.bf16 %v15348_v56  ;;  %v5781_v31 = vpop.permute.xlu1 %5780  ;;  %5794 = vrot.lane.b32.xlu0 %v5712_v19, %s11198_s28  ;;  %v9183_v10 = vunpack.c.h.bf16 %v15351_v9  ;;  %v9247_v45 = vunpack.c.h.bf16 %v15356_v48 }
 0x40b   : > { %v15399_v18 = vld [vmem:[%s11639_s23 + $0x458] sm:$0xff]   ;;  %v3752_v40 = vmul.f32 %v9438_v26, %v15391_v12  ;;  %v5391_v0 = vadd.f32 %v5359_v54, %v5229_v49  ;;  %5866 = vst.msk [vmem:[#allocation3 + $0x99] sm:$0xff] %vm5854_vm9, %v5781_v31  ;;  %v3300_v36 = vadd.f32 %v3268_v33, %v3139_v15  ;;  %v2786_v56 = vmul.f32 %v9055_v37, %v2690_v5  ;;  %v6920_v9 = vld [vmem:[#allocation4 + $0x8] sm:$0xff] }
 0x40c   : > { %v2850_v44 = vld [vmem:[#allocation2 + $0x1ad] sm:$0xff]  ;;  %v9566_v30 = vunpack.c.l.bf16 %v15399_v18  ;;  %v9311_v54 = vunpack.c.h.bf16 %v15360_v3  ;;  %v3913_v23 = vmul.f32 %v9502_v11, %v15327_v42  ;;  %v3108_v48 = vmul.f32 %v9183_v10, %v3011_v62  ;;  %8407 = vmatprep.mubr.msk.bf16.mxu0 %vm662_vm0, %v6920_v9  ;;  %v15428_v26 = vld [vmem:[%s11633_s24 + $0xe8] sm:$0xff]   ;;  %v1082_v11 = vld [vmem:[#allocation2 + $0x224] sm:$0xff] }
 0x40d   : > { %v15409_v46 = vld [vmem:[#allocation2 + $0x20a] sm:$0xff]  ;;  %v2947_v29 = vmul.f32 %v9119_v32, %v2850_v44  ;;  %v5552_v8 = vadd.f32 %v5520_v63, %v5391_v0  ;;  %v9375_v57 = vunpack.c.h.bf16 %v15363_v55  ;;  %v3461_v17 = vadd.f32 %v3429_v34, %v3300_v36  ;;  %v4177_v63 = vpop.permute.xlu0 %4176  ;;  %v15437_v5 = vld [vmem:[%s11633_s24 + $0x1e8] sm:$0xff]  }
 0x40e   : > { %17472 = vst [vmem:[#allocation58_spill] sm:$0xff] %v15409_v46  ;;  %v15414_v35 = vld [vmem:[#allocation2 + $0x20d] sm:$0xff]  ;;  %v3269_v38 = vmul.f32 %v9247_v45, %v15409_v46  ;;  %v9439_v3 = vunpack.c.h.bf16 %v15375_v39  ;;  %v4179_v33 = vpop.permute.xlu1 %4178  ;;  %v4074_v19 = vmul.f32 %v9566_v30, %v15345_v25  ;;  %4259 = vst.msk [vmem:[#allocation3 + $0xc1] sm:$0xff] %vm4244_vm8, %v4177_v63  ;;  %v9503_v15 = vunpack.c.h.bf16 %v15388_v52  ;;  %v15444_v32 = vld [vmem:[%s11633_s24 + $0x268] sm:$0xff]  }
 0x40f   : > { %17473 = vst [vmem:[#allocation65_spill] sm:$0xff] %v15414_v35  ;;  %v2979_v61 = vadd.f32 %v2947_v29, %v2786_v56  ;;  %v5713_v55 = vadd.f32 %v5681_v24, %v5552_v8  ;;  %v3430_v49 = vmul.f32 %v9311_v54, %v15414_v35  ;;  %v3591_v34 = vmul.f32 %v9375_v57, %v15417_v27  ;;  %v1403_v37 = vld [vmem:[#allocation2 + $0x226] sm:$0xff]  ;;  %v15447_v62 = vld [vmem:[%s11633_s24 + $0x2e8] sm:$0xff]   ;;  %v15457_v45 = vld [vmem:[#allocation2 + $0x270] sm:$0xff] }
 0x410   : > { %4260 = vst.msk [vmem:[#allocation3 + $0xc9] sm:$0xff] %vm4244_vm8, %v4179_v33  ;;  %v3622_v39 = vadd.f32 %v3590_v7, %v3461_v17  ;;  %v8486_v24 = vunpack.c.l.bf16 %v15422_v16  ;;  %v3753_v20 = vmul.f32 %v9439_v3, %v15330_v6  ;;  %v9567_v31 = vunpack.c.h.bf16 %v15399_v18  ;;  %v15455_v30 = vld [vmem:[%s11633_s24 + $0x368] sm:$0xff]   ;;  %17475 = vst [vmem:[#allocation66_spill] sm:$0xff] %v15457_v45  ;;  %v15459_v56 = vld [vmem:[#allocation2 + $0x244] sm:$0xff] }
 0x411   : > { %v3140_v44 = vadd.f32 %v3108_v48, %v2979_v61  ;;  %5796 = vrot.lane.b32.xlu1 %v5713_v55, %s11198_s28  ;;  %v8550_v0 = vunpack.c.l.bf16 %v15428_v26  ;;  %v8614_v7 = vunpack.c.l.bf16 %v15431_v14  ;;  %v8678_v29 = vunpack.c.l.bf16 %v15437_v5  ;;  %v15462_v54 = vld [vmem:[#allocation2 + $0x245] sm:$0xff]  ;;  %v2574_v9 = vpop.permute.xlu0 %2573  ;;  %v15470_v61 = vld [vmem:[%s11633_s24 + $0x3e8] sm:$0xff]  }
 0x412   : > { %v3784_v52 = vadd.f32 %v3752_v40, %v3622_v39  ;;  %v1178_v36 = vmul.f32 %v8486_v24, %v1082_v11  ;;  %v2576_v18 = vpop.permute.xlu1 %2575  ;;  %v8742_v57 = vunpack.c.l.bf16 %v15444_v32  ;;  %v15466_v17 = vld [vmem:[#allocation2 + $0x246] sm:$0xff]  ;;  %v8806_v40 = vunpack.c.l.bf16 %v15447_v62  ;;  %2652 = vst.msk [vmem:[#allocation3 + $0xf1] sm:$0xff] %vm2633_vm7, %v2574_v9 }
 0x413   : > { %v3301_v10 = vadd.f32 %v3269_v38, %v3140_v44  ;;  %v1339_v8 = vmul.f32 %v8550_v0, %v15218_v4  ;;  %v1500_v48 = vmul.f32 %v8614_v7, %v1403_v37  ;;  %2653 = vst.msk [vmem:[#allocation3 + $0xf9] sm:$0xff] %vm2633_vm7, %v2576_v18  ;;  %v3914_v63 = vmul.f32 %v9503_v15, %v15369_v53  ;;  %v15475_v33 = vld [vmem:[#allocation2 + $0x264] sm:$0xff]  ;;  %v15482_v37 = vld [vmem:[%s11633_s24 + $0x468] sm:$0xff]   ;;  %v1083_v15 = vld [vmem:[#allocation2 + $0x22c] sm:$0xff] }
 0x414   : > { %v3945_v38 = vadd.f32 %v3913_v23, %v3784_v52  ;;  %v8870_v55 = vunpack.c.l.bf16 %v15455_v30  ;;  %v4075_v11 = vmul.f32 %v9567_v31, %v15457_v45  ;;  %v1661_v44 = vmul.f32 %v8678_v29, %v15459_v56  ;;  %v1404_v18 = vld [vmem:[#allocation2 + $0x22e] sm:$0xff] }
 0x415   : > { %v3462_v3 = vadd.f32 %v3430_v49, %v3301_v10  ;;  %v1371_v39 = vadd.f32 %v1339_v8, %v1178_v36  ;;  %v1822_v24 = vmul.f32 %v8742_v57, %v15462_v54  ;;  %v1983_v23 = vmul.f32 %v8806_v40, %v15466_v17  ;;  %v15486_v52 = vpop.permute.xlu0 %5802  ;;  %v15496_v57 = vld [vmem:[#allocation2 + $0x24c] sm:$0xff] }
 0x416   : > { %v4106_v0 = vadd.f32 %v4074_v19, %v3945_v38  ;;  %v8934_v49 = vunpack.c.l.bf16 %v15470_v61  ;;  %17476 = vst [vmem:[#allocation67_spill] sm:$0xff] %v15486_v52  ;;  %v15488_v10 = vpop.permute.xlu1 %5804  ;;  %v2145_v31 = vmul.f32 %v8870_v55, %v15475_v33  ;;  %v8487_v36 = vunpack.c.h.bf16 %v15422_v16  ;;  %v15499_v38 = vld [vmem:[#allocation2 + $0x266] sm:$0xff]  ;;  %v15505_v55 = vld [vmem:[#allocation2 + $0x24e] sm:$0xff] }
 0x417   : > { %v3623_v7 = vadd.f32 %v3591_v34, %v3462_v3  ;;  %17477 = vst [vmem:[#allocation71_spill] sm:$0xff] %v15488_v10  ;;  %v1532_v9 = vadd.f32 %v1500_v48, %v1371_v39  ;;  %v8551_v29 = vunpack.c.h.bf16 %v15428_v26  ;;  %v8998_v34 = vunpack.c.l.bf16 %v15482_v37  ;;  %v15502_v26 = vld [vmem:[#allocation2 + $0x24d] sm:$0xff] }
 0x418   : > { %4192 = vrot.lane.b32.xlu0 %v4106_v0, %s11197_s5  ;;  %v8615_v8 = vunpack.c.h.bf16 %v15431_v14  ;;  %v8679_v40 = vunpack.c.h.bf16 %v15437_v5  ;;  %v1179_v3 = vmul.f32 %v8487_v36, %v1083_v15  ;;  %v2306_v14 = vmul.f32 %v8934_v49, %v15327_v42  ;;  %v15513_v10 = vld [vmem:[#allocation2 + $0x26c] sm:$0xff] }
 0x419   : > { %v3785_v19 = vadd.f32 %v3753_v20, %v3623_v7  ;;  %v1693_v48 = vadd.f32 %v1661_v44, %v1532_v9  ;;  %v1340_v16 = vmul.f32 %v8551_v29, %v15261_v50  ;;  %v8743_v20 = vunpack.c.h.bf16 %v15444_v32  ;;  %v15510_v44 = vld [vmem:[%s11639_s23 + $0x78] sm:$0xff]   ;;  %v2578_v7 = vpop.permute.xlu0 %2577 }
 0x41a   : > { %v1501_v0 = vmul.f32 %v8615_v8, %v1404_v18  ;;  %v8807_v5 = vunpack.c.h.bf16 %v15447_v62  ;;  %v2580_v15 = vpop.permute.xlu1 %2579  ;;  %v1662_v29 = vmul.f32 %v8679_v40, %v15496_v57  ;;  %v8871_v32 = vunpack.c.h.bf16 %v15455_v30  ;;  %v15520_v49 = vld [vmem:[%s11639_s23 + $0x178] sm:$0xff]   ;;  %2654 = vst.msk [vmem:[#allocation3 + $0x109] sm:$0xff] %vm2633_vm7, %v2578_v7 }
 0x41b   : > { %v3946_v39 = vadd.f32 %v3914_v63, %v3785_v19  ;;  %v1854_v9 = vadd.f32 %v1822_v24, %v1693_v48  ;;  %v1372_v36 = vadd.f32 %v1340_v16, %v1179_v3  ;;  %v15517_v63 = vld [vmem:[%s11639_s23 + $0xf8] sm:$0xff]   ;;  %2655 = vst.msk [vmem:[#allocation3 + $0x111] sm:$0xff] %vm2633_vm7, %v2580_v15  ;;  %v2467_v24 = vmul.f32 %v8998_v34, %v15499_v38 }
 0x41c   : > { %v1823_v18 = vmul.f32 %v8743_v20, %v15502_v26  ;;  %v1984_v19 = vmul.f32 %v8807_v5, %v15505_v55  ;;  %v15528_v8 = vld [vmem:[%s11639_s23 + $0x1f8] sm:$0xff]   ;;  %v8935_v48 = vunpack.c.h.bf16 %v15470_v61  ;;  %v9070_v3 = vunpack.c.l.bf16 %v15510_v44 }
 0x41d   : > { %v4107_v62 = vadd.f32 %v4075_v11, %v3946_v39  ;;  %v2015_v40 = vadd.f32 %v1983_v23, %v1854_v9  ;;  %v1533_v30 = vadd.f32 %v1501_v0, %v1372_v36  ;;  %v15533_v16 = vld [vmem:[%s11639_s23 + $0x278] sm:$0xff]   ;;  %v2146_v11 = vmul.f32 %v8871_v32, %v15513_v10  ;;  %v5791_v61 = vpop.permute.xlu0 %5790 }
 0x41e   : > { %v15536_v7 = vld [vmem:[%s11639_s23 + $0x2f8] sm:$0xff]   ;;  %v8999_v34 = vunpack.c.h.bf16 %v15482_v37  ;;  %v9134_v20 = vunpack.c.l.bf16 %v15517_v63  ;;  %v9198_v23 = vunpack.c.l.bf16 %v15520_v49  ;;  %v5793_v0 = vpop.permute.xlu1 %5792  ;;  %v2793_v36 = vmul.f32 %v9070_v3, %v15211_v28  ;;  %5871 = vst.msk [vmem:[#allocation3 + $0xd9] sm:$0xff] %vm5854_vm9, %v5791_v61 }
 0x41f   : > { %4194 = vrot.lane.b32.xlu1 %v4107_v62, %s11197_s5  ;;  %v15544_v39 = vld [vmem:[%s11639_s23 + $0x378] sm:$0xff]   ;;  %v2177_v5 = vadd.f32 %v2145_v31, %v2015_v40  ;;  %v1694_v15 = vadd.f32 %v1662_v29, %v1533_v30  ;;  %v9262_v32 = vunpack.c.l.bf16 %v15528_v8  ;;  %5872 = vst.msk [vmem:[#allocation3 + $0xe1] sm:$0xff] %vm5854_vm9, %v5793_v0  ;;  %v9326_v31 = vunpack.c.l.bf16 %v15533_v16 }
 0x420   : > { %v15546_v9 = vld [vmem:[#allocation2 + $0x26e] sm:$0xff]  ;;  %v2954_v37 = vmul.f32 %v9134_v20, %v15218_v4  ;;  %v3115_v62 = vmul.f32 %v9198_v23, %v15221_v58  ;;  %v9390_v29 = vunpack.c.l.bf16 %v15536_v7  ;;  %v2307_v3 = vmul.f32 %v8935_v48, %v15369_v53  ;;  %v3663_v61 = vld [vmem:[#allocation2 + $0x2e2] sm:$0xff] }
 0x421   : > { %17478 = vst [vmem:[#allocation62_spill] sm:$0xff] %v15546_v9  ;;  %v15557_v40 = vld [vmem:[%s11639_s23 + $0x3f8] sm:$0xff]   ;;  %v2338_v28 = vadd.f32 %v2306_v14, %v2177_v5  ;;  %v1855_v30 = vadd.f32 %v1823_v18, %v1694_v15  ;;  %v9454_v0 = vunpack.c.l.bf16 %v15544_v39  ;;  %v2468_v58 = vmul.f32 %v8999_v34, %v15546_v9  ;;  %v4189_v48 = vpop.permute.xlu0 %4188  ;;  %v5273_v9 = vld [vmem:[#allocation2 + $0x320] sm:$0xff] }
 0x422   : > { %v15562_v52 = vld [vmem:[%s11641_s29 + $0x78] sm:$0xff]   ;;  %v2986_v20 = vadd.f32 %v2954_v37, %v2793_v36  ;;  %v3276_v23 = vmul.f32 %v9262_v32, %v15232_v60  ;;  %v3437_v45 = vmul.f32 %v9326_v31, %v15089_v47  ;;  %v4191_v5 = vpop.permute.xlu1 %4190  ;;  %v3598_v46 = vmul.f32 %v9390_v29, %v15104_v1  ;;  %4265 = vst.msk [vmem:[#allocation3 + $0x109] sm:$0xff] %vm4244_vm8, %v4189_v48 }
 0x423   : > { %17479 = vst [vmem:[#allocation63_spill] sm:$0xff] %v15562_v52  ;;  %v15565_v4 = vld [vmem:[%s11641_s29 + $0xf8] sm:$0xff]   ;;  %v2499_v15 = vadd.f32 %v2467_v24, %v2338_v28  ;;  %v2016_v35 = vadd.f32 %v1984_v19, %v1855_v30  ;;  %v9518_v34 = vunpack.c.l.bf16 %v15557_v40  ;;  %4266 = vst.msk [vmem:[#allocation3 + $0x111] sm:$0xff] %vm4244_vm8, %v4191_v5  ;;  %v3760_v37 = vmul.f32 %v9454_v0, %v3663_v61  ;;  %v10830_v0 = vld [vmem:[#allocation2 + $0x1e0] sm:$0xff] }
 0x424   : > { %17480 = vst [vmem:[#allocation68_spill] sm:$0xff] %v15565_v4  ;;  %v15571_v27 = vld [vmem:[%s11639_s23 + $0x478] sm:$0xff]   ;;  %v3147_v32 = vadd.f32 %v3115_v62, %v2986_v20  ;;  %v9646_v6 = vunpack.c.l.bf16 %v15562_v52  ;;  %v9710_v24 = vunpack.c.l.bf16 %v15565_v4 }
 0x425   : > { %v15574_v14 = vld [vmem:[%s11641_s29 + $0x178] sm:$0xff]   ;;  %2589 = vrot.lane.b32.xlu0 %v2499_v15, %s11196_s20  ;;  %v2178_v1 = vadd.f32 %v2146_v11, %v2016_v35  ;;  %v9582_v29 = vunpack.c.l.bf16 %v15571_v27  ;;  %v5787_v52 = vpop.permute.xlu0 %5786 }
 0x426   : > { %17481 = vst [vmem:[#allocation69_spill] sm:$0xff] %v15574_v14  ;;  %v15577_v18 = vld [vmem:[%s11641_s29 + $0x1f8] sm:$0xff]   ;;  %v9774_v28 = vunpack.c.l.bf16 %v15574_v14  ;;  %v3308_v62 = vadd.f32 %v3276_v23, %v3147_v32  ;;  %v4403_v20 = vmul.f32 %v10830_v0, %v9646_v6  ;;  %v5789_v15 = vpop.permute.xlu1 %5788  ;;  %v15604_v23 = vld [vmem:[%s11633_s24 + $0x70] sm:$0xff]   ;;  %5869 = vst.msk [vmem:[#allocation3 + $0xc1] sm:$0xff] %vm5854_vm9, %v5787_v52 }
 0x427   : > { %17482 = vst [vmem:[#allocation70_spill] sm:$0xff] %v15577_v18  ;;  %v4467_v36 = vld [vmem:[#allocation2 + $0x1e5] sm:$0xff]  ;;  %v9838_v30 = vunpack.c.l.bf16 %v15577_v18  ;;  %v2339_v35 = vadd.f32 %v2307_v3, %v2178_v1  ;;  %5870 = vst.msk [vmem:[#allocation3 + $0xc9] sm:$0xff] %vm5854_vm9, %v5789_v15 }
 0x428   : > { %v15582_v60 = vld [vmem:[%s11641_s29 + $0x278] sm:$0xff]   ;;  %v4564_v5 = vmul.f32 %v9710_v24, %v4467_v36  ;;  %v3469_v6 = vadd.f32 %v3437_v45, %v3308_v62  ;;  %v10832_v3 = vld [vmem:[#allocation2 + $0x280] sm:$0xff] }
 0x429   : > { %v3824_v31 = vld [vmem:[#allocation2 + $0x2e5] sm:$0xff]  ;;  %v9902_v4 = vunpack.c.l.bf16 %v15582_v60  ;;  %v2500_v1 = vadd.f32 %v2468_v58, %v2339_v35 }
 0x42a   : > { %v15589_v19 = vld [vmem:[%s11641_s29 + $0x2f8] sm:$0xff]   ;;  %v3921_v11 = vmul.f32 %v9518_v34, %v3824_v31  ;;  %v4596_v36 = vadd.f32 %v4564_v5, %v4403_v20  ;;  %v4886_v34 = vmul.f32 %v10832_v3, %v9838_v30  ;;  %v15613_v31 = vld [vmem:[%s11633_s24 + $0xf0] sm:$0xff]   ;;  %v3630_v62 = vadd.f32 %v3598_v46, %v3469_v6  ;;  %v4187_v58 = vpop.permute.xlu1 %4186 }
 0x42b   : > { %v15596_v48 = vld [vmem:[%s11641_s29 + $0x378] sm:$0xff]   ;;  %v9966_v22 = vunpack.c.l.bf16 %v15589_v19  ;;  %v15616_v24 = vld [vmem:[%s11633_s24 + $0x170] sm:$0xff]   ;;  %v5047_v52 = vmul.f32 %v9902_v4, %v15089_v47  ;;  %v8490_v5 = vunpack.c.l.bf16 %v15604_v23  ;;  %2591 = vrot.lane.b32.xlu1 %v2500_v1, %s11196_s20  ;;  %4264 = vst.msk [vmem:[#allocation3 + $0xf9] sm:$0xff] %vm4244_vm8, %v4187_v58 }
 0x42c   : > { %17483 = vst [vmem:[#allocation72_spill] sm:$0xff] %v15596_v48  ;;  %v3985_v61 = vld [vmem:[#allocation2 + $0x2e8] sm:$0xff]  ;;  %v15621_v45 = vld [vmem:[%s11633_s24 + $0x1f0] sm:$0xff]   ;;  %v8618_v46 = vunpack.c.l.bf16 %v15616_v24 }
 0x42d   : > { %v10831_v14 = vld [vmem:[#allocation2 + $0x1ea] sm:$0xff]  ;;  %v5208_v0 = vmul.f32 %v9966_v22, %v15091_v59  ;;  %v15626_v15 = vld [vmem:[%s11633_s24 + $0x270] sm:$0xff]   ;;  %v8554_v22 = vunpack.c.l.bf16 %v15613_v31  ;;  %v1180_v6 = vmul.f32 %v8490_v5, %v15459_v56 }
 0x42e   : > { %v4725_v18 = vmul.f32 %v10831_v14, %v9774_v28  ;;  %v15601_v53 = vld [vmem:[%s11641_s29 + $0x3f8] sm:$0xff]   ;;  %v10030_v14 = vunpack.c.l.bf16 %v15596_v48  ;;  %v4082_v28 = vmul.f32 %v9582_v29, %v3985_v61  ;;  %v15629_v3 = vld [vmem:[%s11633_s24 + $0x2f0] sm:$0xff]   ;;  %v4185_v48 = vpop.permute.xlu0 %4184  ;;  %v3792_v29 = vadd.f32 %v3760_v37, %v3630_v62 }
 0x42f   : > { %17484 = vst [vmem:[#allocation77_spill] sm:$0xff] %v15601_v53  ;;  %v15610_v32 = vld [vmem:[%s11641_s29 + $0x478] sm:$0xff]   ;;  %v10094_v30 = vunpack.c.l.bf16 %v15601_v53  ;;  %4263 = vst.msk [vmem:[#allocation3 + $0xf1] sm:$0xff] %vm4244_vm8, %v4185_v48  ;;  %v8746_v1 = vunpack.c.l.bf16 %v15626_v15  ;;  %v15647_v53 = vld [vmem:[%s11633_s24 + $0x3f0] sm:$0xff]  }
 0x430   : > { %17485 = vst [vmem:[#allocation78_spill] sm:$0xff] %v15610_v32  ;;  %v4757_v20 = vadd.f32 %v4725_v18, %v4596_v36  ;;  %v5370_v47 = vmul.f32 %v10030_v14, %v5273_v9  ;;  %v5434_v4 = vld [vmem:[#allocation2 + $0x325] sm:$0xff]  ;;  %v10158_v59 = vunpack.c.l.bf16 %v15610_v32  ;;  %v8682_v9 = vunpack.c.l.bf16 %v15621_v45 }
 0x431   : > { %v15636_v18 = vld [vmem:[%s11633_s24 + $0x370] sm:$0xff]   ;;  %v5595_v35 = vld [vmem:[#allocation2 + $0x32a] sm:$0xff]  ;;  %v1341_v36 = vmul.f32 %v8554_v22, %v15462_v54  ;;  %v1502_v14 = vmul.f32 %v8618_v46, %v15466_v17  ;;  %v8810_v32 = vunpack.c.l.bf16 %v15629_v3  ;;  %v3953_v48 = vadd.f32 %v3921_v11, %v3792_v29 }
 0x432   : > { %v4918_v61 = vadd.f32 %v4886_v34, %v4757_v20  ;;  %v5531_v37 = vmul.f32 %v10094_v30, %v5434_v4  ;;  %v15649_v34 = vld [vmem:[#allocation2 + $0x284] sm:$0xff]  ;;  %v8874_v56 = vunpack.c.l.bf16 %v15636_v18  ;;  %v2582_v62 = vpop.permute.xlu0 %2581  ;;  %v2584_v20 = vpop.permute.xlu1 %2583  ;;  %v5692_v5 = vmul.f32 %v10158_v59, %v5595_v35 }
 0x433   : > { %v1373_v54 = vadd.f32 %v1341_v36, %v1180_v6  ;;  %v1663_v22 = vmul.f32 %v8682_v9, %v15475_v33  ;;  %v1824_v17 = vmul.f32 %v8746_v1, %v15327_v42  ;;  %v15655_v46 = vld [vmem:[%s11633_s24 + $0x470] sm:$0xff]   ;;  %2656 = vst.msk [vmem:[#allocation3 + $0x121] sm:$0xff] %vm2633_vm7, %v2582_v62  ;;  %2657 = vst.msk [vmem:[#allocation3 + $0x129] sm:$0xff] %vm2633_vm7, %v2584_v20  ;;  %v8938_v4 = vunpack.c.l.bf16 %v15647_v53 }
 0x434   : > { %v5079_v58 = vadd.f32 %v5047_v52, %v4918_v61  ;;  %v4114_v11 = vadd.f32 %v4082_v28, %v3953_v48  ;;  %v1985_v30 = vmul.f32 %v8810_v32, %v15499_v38  ;;  %v2147_v59 = vmul.f32 %v8874_v56, %v15649_v34  ;;  %v15662_v61 = vld [vmem:[#allocation2 + $0x285] sm:$0xff]  ;;  %v15677_v56 = vld [vmem:[#allocation2 + $0x28d] sm:$0xff] }
 0x435   : > { %v1534_v29 = vadd.f32 %v1502_v14, %v1373_v54  ;;  %v9071_v35 = vunpack.c.h.bf16 %v15510_v44  ;;  %v9135_v6 = vunpack.c.h.bf16 %v15517_v63  ;;  %v9002_v28 = vunpack.c.l.bf16 %v15655_v46  ;;  %v3180_v32 = vld [vmem:[#allocation2 + $0x28a] sm:$0xff]  ;;  %v15681_v62 = vld [vmem:[%s11639_s23 + $0x70] sm:$0xff]  }
 0x436   : > { %v5240_v52 = vadd.f32 %v5208_v0, %v5079_v58  ;;  %4208 = vrot.lane.b32.xlu0 %v4114_v11, %s11197_s5  ;;  %v9199_v0 = vunpack.c.h.bf16 %v15520_v49  ;;  %v9263_v36 = vunpack.c.h.bf16 %v15528_v8  ;;  %v15670_v1 = vld [vmem:[#allocation2 + $0x286] sm:$0xff]  ;;  %v9327_v48 = vunpack.c.h.bf16 %v15533_v16 }
 0x437   : > { %v1695_v14 = vadd.f32 %v1663_v22, %v1534_v29  ;;  %v2794_v44 = vmul.f32 %v9071_v35, %v15257_v41  ;;  %v2955_v63 = vmul.f32 %v9135_v6, %v15261_v50  ;;  %v9391_v8 = vunpack.c.h.bf16 %v15536_v7  ;;  %v3664_v50 = vld [vmem:[#allocation2 + $0x2ea] sm:$0xff]  ;;  %v15688_v22 = vld [vmem:[%s11639_s23 + $0x170] sm:$0xff]  }
 0x438   : > { %v5402_v9 = vadd.f32 %v5370_v47, %v5240_v52  ;;  %v2308_v47 = vmul.f32 %v8938_v4, %v15662_v61  ;;  %v3116_v49 = vmul.f32 %v9199_v0, %v15266_v13  ;;  %v3277_v41 = vmul.f32 %v9263_v36, %v3180_v32  ;;  %v15699_v6 = vld [vmem:[%s11639_s23 + $0x270] sm:$0xff]  }
 0x439   : > { %v1856_v20 = vadd.f32 %v1824_v17, %v1695_v14  ;;  %v2987_v54 = vadd.f32 %v2955_v63, %v2794_v44  ;;  %v9455_v16 = vunpack.c.h.bf16 %v15544_v39  ;;  %v2469_v13 = vmul.f32 %v9002_v28, %v15670_v1  ;;  %v15694_v17 = vld [vmem:[%s11639_s23 + $0x1f0] sm:$0xff]   ;;  %v3825_v28 = vld [vmem:[#allocation2 + $0x2ed] sm:$0xff] }
 0x43a   : > { %v5563_v58 = vadd.f32 %v5531_v37, %v5402_v9  ;;  %v15685_v37 = vld [vmem:[%s11639_s23 + $0xf0] sm:$0xff]   ;;  %v3438_v7 = vmul.f32 %v9327_v48, %v15677_v56  ;;  %v3599_v52 = vmul.f32 %v9391_v8, %v15293_v43  ;;  %v9519_v35 = vunpack.c.h.bf16 %v15557_v40  ;;  %v3986_v14 = vld [vmem:[#allocation2 + $0x2f0] sm:$0xff] }
 0x43b   : > { %v2017_v4 = vadd.f32 %v1985_v30, %v1856_v20  ;;  %v3148_v29 = vadd.f32 %v3116_v49, %v2987_v54  ;;  %v9066_v39 = vunpack.c.l.bf16 %v15681_v62  ;;  %v15702_v9 = vld [vmem:[%s11639_s23 + $0x2f0] sm:$0xff]   ;;  %v9583_v0 = vunpack.c.h.bf16 %v15571_v27 }
 0x43c   : > { %v5724_v11 = vadd.f32 %v5692_v5, %v5563_v58  ;;  %v3761_v5 = vmul.f32 %v9455_v16, %v3664_v50  ;;  %v9130_v43 = vunpack.c.l.bf16 %v15685_v37  ;;  %v9194_v30 = vunpack.c.l.bf16 %v15688_v22  ;;  %v15709_v32 = vld [vmem:[%s11639_s23 + $0x370] sm:$0xff]  }
 0x43d   : > { %v2179_v40 = vadd.f32 %v2147_v59, %v2017_v4  ;;  %v3309_v36 = vadd.f32 %v3277_v41, %v3148_v29  ;;  %v2791_v44 = vmul.f32 %v9066_v39, %v15378_v21  ;;  %v9258_v63 = vunpack.c.l.bf16 %v15694_v17  ;;  %v15718_v8 = vld [vmem:[%s11639_s23 + $0x3f0] sm:$0xff]  }
 0x43e   : > { %5818 = vrot.lane.b32.xlu1 %v5724_v11, %s11198_s28  ;;  %v2952_v48 = vmul.f32 %v9130_v43, %v15381_v2  ;;  %v3113_v58 = vmul.f32 %v9194_v30, %v15384_v51  ;;  %v9322_v27 = vunpack.c.l.bf16 %v15699_v6  ;;  %v9386_v49 = vunpack.c.l.bf16 %v15702_v9  ;;  %v3661_v41 = vld [vmem:[#allocation2 + $0x2c2] sm:$0xff]  ;;  %v15726_v51 = vpop.permute.xlu0 %4200 }
 0x43f   : > { %v2340_v20 = vadd.f32 %v2308_v47, %v2179_v40  ;;  %v3470_v54 = vadd.f32 %v3438_v7, %v3309_v36  ;;  %v3922_v59 = vmul.f32 %v9519_v35, %v3825_v28  ;;  %v9450_v50 = vunpack.c.l.bf16 %v15709_v32  ;;  %v15724_v4 = vld [vmem:[%s11639_s23 + $0x470] sm:$0xff]   ;;  %v3983_v36 = vld [vmem:[#allocation2 + $0x2c8] sm:$0xff]  ;;  %s11094_s23 = scalar_lea.vmem %s16580_s1, 4096 }
 0x440   : > { %v4083_v21 = vmul.f32 %v9583_v0, %v3986_v14  ;;  %v2984_v16 = vadd.f32 %v2952_v48, %v2791_v44  ;;  %v3274_v11 = vmul.f32 %v9258_v63, %v15391_v12  ;;  %v3435_v2 = vmul.f32 %v9322_v27, %v15327_v42  ;;  %v3822_v28 = vld [vmem:[#allocation2 + $0x2c5] sm:$0xff]  ;;  %p11095_p3 = scmp.ne.s32.totalorder %s16580_s1, %s11094_s23 }
 0x441   : > { %v2501_v29 = vadd.f32 %v2469_v13, %v2340_v20  ;;  %v3631_v39 = vadd.f32 %v3599_v52, %v3470_v54  ;;  %v3596_v43 = vmul.f32 %v9386_v49, %v15345_v25  ;;  %v9514_v47 = vunpack.c.l.bf16 %v15718_v8  ;;  %v15745_v49 = vld [vmem:[#allocation2 + $0x28c] sm:$0xff] }
 0x442   : > { %v3145_v7 = vadd.f32 %v3113_v58, %v2984_v16  ;;  %v3758_v35 = vmul.f32 %v9450_v50, %v3661_v41  ;;  %v8491_v0 = vunpack.c.h.bf16 %v15604_v23  ;;  %v8555_v12 = vunpack.c.h.bf16 %v15613_v31  ;;  %v17487_v50 = vld [vmem:[#allocation62_spill] sm:$0xff]  ;;  %p11096_p10 = pnand %p11095_p3, %p17505_p5 }
 0x443   : > { %2593 = vrot.lane.b32.xlu0 %v2501_v29, %s11196_s20  ;;  %v3793_v30 = vadd.f32 %v3761_v5, %v3631_v39  ;;  %v9578_v40 = vunpack.c.l.bf16 %v15724_v4  ;;  %v8619_v13 = vunpack.c.h.bf16 %v15616_v24  ;;  %v8683_v52 = vunpack.c.h.bf16 %v15621_v45  ;;  %v15742_v24 = vld [vmem:[%s11641_s29 + $0x70] sm:$0xff]  }
 0x444   : > { %v3306_v25 = vadd.f32 %v3274_v11, %v3145_v7  ;;  %v1181_v14 = vmul.f32 %v8491_v0, %v15496_v57  ;;  %v1342_v23 = vmul.f32 %v8555_v12, %v15502_v26  ;;  %v8747_v44 = vunpack.c.h.bf16 %v15626_v15  ;;  %v15749_v26 = vld [vmem:[%s11641_s29 + $0xf0] sm:$0xff]   ;;  %v4626_v7 = vld [vmem:[#allocation2 + $0x1ca] sm:$0xff]  ;;  %p11097_p12 = pneg %p11096_p10 }
 0x445   : > { %v3954_v31 = vadd.f32 %v3922_v59, %v3793_v30  ;;  %v3919_v63 = vmul.f32 %v9514_v47, %v3822_v28  ;;  %v1503_v5 = vmul.f32 %v8619_v13, %v15505_v55  ;;  %v8811_v48 = vunpack.c.h.bf16 %v15629_v3  ;;  %v15752_v15 = vld [vmem:[%s11641_s29 + $0x170] sm:$0xff]   ;;  %v15754_v55 = vpop.permute.xlu1 %4202  ;;  %v15756_v3 = vpop.permute.xlu0 %5810  ;;  %v17486_v59 = vld [vmem:[#allocation52_spill] sm:$0xff] }
 0x446   : > { %v3467_v45 = vadd.f32 %v3435_v2, %v3306_v25  ;;  %v1374_v58 = vadd.f32 %v1342_v23, %v1181_v14  ;;  %v1664_v27 = vmul.f32 %v8683_v52, %v15513_v10  ;;  %v8875_v57 = vunpack.c.h.bf16 %v15636_v18  ;;  %v4465_v11 = vld [vmem:[#allocation2 + $0x1c5] sm:$0xff]  ;;  %v15779_v52 = vld [vmem:[#allocation2 + $0x28e] sm:$0xff] }
 0x447   : > { %v4115_v20 = vadd.f32 %v4083_v21, %v3954_v31  ;;  %v4080_v54 = vmul.f32 %v9578_v40, %v3983_v36  ;;  %v1825_v41 = vmul.f32 %v8747_v44, %v17486_v59  ;;  %v1986_v16 = vmul.f32 %v8811_v48, %v17487_v50  ;;  %v15761_v2 = vld [vmem:[%s11641_s29 + $0x1f0] sm:$0xff]   ;;  %v17488_v25 = vld [vmem:[#allocation60_spill] sm:$0xff] }
 0x448   : > { %v3628_v18 = vadd.f32 %v3596_v43, %v3467_v45  ;;  %v1535_v29 = vadd.f32 %v1503_v5, %v1374_v58  ;;  %v8939_v39 = vunpack.c.h.bf16 %v15647_v53  ;;  %v9642_v47 = vunpack.c.l.bf16 %v15742_v24  ;;  %v15766_v28 = vld [vmem:[%s11641_s29 + $0x270] sm:$0xff]  }
 0x449   : > { %v15769_v0 = vld [vmem:[%s11641_s29 + $0x2f0] sm:$0xff]   ;;  %4210 = vrot.lane.b32.xlu1 %v4115_v20, %s11197_s5  ;;  %v2148_v21 = vmul.f32 %v8875_v57, %v15745_v49  ;;  %v9003_v12 = vunpack.c.h.bf16 %v15655_v46  ;;  %v9706_v30 = vunpack.c.l.bf16 %v15749_v26  ;;  %v9770_v43 = vunpack.c.l.bf16 %v15752_v15  ;;  %v15790_v57 = vpop.permute.xlu1 %5812  ;;  %v2586_v20 = vpop.permute.xlu0 %2585 }
 0x44a   : > { %v15777_v40 = vld [vmem:[%s11641_s29 + $0x370] sm:$0xff]   ;;  %v3790_v53 = vadd.f32 %v3758_v35, %v3628_v18  ;;  %v1696_v13 = vadd.f32 %v1664_v27, %v1535_v29  ;;  %v4401_v36 = vmul.f32 %v9642_v47, %v17488_v25  ;;  %v9834_v14 = vunpack.c.l.bf16 %v15761_v2  ;;  %2658 = vst.msk [vmem:[#allocation3 + $0x139] sm:$0xff] %vm2633_vm7, %v2586_v20  ;;  %v17492_v20 = vld [vmem:[#allocation56_spill] sm:$0xff] }
 0x44b   : > { %v4562_v23 = vmul.f32 %v9706_v30, %v4465_v11  ;;  %v4723_v44 = vmul.f32 %v9770_v43, %v4626_v7  ;;  %v9898_v31 = vunpack.c.l.bf16 %v15766_v28  ;;  %v9962_v46 = vunpack.c.l.bf16 %v15769_v0  ;;  %v15786_v5 = vld [vmem:[%s11641_s29 + $0x3f0] sm:$0xff]  }
 0x44c   : > { %v3951_v48 = vadd.f32 %v3919_v63, %v3790_v53  ;;  %v1857_v45 = vadd.f32 %v1825_v41, %v1696_v13  ;;  %v2309_v35 = vmul.f32 %v8939_v39, %v15677_v56  ;;  %v5271_v58 = vld [vmem:[#allocation2 + $0x300] sm:$0xff]  ;;  %v10026_v27 = vunpack.c.l.bf16 %v15777_v40 }
 0x44d   : > { %v2470_v59 = vmul.f32 %v9003_v12, %v15779_v52  ;;  %v4594_v11 = vadd.f32 %v4562_v23, %v4401_v36  ;;  %v10833_v18 = vld [vmem:[#allocation2 + $0x260] sm:$0xff]  ;;  %v5045_v47 = vmul.f32 %v9898_v31, %v15327_v42  ;;  %v10090_v43 = vunpack.c.l.bf16 %v15786_v5 }
 0x44e   : > { %v4884_v29 = vmul.f32 %v10833_v18, %v9834_v14  ;;  %v15795_v7 = vld [vmem:[%s11641_s29 + $0x470] sm:$0xff]   ;;  %v4112_v63 = vadd.f32 %v4080_v54, %v3951_v48  ;;  %v2018_v41 = vadd.f32 %v1986_v16, %v1857_v45  ;;  %v5368_v13 = vmul.f32 %v10026_v27, %v5271_v58  ;;  %v3178_v54 = vld [vmem:[#allocation2 + $0x26a] sm:$0xff]  ;;  %v17491_v45 = vld [vmem:[#allocation65_spill] sm:$0xff]  ;;  %s11098_s29 = sshll.u32 %s11205_s27, 4  ;;  %s11099_s29 = int_to_ptr.vmem [resolvable:$false] %s11098_s29 }
 0x44f   : > { %v17489_v39 = vld [vmem:[#allocation46_spill] sm:$0xff]  ;;  %v4755_v53 = vadd.f32 %v4723_v44, %v4594_v11  ;;  %v9067_v12 = vunpack.c.h.bf16 %v15681_v62  ;;  %v9131_v36 = vunpack.c.h.bf16 %v15685_v37  ;;  %v10154_v14 = vunpack.c.l.bf16 %v15795_v7  ;;  %p11101_p4 = scmp.lt.s32.totalorder %s16580_s1, %s11099_s29 }
 0x450   : > { %v5206_v30 = vmul.f32 %v9962_v46, %v17489_v39  ;;  %v5432_v25 = vld [vmem:[#allocation2 + $0x305] sm:$0xff]  ;;  %4204 = vrot.lane.b32.xlu0 %v4112_v63, %s11197_s5  ;;  %v2180_v42 = vadd.f32 %v2148_v21, %v2018_v41  ;;  %v9195_v23 = vunpack.c.h.bf16 %v15688_v22  ;;  %v9259_v16 = vunpack.c.h.bf16 %v15694_v17  ;;  %v6861_v18 = vld [vmem:[#allocation3 + $0x7a] sm:$0xff]  ;;  %v2588_v63 = vpop.permute.xlu1 %2587  ;;  %v15811_v17 = vld [vmem:[#allocation2 + $0x26d] sm:$0xff] }
 0x451   : > { %v4916_v31 = vadd.f32 %v4884_v29, %v4755_v53  ;;  %v5593_v46 = vld [vmem:[#allocation2 + $0x30a] sm:$0xff]  ;;  %v17490_v48 = vld [vmem:[#allocation58_spill] sm:$0xff]  ;;  %v2953_v58 = vmul.f32 %v9131_v36, %v17491_v45  ;;  %v9323_v62 = vunpack.c.h.bf16 %v15699_v6  ;;  %v5529_v37 = vmul.f32 %v10090_v43, %v5432_v25  ;;  %2659 = vst.msk [vmem:[#allocation3 + $0x141] sm:$0xff] %vm2633_vm7, %v2588_v63  ;;  %v4629_v45 = vld [vmem:[#allocation2 + $0x1f2] sm:$0xff] }
 0x452   : > { %v2792_v44 = vmul.f32 %v9067_v12, %v17490_v48  ;;  %v2341_v27 = vadd.f32 %v2309_v35, %v2180_v42  ;;  %v3114_v11 = vmul.f32 %v9195_v23, %v17492_v20  ;;  %v9387_v21 = vunpack.c.h.bf16 %v15702_v9  ;;  %v3662_v29 = vld [vmem:[#allocation2 + $0x2ca] sm:$0xff]  ;;  %v6862_v6 = vld [vmem:[#allocation3 + $0x82] sm:$0xff] }
 0x453   : > { %v5077_v22 = vadd.f32 %v5045_v47, %v4916_v31  ;;  %v3275_v39 = vmul.f32 %v9259_v16, %v3178_v54  ;;  %v9451_v53 = vunpack.c.h.bf16 %v15709_v32  ;;  %v5690_v35 = vmul.f32 %v10154_v14, %v5593_v46  ;;  %v17493_v25 = vld [vmem:[#allocation66_spill] sm:$0xff]  ;;  %v4308_v54 = vld [vmem:[#allocation2 + $0x1e8] sm:$0xff] }
 0x454   : > { %v2985_v41 = vadd.f32 %v2953_v58, %v2792_v44  ;;  %v2502_v12 = vadd.f32 %v2470_v59, %v2341_v27  ;;  %v3436_v43 = vmul.f32 %v9323_v62, %v15811_v17  ;;  %v3597_v36 = vmul.f32 %v9387_v21, %v17493_v25  ;;  %v4468_v16 = vld [vmem:[#allocation2 + $0x1ed] sm:$0xff] }
 0x455   : > { %v5238_v9 = vadd.f32 %v5206_v30, %v5077_v22  ;;  %v9515_v47 = vunpack.c.h.bf16 %v15718_v8  ;;  %v6890_v23 = vpack.c.bf16 %v6862_v6, %v6861_v18  ;;  %v3759_v31 = vmul.f32 %v9451_v53, %v3662_v29  ;;  %v3823_v32 = vld [vmem:[#allocation2 + $0x2cd] sm:$0xff]  ;;  %v17496_v8 = vld [vmem:[#allocation69_spill] sm:$0xff] }
 0x456   : > { %v3146_v42 = vadd.f32 %v3114_v11, %v2985_v41  ;;  %2595 = vrot.lane.b32.xlu1 %v2502_v12, %s11196_s20  ;;  %v9579_v48 = vunpack.c.h.bf16 %v15724_v4  ;;  %v17494_v59 = vld [vmem:[#allocation63_spill] sm:$0xff]  ;;  %v17495_v14 = vld [vmem:[#allocation68_spill] sm:$0xff]  ;;  %v9775_v27 = vunpack.c.h.bf16 %v17496_v8  ;;  %v17497_v11 = vld [vmem:[#allocation70_spill] sm:$0xff]  ;;  %v9903_v22 = vunpack.c.h.bf16 %v15582_v60 }
 0x457   : > { %v9647_v44 = vunpack.c.h.bf16 %v17494_v59  ;;  %v9711_v46 = vunpack.c.h.bf16 %v17495_v14  ;;  %v5400_v58 = vadd.f32 %v5368_v13, %v5238_v9  ;;  %v3984_v30 = vld [vmem:[#allocation2 + $0x2d0] sm:$0xff]  ;;  %6906 = vst.msk [vmem:[#allocation4 + $0x38] sm:$0xff] %vm662_vm0, %v6890_v23  ;;  %v4790_v20 = vld [vmem:[#allocation2 + $0x288] sm:$0xff]  ;;  %v9839_v21 = vunpack.c.h.bf16 %v17497_v11 }
 0x458   : > { %v3307_v62 = vadd.f32 %v3275_v39, %v3146_v42  ;;  %v5112_v4 = vld [vmem:[#allocation2 + $0x292] sm:$0xff]  ;;  %v9967_v41 = vunpack.c.h.bf16 %v15589_v19  ;;  %v3920_v12 = vmul.f32 %v9515_v47, %v3823_v32  ;;  %v4726_v13 = vmul.f32 %v9775_v27, %v4629_v45  ;;  %v5274_v9 = vld [vmem:[#allocation2 + $0x328] sm:$0xff]  ;;  %v17500_v45 = vld [vmem:[#allocation78_spill] sm:$0xff] }
 0x459   : > { %v4404_v18 = vmul.f32 %v9647_v44, %v4308_v54  ;;  %v4565_v63 = vmul.f32 %v9711_v46, %v4468_v16  ;;  %v5561_v29 = vadd.f32 %v5529_v37, %v5400_v58  ;;  %v4081_v39 = vmul.f32 %v9579_v48, %v3984_v30  ;;  %v17498_v42 = vld [vmem:[#allocation72_spill] sm:$0xff]  ;;  %v17499_v8 = vld [vmem:[#allocation77_spill] sm:$0xff] }
 0x45a   : > { %v3468_v53 = vadd.f32 %v3436_v43, %v3307_v62  ;;  %v4887_v25 = vmul.f32 %v9839_v21, %v4790_v20  ;;  %v10031_v23 = vunpack.c.h.bf16 %v17498_v42  ;;  %v5048_v54 = vmul.f32 %v9903_v22, %v15677_v56  ;;  %v4306_v44 = vld [vmem:[#allocation2 + $0x1c8] sm:$0xff]  ;;  %v4627_v47 = vld [vmem:[#allocation2 + $0x1d2] sm:$0xff] }
 0x45b   : > { %v4597_v6 = vadd.f32 %v4565_v63, %v4404_v18  ;;  %v5722_v59 = vadd.f32 %v5690_v35, %v5561_v29  ;;  %v5209_v16 = vmul.f32 %v9967_v41, %v5112_v4  ;;  %v4466_v60 = vld [vmem:[#allocation2 + $0x1cd] sm:$0xff]  ;;  %v10095_v19 = vunpack.c.h.bf16 %v17499_v8 }
 0x45c   : > { %v3629_v14 = vadd.f32 %v3597_v36, %v3468_v53  ;;  %v9643_v37 = vunpack.c.h.bf16 %v15742_v24  ;;  %v9707_v43 = vunpack.c.h.bf16 %v15749_v26  ;;  %v5371_v48 = vmul.f32 %v10031_v23, %v5274_v9  ;;  %v4788_v58 = vld [vmem:[#allocation2 + $0x268] sm:$0xff]  ;;  %v5596_v27 = vld [vmem:[#allocation2 + $0x332] sm:$0xff] }
 0x45d   : > { %v4758_v46 = vadd.f32 %v4726_v13, %v4597_v6  ;;  %5814 = vrot.lane.b32.xlu0 %v5722_v59, %s11198_s28  ;;  %v10159_v35 = vunpack.c.h.bf16 %v17500_v45  ;;  %v9771_v36 = vunpack.c.h.bf16 %v15752_v15  ;;  %v5435_v30 = vld [vmem:[#allocation2 + $0x32d] sm:$0xff]  ;;  %v9835_v24 = vunpack.c.h.bf16 %v15761_v2  ;;  %v6859_v13 = vld [vmem:[#allocation3 + $0x62] sm:$0xff]  ;;  %v15845_v6 = vpop.permute.xlu0 %5806 }
 0x45e   : > { %v3791_v32 = vadd.f32 %v3759_v31, %v3629_v14  ;;  %v4402_v20 = vmul.f32 %v9643_v37, %v4306_v44  ;;  %v4563_v11 = vmul.f32 %v9707_v43, %v4466_v60  ;;  %v9899_v18 = vunpack.c.h.bf16 %v15766_v28  ;;  %v5110_v31 = vld [vmem:[#allocation2 + $0x272] sm:$0xff]  ;;  %v5272_v22 = vld [vmem:[#allocation2 + $0x308] sm:$0xff] }
 0x45f   : > { %v4919_v62 = vadd.f32 %v4887_v25, %v4758_v46  ;;  %v4724_v21 = vmul.f32 %v9771_v36, %v4627_v47  ;;  %v9963_v63 = vunpack.c.h.bf16 %v15769_v0  ;;  %v15839_v4 = vld [vmem:[%s11633_s24 + $0x78] sm:$0xff]   ;;  %v4885_v29 = vmul.f32 %v9835_v24, %v4788_v58  ;;  %v5594_v45 = vld [vmem:[#allocation2 + $0x312] sm:$0xff] }
 0x460   : > { %v3952_v26 = vadd.f32 %v3920_v12, %v3791_v32  ;;  %v4595_v41 = vadd.f32 %v4563_v11, %v4402_v20  ;;  %v10027_v53 = vunpack.c.h.bf16 %v15777_v40  ;;  %v6860_v2 = vld [vmem:[#allocation3 + $0x6a] sm:$0xff]  ;;  %v5532_v25 = vmul.f32 %v10095_v19, %v5435_v30 }
 0x461   : > { %v5080_v15 = vadd.f32 %v5048_v54, %v4919_v62  ;;  %v15843_v12 = vld [vmem:[%s11633_s24 + $0xf8] sm:$0xff]   ;;  %v5693_v0 = vmul.f32 %v10159_v35, %v5596_v27  ;;  %v5046_v9 = vmul.f32 %v9899_v18, %v15811_v17  ;;  %v5207_v14 = vmul.f32 %v9963_v63, %v5110_v31 }
 0x462   : > { %v4113_v28 = vadd.f32 %v4081_v39, %v3952_v26  ;;  %v10206_v42 = vld [vmem:[%s11633_s24 + $0x178] sm:$0xff]   ;;  %v4756_v59 = vadd.f32 %v4724_v21, %v4595_v41  ;;  %v10091_v54 = vunpack.c.h.bf16 %v15786_v5  ;;  %v5369_v46 = vmul.f32 %v10027_v53, %v5272_v22  ;;  %v5799_v11 = vpop.permute.xlu0 %5798 }
 0x463   : > { %v5241_v23 = vadd.f32 %v5209_v16, %v5080_v15  ;;  %v1246_v40 = vld [vmem:[#allocation2 + $0x265] sm:$0xff]  ;;  %v15857_v39 = vpack.c.bf16 %v6860_v2, %v6859_v13  ;;  %v8494_v8 = vunpack.c.l.bf16 %v15839_v4  ;;  %v8558_v19 = vunpack.c.l.bf16 %v15843_v12  ;;  %v5433_v32 = vld [vmem:[#allocation2 + $0x30d] sm:$0xff]  ;;  %5875 = vst.msk [vmem:[#allocation3 + $0x109] sm:$0xff] %vm5854_vm9, %v5799_v11 }
 0x464   : > { %v15851_v44 = vld [vmem:[%s11633_s24 + $0x1f8] sm:$0xff]   ;;  %4206 = vrot.lane.b32.xlu1 %v4113_v28, %s11197_s5  ;;  %v4917_v43 = vadd.f32 %v4885_v29, %v4756_v59  ;;  %v10155_v5 = vunpack.c.h.bf16 %v15795_v7  ;;  %v8622_v47 = vunpack.c.l.bf16 %v10206_v42  ;;  %v5530_v31 = vmul.f32 %v10091_v54, %v5433_v32  ;;  %v6866_v32 = vld [vmem:[#allocation3 + $0xb2] sm:$0xff] }
 0x465   : > { %v15854_v60 = vld [vmem:[%s11633_s24 + $0x278] sm:$0xff]   ;;  %v5403_v16 = vadd.f32 %v5371_v48, %v5241_v23  ;;  %6905 = vst.msk [vmem:[#allocation4 + $0x28] sm:$0xff] %vm662_vm0, %v15857_v39  ;;  %v1182_v35 = vmul.f32 %v8494_v8, %v15475_v33  ;;  %v1343_v36 = vmul.f32 %v8558_v19, %v1246_v40  ;;  %v8686_v58 = vunpack.c.l.bf16 %v15851_v44  ;;  %v15876_v33 = vpop.permute.xlu1 %5808 }
 0x466   : > { %v15862_v37 = vld [vmem:[%s11633_s24 + $0x2f8] sm:$0xff]   ;;  %v8750_v62 = vunpack.c.l.bf16 %v15854_v60  ;;  %v5078_v27 = vadd.f32 %v5046_v9, %v4917_v43  ;;  %v1504_v48 = vmul.f32 %v8622_v47, %v15499_v38  ;;  %v5691_v63 = vmul.f32 %v10155_v5, %v5594_v45  ;;  %v6209_v47 = vld [vmem:[#allocation3 + $0x18] sm:$0xff] }
 0x467   : > { %v5564_v30 = vadd.f32 %v5532_v25, %v5403_v16  ;;  %v8814_v7 = vunpack.c.l.bf16 %v15862_v37  ;;  %v15873_v20 = vld [vmem:[%s11633_s24 + $0x378] sm:$0xff]   ;;  %v1375_v24 = vadd.f32 %v1343_v36, %v1182_v35  ;;  %v1665_v26 = vmul.f32 %v8686_v58, %v15649_v34  ;;  %v6863_v35 = vld [vmem:[#allocation3 + $0x92] sm:$0xff]  ;;  %v6864_v36 = vld [vmem:[#allocation3 + $0x9a] sm:$0xff] }
 0x468   : > { %v5239_v18 = vadd.f32 %v5207_v14, %v5078_v27  ;;  %v15880_v22 = vld [vmem:[%s11633_s24 + $0x3f8] sm:$0xff]   ;;  %v1826_v15 = vmul.f32 %v8750_v62, %v15662_v61  ;;  %v8878_v41 = vunpack.c.l.bf16 %v15873_v20  ;;  %v8495_v29 = vunpack.c.h.bf16 %v15839_v4  ;;  %v6600_v58 = vld [vmem:[#allocation3 + $0x50] sm:$0xff]  ;;  %v6869_v27 = vld [vmem:[#allocation3 + $0xda] sm:$0xff] }
 0x469   : > { %v5725_v21 = vadd.f32 %v5693_v0, %v5564_v30  ;;  %v1536_v38 = vadd.f32 %v1504_v48, %v1375_v24  ;;  %v1987_v53 = vmul.f32 %v8814_v7, %v15670_v1  ;;  %v2052_v13 = vld [vmem:[#allocation2 + $0x2a4] sm:$0xff]  ;;  %v8559_v28 = vunpack.c.h.bf16 %v15843_v12  ;;  %v5801_v19 = vpop.permute.xlu1 %5800  ;;  %v2053_v5 = vld [vmem:[#allocation2 + $0x2ac] sm:$0xff] }
 0x46a   : > { %v5401_v34 = vadd.f32 %v5369_v46, %v5239_v18  ;;  %v15888_v2 = vld [vmem:[%s11633_s24 + $0x478] sm:$0xff]   ;;  %v8623_v25 = vunpack.c.h.bf16 %v10206_v42  ;;  %v8942_v9 = vunpack.c.l.bf16 %v15880_v22  ;;  %v1183_v61 = vmul.f32 %v8495_v29, %v15513_v10  ;;  %v6210_v42 = vld [vmem:[#allocation3 + $0x20] sm:$0xff]  ;;  %5876 = vst.msk [vmem:[#allocation3 + $0x111] sm:$0xff] %vm5854_vm9, %v5801_v19  ;;  %v6598_v18 = vld [vmem:[#allocation3 + $0x38] sm:$0xff]  ;;  %s16576_s24 = scalar_lea.hbm %s17504_s18, %s8431_s4 }
 0x46b   : > { %5820 = vrot.lane.b32.xlu0 %v5725_v21, %s11198_s28  ;;  %v1697_v0 = vadd.f32 %v1665_v26, %v1536_v38  ;;  %v8687_v23 = vunpack.c.h.bf16 %v15851_v44  ;;  %v2213_v4 = vld [vmem:[#allocation2 + $0x2a5] sm:$0xff]  ;;  %v1344_v14 = vmul.f32 %v8559_v28, %v15811_v17  ;;  %v8751_v1 = vunpack.c.h.bf16 %v15854_v60  ;;  %v2214_v29 = vld [vmem:[#allocation2 + $0x2ad] sm:$0xff]  ;;  %v5897_v19 = vld [vmem:[#allocation3 + $0x78] sm:$0xff] }
 0x46c   : > { %v5562_v59 = vadd.f32 %v5530_v31, %v5401_v34  ;;  %v1505_v54 = vmul.f32 %v8623_v25, %v17487_v50  ;;  %v2149_v46 = vmul.f32 %v8878_v41, %v2052_v13  ;;  %v2374_v8 = vld [vmem:[#allocation2 + $0x2a6] sm:$0xff]  ;;  %v9006_v12 = vunpack.c.l.bf16 %v15888_v2  ;;  %v6597_v34 = vld [vmem:[#allocation3 + $0x30] sm:$0xff] }
 0x46d   : > { %v1858_v40 = vadd.f32 %v1826_v15, %v1697_v0  ;;  %v1376_v43 = vadd.f32 %v1344_v14, %v1183_v61  ;;  %v1666_v10 = vmul.f32 %v8687_v23, %v15745_v49  ;;  %v8815_v44 = vunpack.c.h.bf16 %v15862_v37  ;;  %v6865_v17 = vld [vmem:[#allocation3 + $0xaa] sm:$0xff]  ;;  %v6870_v48 = vld [vmem:[#allocation3 + $0xe2] sm:$0xff] }
 0x46e   : > { %v5723_v16 = vadd.f32 %v5691_v63, %v5562_v59  ;;  %v2310_v60 = vmul.f32 %v8942_v9, %v2213_v4  ;;  %v8879_v45 = vunpack.c.h.bf16 %v15873_v20  ;;  %v1827_v49 = vmul.f32 %v8751_v1, %v15677_v56  ;;  %v6599_v37 = vld [vmem:[#allocation3 + $0x48] sm:$0xff]  ;;  %v6601_v9 = vld [vmem:[#allocation3 + $0x60] sm:$0xff]  ;;  %v6222_v4 = vld [vmem:[#allocation3 + $0xb0] sm:$0xff] }
 0x46f   : > { %v2019_v50 = vadd.f32 %v1987_v53, %v1858_v40  ;;  %v1537_v62 = vadd.f32 %v1505_v54, %v1376_v43  ;;  %v15904_v30 = vpack.c.bf16 %v6210_v42, %v6209_v47  ;;  %v2471_v11 = vmul.f32 %v9006_v12, %v2374_v8  ;;  %v6867_v20 = vld [vmem:[#allocation3 + $0xc2] sm:$0xff]  ;;  %v6868_v21 = vld [vmem:[#allocation3 + $0xca] sm:$0xff]  ;;  %v4197_v53 = vpop.permute.xlu0 %4196 }
 0x470   : > { %5816 = vrot.lane.b32.xlu1 %v5723_v16, %s11198_s28  ;;  %v8943_v24 = vunpack.c.h.bf16 %v15880_v22  ;;  %v15907_v26 = vpack.c.bf16 %v6866_v32, %v6865_v17  ;;  %v1988_v63 = vmul.f32 %v8815_v44, %v15779_v52  ;;  %v15910_v38 = vpack.c.bf16 %v6864_v36, %v6863_v35  ;;  %v2375_v28 = vld [vmem:[#allocation2 + $0x2ae] sm:$0xff]  ;;  %4269 = vst.msk [vmem:[#allocation3 + $0x139] sm:$0xff] %vm4244_vm8, %v4197_v53  ;;  %v6612_v8 = vld [vmem:[#allocation3 + $0xe0] sm:$0xff] }
 0x471   : > { %v2181_v7 = vadd.f32 %v2149_v46, %v2019_v50  ;;  %v1698_v31 = vadd.f32 %v1666_v10, %v1537_v62  ;;  %v15912_v56 = vpack.c.bf16 %v6600_v58, %v6599_v37  ;;  %5936 = vst.msk [vmem:[#allocation4 + $0x10] sm:$0xff] %vm662_vm0, %v15904_v30  ;;  %v2150_v41 = vmul.f32 %v8879_v45, %v2053_v5  ;;  %v6602_v61 = vld [vmem:[#allocation3 + $0x68] sm:$0xff]  ;;  %v6230_v46 = vld [vmem:[#allocation3 + $0x110] sm:$0xff]  ;;  %v5898_v16 = vld [vmem:[#allocation3 + $0x80] sm:$0xff] }
 0x472   : > { %6908 = vst.msk [vmem:[#allocation4 + $0x58] sm:$0xff] %vm662_vm0, %v15907_v26  ;;  %v15918_v22 = vpack.c.bf16 %v6870_v48, %v6869_v27  ;;  %v9007_v52 = vunpack.c.h.bf16 %v15888_v2  ;;  %6907 = vst.msk [vmem:[#allocation4 + $0x48] sm:$0xff] %vm662_vm0, %v15910_v38  ;;  %v15923_v25 = vpack.c.bf16 %v6868_v21, %v6867_v20  ;;  %v15925_v0 = vpack.c.bf16 %v6598_v18, %v6597_v34  ;;  %v6873_v59 = vld [vmem:[#allocation3 + $0x10a] sm:$0xff]  ;;  %v6874_v2 = vld [vmem:[#allocation3 + $0x112] sm:$0xff] }
 0x473   : > { %v2342_v15 = vadd.f32 %v2310_v60, %v2181_v7  ;;  %v1859_v13 = vadd.f32 %v1827_v49, %v1698_v31  ;;  %5938 = vst.msk [vmem:[#allocation4 + $0x30] sm:$0xff] %vm662_vm0, %v15912_v56  ;;  %v2311_v54 = vmul.f32 %v8943_v24, %v2214_v29  ;;  %v15936_v1 = vpack.c.bf16 %v6874_v2, %v6873_v59  ;;  %v6229_v40 = vld [vmem:[#allocation3 + $0x108] sm:$0xff]  ;;  %v6611_v5 = vld [vmem:[#allocation3 + $0xd8] sm:$0xff]  ;;  %v6605_v53 = vld [vmem:[#allocation3 + $0x90] sm:$0xff] }
 0x474   : > { %6910 = vst.msk [vmem:[#allocation4 + $0x78] sm:$0xff] %vm662_vm0, %v15918_v22  ;;  %6909 = vst.msk [vmem:[#allocation4 + $0x68] sm:$0xff] %vm662_vm0, %v15923_v25  ;;  %v15941_v12 = vpack.c.bf16 %v6602_v61, %v6601_v9  ;;  %v15943_v42 = vpack.c.bf16 %v6230_v46, %v6229_v40  ;;  %v2472_v10 = vmul.f32 %v9007_v52, %v2375_v28  ;;  %v6339_v32 = vld [vmem:[#allocation3 + $0x21] sm:$0xff]  ;;  %v6351_v45 = vld [vmem:[#allocation3 + $0xb1] sm:$0xff]  ;;  %v11202_v21 = vmov 0  }
 0x475   : > { %v2503_v23 = vadd.f32 %v2471_v11, %v2342_v15  ;;  %5879 = vst.msk [vmem:[#allocation3 + $0x139] sm:$0xff] %vm5854_vm9, %v15845_v6  ;;  %v2020_v14 = vadd.f32 %v1988_v63, %v1859_v13  ;;  %v6221_v6 = vld [vmem:[#allocation3 + $0xa8] sm:$0xff]  ;;  %v15949_v47 = vpack.c.bf16 %v6612_v8, %v6611_v5  ;;  %v5924_v60 = vpack.c.bf16 %v5898_v16, %v5897_v19  ;;  %v6338_v36 = vld [vmem:[#allocation3 + $0x19] sm:$0xff]  ;;  %v6729_v61 = vld [vmem:[#allocation3 + $0x51] sm:$0xff] }
 0x476   : > { %5937 = vst.msk [vmem:[#allocation4 + $0x20] sm:$0xff] %vm662_vm0, %v15925_v0  ;;  %6912 = vst.msk [vmem:[#allocation4 + $0x98] sm:$0xff] %vm662_vm0, %v15936_v1  ;;  %v15947_v44 = vpack.c.bf16 %v6222_v4, %v6221_v6  ;;  %v6370_v58 = vpack.c.bf16 %v6339_v32, %v6338_v36  ;;  %v6350_v62 = vld [vmem:[#allocation3 + $0xa9] sm:$0xff]  ;;  %v6467_v37 = vld [vmem:[#allocation3 + $0x1a] sm:$0xff]  ;;  %7071 = vmatprep.subr.bf16.mxu0 %v11202_v21  ;;  %10640 = vmatprep.subr.bf16.mxu1 %v11202_v21 }
 0x477   : > { %2597 = vrot.lane.b32.xlu0 %v2503_v23, %s11196_s20  ;;  %v2182_v43 = vadd.f32 %v2150_v41, %v2020_v14  ;;  %5946 = vst.msk [vmem:[#allocation4 + $0xb0] sm:$0xff] %vm662_vm0, %v15943_v42  ;;  %5939 = vst.msk [vmem:[#allocation4 + $0x40] sm:$0xff] %vm662_vm0, %v15941_v12  ;;  %v6376_v27 = vpack.c.bf16 %v6351_v45, %v6350_v62  ;;  %v10809_v20 = vld [vmem:[#allocation16] sm:$0xff]   ;;  %v10810_v15 = vld [vmem:[#allocation16 + $0x8] sm:$0xff]  }
 0x478   : > { %5942 = vst.msk [vmem:[#allocation4 + $0x70] sm:$0xff] %vm662_vm0, %v15947_v44  ;;  %5944 = vst.msk [vmem:[#allocation4 + $0x90] sm:$0xff] %vm662_vm0, %v15949_v47  ;;  %v6741_v18 = vld [vmem:[#allocation3 + $0xe1] sm:$0xff]  ;;  %7072 = vmatpush1.bf16.msra.mxu0 %v10809_v20  ;;  %v6740_v63 = vld [vmem:[#allocation3 + $0xd9] sm:$0xff]  ;;  %10649 = vmatpush1.bf16.msra.mxu1 %v10809_v20 }
 0x479   : > { %v2343_v17 = vadd.f32 %v2311_v54, %v2182_v43  ;;  %5940 = vst.msk [vmem:[#allocation4 + $0x50] sm:$0xff] %vm662_vm0, %v5924_v60  ;;  %7073 = vmatprep.subr.bf16.mxu0 %v11202_v21  ;;  %v6765_v41 = vpack.c.bf16 %v6741_v18, %v6740_v63  ;;  %10641 = vmatprep.subr.bf16.mxu1 %v11202_v21  ;;  %v6606_v13 = vld [vmem:[#allocation3 + $0x98] sm:$0xff]  ;;  %v10811_v9 = vld [vmem:[#allocation16 + $0x10] sm:$0xff]   ;;  %v6609_v5 = vld [vmem:[#allocation3 + $0xc0] sm:$0xff] }
 0x47a   : > { %v4199_v50 = vpop.permute.xlu1 %4198  ;;  %v15986_v28 = vpack.c.bf16 %v6606_v13, %v6605_v53  ;;  %v6728_v14 = vld [vmem:[#allocation3 + $0x49] sm:$0xff]  ;;  %v10812_v6 = vld [vmem:[#allocation16 + $0x18] sm:$0xff]  }
 0x47b   : > { %6273 = vrot.lane.b32.xlu0 %v15904_v30, %s11199_s22  ;;  %4270 = vst.msk [vmem:[#allocation3 + $0x141] sm:$0xff] %vm4244_vm8, %v4199_v50  ;;  %v2504_v35 = vadd.f32 %v2472_v10, %v2343_v17  ;;  %v6932_v49 = vld [vmem:[#allocation4 + $0x68] sm:$0xff]  ;;  %v6468_v30 = vld [vmem:[#allocation3 + $0x22] sm:$0xff]  ;;  %v6759_v8 = vpack.c.bf16 %v6729_v61, %v6728_v14  ;;  %v6471_v32 = vld [vmem:[#allocation3 + $0x4a] sm:$0xff] }
 0x47c   : > { %5880 = vst.msk [vmem:[#allocation3 + $0x141] sm:$0xff] %vm5854_vm9, %v15876_v33  ;;  %8413 = vmatprep.mubr.msk.bf16.mxu1 %vm662_vm0, %v6932_v49  ;;  %v6499_v48 = vpack.c.bf16 %v6468_v30, %v6467_v37  ;;  %v5795_v7 = vpop.permute.xlu0 %5794  ;;  %v6619_v33 = vld [vmem:[#allocation3 + $0x138] sm:$0xff]  ;;  %7074 = vmatpush1.bf16.msra.mxu0 %v10810_v15  ;;  %v17501_v40 = vld [vmem:[#allocation67_spill] sm:$0xff] }
 0x47d   : > { %2599 = vrot.lane.b32.xlu1 %v2504_v35, %s11196_s20  ;;  %5873 = vst.msk [vmem:[#allocation3 + $0xf1] sm:$0xff] %vm5854_vm9, %v5795_v7  ;;  %7075 = vmatprep.subr.bf16.mxu0 %v11202_v21  ;;  %v6610_v16 = vld [vmem:[#allocation3 + $0xc8] sm:$0xff]  ;;  %v10813_v10 = vld [vmem:[#allocation16 + $0x20] sm:$0xff]   ;;  %v6472_v50 = vld [vmem:[#allocation3 + $0x52] sm:$0xff] }
 0x47e   : > { %10650 = vmatpush1.bf16.msra.mxu1 %v10810_v15  ;;  %5941 = vst.msk [vmem:[#allocation4 + $0x60] sm:$0xff] %vm662_vm0, %v15986_v28  ;;  %v17502_v43 = vld [vmem:[#allocation71_spill] sm:$0xff]  ;;  %v6635_v17 = vpack.c.bf16 %v6610_v16, %v6609_v5  ;;  %v6745_v49 = vld [vmem:[#allocation3 + $0x111] sm:$0xff]  ;;  %v6470_v15 = vld [vmem:[#allocation3 + $0x3a] sm:$0xff] }
 0x47f   : > { %6402 = vrot.lane.b32.xlu0 %v6370_v58, %s11200_s25  ;;  %10642 = vmatprep.subr.bf16.mxu1 %v11202_v21  ;;  %v10814_v60 = vld [vmem:[#allocation16 + $0x28] sm:$0xff]   ;;  %v10815_v62 = vld [vmem:[#allocation16 + $0x30] sm:$0xff]   ;;  %v6469_v63 = vld [vmem:[#allocation3 + $0x32] sm:$0xff] }
 0x480   : > { %7076 = vmatpush1.bf16.msra.mxu0 %v10811_v9  ;;  %v6744_v37 = vld [vmem:[#allocation3 + $0x109] sm:$0xff]  ;;  %v6603_v13 = vld [vmem:[#allocation3 + $0x78] sm:$0xff] }
 0x481   : > { %6414 = vrot.lane.b32.xlu1 %v6376_v27, %s11200_s25  ;;  %7077 = vmatprep.subr.bf16.mxu0 %v11202_v21  ;;  %v6767_v30 = vpack.c.bf16 %v6745_v49, %v6744_v37 }
 0x482   : > { %10651 = vmatpush1.bf16.msra.mxu1 %v10811_v9  ;;  %v6604_v9 = vld [vmem:[#allocation3 + $0x80] sm:$0xff] }
 0x483   : > { %6531 = vrot.lane.b32.xlu0 %v6499_v48, %s11201_s30  ;;  %v6620_v11 = vld [vmem:[#allocation3 + $0x140] sm:$0xff]  ;;  %v5797_v31 = vpop.permute.xlu1 %5796  ;;  %10643 = vmatprep.subr.bf16.mxu1 %v11202_v21 }
 0x484   : > { %v15971_v24 = vpack.c.bf16 %v6620_v11, %v6619_v33  ;;  %5874 = vst.msk [vmem:[#allocation3 + $0xf9] sm:$0xff] %vm5854_vm9, %v5797_v31  ;;  %v6877_v29 = vld [vmem:[#allocation3 + $0x13a] sm:$0xff]  ;;  %v6878_v34 = vld [vmem:[#allocation3 + $0x142] sm:$0xff]  ;;  %v6613_v23 = vld [vmem:[#allocation3 + $0xf0] sm:$0xff]  ;;  %7078 = vmatpush1.bf16.msra.mxu0 %v10812_v6 }
 0x485   : > { %6029 = vrot.lane.b32.xlu1 %v6376_v27, %s11194_s15  ;;  %v15988_v52 = vpack.c.bf16 %v6878_v34, %v6877_v29  ;;  %7079 = vmatprep.subr.bf16.mxu0 %v11202_v21  ;;  %v5904_v33 = vld [vmem:[#allocation3 + $0xc8] sm:$0xff]  ;;  %v6727_v11 = vld [vmem:[#allocation3 + $0x39] sm:$0xff]  ;;  %v6500_v34 = vpack.c.bf16 %v6470_v15, %v6469_v63  ;;  %v5971_v5 = vld [vmem:[#allocation3 + $0xf1] sm:$0xff] }
 0x486   : > { %5948 = vst.msk [vmem:[#allocation4 + $0xd0] sm:$0xff] %vm662_vm0, %v15971_v24  ;;  %10652 = vmatpush1.bf16.msra.mxu1 %v10812_v6  ;;  %v6733_v6 = vld [vmem:[#allocation3 + $0x81] sm:$0xff] }
 0x487   : > { %6017 = vrot.lane.b32.xlu0 %v6370_v58, %s11194_s15  ;;  %6914 = vst.msk [vmem:[#allocation4 + $0xb8] sm:$0xff] %vm662_vm0, %v15988_v52  ;;  %10644 = vmatprep.subr.bf16.mxu1 %v11202_v21 }
 0x488   : > { %7080 = vmatpush1.bf16.msra.mxu0 %v10813_v10 }
 0x489   : > { %6156 = vrot.lane.b32.xlu1 %v15910_v38, %s11195_s11  ;;  %7081 = vmatprep.subr.bf16.mxu0 %v11202_v21 }
 0x48a   : > { %v4193_v38 = vpop.permute.xlu0 %4192  ;;  %10653 = vmatpush1.bf16.msra.mxu1 %v10813_v10 }
 0x48b   : > { %6146 = vrot.lane.b32.xlu0 %v6499_v48, %s11195_s11  ;;  %v6871_v59 = vld [vmem:[#allocation3 + $0xf2] sm:$0xff]  ;;  %v6872_v2 = vld [vmem:[#allocation3 + $0xfa] sm:$0xff]  ;;  %4267 = vst.msk [vmem:[#allocation3 + $0x121] sm:$0xff] %vm4244_vm8, %v4193_v38  ;;  %10645 = vmatprep.subr.bf16.mxu1 %v11202_v21 }
 0x48c   : > { %v6614_v4 = vld [vmem:[#allocation3 + $0xf8] sm:$0xff]  ;;  %v15999_v54 = vpack.c.bf16 %v6872_v2, %v6871_v59  ;;  %5877 = vst.msk [vmem:[#allocation3 + $0x121] sm:$0xff] %vm5854_vm9, %v17501_v40  ;;  %7082 = vmatpush1.bf16.msra.mxu0 %v10814_v60  ;;  %v6628_v59 = vld [vmem:[#allocation3 + $0x1a0] sm:$0xff]  ;;  %v16090_v2 = vpack.c.bf16 %v6604_v9, %v6603_v13 }
 0x48d   : > { %6804 = vrot.lane.b32.xlu1 %v6765_v41, %s11203_s16  ;;  %v16003_v46 = vpack.c.bf16 %v6614_v4, %v6613_v23  ;;  %7083 = vmatprep.subr.bf16.mxu0 %v11202_v21  ;;  %v10817_v48 = vld [vmem:[#allocation16 + $0x40] sm:$0xff]  }
 0x48e   : > { %6911 = vst.msk [vmem:[#allocation4 + $0x88] sm:$0xff] %vm662_vm0, %v15999_v54  ;;  %10654 = vmatpush1.bf16.msra.mxu1 %v10814_v60  ;;  %v6627_v23 = vld [vmem:[#allocation3 + $0x198] sm:$0xff] }
 0x48f   : > { %6663 = vrot.lane.b32.xlu0 %v15912_v56, %s11204_s26  ;;  %5945 = vst.msk [vmem:[#allocation4 + $0xa0] sm:$0xff] %vm662_vm0, %v16003_v46  ;;  %10646 = vmatprep.subr.bf16.mxu1 %v11202_v21  ;;  %v6732_v4 = vld [vmem:[#allocation3 + $0x79] sm:$0xff] }
 0x490   : > { %7084 = vmatpush1.bf16.msra.mxu0 %v10815_v62  ;;  %v16098_v16 = vpack.c.bf16 %v6733_v6, %v6732_v4 }
 0x491   : > { %6418 = vrot.lane.b32.xlu1 %v6765_v41, %s11200_s25  ;;  %v4195_v19 = vpop.permute.xlu1 %4194  ;;  %7085 = vmatprep.subr.bf16.mxu0 %v11202_v21 }
 0x492   : > { %4268 = vst.msk [vmem:[#allocation3 + $0x129] sm:$0xff] %vm4244_vm8, %v4195_v19  ;;  %10655 = vmatpush1.bf16.msra.mxu1 %v10815_v62 }
 0x493   : > { %6792 = vrot.lane.b32.xlu0 %v6759_v8, %s11203_s16  ;;  %5878 = vst.msk [vmem:[#allocation3 + $0x129] sm:$0xff] %vm5854_vm9, %v17502_v43  ;;  %v6617_v35 = vld [vmem:[#allocation3 + $0x120] sm:$0xff]  ;;  %10647 = vmatprep.subr.bf16.mxu1 %v11202_v21  ;;  %v6731_v43 = vld [vmem:[#allocation3 + $0x69] sm:$0xff] }
 0x495   : > { %6033 = vrot.lane.b32.xlu1 %v6765_v41, %s11194_s15 }
 0x497   : > { %6277 = vrot.lane.b32.xlu0 %v15912_v56, %s11199_s22  ;;  %v2590_v45 = vpop.permute.xlu0 %2589  ;;  %v6501_v56 = vpack.c.bf16 %v6472_v50, %v6471_v32 }
 0x498   : > { %2660 = vst.msk [vmem:[#allocation3 + $0x151] sm:$0xff] %vm2633_vm7, %v2590_v45  ;;  %v6749_v45 = vld [vmem:[#allocation3 + $0x141] sm:$0xff] }
 0x499   : > { %6673 = vrot.lane.b32.xlu1 %v6635_v17, %s11204_s26  ;;  %4271 = vst.msk [vmem:[#allocation3 + $0x151] sm:$0xff] %vm4244_vm8, %v15726_v51 }
 0x49a   : > { %v6618_v36 = vld [vmem:[#allocation3 + $0x128] sm:$0xff]  ;;  %5881 = vst.msk [vmem:[#allocation3 + $0x151] sm:$0xff] %vm5854_vm9, %v15756_v3  ;;  %v10816_v3 = vld [vmem:[#allocation16 + $0x38] sm:$0xff]  }
 0x49b   : > { %6406 = vrot.lane.b32.xlu0 %v6759_v8, %s11200_s25  ;;  %v16032_v58 = vpack.c.bf16 %v6618_v36, %v6617_v35  ;;  %7086 = vmatpush1.bf16.msra.mxu0 %v10816_v3  ;;  %v6875_v27 = vld [vmem:[#allocation3 + $0x122] sm:$0xff]  ;;  %v6876_v7 = vld [vmem:[#allocation3 + $0x12a] sm:$0xff] }
 0x49c   : > { %7087 = vmatprep.subr.bf16.mxu0 %v11202_v21  ;;  %10656 = vmatpush1.bf16.msra.mxu1 %v10816_v3  ;;  %v16054_v20 = vpack.c.bf16 %v6876_v7, %v6875_v27 }
 0x49d   : > { %6287 = vrot.lane.b32.xlu1 %v6635_v17, %s11199_s22  ;;  %5947 = vst.msk [vmem:[#allocation4 + $0xc0] sm:$0xff] %vm662_vm0, %v16032_v58  ;;  %v2592_v51 = vpop.permute.xlu1 %2591  ;;  %10648 = vmatprep.subr.bf16.mxu1 %v11202_v21  ;;  %v6730_v17 = vld [vmem:[#allocation3 + $0x61] sm:$0xff] }
 0x49e   : > { %2661 = vst.msk [vmem:[#allocation3 + $0x159] sm:$0xff] %vm2633_vm7, %v2592_v51  ;;  %v6760_v50 = vpack.c.bf16 %v6731_v43, %v6730_v17  ;;  %v6088_v43 = vld [vmem:[#allocation3 + $0x62] sm:$0xff] }
 0x49f   : > { %6535 = vrot.lane.b32.xlu0 %v6501_v56, %s11201_s30  ;;  %4272 = vst.msk [vmem:[#allocation3 + $0x159] sm:$0xff] %vm4244_vm8, %v15754_v55  ;;  %v5903_v55 = vld [vmem:[#allocation3 + $0xc0] sm:$0xff]  ;;  %7088 = vmatpush1.bf16.msra.mxu0 %v10817_v48 }
 0x4a0   : > { %5882 = vst.msk [vmem:[#allocation3 + $0x159] sm:$0xff] %vm5854_vm9, %v15790_v57  ;;  %v5927_v57 = vpack.c.bf16 %v5904_v33, %v5903_v55  ;;  %10657 = vmatpush1.bf16.msra.mxu1 %v10817_v48  ;;  %v5963_v48 = vld [vmem:[#allocation3 + $0x91] sm:$0xff] }
 0x4a1   : > { %6545 = vrot.lane.b32.xlu1 %v15923_v25, %s11201_s30  ;;  %6913 = vst.msk [vmem:[#allocation4 + $0xa8] sm:$0xff] %vm662_vm0, %v16054_v20  ;;  %v6621_v41 = vld [vmem:[#allocation3 + $0x150] sm:$0xff] }
 0x4a2   : > { %5943 = vst.msk [vmem:[#allocation4 + $0x80] sm:$0xff] %vm662_vm0, %v5927_v57  ;;  %v6747_v57 = vld [vmem:[#allocation3 + $0x129] sm:$0xff] }
 0x4a3   : > { %6021 = vrot.lane.b32.xlu0 %v6759_v8, %s11194_s15 }
 0x4a5   : > { %6160 = vrot.lane.b32.xlu1 %v15923_v25, %s11195_s11  ;;  %v6726_v25 = vld [vmem:[#allocation3 + $0x31] sm:$0xff] }
 0x4a6   : > { %v6758_v21 = vpack.c.bf16 %v6727_v11, %v6726_v25  ;;  %v6746_v11 = vld [vmem:[#allocation3 + $0x121] sm:$0xff] }
 0x4a7   : > { %6150 = vrot.lane.b32.xlu0 %v6501_v56, %s11195_s11  ;;  %v6622_v29 = vld [vmem:[#allocation3 + $0x158] sm:$0xff]  ;;  %v6768_v25 = vpack.c.bf16 %v6747_v57, %v6746_v11 }
 0x4a8   : > { %v16064_v18 = vpop.permute.xlu0 %4208  ;;  %v16073_v53 = vpack.c.bf16 %v6622_v29, %v6621_v41  ;;  %v6493_v14 = vld [vmem:[#allocation3 + $0x152] sm:$0xff]  ;;  %v6494_v40 = vld [vmem:[#allocation3 + $0x15a] sm:$0xff] }
 0x4a9   : > { %6808 = vrot.lane.b32.xlu1 %v6767_v30, %s11203_s16  ;;  %v16096_v8 = vpack.c.bf16 %v6494_v40, %v6493_v14  ;;  %v6748_v56 = vld [vmem:[#allocation3 + $0x139] sm:$0xff]  ;;  %v6750_v14 = vld [vmem:[#allocation3 + $0x151] sm:$0xff] }
 0x4aa   : > { %5949 = vst.msk [vmem:[#allocation4 + $0xe0] sm:$0xff] %vm662_vm0, %v16073_v53  ;;  %v6769_v35 = vpack.c.bf16 %v6749_v45, %v6748_v56  ;;  %v6475_v45 = vld [vmem:[#allocation3 + $0x7a] sm:$0xff]  ;;  %v6476_v56 = vld [vmem:[#allocation3 + $0x82] sm:$0xff] }
 0x4ab   : > { %6661 = vrot.lane.b32.xlu0 %v15925_v0, %s11204_s26  ;;  %6915 = vst.msk [vmem:[#allocation4 + $0xc8] sm:$0xff] %vm662_vm0, %v16096_v8 }
 0x4ad   : > { %6293 = vrot.lane.b32.xlu1 %v15943_v42, %s11199_s22 }
 0x4af   : > { %6790 = vrot.lane.b32.xlu0 %v6758_v21, %s11203_s16 }
 0x4b1   : > { %6422 = vrot.lane.b32.xlu1 %v6767_v30, %s11200_s25 }
 0x4b3   : > { %6275 = vrot.lane.b32.xlu0 %v15925_v0, %s11199_s22  ;;  %v16079_v0 = vpop.permute.xlu1 %5818 }
 0x4b5   : > { %v2594_v31 = vpop.permute.xlu0 %2593  ;;  %6551 = vrot.lane.b32.xlu1 %v15936_v1, %s11201_s30 }
 0x4b6   : > { %2662 = vst.msk [vmem:[#allocation3 + $0x169] sm:$0xff] %vm2633_vm7, %v2594_v31 }
 0x4b7   : > { %6404 = vrot.lane.b32.xlu0 %v6758_v21, %s11200_s25 }
 0x4b9   : > { %6037 = vrot.lane.b32.xlu1 %v6767_v30, %s11194_s15  ;;  %v5964_v30 = vld [vmem:[#allocation3 + $0x99] sm:$0xff] }
 0x4ba   : > { %v16156_v55 = vpack.c.bf16 %v5964_v30, %v5963_v48 }
 0x4bb   : > { %6533 = vrot.lane.b32.xlu0 %v6500_v34, %s11201_s30  ;;  %v16084_v61 = vpop.permute.xlu1 %4210 }
 0x4bd   : > { %6166 = vrot.lane.b32.xlu1 %v15936_v1, %s11195_s11  ;;  %v6644_v1 = vpack.c.bf16 %v6628_v59, %v6627_v23 }
 0x4bf   : > { %6019 = vrot.lane.b32.xlu0 %v6758_v21, %s11194_s15 }
 0x4c1   : > { %6677 = vrot.lane.b32.xlu1 %v16003_v46, %s11204_s26 }
 0x4c2   : > { %v4205_v38 = vpop.permute.xlu0 %4204 }
 0x4c3   : > { %6148 = vrot.lane.b32.xlu0 %v6500_v34, %s11195_s11  ;;  %4273 = vst.msk [vmem:[#allocation3 + $0x169] sm:$0xff] %vm4244_vm8, %v4205_v38  ;;  %v6739_v34 = vld [vmem:[#allocation3 + $0xc9] sm:$0xff] }
 0x4c5   : > { %6291 = vrot.lane.b32.xlu1 %v16003_v46, %s11199_s22  ;;  %v5972_v46 = vld [vmem:[#allocation3 + $0xf9] sm:$0xff] }
 0x4c6   : > { %v16111_v32 = vpack.c.bf16 %v5972_v46, %v5971_v5 }
 0x4c7   : > { %6667 = vrot.lane.b32.xlu0 %v16090_v2, %s11204_s26 }
 0x4c8   : > { %v2596_v19 = vpop.permute.xlu1 %2595 }
 0x4c9   : > { %2663 = vst.msk [vmem:[#allocation3 + $0x171] sm:$0xff] %vm2633_vm7, %v2596_v19  ;;  %6691 = vrot.lane.b32.xlu1 %v6644_v1, %s11204_s26  ;;  %v6751_v1 = vld [vmem:[#allocation3 + $0x159] sm:$0xff] }
 0x4ca   : > { %v6770_v6 = vpack.c.bf16 %v6751_v1, %v6750_v14 }
 0x4cb   : > { %6796 = vrot.lane.b32.xlu0 %v16098_v16, %s11203_s16 }
 0x4cd   : > { %6549 = vrot.lane.b32.xlu1 %v15999_v54, %s11201_s30 }
 0x4cf   : > { %6665 = vrot.lane.b32.xlu0 %v15941_v12, %s11204_s26  ;;  %v5815_v10 = vpop.permute.xlu0 %5814 }
 0x4d0   : > { %5883 = vst.msk [vmem:[#allocation3 + $0x169] sm:$0xff] %vm5854_vm9, %v5815_v10  ;;  %v6089_v10 = vld [vmem:[#allocation3 + $0x6a] sm:$0xff] }
 0x4d1   : > { %6035 = vrot.lane.b32.xlu1 %v16111_v32, %s11194_s15  ;;  %v6116_v17 = vpack.c.bf16 %v6089_v10, %v6088_v43  ;;  %v6885_v43 = vld [vmem:[#allocation3 + $0x19a] sm:$0xff]  ;;  %v6886_v10 = vld [vmem:[#allocation3 + $0x1a2] sm:$0xff] }
 0x4d3   : > { %6794 = vrot.lane.b32.xlu0 %v6760_v50, %s11203_s16 }
 0x4d5   : > { %6164 = vrot.lane.b32.xlu1 %v15999_v54, %s11195_s11 }
 0x4d6   : > { %v4207_v60 = vpop.permute.xlu1 %4206 }
 0x4d7   : > { %4274 = vst.msk [vmem:[#allocation3 + $0x171] sm:$0xff] %vm4244_vm8, %v4207_v60  ;;  %6279 = vrot.lane.b32.xlu0 %v15941_v12, %s11199_s22  ;;  %v6623_v62 = vld [vmem:[#allocation3 + $0x168] sm:$0xff] }
 0x4d9   : > { %6683 = vrot.lane.b32.xlu1 %v15971_v24, %s11204_s26 }
 0x4db   : > { %6408 = vrot.lane.b32.xlu0 %v6760_v50, %s11200_s25 }
 0x4dd   : > { %6812 = vrot.lane.b32.xlu1 %v6769_v35, %s11203_s16  ;;  %v5821_v12 = vpop.permute.xlu0 %5820 }
 0x4df   : > { %6537 = vrot.lane.b32.xlu0 %v15857_v39, %s11201_s30 }
 0x4e1   : > { %6297 = vrot.lane.b32.xlu1 %v15971_v24, %s11199_s22 }
 0x4e2   : > { %v5817_v36 = vpop.permute.xlu1 %5816 }
 0x4e3   : > { %6023 = vrot.lane.b32.xlu0 %v6760_v50, %s11194_s15  ;;  %5884 = vst.msk [vmem:[#allocation3 + $0x171] sm:$0xff] %vm5854_vm9, %v5817_v36 }
 0x4e5   : > { %6426 = vrot.lane.b32.xlu1 %v6769_v35, %s11200_s25 }
 0x4e7   : > { %6285 = vrot.lane.b32.xlu0 %v15947_v44, %s11199_s22 }
 0x4e9   : > { %v2598_v54 = vpop.permute.xlu0 %2597  ;;  %6555 = vrot.lane.b32.xlu1 %v15988_v52, %s11201_s30 }
 0x4ea   : > { %v6881_v51 = vld [vmem:[#allocation3 + $0x16a] sm:$0xff]  ;;  %v6882_v3 = vld [vmem:[#allocation3 + $0x172] sm:$0xff]  ;;  %2664 = vst.msk [vmem:[#allocation3 + $0x181] sm:$0xff] %vm2633_vm7, %v2598_v54  ;;  %v6503_v54 = vpack.c.bf16 %v6476_v56, %v6475_v45 }
 0x4eb   : > { %v6624_v39 = vld [vmem:[#allocation3 + $0x170] sm:$0xff]  ;;  %v16137_v24 = vpack.c.bf16 %v6882_v3, %v6881_v51  ;;  %4275 = vst.msk [vmem:[#allocation3 + $0x181] sm:$0xff] %vm4244_vm8, %v16064_v18  ;;  %6543 = vrot.lane.b32.xlu0 %v15907_v26, %s11201_s30 }
 0x4ec   : > { %v16143_v49 = vpack.c.bf16 %v6624_v39, %v6623_v62  ;;  %5885 = vst.msk [vmem:[#allocation3 + $0x181] sm:$0xff] %vm5854_vm9, %v16079_v0  ;;  %v6738_v0 = vld [vmem:[#allocation3 + $0xc1] sm:$0xff]  ;;  %v6753_v3 = vld [vmem:[#allocation3 + $0x171] sm:$0xff] }
 0x4ed   : > { %6916 = vst.msk [vmem:[#allocation4 + $0xd8] sm:$0xff] %vm662_vm0, %v16137_v24  ;;  %v6274_v37 = vpop.permute.xlu0 %6273  ;;  %6041 = vrot.lane.b32.xlu1 %v6769_v35, %s11194_s15  ;;  %v6764_v9 = vpack.c.bf16 %v6739_v34, %v6738_v0 }
 0x4ee   : > { %5950 = vst.msk [vmem:[#allocation4 + $0xf0] sm:$0xff] %vm662_vm0, %v16143_v49 }
 0x4ef   : > { %6322 = vst.msk [vmem:[#allocation4] sm:$0xff] %vm6321_vm11, %v6274_v37  ;;  %6158 = vrot.lane.b32.xlu0 %v15907_v26, %s11195_s11  ;;  %v2600_v27 = vpop.permute.xlu1 %2599 }
 0x4f0   : > { %2665 = vst.msk [vmem:[#allocation3 + $0x189] sm:$0xff] %vm2633_vm7, %v2600_v27 }
 0x4f1   : > { %v6403_v7 = vpop.permute.xlu0 %6402  ;;  %4276 = vst.msk [vmem:[#allocation3 + $0x189] sm:$0xff] %vm4244_vm8, %v16084_v61  ;;  %6170 = vrot.lane.b32.xlu1 %v15988_v52, %s11195_s11 }
 0x4f2   : > { %6451 = vst.msk [vmem:[#allocation4] sm:$0xff] %vm6450_vm12, %v6403_v7 }
 0x4f3   : > { %5886 = vst.msk [vmem:[#allocation3 + $0x189] sm:$0xff] %vm5854_vm9, %v5821_v12  ;;  %6027 = vrot.lane.b32.xlu0 %v16156_v55, %s11194_s15  ;;  %v16166_v26 = vpop.permute.xlu1 %6414 }
 0x4f5   : > { %v6532_v33 = vpop.permute.xlu0 %6531  ;;  %6681 = vrot.lane.b32.xlu1 %v16032_v58, %s11204_s26 }
 0x4f6   : > { %6580 = vst.msk [vmem:[#allocation4] sm:$0xff] %vm6579_vm13, %v6532_v33  ;;  %v6924_v33 = vld [vmem:[#allocation4 + $0x28] sm:$0xff] }
 0x4f7   : > { %6675 = vrot.lane.b32.xlu0 %v15949_v47, %s11204_s26  ;;  %v6030_v52 = vpop.permute.xlu1 %6029 }
 0x4f8   : > { %6071 = vst.msk [vmem:[#allocation4 + $0x70] sm:$0xff] %vm6063_vm5, %v6030_v52 }
 0x4f9   : > { %v6018_v21 = vpop.permute.xlu0 %6017  ;;  %6810 = vrot.lane.b32.xlu1 %v6768_v25, %s11203_s16 }
 0x4fa   : > { %6065 = vst.msk [vmem:[#allocation4 + $0x10] sm:$0xff] %vm6063_vm5, %v6018_v21  ;;  %v6497_v18 = vld [vmem:[#allocation3 + $0x182] sm:$0xff]  ;;  %v6498_v31 = vld [vmem:[#allocation3 + $0x18a] sm:$0xff]  ;;  %v6477_v21 = vld [vmem:[#allocation3 + $0x92] sm:$0xff] }
 0x4fb   : > { %6289 = vrot.lane.b32.xlu0 %v15949_v47, %s11199_s22  ;;  %v16178_v63 = vpop.permute.xlu1 %6156  ;;  %v16180_v15 = vpack.c.bf16 %v6498_v31, %v6497_v18  ;;  %v6478_v18 = vld [vmem:[#allocation3 + $0x9a] sm:$0xff]  ;;  %v6626_v34 = vld [vmem:[#allocation3 + $0x188] sm:$0xff] }
 0x4fd   : > { %v6147_v41 = vpop.permute.xlu0 %6146  ;;  %6295 = vrot.lane.b32.xlu1 %v16032_v58, %s11199_s22  ;;  %6917 = vst.msk [vmem:[#allocation4 + $0xe8] sm:$0xff] %vm662_vm0, %v16180_v15 }
 0x4fe   : > { %6194 = vst.msk [vmem:[#allocation4 + $0x10] sm:$0xff] %vm6192_vm6, %v6147_v41 }
 0x4ff   : > { %6547 = vrot.lane.b32.xlu0 %v15918_v22, %s11201_s30  ;;  %v16189_v29 = vpop.permute.xlu1 %6804 }
 0x501   : > { %v16191_v47 = vpop.permute.xlu0 %6663  ;;  %6424 = vrot.lane.b32.xlu1 %v6768_v25, %s11200_s25 }
 0x503   : > { %6162 = vrot.lane.b32.xlu0 %v15918_v22, %s11195_s11  ;;  %v16196_v13 = vpop.permute.xlu1 %6418 }
 0x505   : > { %v16198_v58 = vpop.permute.xlu0 %6792  ;;  %6553 = vrot.lane.b32.xlu1 %v16054_v20, %s11201_s30 }
 0x507   : > { %6802 = vrot.lane.b32.xlu0 %v6764_v9, %s11203_s16  ;;  %v6034_v61 = vpop.permute.xlu1 %6033 }
 0x508   : > { %6073 = vst.msk [vmem:[#allocation4 + $0x90] sm:$0xff] %vm6063_vm5, %v6034_v61  ;;  %v6737_v61 = vld [vmem:[#allocation3 + $0xb1] sm:$0xff] }
 0x509   : > { %v16203_v38 = vpop.permute.xlu0 %6277  ;;  %6039 = vrot.lane.b32.xlu1 %v6768_v25, %s11194_s15 }
 0x50b   : > { %6416 = vrot.lane.b32.xlu0 %v6764_v9, %s11200_s25  ;;  %v16208_v22 = vpop.permute.xlu1 %6673 }
 0x50d   : > { %v16210_v23 = vpop.permute.xlu0 %6406  ;;  %6168 = vrot.lane.b32.xlu1 %v16054_v20, %s11195_s11 }
 0x50f   : > { %6031 = vrot.lane.b32.xlu0 %v6764_v9, %s11194_s15  ;;  %v16215_v59 = vpop.permute.xlu1 %6287 }
 0x511   : > { %v16217_v4 = vpop.permute.xlu0 %6535  ;;  %6685 = vrot.lane.b32.xlu1 %v16073_v53, %s11204_s26 }
 0x513   : > { %6679 = vrot.lane.b32.xlu0 %v15943_v42, %s11204_s26  ;;  %v16223_v40 = vpop.permute.xlu1 %6545 }
 0x515   : > { %v6022_v19 = vpop.permute.xlu0 %6021  ;;  %6814 = vrot.lane.b32.xlu1 %v6770_v6, %s11203_s16 }
 0x516   : > { %6067 = vst.msk [vmem:[#allocation4 + $0x30] sm:$0xff] %vm6063_vm5, %v6022_v19  ;;  %v6926_v19 = vld [vmem:[#allocation4 + $0x38] sm:$0xff] }
 0x517   : > { %6806 = vrot.lane.b32.xlu0 %v16111_v32, %s11203_s16  ;;  %v16229_v20 = vpop.permute.xlu1 %6160 }
 0x519   : > { %v6151_v46 = vpop.permute.xlu0 %6150  ;;  %6299 = vrot.lane.b32.xlu1 %v16073_v53, %s11199_s22 }
 0x51a   : > { %6196 = vst.msk [vmem:[#allocation4 + $0x30] sm:$0xff] %vm6192_vm6, %v6151_v46 }
 0x51b   : > { %6420 = vrot.lane.b32.xlu0 %v16111_v32, %s11200_s25  ;;  %v16236_v42 = vpop.permute.xlu1 %6808 }
 0x51d   : > { %v6662_v5 = vpop.permute.xlu0 %6661  ;;  %6428 = vrot.lane.b32.xlu1 %v6770_v6, %s11200_s25 }
 0x51e   : > { %6710 = vst.msk [vmem:[#allocation4] sm:$0xff] %vm6709_vm14, %v6662_v5  ;;  %v6902_v5 = vpack.c.bf16 %v6886_v10, %v6885_v43  ;;  %v6944_v43 = vld [vmem:[#allocation4 + $0xc8] sm:$0xff] }
 0x51f   : > { %6152 = vrot.lane.b32.xlu0 %v6116_v17, %s11195_s11  ;;  %v16241_v50 = vpop.permute.xlu1 %6293 }
 0x520   : > { %6918 = vst.msk [vmem:[#allocation4 + $0xf8] sm:$0xff] %vm662_vm0, %v6902_v5 }
 0x521   : > { %v6791_v60 = vpop.permute.xlu0 %6790  ;;  %6557 = vrot.lane.b32.xlu1 %v16096_v8, %s11201_s30 }
 0x522   : > { %6839 = vst.msk [vmem:[#allocation4] sm:$0xff] %vm6838_vm15, %v6791_v60  ;;  %v6756_v60 = vld [vmem:[#allocation3 + $0x199] sm:$0xff] }
 0x523   : > { %6281 = vrot.lane.b32.xlu0 %v16090_v2, %s11199_s22  ;;  %v16248_v53 = vpop.permute.xlu1 %6422  ;;  %v6922_v2 = vld [vmem:[#allocation4 + $0x18] sm:$0xff] }
 0x525   : > { %v6276_v32 = vpop.permute.xlu0 %6275  ;;  %6043 = vrot.lane.b32.xlu1 %v6770_v6, %s11194_s15 }
 0x526   : > { %6323 = vst.msk [vmem:[#allocation4 + $0x10] sm:$0xff] %vm6321_vm11, %v6276_v32 }
 0x527   : > { %6410 = vrot.lane.b32.xlu0 %v16098_v16, %s11200_s25  ;;  %v16254_v35 = vpop.permute.xlu1 %6551 }
 0x529   : > { %v6405_v36 = vpop.permute.xlu0 %6404  ;;  %v6919_v12 = vld [vmem:[#allocation4] sm:$0xff]  ;;  %6172 = vrot.lane.b32.xlu1 %v16096_v8, %s11195_s11 }
 0x52a   : > { %6452 = vst.msk [vmem:[#allocation4 + $0x10] sm:$0xff] %vm6450_vm12, %v6405_v36  ;;  %7104 = vmatmul.mubr.bf16.vlgmr.msra.gmra.mrb[32].mxu0 %v6919_v12  ;;  %v6752_v8 = vld [vmem:[#allocation3 + $0x169] sm:$0xff]  ;;  %v6928_v36 = vld [vmem:[#allocation4 + $0x48] sm:$0xff] }
 0x52b   : > { %6539 = vrot.lane.b32.xlu0 %v6503_v54, %s11201_s30  ;;  %8408 = vmatprep.mubr.msk.bf16.mxu0 %vm662_vm0, %v6922_v2  ;;  %v6038_v62 = vpop.permute.xlu1 %6037  ;;  %v6771_v37 = vpack.c.bf16 %v6753_v3, %v6752_v8 }
 0x52c   : > { %6075 = vst.msk [vmem:[#allocation4 + $0xb0] sm:$0xff] %vm6063_vm5, %v6038_v62 }
 0x52d   : > { %v6534_v51 = vpop.permute.xlu0 %6533  ;;  %6687 = vrot.lane.b32.xlu1 %v16143_v49, %s11204_s26 }
 0x52e   : > { %6581 = vst.msk [vmem:[#allocation4 + $0x10] sm:$0xff] %vm6579_vm13, %v6534_v51 }
 0x52f   : > { %6711 = vst.msk [vmem:[#allocation4 + $0x10] sm:$0xff] %vm6709_vm14, %v16191_v47  ;;  %6669 = vrot.lane.b32.xlu0 %v15986_v28, %s11204_s26  ;;  %v6167_v39 = vpop.permute.xlu1 %6166  ;;  %v6504_v47 = vpack.c.bf16 %v6478_v18, %v6477_v21 }
 0x530   : > { %6840 = vst.msk [vmem:[#allocation4 + $0x10] sm:$0xff] %vm6838_vm15, %v16198_v58 }
 0x531   : > { %v6020_v30 = vpop.permute.xlu0 %6019  ;;  %6204 = vst.msk [vmem:[#allocation4 + $0xb0] sm:$0xff] %vm6192_vm6, %v6167_v39  ;;  %6816 = vrot.lane.b32.xlu1 %v6771_v37, %s11203_s16 }
 0x532   : > { %6066 = vst.msk [vmem:[#allocation4 + $0x20] sm:$0xff] %vm6063_vm5, %v6020_v30 }
 0x533   : > { %6798 = vrot.lane.b32.xlu0 %v16156_v55, %s11203_s16  ;;  %v16276_v27 = vpop.permute.xlu1 %6677 }
 0x535   : > { %v6149_v48 = vpop.permute.xlu0 %6148  ;;  %6301 = vrot.lane.b32.xlu1 %v16143_v49, %s11199_s22 }
 0x536   : > { %6195 = vst.msk [vmem:[#allocation4 + $0x20] sm:$0xff] %vm6192_vm6, %v6149_v48 }
 0x537   : > { %6324 = vst.msk [vmem:[#allocation4 + $0x20] sm:$0xff] %vm6321_vm11, %v16203_v38  ;;  %6025 = vrot.lane.b32.xlu0 %v16098_v16, %s11194_s15  ;;  %v6921_v7 = vld [vmem:[#allocation4 + $0x10] sm:$0xff]  ;;  %v16287_v57 = vpop.permute.xlu1 %6291  ;;  %v6736_v38 = vld [vmem:[#allocation3 + $0xa9] sm:$0xff] }
 0x538   : > { %6453 = vst.msk [vmem:[#allocation4 + $0x20] sm:$0xff] %vm6450_vm12, %v16210_v23  ;;  %7112 = vmatmul.mubr.bf16.gmra.mrb[36].mxu0 %v6921_v7  ;;  %v6763_v6 = vpack.c.bf16 %v6737_v61, %v6736_v38 }
 0x539   : > { %6582 = vst.msk [vmem:[#allocation4 + $0x20] sm:$0xff] %vm6579_vm13, %v16217_v4  ;;  %8409 = vmatprep.mubr.msk.bf16.mxu0 %vm662_vm0, %v6924_v33  ;;  %v6668_v49 = vpop.permute.xlu0 %6667  ;;  %6430 = vrot.lane.b32.xlu1 %v6771_v37, %s11200_s25 }
 0x53b   : > { %6154 = vrot.lane.b32.xlu0 %v6503_v54, %s11195_s11  ;;  %v16294_v11 = vpop.permute.xlu1 %6691 }
 0x53d   : > { %v6797_v16 = vpop.permute.xlu0 %6796  ;;  %6559 = vrot.lane.b32.xlu1 %v16137_v24, %s11201_s30 }
 0x53f   : > { %6283 = vrot.lane.b32.xlu0 %v15986_v28, %s11199_s22  ;;  %v16300_v52 = vpop.permute.xlu1 %6549  ;;  %v6625_v28 = vld [vmem:[#allocation3 + $0x180] sm:$0xff] }
 0x540   : > { %v6643_v58 = vpack.c.bf16 %v6626_v34, %v6625_v28  ;;  %v6938_v28 = vld [vmem:[#allocation4 + $0x98] sm:$0xff] }
 0x541   : > { %v6666_v25 = vpop.permute.xlu0 %6665  ;;  %6045 = vrot.lane.b32.xlu1 %v6771_v37, %s11194_s15  ;;  %s11100_s15 = scalar_lea.vmem %s11099_s29, 8192 }
 0x542   : > { %6712 = vst.msk [vmem:[#allocation4 + $0x20] sm:$0xff] %vm6709_vm14, %v6666_v25  ;;  %v6934_v25 = vld [vmem:[#allocation4 + $0x78] sm:$0xff]  ;;  %p11102_p8 = scmp.lt.s32.totalorder %s11100_s15, %s11094_s23 }
 0x543   : > { %6412 = vrot.lane.b32.xlu0 %v16156_v55, %s11200_s25  ;;  %v6036_v31 = vpop.permute.xlu1 %6035  ;;  %v6755_v55 = vld [vmem:[#allocation3 + $0x189] sm:$0xff] }
 0x544   : > { %6074 = vst.msk [vmem:[#allocation4 + $0xa0] sm:$0xff] %vm6063_vm5, %v6036_v31  ;;  %v6936_v31 = vld [vmem:[#allocation4 + $0x88] sm:$0xff]  ;;  %p11103_p13 = por %p11102_p8, %p11101_p4 }
 0x545   : > { %v6795_v41 = vpop.permute.xlu0 %6794  ;;  %6174 = vrot.lane.b32.xlu1 %v16137_v24, %s11195_s11  ;;  %v6754_v24 = vld [vmem:[#allocation3 + $0x181] sm:$0xff] }
 0x546   : > { %6841 = vst.msk [vmem:[#allocation4 + $0x20] sm:$0xff] %vm6838_vm15, %v6795_v41  ;;  %v6772_v4 = vpack.c.bf16 %v6755_v55, %v6754_v24  ;;  %p11104_p1 = pnand %p11103_p13, %p11097_p12 }
 0x547   : > { %6541 = vrot.lane.b32.xlu0 %v6504_v47, %s11201_s30  ;;  %v6165_v0 = vpop.permute.xlu1 %6164 }
 0x548   : > { %6203 = vst.msk [vmem:[#allocation4 + $0xa0] sm:$0xff] %vm6192_vm6, %v6165_v0 }
 0x549   : > { %v6280_v9 = vpop.permute.xlu0 %6279  ;;  %6332 = vst.msk [vmem:[#allocation4 + $0xa0] sm:$0xff] %vm6321_vm11, %v16241_v50  ;;  %6689 = vrot.lane.b32.xlu1 %v6643_v58, %s11204_s26 }
 0x54a   : > { %6325 = vst.msk [vmem:[#allocation4 + $0x30] sm:$0xff] %vm6321_vm11, %v6280_v9 }
 0x54b   : > { %6671 = vrot.lane.b32.xlu0 %v15947_v44, %s11204_s26  ;;  %6461 = vst.msk [vmem:[#allocation4 + $0xa0] sm:$0xff] %vm6450_vm12, %v16248_v53  ;;  %v16322_v23 = vpop.permute.xlu1 %6683  ;;  %v6757_v53 = vld [vmem:[#allocation3 + $0x1a1] sm:$0xff] }
 0x54c   : > { %6590 = vst.msk [vmem:[#allocation4 + $0xa0] sm:$0xff] %vm6579_vm13, %v16254_v35  ;;  %v6773_v56 = vpack.c.bf16 %v6757_v53, %v6756_v60 }
 0x54d   : > { %v6409_v1 = vpop.permute.xlu0 %6408  ;;  %v6923_v14 = vld [vmem:[#allocation4 + $0x20] sm:$0xff]  ;;  %6818 = vrot.lane.b32.xlu1 %v6772_v4, %s11203_s16 }
 0x54e   : > { %6454 = vst.msk [vmem:[#allocation4 + $0x30] sm:$0xff] %vm6450_vm12, %v6409_v1  ;;  %7120 = vmatmul.mubr.bf16.gmra.mrb[40].mxu0 %v6923_v14  ;;  %v6942_v1 = vld [vmem:[#allocation4 + $0xb8] sm:$0xff] }
 0x54f   : > { %6800 = vrot.lane.b32.xlu0 %v6763_v6, %s11203_s16  ;;  %8410 = vmatprep.mubr.msk.bf16.mxu0 %vm662_vm0, %v6926_v19  ;;  %v6813_v44 = vpop.permute.xlu1 %6812 }
 0x551   : > { %v6538_v46 = vpop.permute.xlu0 %6537  ;;  %6303 = vrot.lane.b32.xlu1 %v6643_v58, %s11199_s22 }
 0x552   : > { %6583 = vst.msk [vmem:[#allocation4 + $0x30] sm:$0xff] %vm6579_vm13, %v6538_v46 }
 0x553   : > { %6713 = vst.msk [vmem:[#allocation4 + $0x30] sm:$0xff] %vm6709_vm14, %v6668_v49  ;;  %v16332_v17 = vpop.permute.xlu1 %6297 }
 0x554   : > { %6842 = vst.msk [vmem:[#allocation4 + $0x30] sm:$0xff] %vm6838_vm15, %v6797_v16 }
 0x555   : > { %v6024_v50 = vpop.permute.xlu0 %6023  ;;  %6432 = vrot.lane.b32.xlu1 %v6772_v4, %s11200_s25 }
 0x556   : > { %6068 = vst.msk [vmem:[#allocation4 + $0x40] sm:$0xff] %vm6063_vm5, %v6024_v50  ;;  %v6930_v50 = vld [vmem:[#allocation4 + $0x58] sm:$0xff] }
 0x557   : > { %v6427_v32 = vpop.permute.xlu1 %6426 }
 0x559   : > { %v6286_v45 = vpop.permute.xlu0 %6285  ;;  %6561 = vrot.lane.b32.xlu1 %v16180_v15, %s11201_s30 }
 0x55b   : > { %v6925_v35 = vld [vmem:[#allocation4 + $0x30] sm:$0xff]  ;;  %v6556_v12 = vpop.permute.xlu1 %6555 }
 0x55c   : > { %7128 = vmatmul.mubr.bf16.gmra.mrb[44].mxu0 %v6925_v35 }
 0x55d   : > { %8411 = vmatprep.mubr.msk.bf16.mxu0 %vm662_vm0, %v6928_v36  ;;  %v6544_v54 = vpop.permute.xlu0 %6543  ;;  %6820 = vrot.lane.b32.xlu1 %v6773_v56, %s11203_s16 }
 0x55f   : > { %v6042_v2 = vpop.permute.xlu1 %6041 }
 0x560   : > { %6077 = vst.msk [vmem:[#allocation4 + $0xd0] sm:$0xff] %vm6063_vm5, %v6042_v2  ;;  %v6948_v2 = vld [vmem:[#allocation4 + $0xe8] sm:$0xff] }
 0x561   : > { %v6159_v62 = vpop.permute.xlu0 %6158 }
 0x562   : > { %6200 = vst.msk [vmem:[#allocation4 + $0x70] sm:$0xff] %vm6192_vm6, %v6159_v62 }
 0x563   : > { %6329 = vst.msk [vmem:[#allocation4 + $0x70] sm:$0xff] %vm6321_vm11, %v16215_v59  ;;  %v6171_v15 = vpop.permute.xlu1 %6170 }
 0x564   : > { %6206 = vst.msk [vmem:[#allocation4 + $0xd0] sm:$0xff] %vm6192_vm6, %v6171_v15 }
 0x565   : > { %v6028_v51 = vpop.permute.xlu0 %6027 }
 0x566   : > { %6070 = vst.msk [vmem:[#allocation4 + $0x60] sm:$0xff] %vm6063_vm5, %v6028_v51 }
 0x567   : > { %6199 = vst.msk [vmem:[#allocation4 + $0x60] sm:$0xff] %vm6192_vm6, %v16178_v63  ;;  %v6682_v3 = vpop.permute.xlu1 %6681 }
 0x568   : > { %6328 = vst.msk [vmem:[#allocation4 + $0x60] sm:$0xff] %vm6321_vm11, %v6286_v45  ;;  %v6946_v45 = vld [vmem:[#allocation4 + $0xd8] sm:$0xff] }
 0x569   : > { %6457 = vst.msk [vmem:[#allocation4 + $0x60] sm:$0xff] %vm6450_vm12, %v16166_v26  ;;  %v6676_v8 = vpop.permute.xlu0 %6675 }
 0x56a   : > { %6720 = vst.msk [vmem:[#allocation4 + $0xa0] sm:$0xff] %vm6709_vm14, %v6682_v3 }
 0x56b   : > { %6586 = vst.msk [vmem:[#allocation4 + $0x60] sm:$0xff] %vm6579_vm13, %v6544_v54  ;;  %v6811_v59 = vpop.permute.xlu1 %6810 }
 0x56c   : > { %6716 = vst.msk [vmem:[#allocation4 + $0x60] sm:$0xff] %vm6709_vm14, %v16208_v22 }
 0x56d   : > { %v6290_v39 = vpop.permute.xlu0 %6289  ;;  %6849 = vst.msk [vmem:[#allocation4 + $0xa0] sm:$0xff] %vm6838_vm15, %v6811_v59  ;;  %v6950_v59 = vld [vmem:[#allocation4 + $0xf8] sm:$0xff] }
 0x56f   : > { %v6296_v37 = vpop.permute.xlu1 %6295 }
 0x570   : > { %6333 = vst.msk [vmem:[#allocation4 + $0xb0] sm:$0xff] %vm6321_vm11, %v6296_v37 }
 0x571   : > { %v6548_v63 = vpop.permute.xlu0 %6547 }
 0x573   : > { %v6425_v30 = vpop.permute.xlu1 %6424 }
 0x574   : > { %6462 = vst.msk [vmem:[#allocation4 + $0xb0] sm:$0xff] %vm6450_vm12, %v6425_v30  ;;  %v6939_v4 = vld [vmem:[#allocation4 + $0xa0] sm:$0xff] }
 0x575   : > { %v6163_v48 = vpop.permute.xlu0 %6162 }
 0x576   : > { %6202 = vst.msk [vmem:[#allocation4 + $0x90] sm:$0xff] %vm6192_vm6, %v6163_v48 }
 0x577   : > { %6331 = vst.msk [vmem:[#allocation4 + $0x90] sm:$0xff] %vm6321_vm11, %v16287_v57  ;;  %v6554_v26 = vpop.permute.xlu1 %6553 }
 0x578   : > { %6591 = vst.msk [vmem:[#allocation4 + $0xb0] sm:$0xff] %vm6579_vm13, %v6554_v26 }
 0x579   : > { %v6803_v7 = vpop.permute.xlu0 %6802  ;;  %6721 = vst.msk [vmem:[#allocation4 + $0xb0] sm:$0xff] %vm6709_vm14, %v16322_v23 }
 0x57a   : > { %6845 = vst.msk [vmem:[#allocation4 + $0x60] sm:$0xff] %vm6838_vm15, %v6803_v7  ;;  %6850 = vst.msk [vmem:[#allocation4 + $0xb0] sm:$0xff] %vm6838_vm15, %v6813_v44  ;;  %v16440_v7 = vld [vmem:[#allocation17] ss:$0 sm:$0xff] }
 0x57b   : > { %v6040_v22 = vpop.permute.xlu1 %6039 }
 0x57c   : > { %6076 = vst.msk [vmem:[#allocation4 + $0xc0] sm:$0xff] %vm6063_vm5, %v6040_v22 }
 0x57d   : > { %v6417_v33 = vpop.permute.xlu0 %6416 }
 0x57e   : > { %6458 = vst.msk [vmem:[#allocation4 + $0x70] sm:$0xff] %vm6450_vm12, %v6417_v33  ;;  %v16442_v33 = vld [vmem:[#allocation19] ss:$0 sm:$0xff] }
 0x57f   : > { %6587 = vst.msk [vmem:[#allocation4 + $0x70] sm:$0xff] %vm6579_vm13, %v16223_v40  ;;  %v6169_v57 = vpop.permute.xlu1 %6168 }
 0x580   : > { %6717 = vst.msk [vmem:[#allocation4 + $0x70] sm:$0xff] %vm6709_vm14, %v6676_v8 }
 0x581   : > { %6846 = vst.msk [vmem:[#allocation4 + $0x70] sm:$0xff] %vm6838_vm15, %v16189_v29  ;;  %v6032_v49 = vpop.permute.xlu0 %6031  ;;  %v6931_v16 = vld [vmem:[#allocation4 + $0x60] sm:$0xff]  ;;  %v6941_v46 = vld [vmem:[#allocation4 + $0xb0] sm:$0xff] }
 0x582   : > { %6205 = vst.msk [vmem:[#allocation4 + $0xc0] sm:$0xff] %vm6192_vm6, %v6169_v57  ;;  %7152 = vmatmul.mubr.bf16.vlgmr.msra.gmra.mrb[0].mxu1 %v6931_v16 }
 0x583   : > { %6072 = vst.msk [vmem:[#allocation4 + $0x80] sm:$0xff] %vm6063_vm5, %v6032_v49  ;;  %8414 = vmatprep.mubr.msk.bf16.mxu1 %vm662_vm0, %v6934_v25  ;;  %v6686_v29 = vpop.permute.xlu1 %6685 }
 0x584   : > { %6334 = vst.msk [vmem:[#allocation4 + $0xc0] sm:$0xff] %vm6321_vm11, %v16332_v17 }
 0x585   : > { %6201 = vst.msk [vmem:[#allocation4 + $0x80] sm:$0xff] %vm6192_vm6, %v16229_v20  ;;  %v6680_v40 = vpop.permute.xlu0 %6679 }
 0x586   : > { %6463 = vst.msk [vmem:[#allocation4 + $0xc0] sm:$0xff] %vm6450_vm12, %v6427_v32 }
 0x587   : > { %6330 = vst.msk [vmem:[#allocation4 + $0x80] sm:$0xff] %vm6321_vm11, %v6290_v39  ;;  %v6815_v21 = vpop.permute.xlu1 %6814 }
 0x588   : > { %6592 = vst.msk [vmem:[#allocation4 + $0xc0] sm:$0xff] %vm6579_vm13, %v6556_v12  ;;  %v6933_v20 = vld [vmem:[#allocation4 + $0x70] sm:$0xff] }
 0x589   : > { %6459 = vst.msk [vmem:[#allocation4 + $0x80] sm:$0xff] %vm6450_vm12, %v16196_v13  ;;  %v6807_v18 = vpop.permute.xlu0 %6806 }
 0x58a   : > { %6722 = vst.msk [vmem:[#allocation4 + $0xc0] sm:$0xff] %vm6709_vm14, %v6686_v29  ;;  %7160 = vmatmul.mubr.bf16.gmra.mrb[4].mxu1 %v6933_v20 }
 0x58b   : > { %6588 = vst.msk [vmem:[#allocation4 + $0x80] sm:$0xff] %vm6579_vm13, %v6548_v63  ;;  %8415 = vmatprep.mubr.msk.bf16.mxu1 %vm662_vm0, %v6936_v31  ;;  %v6300_v13 = vpop.permute.xlu1 %6299 }
 0x58c   : > { %6718 = vst.msk [vmem:[#allocation4 + $0x80] sm:$0xff] %vm6709_vm14, %v16276_v27 }
 0x58d   : > { %6851 = vst.msk [vmem:[#allocation4 + $0xc0] sm:$0xff] %vm6838_vm15, %v6815_v21  ;;  %6847 = vst.msk [vmem:[#allocation4 + $0x80] sm:$0xff] %vm6838_vm15, %v6807_v18  ;;  %v6421_v41 = vpop.permute.xlu0 %6420 }
 0x58e   : > { %6335 = vst.msk [vmem:[#allocation4 + $0xd0] sm:$0xff] %vm6321_vm11, %v6300_v13 }
 0x58f   : > { %6460 = vst.msk [vmem:[#allocation4 + $0x90] sm:$0xff] %vm6450_vm12, %v6421_v41  ;;  %v6429_v27 = vpop.permute.xlu1 %6428 }
 0x590   : > { %6589 = vst.msk [vmem:[#allocation4 + $0x90] sm:$0xff] %vm6579_vm13, %v16300_v52 }
 0x591   : > { %6719 = vst.msk [vmem:[#allocation4 + $0x90] sm:$0xff] %vm6709_vm14, %v6680_v40  ;;  %v6153_v47 = vpop.permute.xlu0 %6152 }
 0x592   : > { %6848 = vst.msk [vmem:[#allocation4 + $0x90] sm:$0xff] %vm6838_vm15, %v16236_v42  ;;  %v6940_v42 = vld [vmem:[#allocation4 + $0xa8] sm:$0xff] }
 0x593   : > { %6464 = vst.msk [vmem:[#allocation4 + $0xd0] sm:$0xff] %vm6450_vm12, %v6429_v27  ;;  %v6558_v0 = vpop.permute.xlu1 %6557 }
 0x594   : > { %v6935_v34 = vld [vmem:[#allocation4 + $0x80] sm:$0xff]  ;;  %6197 = vst.msk [vmem:[#allocation4 + $0x40] sm:$0xff] %vm6192_vm6, %v6153_v47 }
 0x595   : > { %7168 = vmatmul.mubr.bf16.gmra.mrb[8].mxu1 %v6935_v34  ;;  %v6282_v58 = vpop.permute.xlu0 %6281  ;;  %6593 = vst.msk [vmem:[#allocation4 + $0xd0] sm:$0xff] %vm6579_vm13, %v6558_v0  ;;  %v6943_v60 = vld [vmem:[#allocation4 + $0xc0] sm:$0xff] }
 0x596   : > { %8416 = vmatprep.mubr.msk.bf16.mxu1 %vm662_vm0, %v6938_v28  ;;  %6326 = vst.msk [vmem:[#allocation4 + $0x40] sm:$0xff] %vm6321_vm11, %v6282_v58 }
 0x597   : > { %v6044_v9 = vpop.permute.xlu1 %6043 }
 0x598   : > { %6078 = vst.msk [vmem:[#allocation4 + $0xe0] sm:$0xff] %vm6063_vm5, %v6044_v9 }
 0x599   : > { %v6937_v52 = vld [vmem:[#allocation4 + $0x90] sm:$0xff]  ;;  %v6411_v55 = vpop.permute.xlu0 %6410 }
 0x59a   : > { %6455 = vst.msk [vmem:[#allocation4 + $0x40] sm:$0xff] %vm6450_vm12, %v6411_v55 }
 0x59b   : > { %v6173_v61 = vpop.permute.xlu1 %6172 }
 0x59c   : > { %6207 = vst.msk [vmem:[#allocation4 + $0xe0] sm:$0xff] %vm6192_vm6, %v6173_v61 }
 0x59d   : > { %7176 = vmatmul.mubr.bf16.gmra.mrb[12].mxu1 %v6937_v52  ;;  %v6540_v24 = vpop.permute.xlu0 %6539 }
 0x59e   : > { %8417 = vmatprep.mubr.msk.bf16.mxu1 %vm662_vm0, %v6940_v42  ;;  %6584 = vst.msk [vmem:[#allocation4 + $0x40] sm:$0xff] %vm6579_vm13, %v6540_v24 }
 0x59f   : > { %v6688_v38 = vpop.permute.xlu1 %6687 }
 0x5a0   : > { %6723 = vst.msk [vmem:[#allocation4 + $0xd0] sm:$0xff] %vm6709_vm14, %v6688_v38 }
 0x5a1   : > { %v6670_v23 = vpop.permute.xlu0 %6669 }
 0x5a2   : > { %6714 = vst.msk [vmem:[#allocation4 + $0x40] sm:$0xff] %vm6709_vm14, %v6670_v23 }
 0x5a3   : > { %v6817_v14 = vpop.permute.xlu1 %6816 }
 0x5a4   : > { %6852 = vst.msk [vmem:[#allocation4 + $0xd0] sm:$0xff] %vm6838_vm15, %v6817_v14 }
 0x5a5   : > { %7184 = vmatmul.mubr.bf16.gmra.mrb[16].mxu1 %v6939_v4  ;;  %v6799_v6 = vpop.permute.xlu0 %6798 }
 0x5a6   : > { %8418 = vmatprep.mubr.msk.bf16.mxu1 %vm662_vm0, %v6942_v1  ;;  %6843 = vst.msk [vmem:[#allocation4 + $0x40] sm:$0xff] %vm6838_vm15, %v6799_v6 }
 0x5a7   : > { %v6302_v19 = vpop.permute.xlu1 %6301 }
 0x5a8   : > { %6336 = vst.msk [vmem:[#allocation4 + $0xe0] sm:$0xff] %vm6321_vm11, %v6302_v19 }
 0x5a9   : > { %v6026_v44 = vpop.permute.xlu0 %6025 }
 0x5aa   : > { %6069 = vst.msk [vmem:[#allocation4 + $0x50] sm:$0xff] %vm6063_vm5, %v6026_v44 }
 0x5ab   : > { %v6431_v10 = vpop.permute.xlu1 %6430  ;;  %v6945_v36 = vld [vmem:[#allocation4 + $0xd0] sm:$0xff] }
 0x5ac   : > { %6465 = vst.msk [vmem:[#allocation4 + $0xe0] sm:$0xff] %vm6450_vm12, %v6431_v10 }
 0x5ad   : > { %7192 = vmatmul.mubr.bf16.gmra.mrb[20].mxu1 %v6941_v46  ;;  %v6155_v5 = vpop.permute.xlu0 %6154  ;;  %v6927_v17 = vld [vmem:[#allocation4 + $0x40] sm:$0xff] }
 0x5ae   : > { %8419 = vmatprep.mubr.msk.bf16.mxu1 %vm662_vm0, %v6944_v43  ;;  %6198 = vst.msk [vmem:[#allocation4 + $0x50] sm:$0xff] %vm6192_vm6, %v6155_v5  ;;  %7136 = vmatmul.mubr.bf16.gmra.mrb[48].mxu0 %v6927_v17 }
 0x5af   : > { %8412 = vmatprep.mubr.msk.bf16.mxu0 %vm662_vm0, %v6930_v50  ;;  %v6560_v53 = vpop.permute.xlu1 %6559 }
 0x5b0   : > { %6594 = vst.msk [vmem:[#allocation4 + $0xe0] sm:$0xff] %vm6579_vm13, %v6560_v53 }
 0x5b1   : > { %v6284_v32 = vpop.permute.xlu0 %6283 }
 0x5b2   : > { %6327 = vst.msk [vmem:[#allocation4 + $0x50] sm:$0xff] %vm6321_vm11, %v6284_v32 }
 0x5b3   : > { %v6046_v56 = vpop.permute.xlu1 %6045 }
 0x5b4   : > { %6079 = vst.msk [vmem:[#allocation4 + $0xf0] sm:$0xff] %vm6063_vm5, %v6046_v56 }
 0x5b5   : > { %7200 = vmatmul.mubr.bf16.gmra.mrb[24].mxu1 %v6943_v60  ;;  %v6413_v35 = vpop.permute.xlu0 %6412 }
 0x5b6   : > { %8420 = vmatprep.mubr.msk.bf16.mxu1 %vm662_vm0, %v6946_v45  ;;  %6456 = vst.msk [vmem:[#allocation4 + $0x50] sm:$0xff] %vm6450_vm12, %v6413_v35 }
 0x5b7   : > { %v6175_v12 = vpop.permute.xlu1 %6174 }
 0x5b8   : > { %6208 = vst.msk [vmem:[#allocation4 + $0xf0] sm:$0xff] %vm6192_vm6, %v6175_v12 }
 0x5b9   : > { %v6542_v54 = vpop.permute.xlu0 %6541 }
 0x5ba   : > { %6585 = vst.msk [vmem:[#allocation4 + $0x50] sm:$0xff] %vm6579_vm13, %v6542_v54 }
 0x5bb   : > { %v6690_v62 = vpop.permute.xlu1 %6689 }
 0x5bc   : > { %6724 = vst.msk [vmem:[#allocation4 + $0xe0] sm:$0xff] %vm6709_vm14, %v6690_v62 }
 0x5bd   : > { %7208 = vmatmul.mubr.bf16.gmra.mrb[28].mxu1 %v6945_v36  ;;  %v6672_v15 = vpop.permute.xlu0 %6671 }
 0x5be   : > { %8421 = vmatprep.mubr.msk.bf16.mxu1 %vm662_vm0, %v6948_v2  ;;  %6715 = vst.msk [vmem:[#allocation4 + $0x50] sm:$0xff] %vm6709_vm14, %v6672_v15 }
 0x5bf   : > { %v6819_v51 = vpop.permute.xlu1 %6818 }
 0x5c0   : > { %6853 = vst.msk [vmem:[#allocation4 + $0xe0] sm:$0xff] %vm6838_vm15, %v6819_v51 }
 0x5c1   : > { %v6801_v3 = vpop.permute.xlu0 %6800 }
 0x5c2   : > { %6844 = vst.msk [vmem:[#allocation4 + $0x50] sm:$0xff] %vm6838_vm15, %v6801_v3 }
 0x5c3   : > { %v6304_v8 = vpop.permute.xlu1 %6303 }
 0x5c4   : > { %6337 = vst.msk [vmem:[#allocation4 + $0xf0] sm:$0xff] %vm6321_vm11, %v6304_v8 }
 0x5c7   : > { %v6433_v39 = vpop.permute.xlu1 %6432  ;;  %v6947_v37 = vld [vmem:[#allocation4 + $0xe0] sm:$0xff] }
 0x5c8   : > { %6466 = vst.msk [vmem:[#allocation4 + $0xf0] sm:$0xff] %vm6450_vm12, %v6433_v39  ;;  %7216 = vmatmul.mubr.bf16.gmra.mrb[32].mxu1 %v6947_v37 }
 0x5c9   : > { %v6929_v63 = vld [vmem:[#allocation4 + $0x50] sm:$0xff]  ;;  %8422 = vmatprep.mubr.msk.bf16.mxu1 %vm662_vm0, %v6950_v59 }
 0x5ca   : > { %7144 = vmatmul.mubr.bf16.gmra.mrb[52].mxu0 %v6929_v63 }
 0x5cb   : > { %v6562_v30 = vpop.permute.xlu1 %6561 }
 0x5cc   : > { %6595 = vst.msk [vmem:[#allocation4 + $0xf0] sm:$0xff] %vm6579_vm13, %v6562_v30 }
 0x5cd   : > { %6725 = vst.msk [vmem:[#allocation4 + $0xf0] sm:$0xff] %vm6709_vm14, %v16294_v11 }
 0x5cf   : > { %v6821_v48 = vpop.permute.xlu1 %6820 }
 0x5d0   : > { %6854 = vst.msk [vmem:[#allocation4 + $0xf0] sm:$0xff] %vm6838_vm15, %v6821_v48 }
 0x5d7   : > { %v6949_v26 = vld [vmem:[#allocation4 + $0xf0] sm:$0xff] }
 0x5d8   : > { %7224 = vmatmul.mubr.bf16.gmra.mrb[36].mxu1 %v6949_v26 }
 0x5fd   : > { %v7105_v22 = vpop.f32.mrb[32].mxu0 }
 0x5fe   : > { %v7239_v57 = vmul.f32 %v16440_v7, %v7105_v22  ;;  %v7107_v49 = vpop.f32.mrb[33].mxu0 }
 0x5ff   : > { %v7108_v16 = vpop.f32.mrb[34].mxu0 }
 0x600   : > { %v7278_v25 = vadd.f32 %v16442_v33, %v7239_v57  ;;  %v7240_v29 = vmul.f32 %v16440_v7, %v7108_v16  ;;  %v7110_v11 = vpop.f32.mrb[35].mxu0 }
 0x602   : > { %v7310_v40 = vmax.f32 %v7278_v25, 0.0  ;;  %v7279_v20 = vadd.f32 %v16442_v33, %v7240_v29 }
 0x604   : > { %7342 = vst.msk [vmem:[%s16449_s21] sm:$0xff] %vm662_vm0, %v7310_v40  ;;  %v7311_v21 = vmax.f32 %v7279_v20, 0.0 }
 0x606   : > { %7343 = vst.msk [vmem:[%s16449_s21 + $0x8] sm:$0xff] %vm662_vm0, %v7311_v21 }
 0x60b   : > { %v7113_v18 = vpop.f32.mrb[36].mxu0 }
 0x60c   : > { %v7241_v31 = vmul.f32 %v16440_v7, %v7113_v18  ;;  %v7115_v13 = vpop.f32.mrb[37].mxu0 }
 0x60d   : > { %v7116_v41 = vpop.f32.mrb[38].mxu0 }
 0x60e   : > { %v7280_v27 = vadd.f32 %v16442_v33, %v7241_v31  ;;  %v7242_v47 = vmul.f32 %v16440_v7, %v7116_v41  ;;  %v7118_v34 = vpop.f32.mrb[39].mxu0 }
 0x610   : > { %v7312_v28 = vmax.f32 %v7280_v27, 0.0  ;;  %v7281_v0 = vadd.f32 %v16442_v33, %v7242_v47 }
 0x612   : > { %7344 = vst.msk [vmem:[%s16449_s21 + $0x10] sm:$0xff] %vm662_vm0, %v7312_v28  ;;  %v7313_v58 = vmax.f32 %v7281_v0, 0.0 }
 0x614   : > { %7345 = vst.msk [vmem:[%s16449_s21 + $0x18] sm:$0xff] %vm662_vm0, %v7313_v58 }
 0x621   : > { %v7121_v52 = vpop.f32.mrb[40].mxu0 }
 0x622   : > { %v7243_v9 = vmul.f32 %v16440_v7, %v7121_v52  ;;  %v7123_v55 = vpop.f32.mrb[41].mxu0 }
 0x623   : > { %v7124_v42 = vpop.f32.mrb[42].mxu0 }
 0x624   : > { %v7282_v61 = vadd.f32 %v16442_v33, %v7243_v9  ;;  %v7244_v24 = vmul.f32 %v16440_v7, %v7124_v42  ;;  %v7126_v38 = vpop.f32.mrb[43].mxu0 }
 0x626   : > { %v7314_v23 = vmax.f32 %v7282_v61, 0.0  ;;  %v7283_v4 = vadd.f32 %v16442_v33, %v7244_v24 }
 0x628   : > { %7346 = vst.msk [vmem:[%s16449_s21 + $0x20] sm:$0xff] %vm662_vm0, %v7314_v23  ;;  %v7315_v1 = vmax.f32 %v7283_v4, 0.0 }
 0x62a   : > { %7347 = vst.msk [vmem:[%s16449_s21 + $0x28] sm:$0xff] %vm662_vm0, %v7315_v1 }
 0x62f   : > { %v7129_v14 = vpop.f32.mrb[44].mxu0 }
 0x630   : > { %v7245_v6 = vmul.f32 %v16440_v7, %v7129_v14  ;;  %v7131_v19 = vpop.f32.mrb[45].mxu0 }
 0x631   : > { %v7132_v44 = vpop.f32.mrb[46].mxu0 }
 0x632   : > { %v7284_v46 = vadd.f32 %v16442_v33, %v7245_v6  ;;  %v7246_v43 = vmul.f32 %v16440_v7, %v7132_v44  ;;  %v7134_v10 = vpop.f32.mrb[47].mxu0 }
 0x634   : > { %v7316_v5 = vmax.f32 %v7284_v46, 0.0  ;;  %v7285_v17 = vadd.f32 %v16442_v33, %v7246_v43 }
 0x636   : > { %7348 = vst.msk [vmem:[%s16449_s21 + $0x30] sm:$0xff] %vm662_vm0, %v7316_v5  ;;  %v7317_v50 = vmax.f32 %v7285_v17, 0.0 }
 0x638   : > { %7349 = vst.msk [vmem:[%s16449_s21 + $0x38] sm:$0xff] %vm662_vm0, %v7317_v50 }
 0x655   : > { %v7153_v60 = vpop.f32.mrb[0].mxu1 }
 0x656   : > { %v7251_v53 = vmul.f32 %v16440_v7, %v7153_v60  ;;  %v7155_v32 = vpop.f32.mrb[1].mxu1 }
 0x657   : > { %v7156_v45 = vpop.f32.mrb[2].mxu1 }
 0x658   : > { %v7290_v56 = vadd.f32 %v16442_v33, %v7251_v53  ;;  %v7252_v35 = vmul.f32 %v16440_v7, %v7156_v45  ;;  %v7158_v36 = vpop.f32.mrb[3].mxu1 }
 0x65a   : > { %v7322_v12 = vmax.f32 %v7290_v56, 0.0  ;;  %v7291_v54 = vadd.f32 %v16442_v33, %v7252_v35 }
 0x65c   : > { %7354 = vst.msk [vmem:[%s16449_s21 + $0x60] sm:$0xff] %vm662_vm0, %v7322_v12  ;;  %v7323_v2 = vmax.f32 %v7291_v54, 0.0 }
 0x65d   : > { %v7161_v62 = vpop.f32.mrb[4].mxu1 }
 0x65e   : > { %7355 = vst.msk [vmem:[%s16449_s21 + $0x68] sm:$0xff] %vm662_vm0, %v7323_v2  ;;  %v7253_v15 = vmul.f32 %v16440_v7, %v7161_v62  ;;  %v7163_v51 = vpop.f32.mrb[5].mxu1 }
 0x65f   : > { %v7164_v3 = vpop.f32.mrb[6].mxu1 }
 0x660   : > { %v7292_v8 = vadd.f32 %v16442_v33, %v7253_v15  ;;  %v7254_v59 = vmul.f32 %v16440_v7, %v7164_v3  ;;  %v7166_v39 = vpop.f32.mrb[7].mxu1 }
 0x662   : > { %v7324_v37 = vmax.f32 %v7292_v8, 0.0  ;;  %v7293_v63 = vadd.f32 %v16442_v33, %v7254_v59 }
 0x664   : > { %7356 = vst.msk [vmem:[%s16449_s21 + $0x70] sm:$0xff] %vm662_vm0, %v7324_v37  ;;  %v7325_v30 = vmax.f32 %v7293_v63, 0.0 }
 0x666   : > { %7357 = vst.msk [vmem:[%s16449_s21 + $0x78] sm:$0xff] %vm662_vm0, %v7325_v30 }
 0x668   : > { %v7169_v48 = vpop.f32.mrb[8].mxu1 }
 0x669   : > { %v7255_v26 = vmul.f32 %v16440_v7, %v7169_v48  ;;  %v7171_v22 = vpop.f32.mrb[9].mxu1 }
 0x66a   : > { %v7172_v57 = vpop.f32.mrb[10].mxu1 }
 0x66b   : > { %v7294_v49 = vadd.f32 %v16442_v33, %v7255_v26  ;;  %v7256_v16 = vmul.f32 %v16440_v7, %v7172_v57  ;;  %v7174_v25 = vpop.f32.mrb[11].mxu1 }
 0x66d   : > { %v7326_v29 = vmax.f32 %v7294_v49, 0.0  ;;  %v7295_v11 = vadd.f32 %v16442_v33, %v7256_v16 }
 0x66f   : > { %7358 = vst.msk [vmem:[%s16449_s21 + $0x80] sm:$0xff] %vm662_vm0, %v7326_v29  ;;  %v7327_v40 = vmax.f32 %v7295_v11, 0.0 }
 0x670   : > { %v7177_v20 = vpop.f32.mrb[12].mxu1 }
 0x671   : > { %7359 = vst.msk [vmem:[%s16449_s21 + $0x88] sm:$0xff] %vm662_vm0, %v7327_v40  ;;  %v7257_v21 = vmul.f32 %v16440_v7, %v7177_v20  ;;  %v7179_v18 = vpop.f32.mrb[13].mxu1 }
 0x672   : > { %v7180_v31 = vpop.f32.mrb[14].mxu1 }
 0x673   : > { %v7296_v13 = vadd.f32 %v16442_v33, %v7257_v21  ;;  %v7258_v41 = vmul.f32 %v16440_v7, %v7180_v31  ;;  %v7182_v27 = vpop.f32.mrb[15].mxu1 }
 0x675   : > { %v7328_v47 = vmax.f32 %v7296_v13, 0.0  ;;  %v7297_v34 = vadd.f32 %v16442_v33, %v7258_v41 }
 0x677   : > { %7360 = vst.msk [vmem:[%s16449_s21 + $0x90] sm:$0xff] %vm662_vm0, %v7328_v47  ;;  %v7329_v28 = vmax.f32 %v7297_v34, 0.0 }
 0x678   : > { %v7185_v0 = vpop.f32.mrb[16].mxu1 }
 0x679   : > { %7361 = vst.msk [vmem:[%s16449_s21 + $0x98] sm:$0xff] %vm662_vm0, %v7329_v28  ;;  %v7259_v58 = vmul.f32 %v16440_v7, %v7185_v0  ;;  %v7187_v52 = vpop.f32.mrb[17].mxu1 }
 0x67a   : > { %v7188_v9 = vpop.f32.mrb[18].mxu1 }
 0x67b   : > { %v7298_v55 = vadd.f32 %v16442_v33, %v7259_v58  ;;  %v7260_v42 = vmul.f32 %v16440_v7, %v7188_v9  ;;  %v7190_v61 = vpop.f32.mrb[19].mxu1 }
 0x67d   : > { %v7330_v24 = vmax.f32 %v7298_v55, 0.0  ;;  %v7299_v38 = vadd.f32 %v16442_v33, %v7260_v42 }
 0x67f   : > { %7362 = vst.msk [vmem:[%s16449_s21 + $0xa0] sm:$0xff] %vm662_vm0, %v7330_v24  ;;  %v7331_v23 = vmax.f32 %v7299_v38, 0.0 }
 0x680   : > { %v7193_v4 = vpop.f32.mrb[20].mxu1 }
 0x681   : > { %7363 = vst.msk [vmem:[%s16449_s21 + $0xa8] sm:$0xff] %vm662_vm0, %v7331_v23  ;;  %v7261_v1 = vmul.f32 %v16440_v7, %v7193_v4  ;;  %v7195_v14 = vpop.f32.mrb[21].mxu1  ;;  %v7137_v43 = vpop.f32.mrb[48].mxu0 }
 0x682   : > { %v7196_v6 = vpop.f32.mrb[22].mxu1  ;;  %v7247_v17 = vmul.f32 %v16440_v7, %v7137_v43  ;;  %v7139_v50 = vpop.f32.mrb[49].mxu0 }
 0x683   : > { %v7300_v19 = vadd.f32 %v16442_v33, %v7261_v1  ;;  %v7262_v44 = vmul.f32 %v16440_v7, %v7196_v6  ;;  %v7198_v46 = vpop.f32.mrb[23].mxu1  ;;  %v7140_v60 = vpop.f32.mrb[50].mxu0 }
 0x684   : > { %v7286_v32 = vadd.f32 %v16442_v33, %v7247_v17  ;;  %v7248_v45 = vmul.f32 %v16440_v7, %v7140_v60  ;;  %v7142_v56 = vpop.f32.mrb[51].mxu0 }
 0x685   : > { %v7332_v10 = vmax.f32 %v7300_v19, 0.0  ;;  %v7301_v5 = vadd.f32 %v16442_v33, %v7262_v44 }
 0x686   : > { %v7318_v36 = vmax.f32 %v7286_v32, 0.0  ;;  %v7287_v12 = vadd.f32 %v16442_v33, %v7248_v45 }
 0x687   : > { %7364 = vst.msk [vmem:[%s16449_s21 + $0xb0] sm:$0xff] %vm662_vm0, %v7332_v10  ;;  %v7333_v53 = vmax.f32 %v7301_v5, 0.0 }
 0x688   : > { %v7201_v35 = vpop.f32.mrb[24].mxu1  ;;  %7350 = vst.msk [vmem:[%s16449_s21 + $0x40] sm:$0xff] %vm662_vm0, %v7318_v36  ;;  %v7319_v15 = vmax.f32 %v7287_v12, 0.0 }
 0x689   : > { %7365 = vst.msk [vmem:[%s16449_s21 + $0xb8] sm:$0xff] %vm662_vm0, %v7333_v53  ;;  %v7263_v54 = vmul.f32 %v16440_v7, %v7201_v35  ;;  %v7203_v2 = vpop.f32.mrb[25].mxu1 }
 0x68a   : > { %v7204_v62 = vpop.f32.mrb[26].mxu1  ;;  %7351 = vst.msk [vmem:[%s16449_s21 + $0x48] sm:$0xff] %vm662_vm0, %v7319_v15 }
 0x68b   : > { %v7302_v51 = vadd.f32 %v16442_v33, %v7263_v54  ;;  %v7264_v3 = vmul.f32 %v16440_v7, %v7204_v62  ;;  %v7206_v8 = vpop.f32.mrb[27].mxu1 }
 0x68d   : > { %v7334_v59 = vmax.f32 %v7302_v51, 0.0  ;;  %v7303_v39 = vadd.f32 %v16442_v33, %v7264_v3 }
 0x68f   : > { %7366 = vst.msk [vmem:[%s16449_s21 + $0xc0] sm:$0xff] %vm662_vm0, %v7334_v59  ;;  %v7335_v37 = vmax.f32 %v7303_v39, 0.0 }
 0x690   : > { %v7209_v63 = vpop.f32.mrb[28].mxu1 }
 0x691   : > { %7367 = vst.msk [vmem:[%s16449_s21 + $0xc8] sm:$0xff] %vm662_vm0, %v7335_v37  ;;  %v7265_v30 = vmul.f32 %v16440_v7, %v7209_v63  ;;  %v7211_v48 = vpop.f32.mrb[29].mxu1 }
 0x692   : > { %v7212_v26 = vpop.f32.mrb[30].mxu1 }
 0x693   : > { %v7304_v22 = vadd.f32 %v16442_v33, %v7265_v30  ;;  %v7266_v57 = vmul.f32 %v16440_v7, %v7212_v26  ;;  %v7214_v49 = vpop.f32.mrb[31].mxu1 }
 0x695   : > { %v7336_v16 = vmax.f32 %v7304_v22, 0.0  ;;  %v7305_v25 = vadd.f32 %v16442_v33, %v7266_v57 }
 0x697   : > { %7368 = vst.msk [vmem:[%s16449_s21 + $0xd0] sm:$0xff] %vm662_vm0, %v7336_v16  ;;  %v7337_v29 = vmax.f32 %v7305_v25, 0.0 }
 0x699   : > { %7369 = vst.msk [vmem:[%s16449_s21 + $0xd8] sm:$0xff] %vm662_vm0, %v7337_v29 }
 0x69b   : > { %v7217_v11 = vpop.f32.mrb[32].mxu1 }
 0x69c   : > { %v7267_v20 = vmul.f32 %v16440_v7, %v7217_v11  ;;  %v7219_v21 = vpop.f32.mrb[33].mxu1 }
 0x69d   : > { %v7145_v40 = vpop.f32.mrb[52].mxu0  ;;  %v7220_v13 = vpop.f32.mrb[34].mxu1 }
 0x69e   : > { %v7249_v18 = vmul.f32 %v16440_v7, %v7145_v40  ;;  %v7147_v31 = vpop.f32.mrb[53].mxu0  ;;  %v7306_v27 = vadd.f32 %v16442_v33, %v7267_v20  ;;  %v7268_v47 = vmul.f32 %v16440_v7, %v7220_v13  ;;  %v7222_v34 = vpop.f32.mrb[35].mxu1 }
 0x69f   : > { %v7148_v41 = vpop.f32.mrb[54].mxu0 }
 0x6a0   : > { %v7288_v28 = vadd.f32 %v16442_v33, %v7249_v18  ;;  %v7250_v0 = vmul.f32 %v16440_v7, %v7148_v41  ;;  %v7150_v58 = vpop.f32.mrb[55].mxu0  ;;  %v7338_v52 = vmax.f32 %v7306_v27, 0.0  ;;  %v7307_v9 = vadd.f32 %v16442_v33, %v7268_v47 }
 0x6a2   : > { %v7320_v55 = vmax.f32 %v7288_v28, 0.0  ;;  %v7289_v42 = vadd.f32 %v16442_v33, %v7250_v0  ;;  %7370 = vst.msk [vmem:[%s16449_s21 + $0xe0] sm:$0xff] %vm662_vm0, %v7338_v52  ;;  %v7339_v61 = vmax.f32 %v7307_v9, 0.0 }
 0x6a4   : > { %7352 = vst.msk [vmem:[%s16449_s21 + $0x50] sm:$0xff] %vm662_vm0, %v7320_v55  ;;  %v7321_v24 = vmax.f32 %v7289_v42, 0.0  ;;  %7371 = vst.msk [vmem:[%s16449_s21 + $0xe8] sm:$0xff] %vm662_vm0, %v7339_v61 }
 0x6a6   : > { %7353 = vst.msk [vmem:[%s16449_s21 + $0x58] sm:$0xff] %vm662_vm0, %v7321_v24 }
 0x6ab   : > { %v7225_v38 = vpop.f32.mrb[36].mxu1 }
 0x6ac   : > { %v7269_v23 = vmul.f32 %v16440_v7, %v7225_v38  ;;  %v7227_v4 = vpop.f32.mrb[37].mxu1 }
 0x6ad   : > { %v7228_v1 = vpop.f32.mrb[38].mxu1 }
 0x6ae   : > { %v7308_v14 = vadd.f32 %v16442_v33, %v7269_v23  ;;  %v7270_v6 = vmul.f32 %v16440_v7, %v7228_v1  ;;  %v7230_v19 = vpop.f32.mrb[39].mxu1 }
 0x6b0   : > { %v7340_v44 = vmax.f32 %v7308_v14, 0.0  ;;  %v7309_v46 = vadd.f32 %v16442_v33, %v7270_v6 }
 0x6b2   : > { %7372 = vst.msk [vmem:[%s16449_s21 + $0xf0] sm:$0xff] %vm662_vm0, %v7340_v44  ;;  %v7341_v43 = vmax.f32 %v7309_v46, 0.0 }
 0x6b4   : > { %7373 = vst.msk [vmem:[%s16449_s21 + $0xf8] sm:$0xff] %vm662_vm0, %v7341_v43 }
 0x6b5   : > { %11107 = shalt.err (!%p11104_p1)
}
 0x6b6   : > { %s11108_s11 = scalar_lea.hbm %s16576_s24, 4096  ;;  %s11112_s22 = scalar_lea.hbm %s17504_s18, 8192 }
 0x6b7   : > { %p11109_p11 = scmp.ne.s32.totalorder %s16576_s24, %s11108_s11  ;;  %p11113_p7 = scmp.lt.u32.totalorder %s16576_s24, %s17504_s18 }
 0x6b8   : > { %p11114_p2 = scmp.lt.u32.totalorder %s11112_s22, %s11108_s11  ;;  %p11116_p3 = scmp.lt.u32.totalorder %s11108_s11, %s16576_s24 }
 0x6b9   : > { %p11110_p0 = pnand %p11109_p11, %p17505_p5 }
 0x6ba   : > { %p11115_p6 = por %p11114_p2, %p11113_p7 }
 0x6bb   : > { %p11111_p9 = pneg %p11110_p0 }
 0x6bc   : > { %p11117_p10 = por %p11116_p3, %p11115_p6 }
 0x6be   : > { %p11118_p12 = pnand %p11117_p10, %p11111_p9 }
 0x6c0   : > { %11121 = shalt.err (!%p11118_p12)
}
 0x6c1   : > { %s11206_s16 = smov 128  }
 0x6c2   : > { %10693 = dma.vmem_to_hbm [thread:$0]  (%p17505_p5), %s16580_s1, 4096, %s16576_s24, %s7375_s19, %s11206_s16, %s11206_s16, %s11197_s5  }
 0x6c3 PF: > { %s17506_s26 = sld [smem:[#allocation28_spill]]  ;;  %s17507_s13 = sld [smem:[#allocation31_spill]] }
 0x6c4   : > { %p17509_p8 = scmp.ge.s32.totalorder %s11180_s12, 2 }
 0x6c9   : > { %s7403_s21 = sand.u32 1, %s17506_s26   ;;  %p17508_p4 = scmp.ne.s32.totalorder %s17507_s13, 0 }
 0x6ca   : > { %s7404_s4 = scalar_lea.sflag [#allocation7], %s7403_s21 }
 0x6cb   : > { %p10725_p13 = pnand %p17509_p8, %p17508_p4 }
 0x6cd   : > { %11163 = dma.done.wait (!%p10725_p13), %s7404_s4, 4096  }
 0x6ce   : > { %11165 = vsyncadd (!%p10725_p13), %s7404_s4, 4294963200  ;;  %s17510_s12 = sld [smem:[#allocation32_spill]]  ;;  %s17511_s14 = sld [smem:[#allocation29_spill]] }
 0x6cf   : > { %s17512_s11 = sld [smem:[#allocation33_spill]]  ;;  %s17513_s30 = smov %s11172_s10 }
 0x6d4   : > { %p30_p1 = scmp.ge.s32.totalorder %s17510_s12, 4   ;;  %s17514_s10 = smov %s17511_s14 }
 0x6d6   :  { %32 = sbr.rel (!%p30_p1) target bundleno = 17 (0x11), region = 192 }
 0x6dd   :  { %7409 = vsyncpa [#allocation6], 1 }
 0x6de   :  { %7411 = vsyncpa [#allocation6 + $0x1], 1 }
 0x6df   :  { %7412 = vsyncpa [#allocation9], 1 }
 0x6e0   :  { %7414 = vsyncpa [#allocation9 + $0x1], 1 }
 0x6e1   :  { %7415 = vsyncpa [#allocation12], 1 }
 0x6e2   :  { %7417 = vsyncpa [#allocation12 + $0x1], 1 }
 0x6e3   :  { %7418 = vsyncpa [#allocation15], 1 }
 0x6e4   :  { %7419 = vsyncpa [#allocation18], 1 }
 0x6e5   :  { %7420 = vsyncpa [#allocation7], 1 }
 0x6e6   :  { %7422 = vsyncpa [#allocation7 + $0x1], 1 }

</bundles_post_ra>
